<compile_context>
chip_gen: v6e
topology: v6e:2x2x1
jax: 0.10.0
libtpu: 0.0.40
codegen_flags: <defaults>
</compile_context>

<pallas_src>
import functools
import math

import jax
import jax.numpy as jnp
from jax.experimental import pallas as pl
from jax.experimental.pallas import tpu as pltpu


def _mm(a, b, *, ta=False, tb=False):
    """2-D matmul on the MXU with optional logical operand transposes.

    If operand dtypes differ (f32 vs bf16) both are cast to bf16: the MXU at
    default precision does a single bf16 pass anyway, so this loses nothing
    while keeping lax.dot_general's dtype requirements satisfied.
    """
    if a.dtype != b.dtype:
        a = a.astype(jnp.bfloat16)
        b = b.astype(jnp.bfloat16)
    dims = (((0,) if ta else (1,), (1,) if tb else (0,)), ((), ()))
    return jax.lax.dot_general(a, b, dims, preferred_element_type=jnp.float32)


def _hamburger_kernel(x_ref, w_in_ref, b_in_ref, w_out_ref, b_out_ref,
                      bases_ref, o_ref, *, steps, eps, n_valid):
    f32 = jnp.float32
    x = x_ref[0].astype(f32)                  # (C, Np)  residual input
    w_in = w_in_ref[...].astype(f32)          # (C, C)
    w_out = w_out_ref[...].astype(f32)        # (C, C)
    b_in = b_in_ref[...].astype(f32)          # (C, 1)
    b_out = b_out_ref[...].astype(f32)        # (C, 1)

    n_pad = x.shape[-1]
    padded = n_valid < n_pad
    if padded:
        lane = jax.lax.broadcasted_iota(jnp.int32, (1, n_pad), 1)
        valid = lane < n_valid                # (1, Np) lane mask

    # ---- ham_in: 1x1 conv + bias, ReLU.  z (D, N) is only an MXU operand from
    # here on, so keep it in bf16 (no precision loss vs default MXU precision).
    z_f32 = jnp.maximum(_mm(w_in, x) + b_in, 0.0)
    if padded:
        z_f32 = jnp.where(valid, z_f32, 0.0)  # padded tokens contribute nothing
    z = z_f32.astype(jnp.bfloat16)            # (C, Np)

    bases = bases_ref[0].astype(f32)          # (D, R), columns L2-normalized

    # ---- coef init: softmax over R of (bases^T z); coef is kept transposed as
    # (R, Np) so the big per-step outputs and elementwise chains are lane-dense.
    # inv_t == 1 for NMF2D.
    logits = _mm(bases, z, ta=True)           # (R, Np)
    logits = logits - jnp.max(logits, axis=0, keepdims=True)
    e = jnp.exp(logits)
    # approx reciprocal is safe here: any per-column scale error is immediately
    # corrected by the first multiplicative update.
    coef = e * pl.reciprocal(jnp.sum(e, axis=0, keepdims=True), approx=True)
    if padded:
        coef = jnp.where(valid, coef, 0.0)    # keep padded tokens out of MU

    # ---- multiplicative-update iterations (NMF2D.local_step), transposed form.
    def mu_step(_, carry):
        bases, coef = carry
        # coef update: lane-dense (R, Np) outputs.
        num = _mm(bases, z, ta=True)                       # (R, Np)
        den = _mm(_mm(bases, bases, ta=True), coef)        # (R,R)@(R,Np)
        coef = coef * num / (den + eps)     # exact div: approx recip compounds
        # bases update: small (D, R) outputs.
        num = _mm(z, coef, tb=True)                        # (D, R) = z @ coef^T
        den = _mm(bases, _mm(coef, coef, tb=True))         # (D,R)@(R,R)
        bases = bases * num / (den + eps)
        return bases, coef

    bases, coef = jax.lax.fori_loop(0, steps, mu_step, (bases, coef),
                                    unroll=True)

    # ---- compute_coef: one final coef refresh.
    num = _mm(bases, z, ta=True)
    den = _mm(_mm(bases, bases, ta=True), coef)
    coef = coef * num / (den + eps)

    # ---- reconstruction: bases @ coef -> (D, Np), natural form (no transpose).
    rec = _mm(bases, coef)

    # ---- ham_out: 1x1 conv + bias, residual add, final ReLU.
    y = _mm(w_out, rec) + b_out
    o_ref[0] = jnp.maximum(x + y, 0.0).astype(o_ref.dtype)


def _vmem_capacity_bytes():
    """Physical per-core VMEM, queried at trace time (per-generation limits)."""
    try:
        info = pltpu.get_tpu_info()
        cap = getattr(info, "vmem_capacity_bytes", None)
        if cap:
            return int(cap)
    except Exception:
        pass
    return 128 * 1024 * 1024  # v5e / v6e default if the query is unavailable


def _big_block_spec(shape, index_map, *, single_buffer):
    """BlockSpec for the large activation tiles, optionally single-buffered."""
    if single_buffer:
        try:
            return pl.BlockSpec(shape, index_map, pipeline_mode=pl.Buffered(1))
        except Exception:
            pass  # older jax without pipeline_mode / Buffered: default buffers
    return pl.BlockSpec(shape, index_map)


def hamburger_pallas(x, w_in, b_in, w_out, b_out, bases0, *, steps=6,
                     eps=1e-6):
    """Fused Hamburger forward.

    Args:
      x:      (B, C, H, W) input feature map.
      w_in:   (C, C)   ham_in 1x1 conv weight (torch weight[:, :, 0, 0]).
      b_in:   (C,)     ham_in bias.
      w_out:  (C, C)   ham_out 1x1 conv weight.
      b_out:  (C,)     ham_out bias.
      bases0: (B, C, R) initial NMF bases, L2-normalized along C.
      steps:  MU iterations (train_steps=6, eval_steps=7 in the torch module).
    Returns: (B, C, H, W)
    """
    B, C, H, W = x.shape
    N = H * W
    R = bases0.shape[-1]
    assert bases0.shape == (B, C, R)

    # Lane-dense blocks: pad N up to a multiple of 128; padded tokens are
    # masked inside the kernel so the math on real tokens is unchanged.
    n_pad = ((N + 127) // 128) * 128
    x_flat = x.reshape(B, C, N)               # free reshape, no HBM pass
    if n_pad != N:
        x_flat = jnp.pad(x_flat, ((0, 0), (0, 0), (0, n_pad - N)))

    b_in2 = b_in.reshape(C, 1)
    b_out2 = b_out.reshape(C, 1)

    # ---- per-generation VMEM budget ----------------------------------------
    cap = _vmem_capacity_bytes()
    small_vmem = cap <= 80 * 1024 * 1024              # v7x-class (64 MiB) part
    ceiling = cap - 12 * 1024 * 1024 if small_vmem else int(cap * 0.85)

    itemsize = jnp.dtype(x.dtype).itemsize
    tile_bytes = C * n_pad * itemsize
    # Single-buffer the big activation blocks only on small-VMEM parts where
    # the extra buffers would cost a meaningful VMEM fraction (>12.5%): the
    # per-step MXU chain dwarfs the tile DMA, so double-buffering hides nothing.
    single_buffer_big = small_vmem and (2 * tile_bytes > cap // 8)
    n_big_bufs = 1 if single_buffer_big else 2

    # Live-set estimate (f32 unless noted) + 20% headroom.  The 32 MiB floor
    # only matters for toy shapes, where nothing else contends for VMEM.
    f32b = 4
    live = (3 * f32b * C * n_pad        # x (f32 copy), rec, y
            + 2 * C * n_pad             # z (bf16)
            + 6 * f32b * R * n_pad      # coef / num / den / logits / e + casts
            + 5 * f32b * C * R          # bases, bases-update num/den, copies
            + 3 * f32b * C * C          # w_in, w_out (+ cast copy)
            + 3 * f32b * R * R)         # grams
    bufs = (2 * n_big_bufs * tile_bytes                       # x in + out
            + 2 * itemsize * (2 * C * C + 2 * C + C * R))     # weights/bases
    est = int(1.2 * (live + bufs)) + (2 << 20)
    vmem_limit = int(max(32 * 1024 * 1024, min(est, ceiling)))

    kernel = functools.partial(_hamburger_kernel, steps=steps, eps=eps,
                               n_valid=N)

    out_flat = pl.pallas_call(
        kernel,
        out_shape=jax.ShapeDtypeStruct((B, C, n_pad), x.dtype),
        grid=(B,),
        in_specs=[
            _big_block_spec((1, C, n_pad), lambda b: (b, 0, 0),
                            single_buffer=single_buffer_big),   # x
            pl.BlockSpec((C, C), lambda b: (0, 0)),             # w_in
            pl.BlockSpec((C, 1), lambda b: (0, 0)),             # b_in
            pl.BlockSpec((C, C), lambda b: (0, 0)),             # w_out
            pl.BlockSpec((C, 1), lambda b: (0, 0)),             # b_out
            pl.BlockSpec((1, C, R), lambda b: (b, 0, 0)),       # bases0
        ],
        out_specs=_big_block_spec((1, C, n_pad), lambda b: (b, 0, 0),
                                  single_buffer=single_buffer_big),
        compiler_params=pltpu.CompilerParams(
            # NOTE: on v7x (2 TCs/chip) this only uses both cores when B >= 2.
            dimension_semantics=("parallel",),
            vmem_limit_bytes=vmem_limit,
        ),
    )(x_flat, w_in, b_in2, w_out, b_out2, bases0)

    if n_pad != N:
        out_flat = out_flat[:, :, :N]
    return out_flat.reshape(B, C, H, W)


def _reference_hamburger(x, w_in, b_in, w_out, b_out, bases0, steps=6,
                         eps=1e-6):
    """Pure-JAX reference mirroring the PyTorch Hamburger/NMF2D math."""
    B, C, H, W = x.shape
    N = H * W
    hp = jax.lax.Precision.HIGHEST
    f32 = jnp.float32

    def one(xb, basesb):
        xb = xb.reshape(C, N).astype(f32)                       # (D, N)
        z = jnp.dot(w_in.astype(f32), xb, precision=hp) + b_in.astype(f32)[:, None]
        z = jnp.maximum(z, 0.0)
        bases = basesb.astype(f32)                              # (D, R)
        coef = jax.nn.softmax(jnp.dot(z.T, bases, precision=hp), axis=-1)
        for _ in range(steps):
            num = jnp.dot(z.T, bases, precision=hp)
            den = jnp.dot(coef, jnp.dot(bases.T, bases, precision=hp),
                          precision=hp)
            coef = coef * num / (den + eps)
            num = jnp.dot(z, coef, precision=hp)
            den = jnp.dot(bases, jnp.dot(coef.T, coef, precision=hp),
                          precision=hp)
            bases = bases * num / (den + eps)
        num = jnp.dot(z.T, bases, precision=hp)
        den = jnp.dot(coef, jnp.dot(bases.T, bases, precision=hp), precision=hp)
        coef = coef * num / (den + eps)
        rec = jnp.dot(bases, coef.T, precision=hp)               # (D, N)
        y = jnp.dot(w_out.astype(f32), rec, precision=hp) + b_out.astype(f32)[:, None]
        return jnp.maximum(xb + y, 0.0).reshape(C, H, W)

    return jax.vmap(one)(x, bases0).astype(x.dtype)


if __name__ == "__main__":
    # Small but lane/sublane friendly stand-in for ham_channels=512 defaults.
    B, C, H, W, R = 2, 128, 16, 16, 64
    steps = 6   # NMF2D train_steps (default nn.Module training state)

    key = jax.random.PRNGKey(0)
    kx, k1, k2, k3, k4, kb, kx2 = jax.random.split(key, 7)

    x = jax.random.normal(kx, (B, C, H, W), dtype=jnp.float32)
    scale = 1.0 / math.sqrt(C)
    w_in = jax.random.normal(k1, (C, C), dtype=jnp.float32) * scale
    b_in = jax.random.normal(k2, (C,), dtype=jnp.float32) * 0.1
    w_out = jax.random.normal(k3, (C, C), dtype=jnp.float32) * scale
    b_out = jax.random.normal(k4, (C,), dtype=jnp.float32) * 0.1

    # NMF2D._build_bases: uniform random, L2-normalized along D (= C).
    bases_raw = jax.random.uniform(kb, (B, C, R), dtype=jnp.float32)
    bases0 = bases_raw / jnp.maximum(
        jnp.linalg.norm(bases_raw, axis=1, keepdims=True), 1e-12)

    out = hamburger_pallas(x, w_in, b_in, w_out, b_out, bases0, steps=steps)
    out = jax.block_until_ready(out)
    ref = _reference_hamburger(x, w_in, b_in, w_out, b_out, bases0, steps=steps)
    assert out.shape == (B, C, H, W)
    assert jnp.allclose(out, ref, atol=1e-2, rtol=1e-2), (
        float(jnp.max(jnp.abs(out - ref))))

    # Exercise the pad+mask path (N = 100 not a multiple of 128).
    H2 = W2 = 10
    x2 = jax.random.normal(kx2, (B, C, H2, W2), dtype=jnp.float32)
    out2 = hamburger_pallas(x2, w_in, b_in, w_out, b_out, bases0, steps=steps)
    out2 = jax.block_until_ready(out2)
    ref2 = _reference_hamburger(x2, w_in, b_in, w_out, b_out, bases0,
                                steps=steps)
    assert out2.shape == (B, C, H2, W2)
    assert jnp.allclose(out2, ref2, atol=1e-2, rtol=1e-2), (
        float(jnp.max(jnp.abs(out2 - ref2))))

    print("KERNEL_OK")
</pallas_src>

<mosaic_0001>
module attributes {stable_mosaic.version = 11 : i64} {
  func.func @_hamburger_kernel(%arg0: i32, %arg1: memref<1x128x256xf32, #tpu.memory_space<vmem>>, %arg2: memref<128x128xf32, #tpu.memory_space<vmem>>, %arg3: memref<128x1xf32, #tpu.memory_space<vmem>>, %arg4: memref<128x128xf32, #tpu.memory_space<vmem>>, %arg5: memref<128x1xf32, #tpu.memory_space<vmem>>, %arg6: memref<1x128x64xf32, #tpu.memory_space<vmem>>, %arg7: memref<1x128x256xf32, #tpu.memory_space<vmem>>) attributes {dimension_semantics = [#tpu.dimension_semantics<parallel>], iteration_bounds = array<i64: 2>, scalar_prefetch = 0 : i64, scratch_operands = 0 : i64, tpu.core_type = #tpu.core_type<tc>, window_params = [{transform_indices = @transform_0, window_bounds = array<i64: 1, 128, 256>}, {pipeline_mode = #tpu.pipeline_mode<synchronous>, transform_indices = @transform_1, window_bounds = array<i64: 128, 128>}, {pipeline_mode = #tpu.pipeline_mode<synchronous>, transform_indices = @transform_2, window_bounds = array<i64: 128, 1>}, {pipeline_mode = #tpu.pipeline_mode<synchronous>, transform_indices = @transform_3, window_bounds = array<i64: 128, 128>}, {pipeline_mode = #tpu.pipeline_mode<synchronous>, transform_indices = @transform_4, window_bounds = array<i64: 128, 1>}, {transform_indices = @transform_5, window_bounds = array<i64: 1, 128, 64>}, {transform_indices = @transform_6, window_bounds = array<i64: 1, 128, 256>}]} {
    %c0 = arith.constant 0 : index
    %c0_0 = arith.constant 0 : index
    %c0_1 = arith.constant 0 : index
    %0 = vector.load %arg1[%c0, %c0_0, %c0_1] : memref<1x128x256xf32, #tpu.memory_space<vmem>>, vector<1x128x256xf32>
    %1 = vector.shape_cast %0 : vector<1x128x256xf32> to vector<128x256xf32>
    %c0_2 = arith.constant 0 : index
    %c0_3 = arith.constant 0 : index
    %2 = vector.load %arg2[%c0_2, %c0_3] : memref<128x128xf32, #tpu.memory_space<vmem>>, vector<128x128xf32>
    %c0_4 = arith.constant 0 : index
    %c0_5 = arith.constant 0 : index
    %3 = vector.load %arg4[%c0_4, %c0_5] : memref<128x128xf32, #tpu.memory_space<vmem>>, vector<128x128xf32>
    %c0_6 = arith.constant 0 : index
    %c0_7 = arith.constant 0 : index
    %4 = vector.load %arg3[%c0_6, %c0_7] : memref<128x1xf32, #tpu.memory_space<vmem>>, vector<128x1xf32>
    %c0_8 = arith.constant 0 : index
    %c0_9 = arith.constant 0 : index
    %5 = vector.load %arg5[%c0_8, %c0_9] : memref<128x1xf32, #tpu.memory_space<vmem>>, vector<128x1xf32>
    %cst = arith.constant dense<0.000000e+00> : vector<128x256xf32>
    %6 = tpu.matmul %2, %1, %cst {dimension_numbers = #tpu.dot_dimension_numbers<[1], [0], [0], [1], [0, 0, 1, 1], [], []>} : vector<128x128xf32>, vector<128x256xf32>, vector<128x256xf32> -> vector<128x256xf32>
    %7 = vector.broadcast %4 : vector<128x1xf32> to vector<128x256xf32>
    %8 = arith.addf %6, %7 : vector<128x256xf32>
    %cst_10 = arith.constant 0.000000e+00 : f32
    %9 = vector.broadcast %cst_10 : f32 to vector<128x256xf32>
    %10 = arith.maximumf %8, %9 : vector<128x256xf32>
    %11 = arith.truncf %10 : vector<128x256xf32> to vector<128x256xbf16>
    %c0_11 = arith.constant 0 : index
    %c0_12 = arith.constant 0 : index
    %c0_13 = arith.constant 0 : index
    %12 = vector.load %arg6[%c0_11, %c0_12, %c0_13] : memref<1x128x64xf32, #tpu.memory_space<vmem>>, vector<1x128x64xf32>
    %13 = vector.shape_cast %12 : vector<1x128x64xf32> to vector<128x64xf32>
    %14 = arith.truncf %13 : vector<128x64xf32> to vector<128x64xbf16>
    %cst_14 = arith.constant dense<0.000000e+00> : vector<64x256xf32>
    %15 = tpu.matmul %14, %11, %cst_14 {dimension_numbers = #tpu.dot_dimension_numbers<[0], [0], [1], [1], [0, 1, 1, 1], [], []>} : vector<128x64xbf16>, vector<128x256xbf16>, vector<64x256xf32> -> vector<64x256xf32>
    %cst_15 = arith.constant dense<0xFF800000> : vector<256xf32>
    %16 = vector.multi_reduction <maximumf>, %15, %cst_15 [0] : vector<64x256xf32> to vector<256xf32>
    %17 = vector.shape_cast %16 : vector<256xf32> to vector<1x256xf32>
    %18 = vector.broadcast %17 : vector<1x256xf32> to vector<64x256xf32>
    %19 = arith.subf %15, %18 : vector<64x256xf32>
    %20 = math.exp %19 : vector<64x256xf32>
    %cst_16 = arith.constant dense<0.000000e+00> : vector<256xf32>
    %21 = vector.multi_reduction <add>, %20, %cst_16 [0] : vector<64x256xf32> to vector<256xf32>
    %22 = vector.shape_cast %21 : vector<256xf32> to vector<1x256xf32>
    %23 = tpu.reciprocal %22 {approx = true} : vector<1x256xf32> -> vector<1x256xf32>
    %24 = vector.broadcast %23 : vector<1x256xf32> to vector<64x256xf32>
    %25 = arith.mulf %20, %24 : vector<64x256xf32>
    %c0_i32 = arith.constant 0 : i32
    %26 = arith.truncf %13 : vector<128x64xf32> to vector<128x64xbf16>
    %cst_17 = arith.constant dense<0.000000e+00> : vector<64x256xf32>
    %27 = tpu.matmul %26, %11, %cst_17 {dimension_numbers = #tpu.dot_dimension_numbers<[0], [0], [1], [1], [0, 1, 1, 1], [], []>} : vector<128x64xbf16>, vector<128x256xbf16>, vector<64x256xf32> -> vector<64x256xf32>
    %cst_18 = arith.constant dense<0.000000e+00> : vector<64x64xf32>
    %28 = tpu.matmul %13, %13, %cst_18 {dimension_numbers = #tpu.dot_dimension_numbers<[0], [0], [1], [1], [0, 1, 1, 1], [], []>} : vector<128x64xf32>, vector<128x64xf32>, vector<64x64xf32> -> vector<64x64xf32>
    %cst_19 = arith.constant dense<0.000000e+00> : vector<64x256xf32>
    %29 = tpu.matmul %28, %25, %cst_19 {dimension_numbers = #tpu.dot_dimension_numbers<[1], [0], [0], [1], [0, 0, 1, 1], [], []>} : vector<64x64xf32>, vector<64x256xf32>, vector<64x256xf32> -> vector<64x256xf32>
    %30 = arith.mulf %25, %27 : vector<64x256xf32>
    %cst_20 = arith.constant 9.99999997E-7 : f32
    %31 = vector.broadcast %cst_20 : f32 to vector<64x256xf32>
    %32 = arith.addf %29, %31 : vector<64x256xf32>
    %33 = arith.divf %30, %32 : vector<64x256xf32>
    %34 = arith.truncf %33 : vector<64x256xf32> to vector<64x256xbf16>
    %cst_21 = arith.constant dense<0.000000e+00> : vector<128x64xf32>
    %35 = tpu.matmul %11, %34, %cst_21 {dimension_numbers = #tpu.dot_dimension_numbers<[1], [1], [0], [0], [0, 0, 1, 0], [], []>} : vector<128x256xbf16>, vector<64x256xbf16>, vector<128x64xf32> -> vector<128x64xf32>
    %cst_22 = arith.constant dense<0.000000e+00> : vector<64x64xf32>
    %36 = tpu.matmul %33, %33, %cst_22 {dimension_numbers = #tpu.dot_dimension_numbers<[1], [1], [0], [0], [0, 0, 1, 0], [], []>} : vector<64x256xf32>, vector<64x256xf32>, vector<64x64xf32> -> vector<64x64xf32>
    %cst_23 = arith.constant dense<0.000000e+00> : vector<128x64xf32>
    %37 = tpu.matmul %13, %36, %cst_23 {dimension_numbers = #tpu.dot_dimension_numbers<[1], [0], [0], [1], [0, 0, 1, 1], [], []>} : vector<128x64xf32>, vector<64x64xf32>, vector<128x64xf32> -> vector<128x64xf32>
    %38 = arith.mulf %13, %35 : vector<128x64xf32>
    %cst_24 = arith.constant 9.99999997E-7 : f32
    %39 = vector.broadcast %cst_24 : f32 to vector<128x64xf32>
    %40 = arith.addf %37, %39 : vector<128x64xf32>
    %41 = arith.divf %38, %40 : vector<128x64xf32>
    %c1_i32 = arith.constant 1 : i32
    %42 = arith.truncf %41 : vector<128x64xf32> to vector<128x64xbf16>
    %cst_25 = arith.constant dense<0.000000e+00> : vector<64x256xf32>
    %43 = tpu.matmul %42, %11, %cst_25 {dimension_numbers = #tpu.dot_dimension_numbers<[0], [0], [1], [1], [0, 1, 1, 1], [], []>} : vector<128x64xbf16>, vector<128x256xbf16>, vector<64x256xf32> -> vector<64x256xf32>
    %cst_26 = arith.constant dense<0.000000e+00> : vector<64x64xf32>
    %44 = tpu.matmul %41, %41, %cst_26 {dimension_numbers = #tpu.dot_dimension_numbers<[0], [0], [1], [1], [0, 1, 1, 1], [], []>} : vector<128x64xf32>, vector<128x64xf32>, vector<64x64xf32> -> vector<64x64xf32>
    %cst_27 = arith.constant dense<0.000000e+00> : vector<64x256xf32>
    %45 = tpu.matmul %44, %33, %cst_27 {dimension_numbers = #tpu.dot_dimension_numbers<[1], [0], [0], [1], [0, 0, 1, 1], [], []>} : vector<64x64xf32>, vector<64x256xf32>, vector<64x256xf32> -> vector<64x256xf32>
    %46 = arith.mulf %33, %43 : vector<64x256xf32>
    %cst_28 = arith.constant 9.99999997E-7 : f32
    %47 = vector.broadcast %cst_28 : f32 to vector<64x256xf32>
    %48 = arith.addf %45, %47 : vector<64x256xf32>
    %49 = arith.divf %46, %48 : vector<64x256xf32>
    %50 = arith.truncf %49 : vector<64x256xf32> to vector<64x256xbf16>
    %cst_29 = arith.constant dense<0.000000e+00> : vector<128x64xf32>
    %51 = tpu.matmul %11, %50, %cst_29 {dimension_numbers = #tpu.dot_dimension_numbers<[1], [1], [0], [0], [0, 0, 1, 0], [], []>} : vector<128x256xbf16>, vector<64x256xbf16>, vector<128x64xf32> -> vector<128x64xf32>
    %cst_30 = arith.constant dense<0.000000e+00> : vector<64x64xf32>
    %52 = tpu.matmul %49, %49, %cst_30 {dimension_numbers = #tpu.dot_dimension_numbers<[1], [1], [0], [0], [0, 0, 1, 0], [], []>} : vector<64x256xf32>, vector<64x256xf32>, vector<64x64xf32> -> vector<64x64xf32>
    %cst_31 = arith.constant dense<0.000000e+00> : vector<128x64xf32>
    %53 = tpu.matmul %41, %52, %cst_31 {dimension_numbers = #tpu.dot_dimension_numbers<[1], [0], [0], [1], [0, 0, 1, 1], [], []>} : vector<128x64xf32>, vector<64x64xf32>, vector<128x64xf32> -> vector<128x64xf32>
    %54 = arith.mulf %41, %51 : vector<128x64xf32>
    %cst_32 = arith.constant 9.99999997E-7 : f32
    %55 = vector.broadcast %cst_32 : f32 to vector<128x64xf32>
    %56 = arith.addf %53, %55 : vector<128x64xf32>
    %57 = arith.divf %54, %56 : vector<128x64xf32>
    %c2_i32 = arith.constant 2 : i32
    %58 = arith.truncf %57 : vector<128x64xf32> to vector<128x64xbf16>
    %cst_33 = arith.constant dense<0.000000e+00> : vector<64x256xf32>
    %59 = tpu.matmul %58, %11, %cst_33 {dimension_numbers = #tpu.dot_dimension_numbers<[0], [0], [1], [1], [0, 1, 1, 1], [], []>} : vector<128x64xbf16>, vector<128x256xbf16>, vector<64x256xf32> -> vector<64x256xf32>
    %cst_34 = arith.constant dense<0.000000e+00> : vector<64x64xf32>
    %60 = tpu.matmul %57, %57, %cst_34 {dimension_numbers = #tpu.dot_dimension_numbers<[0], [0], [1], [1], [0, 1, 1, 1], [], []>} : vector<128x64xf32>, vector<128x64xf32>, vector<64x64xf32> -> vector<64x64xf32>
    %cst_35 = arith.constant dense<0.000000e+00> : vector<64x256xf32>
    %61 = tpu.matmul %60, %49, %cst_35 {dimension_numbers = #tpu.dot_dimension_numbers<[1], [0], [0], [1], [0, 0, 1, 1], [], []>} : vector<64x64xf32>, vector<64x256xf32>, vector<64x256xf32> -> vector<64x256xf32>
    %62 = arith.mulf %49, %59 : vector<64x256xf32>
    %cst_36 = arith.constant 9.99999997E-7 : f32
    %63 = vector.broadcast %cst_36 : f32 to vector<64x256xf32>
    %64 = arith.addf %61, %63 : vector<64x256xf32>
    %65 = arith.divf %62, %64 : vector<64x256xf32>
    %66 = arith.truncf %65 : vector<64x256xf32> to vector<64x256xbf16>
    %cst_37 = arith.constant dense<0.000000e+00> : vector<128x64xf32>
    %67 = tpu.matmul %11, %66, %cst_37 {dimension_numbers = #tpu.dot_dimension_numbers<[1], [1], [0], [0], [0, 0, 1, 0], [], []>} : vector<128x256xbf16>, vector<64x256xbf16>, vector<128x64xf32> -> vector<128x64xf32>
    %cst_38 = arith.constant dense<0.000000e+00> : vector<64x64xf32>
    %68 = tpu.matmul %65, %65, %cst_38 {dimension_numbers = #tpu.dot_dimension_numbers<[1], [1], [0], [0], [0, 0, 1, 0], [], []>} : vector<64x256xf32>, vector<64x256xf32>, vector<64x64xf32> -> vector<64x64xf32>
    %cst_39 = arith.constant dense<0.000000e+00> : vector<128x64xf32>
    %69 = tpu.matmul %57, %68, %cst_39 {dimension_numbers = #tpu.dot_dimension_numbers<[1], [0], [0], [1], [0, 0, 1, 1], [], []>} : vector<128x64xf32>, vector<64x64xf32>, vector<128x64xf32> -> vector<128x64xf32>
    %70 = arith.mulf %57, %67 : vector<128x64xf32>
    %cst_40 = arith.constant 9.99999997E-7 : f32
    %71 = vector.broadcast %cst_40 : f32 to vector<128x64xf32>
    %72 = arith.addf %69, %71 : vector<128x64xf32>
    %73 = arith.divf %70, %72 : vector<128x64xf32>
    %c3_i32 = arith.constant 3 : i32
    %74 = arith.truncf %73 : vector<128x64xf32> to vector<128x64xbf16>
    %cst_41 = arith.constant dense<0.000000e+00> : vector<64x256xf32>
    %75 = tpu.matmul %74, %11, %cst_41 {dimension_numbers = #tpu.dot_dimension_numbers<[0], [0], [1], [1], [0, 1, 1, 1], [], []>} : vector<128x64xbf16>, vector<128x256xbf16>, vector<64x256xf32> -> vector<64x256xf32>
    %cst_42 = arith.constant dense<0.000000e+00> : vector<64x64xf32>
    %76 = tpu.matmul %73, %73, %cst_42 {dimension_numbers = #tpu.dot_dimension_numbers<[0], [0], [1], [1], [0, 1, 1, 1], [], []>} : vector<128x64xf32>, vector<128x64xf32>, vector<64x64xf32> -> vector<64x64xf32>
    %cst_43 = arith.constant dense<0.000000e+00> : vector<64x256xf32>
    %77 = tpu.matmul %76, %65, %cst_43 {dimension_numbers = #tpu.dot_dimension_numbers<[1], [0], [0], [1], [0, 0, 1, 1], [], []>} : vector<64x64xf32>, vector<64x256xf32>, vector<64x256xf32> -> vector<64x256xf32>
    %78 = arith.mulf %65, %75 : vector<64x256xf32>
    %cst_44 = arith.constant 9.99999997E-7 : f32
    %79 = vector.broadcast %cst_44 : f32 to vector<64x256xf32>
    %80 = arith.addf %77, %79 : vector<64x256xf32>
    %81 = arith.divf %78, %80 : vector<64x256xf32>
    %82 = arith.truncf %81 : vector<64x256xf32> to vector<64x256xbf16>
    %cst_45 = arith.constant dense<0.000000e+00> : vector<128x64xf32>
    %83 = tpu.matmul %11, %82, %cst_45 {dimension_numbers = #tpu.dot_dimension_numbers<[1], [1], [0], [0], [0, 0, 1, 0], [], []>} : vector<128x256xbf16>, vector<64x256xbf16>, vector<128x64xf32> -> vector<128x64xf32>
    %cst_46 = arith.constant dense<0.000000e+00> : vector<64x64xf32>
    %84 = tpu.matmul %81, %81, %cst_46 {dimension_numbers = #tpu.dot_dimension_numbers<[1], [1], [0], [0], [0, 0, 1, 0], [], []>} : vector<64x256xf32>, vector<64x256xf32>, vector<64x64xf32> -> vector<64x64xf32>
    %cst_47 = arith.constant dense<0.000000e+00> : vector<128x64xf32>
    %85 = tpu.matmul %73, %84, %cst_47 {dimension_numbers = #tpu.dot_dimension_numbers<[1], [0], [0], [1], [0, 0, 1, 1], [], []>} : vector<128x64xf32>, vector<64x64xf32>, vector<128x64xf32> -> vector<128x64xf32>
    %86 = arith.mulf %73, %83 : vector<128x64xf32>
    %cst_48 = arith.constant 9.99999997E-7 : f32
    %87 = vector.broadcast %cst_48 : f32 to vector<128x64xf32>
    %88 = arith.addf %85, %87 : vector<128x64xf32>
    %89 = arith.divf %86, %88 : vector<128x64xf32>
    %c4_i32 = arith.constant 4 : i32
    %90 = arith.truncf %89 : vector<128x64xf32> to vector<128x64xbf16>
    %cst_49 = arith.constant dense<0.000000e+00> : vector<64x256xf32>
    %91 = tpu.matmul %90, %11, %cst_49 {dimension_numbers = #tpu.dot_dimension_numbers<[0], [0], [1], [1], [0, 1, 1, 1], [], []>} : vector<128x64xbf16>, vector<128x256xbf16>, vector<64x256xf32> -> vector<64x256xf32>
    %cst_50 = arith.constant dense<0.000000e+00> : vector<64x64xf32>
    %92 = tpu.matmul %89, %89, %cst_50 {dimension_numbers = #tpu.dot_dimension_numbers<[0], [0], [1], [1], [0, 1, 1, 1], [], []>} : vector<128x64xf32>, vector<128x64xf32>, vector<64x64xf32> -> vector<64x64xf32>
    %cst_51 = arith.constant dense<0.000000e+00> : vector<64x256xf32>
    %93 = tpu.matmul %92, %81, %cst_51 {dimension_numbers = #tpu.dot_dimension_numbers<[1], [0], [0], [1], [0, 0, 1, 1], [], []>} : vector<64x64xf32>, vector<64x256xf32>, vector<64x256xf32> -> vector<64x256xf32>
    %94 = arith.mulf %81, %91 : vector<64x256xf32>
    %cst_52 = arith.constant 9.99999997E-7 : f32
    %95 = vector.broadcast %cst_52 : f32 to vector<64x256xf32>
    %96 = arith.addf %93, %95 : vector<64x256xf32>
    %97 = arith.divf %94, %96 : vector<64x256xf32>
    %98 = arith.truncf %97 : vector<64x256xf32> to vector<64x256xbf16>
    %cst_53 = arith.constant dense<0.000000e+00> : vector<128x64xf32>
    %99 = tpu.matmul %11, %98, %cst_53 {dimension_numbers = #tpu.dot_dimension_numbers<[1], [1], [0], [0], [0, 0, 1, 0], [], []>} : vector<128x256xbf16>, vector<64x256xbf16>, vector<128x64xf32> -> vector<128x64xf32>
    %cst_54 = arith.constant dense<0.000000e+00> : vector<64x64xf32>
    %100 = tpu.matmul %97, %97, %cst_54 {dimension_numbers = #tpu.dot_dimension_numbers<[1], [1], [0], [0], [0, 0, 1, 0], [], []>} : vector<64x256xf32>, vector<64x256xf32>, vector<64x64xf32> -> vector<64x64xf32>
    %cst_55 = arith.constant dense<0.000000e+00> : vector<128x64xf32>
    %101 = tpu.matmul %89, %100, %cst_55 {dimension_numbers = #tpu.dot_dimension_numbers<[1], [0], [0], [1], [0, 0, 1, 1], [], []>} : vector<128x64xf32>, vector<64x64xf32>, vector<128x64xf32> -> vector<128x64xf32>
    %102 = arith.mulf %89, %99 : vector<128x64xf32>
    %cst_56 = arith.constant 9.99999997E-7 : f32
    %103 = vector.broadcast %cst_56 : f32 to vector<128x64xf32>
    %104 = arith.addf %101, %103 : vector<128x64xf32>
    %105 = arith.divf %102, %104 : vector<128x64xf32>
    %c5_i32 = arith.constant 5 : i32
    %106 = arith.truncf %105 : vector<128x64xf32> to vector<128x64xbf16>
    %cst_57 = arith.constant dense<0.000000e+00> : vector<64x256xf32>
    %107 = tpu.matmul %106, %11, %cst_57 {dimension_numbers = #tpu.dot_dimension_numbers<[0], [0], [1], [1], [0, 1, 1, 1], [], []>} : vector<128x64xbf16>, vector<128x256xbf16>, vector<64x256xf32> -> vector<64x256xf32>
    %cst_58 = arith.constant dense<0.000000e+00> : vector<64x64xf32>
    %108 = tpu.matmul %105, %105, %cst_58 {dimension_numbers = #tpu.dot_dimension_numbers<[0], [0], [1], [1], [0, 1, 1, 1], [], []>} : vector<128x64xf32>, vector<128x64xf32>, vector<64x64xf32> -> vector<64x64xf32>
    %cst_59 = arith.constant dense<0.000000e+00> : vector<64x256xf32>
    %109 = tpu.matmul %108, %97, %cst_59 {dimension_numbers = #tpu.dot_dimension_numbers<[1], [0], [0], [1], [0, 0, 1, 1], [], []>} : vector<64x64xf32>, vector<64x256xf32>, vector<64x256xf32> -> vector<64x256xf32>
    %110 = arith.mulf %97, %107 : vector<64x256xf32>
    %cst_60 = arith.constant 9.99999997E-7 : f32
    %111 = vector.broadcast %cst_60 : f32 to vector<64x256xf32>
    %112 = arith.addf %109, %111 : vector<64x256xf32>
    %113 = arith.divf %110, %112 : vector<64x256xf32>
    %114 = arith.truncf %113 : vector<64x256xf32> to vector<64x256xbf16>
    %cst_61 = arith.constant dense<0.000000e+00> : vector<128x64xf32>
    %115 = tpu.matmul %11, %114, %cst_61 {dimension_numbers = #tpu.dot_dimension_numbers<[1], [1], [0], [0], [0, 0, 1, 0], [], []>} : vector<128x256xbf16>, vector<64x256xbf16>, vector<128x64xf32> -> vector<128x64xf32>
    %cst_62 = arith.constant dense<0.000000e+00> : vector<64x64xf32>
    %116 = tpu.matmul %113, %113, %cst_62 {dimension_numbers = #tpu.dot_dimension_numbers<[1], [1], [0], [0], [0, 0, 1, 0], [], []>} : vector<64x256xf32>, vector<64x256xf32>, vector<64x64xf32> -> vector<64x64xf32>
    %cst_63 = arith.constant dense<0.000000e+00> : vector<128x64xf32>
    %117 = tpu.matmul %105, %116, %cst_63 {dimension_numbers = #tpu.dot_dimension_numbers<[1], [0], [0], [1], [0, 0, 1, 1], [], []>} : vector<128x64xf32>, vector<64x64xf32>, vector<128x64xf32> -> vector<128x64xf32>
    %118 = arith.mulf %105, %115 : vector<128x64xf32>
    %cst_64 = arith.constant 9.99999997E-7 : f32
    %119 = vector.broadcast %cst_64 : f32 to vector<128x64xf32>
    %120 = arith.addf %117, %119 : vector<128x64xf32>
    %121 = arith.divf %118, %120 : vector<128x64xf32>
    %122 = arith.truncf %121 : vector<128x64xf32> to vector<128x64xbf16>
    %cst_65 = arith.constant dense<0.000000e+00> : vector<64x256xf32>
    %123 = tpu.matmul %122, %11, %cst_65 {dimension_numbers = #tpu.dot_dimension_numbers<[0], [0], [1], [1], [0, 1, 1, 1], [], []>} : vector<128x64xbf16>, vector<128x256xbf16>, vector<64x256xf32> -> vector<64x256xf32>
    %cst_66 = arith.constant dense<0.000000e+00> : vector<64x64xf32>
    %124 = tpu.matmul %121, %121, %cst_66 {dimension_numbers = #tpu.dot_dimension_numbers<[0], [0], [1], [1], [0, 1, 1, 1], [], []>} : vector<128x64xf32>, vector<128x64xf32>, vector<64x64xf32> -> vector<64x64xf32>
    %cst_67 = arith.constant dense<0.000000e+00> : vector<64x256xf32>
    %125 = tpu.matmul %124, %113, %cst_67 {dimension_numbers = #tpu.dot_dimension_numbers<[1], [0], [0], [1], [0, 0, 1, 1], [], []>} : vector<64x64xf32>, vector<64x256xf32>, vector<64x256xf32> -> vector<64x256xf32>
    %126 = arith.mulf %113, %123 : vector<64x256xf32>
    %cst_68 = arith.constant 9.99999997E-7 : f32
    %127 = vector.broadcast %cst_68 : f32 to vector<64x256xf32>
    %128 = arith.addf %125, %127 : vector<64x256xf32>
    %129 = arith.divf %126, %128 : vector<64x256xf32>
    %cst_69 = arith.constant dense<0.000000e+00> : vector<128x256xf32>
    %130 = tpu.matmul %121, %129, %cst_69 {dimension_numbers = #tpu.dot_dimension_numbers<[1], [0], [0], [1], [0, 0, 1, 1], [], []>} : vector<128x64xf32>, vector<64x256xf32>, vector<128x256xf32> -> vector<128x256xf32>
    %cst_70 = arith.constant dense<0.000000e+00> : vector<128x256xf32>
    %131 = tpu.matmul %3, %130, %cst_70 {dimension_numbers = #tpu.dot_dimension_numbers<[1], [0], [0], [1], [0, 0, 1, 1], [], []>} : vector<128x128xf32>, vector<128x256xf32>, vector<128x256xf32> -> vector<128x256xf32>
    %132 = vector.broadcast %5 : vector<128x1xf32> to vector<128x256xf32>
    %133 = arith.addf %131, %132 : vector<128x256xf32>
    %134 = arith.addf %1, %133 : vector<128x256xf32>
    %cst_71 = arith.constant 0.000000e+00 : f32
    %135 = vector.broadcast %cst_71 : f32 to vector<128x256xf32>
    %136 = arith.maximumf %134, %135 : vector<128x256xf32>
    %c0_72 = arith.constant 0 : index
    %c0_73 = arith.constant 0 : index
    %c0_74 = arith.constant 0 : index
    %137 = vector.load %arg7[%c0_72, %c0_73, %c0_74] : memref<1x128x256xf32, #tpu.memory_space<vmem>>, vector<1x128x256xf32>
    %138 = vector.shape_cast %137 : vector<1x128x256xf32> to vector<128x256xf32>
    %139 = vector.shape_cast %136 : vector<128x256xf32> to vector<1x128x256xf32>
    tpu.vector_store %arg7[%c0_72, %c0_73, %c0_74], %139 {strides = array<i32>} : memref<1x128x256xf32, #tpu.memory_space<vmem>>, vector<1x128x256xf32>,
    return
  }
  func.func @transform_0(%arg0: i32) -> (i32, i32, i32) {
    %c0_i32 = arith.constant 0 : i32
    %c0_i32_0 = arith.constant 0 : i32
    %c0_i32_1 = arith.constant 0 : i32
    return %arg0, %c0_i32, %c0_i32_0 : i32, i32, i32
  }
  func.func @transform_1(%arg0: i32) -> (i32, i32) {
    %c0_i32 = arith.constant 0 : i32
    %c0_i32_0 = arith.constant 0 : i32
    %c0_i32_1 = arith.constant 0 : i32
    return %c0_i32, %c0_i32_0 : i32, i32
  }
  func.func @transform_2(%arg0: i32) -> (i32, i32) {
    %c0_i32 = arith.constant 0 : i32
    %c0_i32_0 = arith.constant 0 : i32
    %c0_i32_1 = arith.constant 0 : i32
    return %c0_i32, %c0_i32_0 : i32, i32
  }
  func.func @transform_3(%arg0: i32) -> (i32, i32) {
    %c0_i32 = arith.constant 0 : i32
    %c0_i32_0 = arith.constant 0 : i32
    %c0_i32_1 = arith.constant 0 : i32
    return %c0_i32, %c0_i32_0 : i32, i32
  }
  func.func @transform_4(%arg0: i32) -> (i32, i32) {
    %c0_i32 = arith.constant 0 : i32
    %c0_i32_0 = arith.constant 0 : i32
    %c0_i32_1 = arith.constant 0 : i32
    return %c0_i32, %c0_i32_0 : i32, i32
  }
  func.func @transform_5(%arg0: i32) -> (i32, i32, i32) {
    %c0_i32 = arith.constant 0 : i32
    %c0_i32_0 = arith.constant 0 : i32
    %c0_i32_1 = arith.constant 0 : i32
    return %arg0, %c0_i32, %c0_i32_0 : i32, i32, i32
  }
  func.func @transform_6(%arg0: i32) -> (i32, i32, i32) {
    %c0_i32 = arith.constant 0 : i32
    %c0_i32_0 = arith.constant 0 : i32
    %c0_i32_1 = arith.constant 0 : i32
    return %arg0, %c0_i32, %c0_i32_0 : i32, i32, i32
  }
}

</mosaic_0001>

<bundles_post_ra>
// kernel: tpu_custom_call.1
= control target key start
LH: loop header
LB: loop body
LE: loop exit
PB: predicated region body
PF: predicated region fallthrough
CT: control target
= control target key end

     0   :  { %11 = vsyncpa [#allocation3], 0  ;;  %s12135_s0 = inlined_call_operand.vmem [shape: f32[2,128,256], index: 0, kind: input, shape index: {}]   ;;  %s12136_s1 = inlined_call_operand.hbm [shape: f32[128,128], index: 1, kind: input, shape index: {}]   ;;  %s12137_s2 = inlined_call_operand.vmem [shape: f32[128,1], index: 2, kind: input, shape index: {}]   ;;  %s12138_s3 = inlined_call_operand.hbm [shape: f32[128,128], index: 3, kind: input, shape index: {}]   ;;  %s12139_s4 = inlined_call_operand.vmem [shape: f32[128,1], index: 4, kind: input, shape index: {}]   ;;  %s12140_s5 = inlined_call_operand.vmem [shape: f32[2,128,64], index: 5, kind: input, shape index: {}]   ;;  %s12141_s6 = inlined_call_operand.hbm [shape: f32[2,128,256], index: 6, kind: output, shape index: {}]  }
   0x1   :  { %12 = vsyncpa [#allocation6], 0 }
   0x2   :  { %13 = vsyncpa [#allocation4], 0 }
   0x3   :  { %15 = vsyncpa [#allocation4 + $0x1], 0  ;;  %s8899_s21 = smov 0   ;;  %s8901_s22 = smov 0  }
   0x4   :  { %s8903_s23 = smov 0   ;;  %s8905_s24 = smov 0  }
   0x5 LB: > { %s8920_s25 = sadd.s32 4294967295, %s8853_s24   ;;  %s7116_s26 = sadd.s32 4294967294, %s8853_s24   ;;  %s8853_s24 = sphi %s8905_s24, %s12606_s24   ;;  %s8849_s23 = sphi %s8903_s23, %s12605_s23   ;;  %s8845_s22 = sphi %s8901_s22, %s12604_s22   ;;  %s8841_s21 = sphi %s8899_s21, %s12603_s21  }
   0x6   : > { %s8924_s27 = sadd.s32 1, %s8853_s24   ;;  %s164_s28 = sadd.s32 1, %s8849_s23 }
   0x7   : > { %s161_s29 = ssub.s32 %s8853_s24, %s8924_s27  ;;  %p174_p0 = scmp.ne.s32.totalorder %s8849_s23, %s8845_s22 }
   0x8   : > { %p162_p1 = scmp.eq.s32.totalorder %s161_s29, 0  ;;  %p175_p2 = scmp.eq.s32.totalorder %s8920_s25, 1 }
   0x9   : > { %p180_p3 = scmp.ne.s32.totalorder %s8845_s22, %s8841_s21  ;;  %p181_p4 = scmp.eq.s32.totalorder %s7116_s26, 1 }
   0xa   : > { %s8935_s30 = scalar_select %p162_p1, %s8849_s23, %s164_s28  }
   0xb   : > { %p8937_p5 = por %p175_p2, %p174_p0  ;;  %p8941_p6 = por %p181_p4, %p180_p3 }
   0xc   : > { %p7117_p7 = scmp.ge.s32.totalorder %s8853_s24, 1  ;;  %p188_p8 = scmp.lt.s32.totalorder %s8853_s24, 3 }
   0xd   : > { %s12364_s8 = scalar_select %p8941_p6, 1, 0 }
   0xe   : > { %p12142_p9 = scmp.eq.s32.totalorder %s8920_s25, 0  ;;  %p8948_p10 = pnand %p7117_p7, %p188_p8 }
   0xf   : > { %s8855_s10 = smov [#allocation2]   ;;  %s8856_s13 = smov [#allocation5]  }
  0x10   : > { %s200_s11 = sshll.u32 %s8855_s10, 4  ;;  %p8175_p11 = pneg %p8948_p10  ;;  %s201_s11 = int_to_ptr.vmem [resolvable:$true] %s200_s11 }
  0x11   : > { %s216_s14 = sshll.u32 %s8856_s13, 4  ;;  %s8744_s15 = scalar_lea.vmem %s201_s11, 2048  ;;  %s217_s14 = int_to_ptr.vmem [resolvable:$true] %s216_s14 }
  0x12   : > { %p8956_p12 = pnand %p12142_p9, %p8175_p11  ;;  %p8745_p0 = scmp.ne.s32.totalorder %s201_s11, %s8744_s15 }
  0x13   : > { %p8752_p3 = scmp.lt.s32.totalorder %s201_s11, %s201_s11  ;;  %p8753_p4 = scmp.lt.s32.totalorder %s8744_s15, %s8744_s15 }
  0x14   : > { %p8735_p13 = pneg %p8956_p12 }
  0x15   : > { %p8754_p7 = por %p8753_p4, %p8752_p3 }
  0x16   : > { %p8747_p1 = pnand %p8745_p0, %p8735_p13 }
  0x18   : > { %p8748_p2 = pneg %p8747_p1 }
  0x1a   : > { %p8755_p8 = pnand %p8754_p7, %p8748_p2 }
  0x1c   : > { %8758 = shalt.err (!%p8755_p8)
}
  0x1d   : > { %s8857_s16 = smov 128   ;;  %s8858_s17 = smov 8  }
  0x1e   : > { %8178 = dma.hbm_to_vmem [thread:$0]  (!%p8956_p12), %s12136_s1, 2048, %s201_s11, [#allocation3], %s8857_s16, %s8857_s16, %s8858_s17  }
  0x1f   : > { %s8770_s20 = scalar_lea.vmem %s217_s14, 2048  ;;  %p8778_p9 = scmp.lt.s32.totalorder %s217_s14, %s217_s14 }
  0x20   : > { %p8771_p11 = scmp.ne.s32.totalorder %s217_s14, %s8770_s20  ;;  %p8779_p6 = scmp.lt.s32.totalorder %s8770_s20, %s8770_s20 }
  0x22   : > { %p8773_p0 = pnand %p8771_p11, %p8735_p13  ;;  %p8780_p3 = por %p8779_p6, %p8778_p9 }
  0x24   : > { %p8774_p1 = pneg %p8773_p0 }
  0x26   : > { %p8781_p2 = pnand %p8780_p3, %p8774_p1 }
  0x28   : > { %8784 = shalt.err (!%p8781_p2)
}
  0x29   : > { %8181 = dma.hbm_to_vmem [thread:$0]  (!%p8956_p12), %s12138_s3, 2048, %s217_s14, [#allocation6], %s8857_s16, %s8857_s16, %s8858_s17  }
  0x2a   : > { %251 = sbr.rel (%p8948_p10) target bundleno = 7806 (0x1e7e), region = 44 }
  0x2f   : > { %p12367_p4 = scmp.eq.s32.totalorder %s8920_s25, 0 }
  0x31   : > { %8828 = dma.done.wait (%p12367_p4), [#allocation3], 2048   ;;  %p12368_p13 = pmov %p12367_p4 }
  0x32   : > { %p12369_p7 = pmov %p12367_p4 }
  0x33   : > { %8830 = vsyncadd (%p12368_p13), [#allocation3], 4294965248 }
  0x34   : > { %8832 = dma.done.wait (%p12369_p7), [#allocation6], 2048   ;;  %p12370_p6 = pmov %p12367_p4 }
  0x35   : > { %p290_p9 = scmp.lt.s32.totalorder %s8920_s25, 1  ;;  %v12143_v0 = vmov 0.0   ;;  %v12145_v1 = vmov 0   ;;  %v379_v19 = vld [vmem:[%s12137_s2 + $0x70] sm:$0xff]  ;;  %v377_v21 = vld [vmem:[%s12137_s2 + $0x60] sm:$0xff]  ;;  %v380_v23 = vld [vmem:[%s12137_s2 + $0x78] sm:$0xff] }
  0x36   : > { %8834 = vsyncadd (%p12370_p6), [#allocation6], 4294965248  ;;  %541 = vmatprep.mubr.f32.mxu0 %v12143_v0  ;;  %8231 = vset.pattern.permute.xlu0 %v12145_v1  ;;  %v378_v25 = vld [vmem:[%s12137_s2 + $0x68] sm:$0xff]  ;;  %v375_v29 = vld [vmem:[%s12137_s2 + $0x50] sm:$0xff]  ;;  %vm1070_vm0 = vcmask 523264   ;;  %s287_s13 = sand.u32 1, %s8845_s22  }
  0x37   : > { %s8992_s29 = scalar_select %p290_p9, %s8920_s25, 1  ;;  %8232 = vset.pattern.permute.xlu1 %v12145_v1  ;;  %758 = vmatprep.mubr.bf16.mxu1 %v12145_v1  ;;  %v376_v31 = vld [vmem:[%s12137_s2 + $0x58] sm:$0xff]  ;;  %v373_v35 = vld [vmem:[%s12137_s2 + $0x40] sm:$0xff]  ;;  %v374_v37 = vld [vmem:[%s12137_s2 + $0x48] sm:$0xff] }
  0x38   : > { %469 = vperm.xlu0 %8231, %v379_v19   ;;  %459 = vperm.xlu1 %8232, %v377_v21   ;;  %v371_v41 = vld [vmem:[%s12137_s2 + $0x30] sm:$0xff]  ;;  %v372_v43 = vld [vmem:[%s12137_s2 + $0x38] sm:$0xff]  ;;  %v333_v44 = vld [vmem:[#allocation2] sm:$0xff]  ;;  %s7124_s14 = sshll.u32 %s287_s13, 8  ;;  %s7304_s16 = sshll.u32 %s8920_s25, 12 }
  0x39   : > { %s7302_s9 = sshll.u32 %s8992_s29, 8  ;;  %v369_v45 = vld [vmem:[%s12137_s2 + $0x20] sm:$0xff]  ;;  %v370_v46 = vld [vmem:[%s12137_s2 + $0x28] sm:$0xff]  ;;  %v367_v48 = vld [vmem:[%s12137_s2 + $0x10] sm:$0xff]  ;;  %s7303_s19 = sshll.u32 %s8992_s29, 7 }
  0x3a   : > { %s9000_s12 = scalar_lea.vmem %s12135_s0, %s7302_s9  ;;  %v334_v47 = vld [vmem:[#allocation2 + $0x8] sm:$0xff]  ;;  %v368_v49 = vld [vmem:[%s12137_s2 + $0x18] sm:$0xff]  ;;  %v335_v50 = vld [vmem:[#allocation2 + $0x10] sm:$0xff]  ;;  %s9101_s28 = scalar_lea.vmem %s12140_s5, %s7303_s19 }
  0x3b   : > { %v332_v2 = vld [vmem:[%s9000_s12 + $0xf8] sm:$0xff]  ;;  %v331_v3 = vld [vmem:[%s9000_s12 + $0xf0] sm:$0xff]  ;;  %v330_v4 = vld [vmem:[%s9000_s12 + $0xe8] sm:$0xff]  ;;  %s12020_s15 = scalar_lea.vmem [#allocation7], %s7124_s14  ;;  %s12087_s20 = scalar_lea.hbm %s12141_s6, %s7304_s16 }
  0x3c   : > { %477 = vmatprep.subr.mxu0 %v332_v2  ;;  %v329_v5 = vld [vmem:[%s9000_s12 + $0xe0] sm:$0xff]  ;;  %v328_v6 = vld [vmem:[%s9000_s12 + $0xd8] sm:$0xff]  ;;  %v327_v7 = vld [vmem:[%s9000_s12 + $0xd0] sm:$0xff]  ;;  %474 = vperm.xlu0 %8231, %v380_v23   ;;  %s7020_s17 = sshll.u32 %s12020_s15, 4  ;;  %s12095_s25 = scalar_lea.sflag [#allocation4], %s287_s13  ;;  %s12089_s17 = int_to_ptr.vmem [resolvable:$true] %s7020_s17 }
  0x3d   : > { %478 = vmatpush1.msra.mxu0 %v331_v3  ;;  %v326_v8 = vld [vmem:[%s9000_s12 + $0xc8] sm:$0xff]  ;;  %v325_v9 = vld [vmem:[%s9000_s12 + $0xc0] sm:$0xff]  ;;  %v324_v10 = vld [vmem:[%s9000_s12 + $0xb8] sm:$0xff]  ;;  %464 = vperm.xlu1 %8232, %v378_v25   ;;  %s8785_s26 = scalar_lea.vmem %s12089_s17, 4096 }
  0x3e   : > { %479 = vmatprep.subr.mxu0 %v330_v4  ;;  %v323_v11 = vld [vmem:[%s9000_s12 + $0xb0] sm:$0xff]  ;;  %v322_v12 = vld [vmem:[%s9000_s12 + $0xa8] sm:$0xff]  ;;  %v321_v13 = vld [vmem:[%s9000_s12 + $0xa0] sm:$0xff]  ;;  %p8786_p10 = scmp.ne.s32.totalorder %s12089_s17, %s8785_s26 }
  0x3f   : > { %480 = vmatpush1.msra.mxu0 %v329_v5  ;;  %v320_v14 = vld [vmem:[%s9000_s12 + $0x98] sm:$0xff]  ;;  %v319_v15 = vld [vmem:[%s9000_s12 + $0x90] sm:$0xff]  ;;  %v318_v16 = vld [vmem:[%s9000_s12 + $0x88] sm:$0xff] }
  0x40   : > { %481 = vmatprep.subr.mxu0 %v328_v6  ;;  %v317_v17 = vld [vmem:[%s9000_s12 + $0x80] sm:$0xff]  ;;  %v316_v18 = vld [vmem:[%s9000_s12 + $0x78] sm:$0xff]  ;;  %v315_v20 = vld [vmem:[%s9000_s12 + $0x70] sm:$0xff]  ;;  %449 = vperm.xlu0 %8231, %v375_v29   ;;  %p8787_p12 = pnand %p8786_p10, %p8937_p5 }
  0x41   : > { %482 = vmatpush1.msra.mxu0 %v327_v7  ;;  %v314_v22 = vld [vmem:[%s9000_s12 + $0x68] sm:$0xff]  ;;  %v313_v24 = vld [vmem:[%s9000_s12 + $0x60] sm:$0xff]  ;;  %v312_v26 = vld [vmem:[%s9000_s12 + $0x58] sm:$0xff]  ;;  %454 = vperm.xlu1 %8232, %v376_v31  }
  0x42   : > { %483 = vmatprep.subr.mxu0 %v326_v8  ;;  %v311_v27 = vld [vmem:[%s9000_s12 + $0x50] sm:$0xff]  ;;  %v310_v28 = vld [vmem:[%s9000_s12 + $0x48] sm:$0xff]  ;;  %v309_v30 = vld [vmem:[%s9000_s12 + $0x40] sm:$0xff]  ;;  %p8788_p8 = pneg %p8787_p12 }
  0x43   : > { %484 = vmatpush1.msra.mxu0 %v325_v9  ;;  %v308_v32 = vld [vmem:[%s9000_s12 + $0x38] sm:$0xff]  ;;  %v307_v33 = vld [vmem:[%s9000_s12 + $0x30] sm:$0xff]  ;;  %v306_v34 = vld [vmem:[%s9000_s12 + $0x28] sm:$0xff] }
  0x44   : > { %485 = vmatprep.subr.mxu0 %v324_v10  ;;  %v305_v36 = vld [vmem:[%s9000_s12 + $0x20] sm:$0xff]  ;;  %v304_v38 = vld [vmem:[%s9000_s12 + $0x18] sm:$0xff]  ;;  %v303_v39 = vld [vmem:[%s9000_s12 + $0x10] sm:$0xff]  ;;  %439 = vperm.xlu0 %8231, %v373_v35  }
  0x45   : > { %486 = vmatpush1.msra.mxu0 %v323_v11  ;;  %v302_v40 = vld [vmem:[%s9000_s12 + $0x8] sm:$0xff]  ;;  %444 = vperm.xlu1 %8232, %v374_v37   ;;  %v301_v42 = vld [vmem:[%s9000_s12] sm:$0xff]  ;;  %v336_v53 = vld [vmem:[#allocation2 + $0x18] sm:$0xff] }
  0x46   : > { %487 = vmatprep.subr.mxu0 %v322_v12  ;;  %v365_v51 = vld [vmem:[%s12137_s2] sm:$0xff]  ;;  %v366_v52 = vld [vmem:[%s12137_s2 + $0x8] sm:$0xff]  ;;  %v339_v56 = vld [vmem:[#allocation2 + $0x30] sm:$0xff] }
  0x47   : > { %488 = vmatpush1.msra.mxu0 %v321_v13  ;;  %v337_v54 = vld [vmem:[#allocation2 + $0x20] sm:$0xff]  ;;  %v338_v55 = vld [vmem:[#allocation2 + $0x28] sm:$0xff]  ;;  %v340_v57 = vld [vmem:[#allocation2 + $0x38] sm:$0xff] }
  0x48   : > { %489 = vmatprep.subr.mxu0 %v320_v14  ;;  %429 = vperm.xlu0 %8231, %v371_v41   ;;  %v341_v58 = vld [vmem:[#allocation2 + $0x40] sm:$0xff]  ;;  %v342_v59 = vld [vmem:[#allocation2 + $0x48] sm:$0xff]  ;;  %v343_v60 = vld [vmem:[#allocation2 + $0x50] sm:$0xff] }
  0x49   : > { %490 = vmatpush1.msra.mxu0 %v319_v15  ;;  %434 = vperm.xlu1 %8232, %v372_v43   ;;  %v344_v61 = vld [vmem:[#allocation2 + $0x58] sm:$0xff]  ;;  %v345_v62 = vld [vmem:[#allocation2 + $0x60] sm:$0xff]  ;;  %v346_v63 = vld [vmem:[#allocation2 + $0x68] sm:$0xff] }
  0x4a   : > { %491 = vmatprep.subr.mxu0 %v318_v16  ;;  %v347_v2 = vld [vmem:[#allocation2 + $0x70] sm:$0xff]  ;;  %v348_v3 = vld [vmem:[#allocation2 + $0x78] sm:$0xff]  ;;  %v9104_v4 = vld [vmem:[%s9101_s28] sm:$0xff] }
  0x4b   : > { %492 = vmatpush1.msra.mxu0 %v317_v17  ;;  %12371 = vst [vmem:[#allocation11_spill] sm:$0xff] %v9104_v4  ;;  %v9107_v5 = vld [vmem:[%s9101_s28 + $0x8] sm:$0xff]  ;;  %v9113_v7 = vld [vmem:[%s9101_s28 + $0x10] sm:$0xff]  ;;  %v9116_v8 = vld [vmem:[%s9101_s28 + $0x18] sm:$0xff] }
  0x4c   : > { %493 = vmatprep.subr.mxu0 %v316_v18  ;;  %419 = vperm.xlu0 %8231, %v369_v45   ;;  %12372 = vst [vmem:[#allocation12_spill] sm:$0xff] %v9107_v5  ;;  %v702_v6 = vpack.c.bf16 %v9107_v5, %v9104_v4  ;;  %12373 = vst [vmem:[#allocation13_spill] sm:$0xff] %v9113_v7  ;;  %v703_v9 = vpack.c.bf16 %v9116_v8, %v9113_v7  ;;  %v9122_v10 = vld [vmem:[%s9101_s28 + $0x20] sm:$0xff]  ;;  %v9125_v11 = vld [vmem:[%s9101_s28 + $0x28] sm:$0xff] }
  0x4d   : > { %494 = vmatpush1.msra.mxu0 %v315_v20  ;;  %424 = vperm.xlu1 %8232, %v370_v46   ;;  %12374 = vst [vmem:[#allocation14_spill] sm:$0xff] %v9116_v8  ;;  %12375 = vst [vmem:[#allocation15_spill] sm:$0xff] %v9122_v10  ;;  %v704_v12 = vpack.c.bf16 %v9125_v11, %v9122_v10  ;;  %v9131_v13 = vld [vmem:[%s9101_s28 + $0x30] sm:$0xff]  ;;  %v9134_v14 = vld [vmem:[%s9101_s28 + $0x38] sm:$0xff] }
  0x4e   : > { %495 = vmatprep.subr.mxu0 %v314_v22  ;;  %12376 = vst [vmem:[#allocation16_spill] sm:$0xff] %v9125_v11  ;;  %12377 = vst [vmem:[#allocation17_spill] sm:$0xff] %v9131_v13  ;;  %v705_v15 = vpack.c.bf16 %v9134_v14, %v9131_v13  ;;  %v9140_v16 = vld [vmem:[%s9101_s28 + $0x40] sm:$0xff]  ;;  %v9143_v17 = vld [vmem:[%s9101_s28 + $0x48] sm:$0xff] }
  0x4f   : > { %496 = vmatpush1.msra.mxu0 %v313_v24  ;;  %12378 = vst [vmem:[#allocation18_spill] sm:$0xff] %v9134_v14  ;;  %v706_v18 = vpack.c.bf16 %v9143_v17, %v9140_v16  ;;  %v9149_v19 = vld [vmem:[%s9101_s28 + $0x50] sm:$0xff]  ;;  %v9152_v20 = vld [vmem:[%s9101_s28 + $0x58] sm:$0xff]  ;;  %v9158_v22 = vld [vmem:[%s9101_s28 + $0x60] sm:$0xff] }
  0x50   : > { %497 = vmatprep.subr.mxu0 %v312_v26  ;;  %409 = vperm.xlu0 %8231, %v367_v48   ;;  %v707_v21 = vpack.c.bf16 %v9152_v20, %v9149_v19  ;;  %v9161_v23 = vld [vmem:[%s9101_s28 + $0x68] sm:$0xff]  ;;  %v9167_v25 = vld [vmem:[%s9101_s28 + $0x70] sm:$0xff]  ;;  %v9170_v26 = vld [vmem:[%s9101_s28 + $0x78] sm:$0xff] }
  0x51   : > { %498 = vmatpush1.msra.mxu0 %v311_v27  ;;  %414 = vperm.xlu1 %8232, %v368_v49   ;;  %v708_v24 = vpack.c.bf16 %v9161_v23, %v9158_v22  ;;  %v709_v27 = vpack.c.bf16 %v9170_v26, %v9167_v25 }
  0x52   : > { %499 = vmatprep.subr.mxu0 %v310_v28 }
  0x53   : > { %500 = vmatpush1.msra.mxu0 %v309_v30 }
  0x54   : > { %501 = vmatprep.subr.mxu0 %v308_v32  ;;  %399 = vperm.xlu0 %8231, %v365_v51  }
  0x55   : > { %502 = vmatpush1.msra.mxu0 %v307_v33  ;;  %404 = vperm.xlu1 %8232, %v366_v52  }
  0x56   : > { %503 = vmatprep.subr.mxu0 %v306_v34 }
  0x57   : > { %504 = vmatpush1.msra.mxu0 %v305_v36 }
  0x58   : > { %505 = vmatprep.subr.mxu0 %v304_v38 }
  0x59   : > { %506 = vmatpush1.msra.mxu0 %v303_v39 }
  0x5a   : > { %507 = vmatprep.subr.mxu0 %v302_v40 }
  0x5b   : > { %508 = vmatpush1.msra.mxu0 %v301_v42 }
  0x5c   : > { %542 = vmatmul.mubr.f32.vlgmr.msra.gmra.mxu0 %v333_v44 }
  0x5d   : > { %547 = vmatprep.mubr.f32.mxu0 %v12143_v0 }
  0x60   : > { %548 = vmatmul.mubr.f32.gmra.mxu0 %v334_v47 }
  0x61   : > { %553 = vmatprep.mubr.f32.mxu0 %v12143_v0 }
  0x64   : > { %554 = vmatmul.mubr.f32.gmra.mxu0 %v335_v50 }
  0x65   : > { %559 = vmatprep.mubr.f32.mxu0 %v12143_v0 }
  0x68   : > { %560 = vmatmul.mubr.f32.gmra.mxu0 %v336_v53 }
  0x69   : > { %565 = vmatprep.mubr.f32.mxu0 %v12143_v0 }
  0x6c   : > { %566 = vmatmul.mubr.f32.gmra.mxu0 %v337_v54 }
  0x6d   : > { %571 = vmatprep.mubr.f32.mxu0 %v12143_v0 }
  0x70   : > { %572 = vmatmul.mubr.f32.gmra.mxu0 %v338_v55 }
  0x71   : > { %577 = vmatprep.mubr.f32.mxu0 %v12143_v0 }
  0x72   : > { %710 = vxpose.xlu0.c.b16.start [1/8] (narrow) %v702_v6, 64 }
  0x74   : > { %578 = vmatmul.mubr.f32.gmra.mxu0 %v339_v56 }
  0x75   : > { %583 = vmatprep.mubr.f32.mxu0 %v12143_v0 }
  0x76   : > { %711 = vxpose.xlu0.c.b16.cont [2/8] (narrow) %v703_v9, 64 }
  0x78   : > { %584 = vmatmul.mubr.f32.gmra.mxu0 %v340_v57 }
  0x79   : > { %589 = vmatprep.mubr.f32.mxu0 %v12143_v0 }
  0x7a   : > { %712 = vxpose.xlu0.c.b16.cont [3/8] (narrow) %v704_v12, 64 }
  0x7c   : > { %590 = vmatmul.mubr.f32.gmra.mxu0 %v341_v58 }
  0x7d   : > { %595 = vmatprep.mubr.f32.mxu0 %v12143_v0 }
  0x7e   : > { %917 = vxpose.xlu1.b32.start [1/16] (narrow) %v9104_v4, 64  ;;  %713 = vxpose.xlu0.c.b16.cont [4/8] (narrow) %v705_v15, 64 }
  0x80   : > { %596 = vmatmul.mubr.f32.gmra.mxu0 %v342_v59 }
  0x81   : > { %601 = vmatprep.mubr.f32.mxu0 %v12143_v0 }
  0x82   : > { %918 = vxpose.xlu1.b32.cont [2/16] (narrow) %v9107_v5, 64  ;;  %714 = vxpose.xlu0.c.b16.cont [5/8] (narrow) %v706_v18, 64 }
  0x84   : > { %602 = vmatmul.mubr.f32.gmra.mxu0 %v343_v60 }
  0x85   : > { %607 = vmatprep.mubr.f32.mxu0 %v12143_v0 }
  0x86   : > { %919 = vxpose.xlu1.b32.cont [3/16] (narrow) %v9113_v7, 64  ;;  %715 = vxpose.xlu0.c.b16.cont [6/8] (narrow) %v707_v21, 64 }
  0x88   : > { %608 = vmatmul.mubr.f32.gmra.mxu0 %v344_v61 }
  0x89   : > { %613 = vmatprep.mubr.f32.mxu0 %v12143_v0 }
  0x8a   : > { %920 = vxpose.xlu1.b32.cont [4/16] (narrow) %v9116_v8, 64  ;;  %716 = vxpose.xlu0.c.b16.cont [7/8] (narrow) %v708_v24, 64 }
  0x8c   : > { %614 = vmatmul.mubr.f32.gmra.mxu0 %v345_v62 }
  0x8d   : > { %619 = vmatprep.mubr.f32.mxu0 %v12143_v0 }
  0x8e   : > { %921 = vxpose.xlu1.b32.cont [5/16] (narrow) %v9122_v10, 64  ;;  %717 = vxpose.xlu0.c.b16.end [8/8] (narrow) %v709_v27, 64 }
  0x90   : > { %620 = vmatmul.mubr.f32.gmra.mxu0 %v346_v63 }
  0x91   : > { %625 = vmatprep.mubr.f32.mxu0 %v12143_v0 }
  0x92   : > { %922 = vxpose.xlu1.b32.cont [6/16] (narrow) %v9125_v11, 64 }
  0x94   : > { %626 = vmatmul.mubr.f32.gmra.mxu0 %v347_v2 }
  0x95   : > { %631 = vmatprep.mubr.f32.mxu0 %v12143_v0 }
  0x96   : > { %923 = vxpose.xlu1.b32.cont [7/16] (narrow) %v9131_v13, 64 }
  0x98   : > { %632 = vmatmul.mubr.f32.gmra.mxu0 %v348_v3 }
  0x9a   : > { %924 = vxpose.xlu1.b32.cont [8/16] (narrow) %v9134_v14, 64 }
  0x9e   : > { %925 = vxpose.xlu1.b32.cont [9/16] (narrow) %v9140_v16, 64 }
  0xa2   : > { %926 = vxpose.xlu1.b32.cont [10/16] (narrow) %v9143_v17, 64 }
  0xa6   : > { %927 = vxpose.xlu1.b32.cont [11/16] (narrow) %v9149_v19, 64 }
  0xaa   : > { %928 = vxpose.xlu1.b32.cont [12/16] (narrow) %v9152_v20, 64 }
  0xae   : > { %929 = vxpose.xlu1.b32.cont [13/16] (narrow) %v9158_v22, 64 }
  0xb2   : > { %930 = vxpose.xlu1.b32.cont [14/16] (narrow) %v9161_v23, 64 }
  0xb3   : > { %v9183_v28 = vpop.permute.xlu0 %469  ;;  %v9185_v29 = vpop.permute.xlu1 %459 }
  0xb6   : > { %931 = vxpose.xlu1.b32.cont [15/16] (narrow) %v9167_v25, 64 }
  0xb7   : > { %v9187_v30 = vpop.permute.xlu0 %474 }
  0xb8   : > { %v9189_v31 = vpop.permute.xlu1 %464 }
  0xba   : > { %932 = vxpose.xlu1.b32.end [16/16] (narrow) %v9170_v26, 64 }
  0xbb   : > { %v9191_v32 = vpop.permute.xlu0 %449 }
  0xbc   : > { %v9193_v33 = vpop.permute.xlu1 %454 }
  0xbf   : > { %v9195_v34 = vpop.permute.xlu0 %439 }
  0xc0   : > { %v9197_v35 = vpop.permute.xlu1 %444 }
  0xc3   : > { %v9199_v36 = vpop.permute.xlu0 %429 }
  0xc4   : > { %v9201_v37 = vpop.permute.xlu1 %434 }
  0xc7   : > { %v9203_v38 = vpop.permute.xlu0 %419 }
  0xc8   : > { %v9205_v39 = vpop.permute.xlu1 %424 }
  0xcb   : > { %v9207_v40 = vpop.permute.xlu0 %409 }
  0xcc   : > { %v9209_v41 = vpop.permute.xlu1 %414 }
  0xcf   : > { %v400_v42 = vpop.permute.xlu0 %399 }
  0xd0   : > { %v405_v46 = vpop.permute.xlu1 %404 }
 0x11c   : > { %v543_v43 = vpop.f32.mrf.mxu0 }
 0x11d   : > { %v544_v44 = vadd.f32 %v543_v43, %v400_v42 }
 0x11e   : > { %v545_v45 = vpop.f32.mrf.mxu0 }
 0x11f   : > { %v546_v48 = vadd.f32 %v545_v45, %v400_v42  ;;  %v638_v51 = vmax.f32 %v544_v44, 0.0 }
 0x120   : > { %v549_v47 = vpop.f32.mrf.mxu0 }
 0x121   : > { %v550_v49 = vadd.f32 %v549_v47, %v405_v46  ;;  %v639_v55 = vmax.f32 %v546_v48, 0.0 }
 0x122   : > { %v551_v50 = vpop.f32.mrf.mxu0 }
 0x123   : > { %v640_v52 = vmax.f32 %v550_v49, 0.0  ;;  %v552_v53 = vadd.f32 %v551_v50, %v405_v46 }
 0x124   : > { %v555_v54 = vpop.f32.mrf.mxu0 }
 0x125   : > { %v9211_v56 = vpack.c.bf16 %v640_v52, %v638_v51  ;;  %v641_v57 = vmax.f32 %v552_v53, 0.0  ;;  %v556_v60 = vadd.f32 %v555_v54, %v9207_v40 }
 0x126   : > { %v9213_v58 = vpop.f32.mrf.mxu0 }
 0x127   : > { %12379 = vst [vmem:[#allocation19_spill] sm:$0xff] %v9211_v56  ;;  %v9215_v59 = vpack.c.bf16 %v641_v57, %v639_v55  ;;  %v642_v2 = vmax.f32 %v556_v60, 0.0 }
 0x128   : > { %v561_v61 = vpop.f32.mrf.mxu0 }
 0x129   : > { %12380 = vst [vmem:[#allocation20_spill] sm:$0xff] %v9215_v59  ;;  %v562_v62 = vadd.f32 %v561_v61, %v9209_v41  ;;  %1280 = vmatprep.mubr.bf16.mxu0 %v9215_v59 }
 0x12a   : > { %v9220_v63 = vpop.f32.mrf.mxu0 }
 0x12b   : > { %v644_v3 = vmax.f32 %v562_v62, 0.0 }
 0x12c   : > { %v9222_v6 = vpop.f32.mrf.mxu0 }
 0x12d   : > { %v9224_v9 = vpack.c.bf16 %v644_v3, %v642_v2 }
 0x12e   : > { %v9226_v12 = vpop.f32.mrf.mxu0 }
 0x12f   : > { %12381 = vst [vmem:[#allocation21_spill] sm:$0xff] %v9224_v9 }
 0x130   : > { %v9228_v15 = vpop.f32.mrf.mxu0 }
 0x132   : > { %v9230_v18 = vpop.f32.mrf.mxu0 }
 0x134   : > { %v9232_v21 = vpop.f32.mrf.mxu0 }
 0x136   : > { %v581_v24 = vpop.f32.mrf.mxu0 }
 0x138   : > { %v585_v27 = vpop.f32.mrf.mxu0 }
 0x13a   : > { %v587_v42 = vpop.f32.mrf.mxu0 }
 0x13c   : > { %v591_v43 = vpop.f32.mrf.mxu0 }
 0x13e   : > { %v593_v44 = vpop.f32.mrf.mxu0 }
 0x140   : > { %v597_v45 = vpop.f32.mrf.mxu0 }
 0x142   : > { %v599_v46 = vpop.f32.mrf.mxu0 }
 0x144   : > { %v603_v47 = vpop.f32.mrf.mxu0 }
 0x146   : > { %v605_v48 = vpop.f32.mrf.mxu0 }
 0x148   : > { %v609_v49 = vpop.f32.mrf.mxu0 }
 0x14a   : > { %v611_v50 = vpop.f32.mrf.mxu0 }
 0x14b   : > { %v612_v8 = vadd.f32 %v611_v50, %v9193_v33 }
 0x14c   : > { %v615_v51 = vpop.f32.mrf.mxu0 }
 0x14e   : > { %v617_v52 = vpop.f32.mrf.mxu0 }
 0x14f   : > { %v618_v1 = vadd.f32 %v617_v52, %v9185_v29  ;;  %v610_v52 = vadd.f32 %v609_v49, %v9193_v33 }
 0x150   : > { %v621_v53 = vpop.f32.mrf.mxu0 }
 0x151   : > { %v622_v5 = vadd.f32 %v621_v53, %v9189_v31  ;;  %v663_v14 = vmax.f32 %v618_v1, 0.0  ;;  %v594_v1 = vadd.f32 %v593_v44, %v9195_v34  ;;  %v582_v44 = vadd.f32 %v581_v24, %v9199_v36 }
 0x152   : > { %v623_v54 = vpop.f32.mrf.mxu0  ;;  %v570_v24 = vadd.f32 %v9226_v12, %v9203_v38  ;;  %v564_v53 = vadd.f32 %v9220_v63, %v9209_v41  ;;  %v558_v12 = vadd.f32 %v9213_v58, %v9207_v40  ;;  %v718_v40 = vpop.trf.xlu0 }
 0x153   : > { %v624_v61 = vadd.f32 %v623_v54, %v9189_v31  ;;  %v616_v54 = vadd.f32 %v615_v51, %v9185_v29  ;;  %v661_v31 = vmax.f32 %v612_v8, 0.0  ;;  %v588_v8 = vadd.f32 %v587_v42, %v9201_v37  ;;  %v933_v58 = vpop.trf.xlu1 }
 0x154   : > { %v627_v55 = vpop.f32.mrf.mxu0  ;;  %v576_v42 = vadd.f32 %v9230_v18, %v9205_v39  ;;  %v651_v51 = vmax.f32 %v582_v44, 0.0 }
 0x155   : > { %v628_v3 = vadd.f32 %v627_v55, %v9183_v28  ;;  %v665_v10 = vmax.f32 %v624_v61, 0.0  ;;  %v664_v55 = vmax.f32 %v622_v5, 0.0  ;;  %v662_v29 = vmax.f32 %v616_v54, 0.0 }
 0x156   : > { %v629_v57 = vpop.f32.mrf.mxu0  ;;  %v598_v5 = vadd.f32 %v597_v45, %v9197_v35  ;;  %v649_v61 = vmax.f32 %v576_v42, 0.0  ;;  %v643_v54 = vmax.f32 %v558_v12, 0.0 }
 0x157   : > { %v630_v62 = vadd.f32 %v629_v57, %v9183_v28  ;;  %v666_v57 = vmax.f32 %v628_v3, 0.0  ;;  %v9250_v50 = vpack.c.bf16 %v665_v10, %v663_v14  ;;  %v645_v3 = vmax.f32 %v564_v53, 0.0 }
 0x158   : > { %v633_v60 = vpop.f32.mrf.mxu0  ;;  %v656_v45 = vmax.f32 %v598_v5, 0.0 }
 0x159   : > { %v634_v2 = vadd.f32 %v633_v60, %v9187_v30  ;;  %v667_v11 = vmax.f32 %v630_v62, 0.0  ;;  %v606_v60 = vadd.f32 %v605_v48, %v9191_v32  ;;  %12384 = vst [vmem:[#allocation24_spill] sm:$0xff] %v9250_v50  ;;  %v653_v48 = vmax.f32 %v588_v8, 0.0 }
 0x15a   : > { %v635_v0 = vpop.f32.mrf.mxu0 }
 0x15b   : > { %v636_v4 = vadd.f32 %v635_v0, %v9187_v30  ;;  %v668_v7 = vmax.f32 %v634_v2, 0.0  ;;  %v600_v30 = vadd.f32 %v599_v46, %v9197_v35  ;;  %v655_v46 = vmax.f32 %v594_v1, 0.0  ;;  %v12403_v1 = vld [vmem:[#allocation11_spill] sm:$0xff] }
 0x15c   : > { %v586_v35 = vadd.f32 %v585_v27, %v9201_v37  ;;  %v574_v37 = vadd.f32 %v9228_v15, %v9205_v39  ;;  %v647_v2 = vmax.f32 %v570_v24, 0.0 }
 0x15d   : > { %v669_v13 = vmax.f32 %v636_v4, 0.0  ;;  %v9247_v0 = vpack.c.bf16 %v668_v7, %v666_v57  ;;  %v604_v4 = vadd.f32 %v603_v47, %v9191_v32  ;;  %v660_v7 = vmax.f32 %v610_v52, 0.0  ;;  %v934_v52 = vpop.trf.xlu1 }
 0x15e   : > { %v657_v10 = vmax.f32 %v600_v30, 0.0  ;;  %v592_v32 = vadd.f32 %v591_v43, %v9195_v34  ;;  %v580_v34 = vadd.f32 %v9232_v21, %v9199_v36  ;;  %v652_v27 = vmax.f32 %v586_v35, 0.0  ;;  %v12400_v30 = vld [vmem:[#allocation14_spill] sm:$0xff] }
 0x15f   : > { %v9244_v28 = vpack.c.bf16 %v669_v13, %v667_v11  ;;  %12383 = vst [vmem:[#allocation23_spill] sm:$0xff] %v9247_v0  ;;  %v659_v11 = vmax.f32 %v606_v60, 0.0  ;;  %v9258_v13 = vpack.c.bf16 %v664_v55, %v662_v29  ;;  %v658_v33 = vmax.f32 %v604_v4, 0.0  ;;  %v719_v60 = vpop.trf.xlu0  ;;  %v12402_v4 = vld [vmem:[#allocation12_spill] sm:$0xff] }
 0x160   : > { %v9272_v49 = vpack.c.bf16 %v657_v10, %v655_v46  ;;  %v654_v43 = vmax.f32 %v592_v32, 0.0  ;;  %v9286_v36 = vpack.c.bf16 %v653_v48, %v651_v51  ;;  %v568_v21 = vadd.f32 %v9222_v6, %v9203_v38 }
 0x161   : > { %12382 = vst [vmem:[#allocation22_spill] sm:$0xff] %v9244_v28  ;;  %726 = vmatprep.subr.bf16.mxu1 %v9244_v28  ;;  %12385 = vst [vmem:[#allocation25_spill] sm:$0xff] %v9258_v13  ;;  %v9261_v14 = vpack.c.bf16 %v661_v31, %v659_v11  ;;  %v9268_v47 = vpack.c.bf16 %v660_v7, %v658_v33  ;;  %v650_v62 = vmax.f32 %v580_v34, 0.0  ;;  %v648_v39 = vmax.f32 %v574_v37, 0.0  ;;  %v12401_v31 = vld [vmem:[#allocation13_spill] sm:$0xff] }
 0x162   : > { %727 = vmatpush1.bf16.msra.mxu1 %v9247_v0  ;;  %12388 = vst [vmem:[#allocation28_spill] sm:$0xff] %v9272_v49  ;;  %v9282_v18 = vpack.c.bf16 %v656_v45, %v654_v43  ;;  %12390 = vst [vmem:[#allocation30_spill] sm:$0xff] %v9286_v36  ;;  %v9296_v41 = vpack.c.bf16 %v649_v61, %v647_v2  ;;  %v646_v63 = vmax.f32 %v568_v21, 0.0  ;;  %v12395_v57 = vmov 0  }
 0x163   : > { %728 = vmatprep.subr.bf16.mxu1 %v9250_v50  ;;  %12386 = vst [vmem:[#allocation26_spill] sm:$0xff] %v9261_v14  ;;  %12387 = vst [vmem:[#allocation27_spill] sm:$0xff] %v9268_v47  ;;  %v9294_v15 = vpack.c.bf16 %v652_v27, %v650_v62  ;;  %v9302_v6 = vpack.c.bf16 %v645_v3, %v643_v54  ;;  %v12404_v7 = vmov 0.0  }
 0x164   : > { %12389 = vst [vmem:[#allocation29_spill] sm:$0xff] %v9282_v18  ;;  %12392 = vst [vmem:[#allocation32_spill] sm:$0xff] %v9296_v41  ;;  %v9300_v38 = vpack.c.bf16 %v648_v39, %v646_v63 }
 0x165   : > { %12391 = vst [vmem:[#allocation31_spill] sm:$0xff] %v9294_v15  ;;  %12394 = vst [vmem:[#allocation34_spill] sm:$0xff] %v9302_v6 }
 0x166   : > { %729 = vmatpush1.bf16.msra.mxu1 %v9258_v13  ;;  %12393 = vst [vmem:[#allocation33_spill] sm:$0xff] %v9300_v38 }
 0x167   : > { %730 = vmatprep.subr.bf16.mxu1 %v9261_v14 }
 0x16a   : > { %731 = vmatpush1.bf16.msra.mxu1 %v9268_v47 }
 0x16b   : > { %732 = vmatprep.subr.bf16.mxu1 %v9272_v49 }
 0x16e   : > { %733 = vmatpush1.bf16.msra.mxu1 %v9282_v18 }
 0x16f   : > { %734 = vmatprep.subr.bf16.mxu1 %v9286_v36 }
 0x172   : > { %735 = vmatpush1.bf16.msra.mxu1 %v9294_v15 }
 0x173   : > { %736 = vmatprep.subr.bf16.mxu1 %v9296_v41 }
 0x176   : > { %737 = vmatpush1.bf16.msra.mxu1 %v9300_v38 }
 0x177   : > { %738 = vmatprep.subr.bf16.mxu1 %v9302_v6 }
 0x17a   : > { %739 = vmatpush1.bf16.msra.mxu1 %v9224_v9 }
 0x17b   : > { %740 = vmatprep.subr.bf16.mxu1 %v9215_v59 }
 0x17e   : > { %741 = vmatpush1.bf16.msra.mxu1 %v9211_v56 }
 0x17f   : > { %7617 = vmatprep.subr.mxu1 %v9170_v26 }
 0x181   : > { %759 = vmatmul.mubr.bf16.vlgmr.msra.gmra.mxu1 %v718_v40 }
 0x182   : > { %768 = vmatprep.mubr.bf16.mxu1 %v12395_v57  ;;  %7618 = vmatpush3.msra.mxu1 %v9170_v26  ;;  %v12397_v26 = vld [vmem:[#allocation17_spill] sm:$0xff] }
 0x183   : > { %7619 = vmatprep.subr.mxu1 %v9167_v25 }
 0x184   : > { %7620 = vmatpush3.msra.mxu1 %v9167_v25  ;;  %v935_v25 = vpop.trf.xlu1 }
 0x185   : > { %7621 = vmatprep.subr.mxu1 %v9161_v23 }
 0x186   : > { %7622 = vmatpush3.msra.mxu1 %v9161_v23  ;;  %v720_v23 = vpop.trf.xlu0 }
 0x187   : > { %7623 = vmatprep.subr.mxu1 %v9158_v22 }
 0x188   : > { %7624 = vmatpush3.msra.mxu1 %v9158_v22  ;;  %v12396_v22 = vld [vmem:[#allocation18_spill] sm:$0xff] }
 0x189   : > { %769 = vmatmul.mubr.bf16.gmra.mxu1 %v719_v60  ;;  %7625 = vmatprep.subr.mxu1 %v9152_v20 }
 0x18a   : > { %778 = vmatprep.mubr.bf16.mxu1 %v12395_v57  ;;  %7626 = vmatpush3.msra.mxu1 %v9152_v20  ;;  %v936_v20 = vpop.trf.xlu1  ;;  %v721_v55 = vpop.trf.xlu0 }
 0x18b   : > { %7627 = vmatprep.subr.mxu1 %v9149_v19 }
 0x18c   : > { %7628 = vmatpush3.msra.mxu1 %v9149_v19  ;;  %v12398_v19 = vld [vmem:[#allocation16_spill] sm:$0xff] }
 0x18d   : > { %7629 = vmatprep.subr.mxu1 %v9143_v17 }
 0x18e   : > { %7630 = vmatpush3.msra.mxu1 %v9143_v17  ;;  %v12399_v17 = vld [vmem:[#allocation15_spill] sm:$0xff] }
 0x18f   : > { %7631 = vmatprep.subr.mxu1 %v9140_v16 }
 0x190   : > { %7632 = vmatpush3.msra.mxu1 %v9140_v16  ;;  %v937_v16 = vpop.trf.xlu1 }
 0x191   : > { %779 = vmatmul.mubr.bf16.gmra.mxu1 %v720_v23  ;;  %7633 = vmatprep.subr.mxu1 %v12396_v22 }
 0x192   : > { %788 = vmatprep.mubr.bf16.mxu1 %v12395_v57  ;;  %7634 = vmatpush3.msra.mxu1 %v12396_v22 }
 0x193   : > { %7635 = vmatprep.subr.mxu1 %v12397_v26 }
 0x194   : > { %7636 = vmatpush3.msra.mxu1 %v12397_v26  ;;  %v938_v29 = vpop.trf.xlu1 }
 0x195   : > { %7637 = vmatprep.subr.mxu1 %v12398_v19 }
 0x196   : > { %7638 = vmatpush3.msra.mxu1 %v12398_v19 }
 0x197   : > { %7639 = vmatprep.subr.mxu1 %v12399_v17 }
 0x198   : > { %7640 = vmatpush3.msra.mxu1 %v12399_v17  ;;  %v939_v11 = vpop.trf.xlu1 }
 0x199   : > { %789 = vmatmul.mubr.bf16.gmra.mxu1 %v721_v55  ;;  %7641 = vmatprep.subr.mxu1 %v12400_v30 }
 0x19a   : > { %7642 = vmatpush3.msra.mxu1 %v12400_v30  ;;  %7649 = vmatprep.mubr.f32.mxu1 %v933_v58 }
 0x19b   : > { %7643 = vmatprep.subr.mxu1 %v12401_v31 }
 0x19c   : > { %7644 = vmatpush3.msra.mxu1 %v12401_v31  ;;  %v940_v5 = vpop.trf.xlu1 }
 0x19d   : > { %7645 = vmatprep.subr.mxu1 %v12402_v4 }
 0x19e   : > { %7646 = vmatpush3.msra.mxu1 %v12402_v4 }
 0x19f   : > { %7647 = vmatprep.subr.mxu1 %v12403_v1 }
 0x1a0   : > { %7648 = vmatpush3.msra.mxu1 %v12403_v1 }
 0x1a1   : > { %7650 = vmatmul.mubr.f32.vlgmr.msra.gmra.mxu1 %v934_v52 }
 0x1a2   : > { %7652 = vmatprep.mubr.f32.mxu1 %v935_v25 }
 0x1a5   : > { %7653 = vmatmul.mubr.f32.gmra.mxu1 %v936_v20 }
 0x1a6   : > { %7655 = vmatprep.mubr.f32.mxu1 %v937_v16 }
 0x1a9   : > { %7656 = vmatmul.mubr.f32.gmra.mxu1 %v938_v29 }
 0x1aa   : > { %7658 = vmatprep.mubr.f32.mxu1 %v939_v11 }
 0x1ad   : > { %7659 = vmatmul.mubr.f32.gmra.mxu1 %v940_v5 }
 0x1ae   : > { %1159 = vmatprep.mubr.f32.mxu1 %v12404_v7 }
 0x241   : > { %v9345_v8 = vpop.f32.mrf.mxu1 }
 0x243   : > { %v9347_v10 = vpop.f32.mrf.mxu1 }
 0x245   : > { %v9349_v32 = vpop.f32.mrf.mxu1 }
 0x247   : > { %v9351_v33 = vpop.f32.mrf.mxu1 }
 0x249   : > { %v9353_v44 = vpop.f32.mrf.mxu1 }
 0x24a   : > { %v799_v51 = vmax.f32 %v9345_v8, %v9353_v44 }
 0x24b   : > { %v9355_v46 = vpop.f32.mrf.mxu1 }
 0x24c   : > { %v812_v53 = vmax.f32 %v9347_v10, %v9355_v46 }
 0x24d   : > { %v9357_v35 = vpop.f32.mrf.mxu1 }
 0x24e   : > { %v800_v37 = vmax.f32 %v9349_v32, %v9357_v35 }
 0x24f   : > { %v9359_v45 = vpop.f32.mrf.mxu1 }
 0x250   : > { %v813_v61 = vmax.f32 %v9351_v33, %v9359_v45 }
 0x251   : > { %v9361_v42 = vpop.f32.mrf.mxu1 }
 0x252   : > { %v801_v21 = vmax.f32 %v799_v51, %v9361_v42 }
 0x253   : > { %v9363_v48 = vpop.f32.mrf.mxu1 }
 0x254   : > { %v814_v2 = vmax.f32 %v812_v53, %v9363_v48 }
 0x255   : > { %v9365_v34 = vpop.f32.mrf.mxu1 }
 0x256   : > { %v802_v62 = vmax.f32 %v800_v37, %v9365_v34 }
 0x257   : > { %v9367_v43 = vpop.f32.mrf.mxu1 }
 0x258   : > { %v815_v39 = vmax.f32 %v813_v61, %v9367_v43 }
 0x259   : > { %v9369_v24 = vpop.f32.mrf.mxu1 }
 0x25a   : > { %v803_v3 = vmax.f32 %v801_v21, %v9369_v24 }
 0x25b   : > { %v9375_v27 = vpop.f32.mrf.mxu1 }
 0x25c   : > { %v816_v40 = vmax.f32 %v814_v2, %v9375_v27 }
 0x25d   : > { %v9383_v12 = vpop.f32.mrf.mxu1 }
 0x25e   : > { %v804_v63 = vmax.f32 %v802_v62, %v9383_v12 }
 0x25f   : > { %v9389_v54 = vpop.f32.mrf.mxu1 }
 0x260   : > { %v805_v58 = vmax.f32 %v803_v3, %v804_v63  ;;  %v817_v60 = vmax.f32 %v815_v39, %v9389_v54 }
 0x262   : > { %v806_v52 = vrot.slane %v805_v58, 4  ;;  %v818_v25 = vmax.f32 %v816_v40, %v817_v60 }
 0x264   : > { %v807_v23 = vmax.f32 %v805_v58, %v806_v52  ;;  %v819_v22 = vrot.slane %v818_v25, 4 }
 0x266   : > { %v808_v20 = vrot.slane %v807_v23, 2  ;;  %v820_v26 = vmax.f32 %v818_v25, %v819_v22 }
 0x268   : > { %v809_v19 = vmax.f32 %v807_v23, %v808_v20  ;;  %v821_v55 = vrot.slane %v820_v26, 2 }
 0x26a   : > { %v810_v17 = vrot.slane %v809_v19, 1  ;;  %v822_v16 = vmax.f32 %v820_v26, %v821_v55 }
 0x26c   : > { %v811_v30 = vmax.f32 %v809_v19, %v810_v17  ;;  %v823_v31 = vrot.slane %v822_v16, 1 }
 0x26e   : > { %v825_v4 = vsub.f32 %v9345_v8, %v811_v30  ;;  %v827_v29 = vsub.f32 %v9349_v32, %v811_v30  ;;  %v829_v1 = vsub.f32 %v9353_v44, %v811_v30  ;;  %v831_v11 = vsub.f32 %v9357_v35, %v811_v30 }
 0x26f   : > { %v833_v5 = vsub.f32 %v9361_v42, %v811_v30  ;;  %v824_v53 = vmax.f32 %v822_v16, %v823_v31  ;;  %v835_v61 = vsub.f32 %v9365_v34, %v811_v30  ;;  %v837_v3 = vsub.f32 %v9369_v24, %v811_v30 }
 0x270   : > { %v841_v51 = vmul.f32 1.442695, %v825_v4  ;;  %v845_v37 = vmul.f32 1.442695, %v827_v29  ;;  %v849_v21 = vmul.f32 1.442695, %v829_v1  ;;  %v839_v60 = vsub.f32 %v9383_v12, %v811_v30 }
 0x271   : > { %v826_v62 = vsub.f32 %v9347_v10, %v824_v53  ;;  %v853_v2 = vmul.f32 1.442695, %v831_v11  ;;  %v828_v39 = vsub.f32 %v9351_v33, %v824_v53  ;;  %v857_v63 = vmul.f32 1.442695, %v833_v5 }
 0x272   : > { %8233 = vpow2.f32 %v841_v51  ;;  %v861_v40 = vmul.f32 1.442695, %v835_v61  ;;  %v830_v58 = vsub.f32 %v9355_v46, %v824_v53  ;;  %v832_v25 = vsub.f32 %v9359_v45, %v824_v53 }
 0x273   : > { %8235 = vpow2.f32 %v845_v37  ;;  %v843_v52 = vmul.f32 1.442695, %v826_v62  ;;  %v847_v23 = vmul.f32 1.442695, %v828_v39  ;;  %v865_v22 = vmul.f32 1.442695, %v837_v3 }
 0x274   : > { %8237 = vpow2.f32 %v849_v21  ;;  %v834_v20 = vsub.f32 %v9363_v48, %v824_v53  ;;  %v851_v26 = vmul.f32 1.442695, %v830_v58  ;;  %v869_v19 = vmul.f32 1.442695, %v839_v60 }
 0x275   : > { %8239 = vpow2.f32 %v853_v2  ;;  %v836_v55 = vsub.f32 %v9367_v43, %v824_v53  ;;  %v855_v17 = vmul.f32 1.442695, %v832_v25  ;;  %v838_v16 = vsub.f32 %v9375_v27, %v824_v53 }
 0x276   : > { %8241 = vpow2.f32 %v857_v63  ;;  %v859_v30 = vmul.f32 1.442695, %v834_v20  ;;  %v840_v4 = vsub.f32 %v9389_v54, %v824_v53 }
 0x277   : > { %8243 = vpow2.f32 %v861_v40  ;;  %v863_v29 = vmul.f32 1.442695, %v836_v55  ;;  %v867_v5 = vmul.f32 1.442695, %v838_v16 }
 0x278   : > { %8245 = vpow2.f32 %v843_v52  ;;  %v871_v61 = vmul.f32 1.442695, %v840_v4 }
 0x279   : > { %8247 = vpow2.f32 %v847_v23 }
 0x27a   : > { %8249 = vpow2.f32 %v865_v22 }
 0x27b   : > { %8251 = vpow2.f32 %v851_v26 }
 0x27c   : > { %8253 = vpow2.f32 %v869_v19 }
 0x27d   : > { %8255 = vpow2.f32 %v855_v17 }
 0x27e   : > { %8257 = vpow2.f32 %v859_v30 }
 0x27f   : > { %v9408_v31 = vpop.eup %8233  ;;  %8259 = vpow2.f32 %v863_v29 }
 0x280   : > { %v9411_v1 = vpop.eup %8235  ;;  %8261 = vpow2.f32 %v867_v5 }
 0x281   : > { %v873_v11 = vadd.f32 %v9411_v1, %v9408_v31  ;;  %v9415_v51 = vpop.eup %8237  ;;  %8263 = vpow2.f32 %v871_v61 }
 0x282   : > { %v8240_v21 = vpop.eup %8239 }
 0x283   : > { %v874_v37 = vadd.f32 %v9415_v51, %v873_v11  ;;  %v8242_v62 = vpop.eup %8241 }
 0x284   : > { %v8244_v53 = vpop.eup %8243 }
 0x285   : > { %v875_v2 = vadd.f32 %v8240_v21, %v874_v37  ;;  %v9418_v39 = vpop.eup %8245 }
 0x286   : > { %v8248_v63 = vpop.eup %8247 }
 0x287   : > { %v876_v3 = vadd.f32 %v8242_v62, %v875_v2  ;;  %v8250_v40 = vpop.eup %8249  ;;  %v886_v60 = vadd.f32 %v8248_v63, %v9418_v39 }
 0x288   : > { %v8252_v52 = vpop.eup %8251 }
 0x289   : > { %v877_v58 = vadd.f32 %v8244_v53, %v876_v3  ;;  %v8254_v25 = vpop.eup %8253  ;;  %v887_v22 = vadd.f32 %v8252_v52, %v886_v60 }
 0x28a   : > { %v8256_v20 = vpop.eup %8255 }
 0x28b   : > { %v878_v23 = vadd.f32 %v8250_v40, %v877_v58  ;;  %v888_v19 = vadd.f32 %v8256_v20, %v887_v22  ;;  %v8258_v55 = vpop.eup %8257 }
 0x28c   : > { %v8260_v30 = vpop.eup %8259 }
 0x28d   : > { %v879_v26 = vadd.f32 %v8254_v25, %v878_v23  ;;  %v889_v16 = vadd.f32 %v8258_v55, %v888_v19  ;;  %v8262_v11 = vpop.eup %8261 }
 0x28e   : > { %v8264_v61 = vpop.eup %8263 }
 0x28f   : > { %v880_v17 = vrot.slane %v879_v26, 4  ;;  %v890_v29 = vadd.f32 %v8260_v30, %v889_v16 }
 0x291   : > { %v881_v4 = vadd.f32 %v880_v17, %v879_v26  ;;  %v891_v37 = vadd.f32 %v8262_v11, %v890_v29 }
 0x293   : > { %v882_v5 = vrot.slane %v881_v4, 2  ;;  %v892_v2 = vadd.f32 %v8264_v61, %v891_v37 }
 0x295   : > { %v883_v3 = vadd.f32 %v882_v5, %v881_v4  ;;  %v893_v57 = vrot.slane %v892_v2, 4  ;;  %v7651_v4 = vpop.f32.mrf.mxu1 }
 0x297   : > { %v894_v59 = vadd.f32 %v893_v57, %v892_v2  ;;  %v884_v15 = vrot.slane %v883_v3, 1 }
 0x299   : > { %v895_v58 = vrot.slane %v894_v59, 2  ;;  %v885_v38 = vadd.f32 %v884_v15, %v883_v3 }
 0x29b   : > { %v896_v60 = vadd.f32 %v895_v58, %v894_v59  ;;  %8265 = vrcp.f32 %v885_v38 }
 0x29d   : > { %v897_v23 = vrot.slane %v896_v60, 1 }
 0x29f   : > { %v898_v22 = vadd.f32 %v897_v23, %v896_v60 }
 0x2a1   : > { %8267 = vrcp.f32 %v898_v22 }
 0x2a8   : > { %v8266_v19 = vpop.eup %8265 }
 0x2a9   : > { %v9423_v17 = vmul.f32 %v8266_v19, %v8254_v25  ;;  %v9429_v57 = vmul.f32 %v8266_v19, %v8250_v40  ;;  %v9435_v15 = vmul.f32 %v8266_v19, %v8244_v53  ;;  %v9441_v25 = vmul.f32 %v8266_v19, %v8242_v62 }
 0x2ae   : > { %v8268_v36 = vpop.eup %8267 }
 0x2af   : > { %v9421_v26 = vmul.f32 %v8268_v36, %v8264_v61  ;;  %v9426_v16 = vmul.f32 %v8268_v36, %v8262_v11  ;;  %v9432_v59 = vmul.f32 %v8268_v36, %v8260_v30  ;;  %v9438_v38 = vmul.f32 %v8268_v36, %v8258_v55 }
 0x2b0   : > { %v9444_v40 = vmul.f32 %v8268_v36, %v8256_v20  ;;  %v9447_v30 = vmul.f32 %v8266_v19, %v8240_v21  ;;  %v9450_v53 = vmul.f32 %v8268_v36, %v8252_v52  ;;  %v9454_v55 = vmul.f32 %v8266_v19, %v9415_v51  ;;  %v1015_v51 = vpop.f32.mrf.mxu1 }
 0x2b1   : > { %1111 = vmatprep.subr.mxu1 %v9421_v26  ;;  %v9457_v62 = vmul.f32 %v8268_v36, %v8248_v63  ;;  %v9461_v20 = vmul.f32 %v8266_v19, %v9411_v1  ;;  %v902_v21 = vmul.f32 %v8268_v36, %v9418_v39  ;;  %v9467_v52 = vmul.f32 %v8266_v19, %v9408_v31 }
 0x2b2   : > { %1112 = vmatpush1.msra.mxu1 %v9423_v17  ;;  %v7654_v1 = vpop.f32.mrf.mxu1 }
 0x2b3   : > { %1113 = vmatprep.subr.mxu1 %v9426_v16  ;;  %v1055_v19 = vmul.f32 %v902_v21, %v9347_v10 }
 0x2b4   : > { %1114 = vmatpush1.msra.mxu1 %v9429_v57  ;;  %v1025_v36 = vpop.f32.mrf.mxu1 }
 0x2b5   : > { %1115 = vmatprep.subr.mxu1 %v9432_v59 }
 0x2b6   : > { %1116 = vmatpush1.msra.mxu1 %v9435_v15  ;;  %v7657_v31 = vpop.f32.mrf.mxu1 }
 0x2b7   : > { %1117 = vmatprep.subr.mxu1 %v9438_v38 }
 0x2b8   : > { %1118 = vmatpush1.msra.mxu1 %v9441_v25  ;;  %v1035_v39 = vpop.f32.mrf.mxu1 }
 0x2b9   : > { %1119 = vmatprep.subr.mxu1 %v9444_v40 }
 0x2ba   : > { %1120 = vmatpush1.msra.mxu1 %v9447_v30  ;;  %v7660_v63 = vpop.f32.mrf.mxu1 }
 0x2bb   : > { %1121 = vmatprep.subr.mxu1 %v9450_v53 }
 0x2bc   : > { %1122 = vmatpush1.msra.mxu1 %v9454_v55  ;;  %v1045_v29 = vpop.f32.mrf.mxu1 }
 0x2bd   : > { %1123 = vmatprep.subr.mxu1 %v9457_v62 }
 0x2be   : > { %1124 = vmatpush1.msra.mxu1 %v9461_v20 }
 0x2bf   : > { %1125 = vmatprep.subr.mxu1 %v902_v21 }
 0x2c0   : > { %1126 = vmatpush1.msra.mxu1 %v9467_v52 }
 0x2c1   : > { %7129 = vmatmul.mubr.msk.f32.vlgmr.msra.gmra.mxu1 %vm1070_vm0, %v1015_v51 }
 0x2c2   : > { %1165 = vmatprep.mubr.f32.mxu1 %v12404_v7 }
 0x2c5   : > { %7130 = vmatmul.mubr.msk.f32.gmra.mxu1 %vm1070_vm0, %v7651_v4 }
 0x2c6   : > { %1171 = vmatprep.mubr.f32.mxu1 %v12404_v7 }
 0x2c9   : > { %7131 = vmatmul.mubr.msk.f32.gmra.mxu1 %vm1070_vm0, %v1025_v36 }
 0x2ca   : > { %1177 = vmatprep.mubr.f32.mxu1 %v12404_v7 }
 0x2cd   : > { %7132 = vmatmul.mubr.msk.f32.gmra.mxu1 %vm1070_vm0, %v7654_v1 }
 0x2ce   : > { %1183 = vmatprep.mubr.f32.mxu1 %v12404_v7 }
 0x2d1   : > { %7133 = vmatmul.mubr.msk.f32.gmra.mxu1 %vm1070_vm0, %v1035_v39 }
 0x2d2   : > { %1189 = vmatprep.mubr.f32.mxu1 %v12404_v7 }
 0x2d5   : > { %7134 = vmatmul.mubr.msk.f32.gmra.mxu1 %vm1070_vm0, %v7657_v31 }
 0x2d6   : > { %1195 = vmatprep.mubr.f32.mxu1 %v12404_v7 }
 0x2d9   : > { %7135 = vmatmul.mubr.msk.f32.gmra.mxu1 %vm1070_vm0, %v1045_v29 }
 0x2da   : > { %1201 = vmatprep.mubr.f32.mxu1 %v12404_v7 }
 0x2dd   : > { %7136 = vmatmul.mubr.msk.f32.gmra.mxu1 %vm1070_vm0, %v7660_v63 }
 0x381   : > { %v9485_v11 = vpop.f32.mrf.mxu1 }
 0x383   : > { %v1163_v5 = vpop.f32.mrf.mxu1 }
 0x384   : > { %v1164_v37 = vadd.f32 1e-06, %v1163_v5 }
 0x385   : > { %v9487_v61 = vpop.f32.mrf.mxu1 }
 0x386   : > { %8269 = vrcp.f32 %v1164_v37 }
 0x387   : > { %v1169_v2 = vpop.f32.mrf.mxu1 }
 0x389   : > { %v1173_v3 = vpop.f32.mrf.mxu1 }
 0x38b   : > { %v1175_v58 = vpop.f32.mrf.mxu1 }
 0x38c   : > { %v1176_v41 = vadd.f32 1e-06, %v1175_v58  ;;  %v1067_v58 = vmul.f32 %v9426_v16, %v9375_v27 }
 0x38d   : > { %v1179_v60 = vpop.f32.mrf.mxu1 }
 0x38f   : > { %v1181_v23 = vpop.f32.mrf.mxu1 }
 0x391   : > { %v1185_v22 = vpop.f32.mrf.mxu1 }
 0x392   : > { %v1186_v47 = vadd.f32 1e-06, %v1185_v22  ;;  %v1162_v22 = vadd.f32 1e-06, %v9485_v11 }
 0x393   : > { %v8270_v4 = vpop.eup %8269  ;;  %v1187_v51 = vpop.f32.mrf.mxu1 }
 0x394   : > { %v9490_v1 = vmul.f32 %v8270_v4, %v1055_v19  ;;  %v1188_v39 = vadd.f32 1e-06, %v1187_v51  ;;  %v1182_v4 = vadd.f32 1e-06, %v1181_v23  ;;  %v1069_v23 = vmul.f32 %v9421_v26, %v9389_v54 }
 0x395   : > { %v1191_v36 = vpop.f32.mrf.mxu1 }
 0x396   : > { %1409 = vmatprep.mubr.f32.mxu1 %v9490_v1  ;;  %8271 = vrcp.f32 %v1188_v39  ;;  %v1192_v19 = vadd.f32 1e-06, %v1191_v36  ;;  %v1180_v39 = vadd.f32 1e-06, %v1179_v60  ;;  %v1066_v60 = vmul.f32 %v9429_v57, %v9369_v24 }
 0x397   : > { %v1193_v31 = vpop.f32.mrf.mxu1  ;;  %v1168_v24 = vadd.f32 1e-06, %v9487_v61  ;;  %v1061_v36 = vmul.f32 %v9444_v40, %v9359_v45 }
 0x398   : > { %v1194_v29 = vadd.f32 1e-06, %v1193_v31 }
 0x399   : > { %v1197_v63 = vpop.f32.mrf.mxu1 }
 0x39a   : > { %v1198_v7 = vadd.f32 1e-06, %v1197_v63  ;;  %8273 = vrcp.f32 %v1194_v29  ;;  %v1170_v29 = vadd.f32 1e-06, %v1169_v2  ;;  %v1063_v2 = vmul.f32 %v9438_v38, %v9363_v48 }
 0x39b   : > { %v1199_v5 = vpop.f32.mrf.mxu1 }
 0x39c   : > { %v1200_v37 = vadd.f32 1e-06, %v1199_v5  ;;  %v1174_v5 = vadd.f32 1e-06, %v1173_v3  ;;  %v1064_v3 = vmul.f32 %v9435_v15, %v9365_v34  ;;  %v1059_v34 = vmul.f32 %v9450_v53, %v9355_v46 }
 0x39d   : > { %v1203_v18 = vpop.f32.mrf.mxu1  ;;  %v1060_v53 = vmul.f32 %v9447_v30, %v9357_v35  ;;  %v1056_v30 = vmul.f32 %v9461_v20, %v9349_v32  ;;  %v12406_v32 = vld [vmem:[#allocation27_spill] sm:$0xff]  ;;  %v12407_v20 = vld [vmem:[#allocation28_spill] sm:$0xff] }
 0x39e   : > { %v1204_v49 = vadd.f32 1e-06, %v1203_v18  ;;  %8275 = vrcp.f32 %v1200_v37 }
 0x39f   : > { %v1205_v10 = vpop.f32.mrf.mxu1 }
 0x3a0   : > { %8277 = vrcp.f32 %v1204_v49  ;;  %v1206_v21 = vadd.f32 1e-06, %v1205_v10  ;;  %v1068_v49 = vmul.f32 %v9423_v17, %v9383_v12  ;;  %v1062_v10 = vmul.f32 %v9441_v25, %v9361_v42 }
 0x3a1   : > { %8279 = vrcp.f32 %v1198_v7 }
 0x3a2   : > { %8281 = vrcp.f32 %v1206_v21 }
 0x3a3   : > { %8283 = vrcp.f32 %v1192_v19  ;;  %v8272_v51 = vpop.eup %8271 }
 0x3a4   : > { %8285 = vrcp.f32 %v1182_v4  ;;  %v1057_v4 = vmul.f32 %v9457_v62, %v9351_v33  ;;  %v1054_v62 = vmul.f32 %v9467_v52, %v9345_v8  ;;  %v12405_v8 = vld [vmem:[#allocation32_spill] sm:$0xff]  ;;  %v12408_v52 = vld [vmem:[#allocation29_spill] sm:$0xff] }
 0x3a5   : > { %8287 = vrcp.f32 %v1186_v47  ;;  %v1065_v47 = vmul.f32 %v9432_v59, %v9367_v43  ;;  %v9515_v43 = vmul.f32 %v8272_v51, %v1063_v2  ;;  %v1058_v51 = vmul.f32 %v9454_v55, %v9353_v44 }
 0x3a6   : > { %8289 = vrcp.f32 %v1176_v41 }
 0x3a7   : > { %v8274_v31 = vpop.eup %8273  ;;  %8291 = vrcp.f32 %v1180_v39 }
 0x3a8   : > { %8293 = vrcp.f32 %v1170_v29  ;;  %v9507_v17 = vmul.f32 %v8274_v31, %v1065_v47  ;;  %v9626_v47 = vld [vmem:[%s9101_s28] sm:$0xff] }
 0x3a9   : > { %8295 = vrcp.f32 %v1174_v5  ;;  %v12409_v5 = vld [vmem:[#allocation30_spill] sm:$0xff] }
 0x3aa   : > { %v1245_v59 = vpack.c.bf16 %v9507_v17, %v9515_v43  ;;  %8297 = vrcp.f32 %v1168_v24 }
 0x3ab   : > { %v8276_v63 = vpop.eup %8275  ;;  %8299 = vrcp.f32 %v1162_v22 }
 0x3ac   : > { %v9509_v54 = vmul.f32 %v8276_v63, %v1067_v58  ;;  %v12412_v58 = vld [vmem:[#allocation20_spill] sm:$0xff] }
 0x3ad   : > { %v8278_v18 = vpop.eup %8277 }
 0x3ae   : > { %v8280_v7 = vpop.eup %8279  ;;  %v9505_v12 = vmul.f32 %v8278_v18, %v1068_v49 }
 0x3af   : > { %v8282_v41 = vpop.eup %8281  ;;  %v9513_v27 = vmul.f32 %v8280_v7, %v1066_v60  ;;  %v12410_v7 = vld [vmem:[#allocation33_spill] sm:$0xff] }
 0x3b0   : > { %v9511_v26 = vmul.f32 %v8282_v41, %v1069_v23  ;;  %v8284_v57 = vpop.eup %8283  ;;  %v12411_v23 = vld [vmem:[#allocation31_spill] sm:$0xff]  ;;  %v12413_v41 = vmov 0  }
 0x3b1   : > { %v1246_v16 = vpack.c.bf16 %v9505_v12, %v9513_v27  ;;  %v8286_v38 = vpop.eup %8285  ;;  %v9535_v21 = vmul.f32 %v8284_v57, %v1064_v3 }
 0x3b2   : > { %1361 = vmatprep.subr.mxu1 %v9511_v26  ;;  %v1247_v48 = vpack.c.bf16 %v9511_v26, %v9509_v54  ;;  %v8288_v61 = vpop.eup %8287  ;;  %v9539_v15 = vmul.f32 %v8286_v38, %v1061_v36 }
 0x3b3   : > { %1362 = vmatpush1.xpose.msra.mxu1 %v9505_v12  ;;  %v8290_v37 = vpop.eup %8289  ;;  %v9542_v11 = vmul.f32 %v8288_v61, %v1062_v10 }
 0x3b4   : > { %1256 = vmatprep.subr.bf16.mxu0 %v1247_v48  ;;  %1363 = vmatprep.subr.mxu1 %v9509_v54  ;;  %v9544_v45 = vmul.f32 %v8290_v37, %v1059_v34  ;;  %v8292_v25 = vpop.eup %8291 }
 0x3b5   : > { %1257 = vmatpush1.bf16.xpose.msra.mxu0 %v1246_v16  ;;  %v1244_v42 = vpack.c.bf16 %v9535_v21, %v9542_v11  ;;  %v8294_v40 = vpop.eup %8293  ;;  %v9559_v31 = vmul.f32 %v8292_v25, %v1060_v53 }
 0x3b6   : > { %1258 = vmatprep.subr.bf16.mxu0 %v1245_v59  ;;  %v1243_v46 = vpack.c.bf16 %v9539_v15, %v9544_v45  ;;  %v8296_v19 = vpop.eup %8295  ;;  %v9561_v39 = vmul.f32 %v8294_v40, %v1057_v4 }
 0x3b7   : > { %1364 = vmatpush1.xpose.msra.mxu1 %v9513_v27  ;;  %v9564_v63 = vmul.f32 %v8296_v19, %v1058_v51  ;;  %v8298_v33 = vpop.eup %8297 }
 0x3b8   : > { %1365 = vmatprep.subr.mxu1 %v9507_v17  ;;  %v1241_v44 = vpack.c.bf16 %v9561_v39, %v9490_v1  ;;  %v8300_v55 = vpop.eup %8299  ;;  %v9577_v29 = vmul.f32 %v8298_v33, %v1056_v30 }
 0x3b9   : > { %v1242_v35 = vpack.c.bf16 %v9559_v31, %v9564_v63  ;;  %v9580_v18 = vmul.f32 %v8300_v55, %v1054_v62 }
 0x3bb   : > { %1366 = vmatpush1.xpose.msra.mxu1 %v9535_v21  ;;  %v1240_v49 = vpack.c.bf16 %v9577_v29, %v9580_v18 }
 0x3bc   : > { %1367 = vmatprep.subr.mxu1 %v9515_v43 }
 0x3bd   : > { %1259 = vmatpush1.bf16.xpose.msra.mxu0 %v1244_v42 }
 0x3be   : > { %1260 = vmatprep.subr.bf16.mxu0 %v1243_v46 }
 0x3bf   : > { %1368 = vmatpush1.xpose.msra.mxu1 %v9542_v11 }
 0x3c0   : > { %1369 = vmatprep.subr.mxu1 %v9539_v15 }
 0x3c3   : > { %1370 = vmatpush1.xpose.msra.mxu1 %v9559_v31 }
 0x3c4   : > { %1371 = vmatprep.subr.mxu1 %v9544_v45 }
 0x3c5   : > { %1261 = vmatpush1.bf16.xpose.msra.mxu0 %v1242_v35 }
 0x3c6   : > { %1262 = vmatprep.subr.bf16.mxu0 %v1241_v44 }
 0x3c7   : > { %1372 = vmatpush1.xpose.msra.mxu1 %v9564_v63 }
 0x3c8   : > { %1373 = vmatprep.subr.mxu1 %v9561_v39 }
 0x3cb   : > { %1374 = vmatpush1.xpose.msra.mxu1 %v9577_v29 }
 0x3cc   : > { %1375 = vmatprep.subr.mxu1 %v9490_v1 }
 0x3cd   : > { %1263 = vmatpush1.bf16.xpose.msra.mxu0 %v1240_v49 }
 0x3ce   : > { %1715 = vmatprep.subr.bf16.mxu0 %v9244_v28 }
 0x3cf   : > { %1376 = vmatpush1.xpose.msra.mxu1 %v9580_v18 }
 0x3d2   : > { %1410 = vmatmul.mubr.f32.vlgmr.msra.gmra.mxu1 %v9580_v18 }
 0x3d3   : > { %1414 = vmatprep.mubr.f32.mxu1 %v9561_v39 }
 0x3d4   : > { %1281 = vmatmul.mubr.bf16.vlgmr.msra.gmra.mxu0 %v9211_v56 }
 0x3d5   : > { %1288 = vmatprep.mubr.bf16.mxu0 %v9302_v6  ;;  %1716 = vmatpush1.bf16.msra.mxu0 %v9247_v0 }
 0x3d6   : > { %1415 = vmatmul.mubr.f32.gmra.mxu1 %v9577_v29  ;;  %1717 = vmatprep.subr.bf16.mxu0 %v9250_v50 }
 0x3d7   : > { %1419 = vmatprep.mubr.f32.mxu1 %v9544_v45 }
 0x3d9   : > { %1718 = vmatpush1.bf16.msra.mxu0 %v9258_v13 }
 0x3da   : > { %1420 = vmatmul.mubr.f32.gmra.mxu1 %v9564_v63  ;;  %1719 = vmatprep.subr.bf16.mxu0 %v9261_v14 }
 0x3db   : > { %1424 = vmatprep.mubr.f32.mxu1 %v9539_v15 }
 0x3dc   : > { %1289 = vmatmul.mubr.bf16.gmra.mxu0 %v9224_v9 }
 0x3dd   : > { %1296 = vmatprep.mubr.bf16.mxu0 %v12405_v8  ;;  %1720 = vmatpush1.bf16.msra.mxu0 %v12406_v32 }
 0x3de   : > { %1425 = vmatmul.mubr.f32.gmra.mxu1 %v9559_v31  ;;  %1721 = vmatprep.subr.bf16.mxu0 %v12407_v20 }
 0x3df   : > { %1429 = vmatprep.mubr.f32.mxu1 %v9515_v43 }
 0x3e1   : > { %1722 = vmatpush1.bf16.msra.mxu0 %v12408_v52 }
 0x3e2   : > { %1430 = vmatmul.mubr.f32.gmra.mxu1 %v9542_v11  ;;  %1723 = vmatprep.subr.bf16.mxu0 %v12409_v5 }
 0x3e3   : > { %1434 = vmatprep.mubr.f32.mxu1 %v9507_v17 }
 0x3e4   : > { %1297 = vmatmul.mubr.bf16.gmra.mxu0 %v12410_v7 }
 0x3e5   : > { %1304 = vmatprep.mubr.bf16.mxu0 %v12409_v5  ;;  %1724 = vmatpush1.bf16.msra.mxu0 %v12411_v23 }
 0x3e6   : > { %1435 = vmatmul.mubr.f32.gmra.mxu1 %v9535_v21  ;;  %1725 = vmatprep.subr.bf16.mxu0 %v12405_v8 }
 0x3e7   : > { %1439 = vmatprep.mubr.f32.mxu1 %v9509_v54 }
 0x3e9   : > { %1726 = vmatpush1.bf16.msra.mxu0 %v12410_v7 }
 0x3ea   : > { %1440 = vmatmul.mubr.f32.gmra.mxu1 %v9513_v27  ;;  %1727 = vmatprep.subr.bf16.mxu0 %v9302_v6 }
 0x3eb   : > { %1444 = vmatprep.mubr.f32.mxu1 %v9511_v26 }
 0x3ec   : > { %1305 = vmatmul.mubr.bf16.gmra.mxu0 %v12411_v23  ;;  %v9737_v23 = vld [vmem:[%s9101_s28 + $0x70] sm:$0xff] }
 0x3ed   : > { %1312 = vmatprep.mubr.bf16.mxu0 %v12407_v20  ;;  %1728 = vmatpush1.bf16.msra.mxu0 %v9224_v9 }
 0x3ee   : > { %1445 = vmatmul.mubr.f32.gmra.mxu1 %v9505_v12  ;;  %1729 = vmatprep.subr.bf16.mxu0 %v12412_v58 }
 0x3ef   : > { %7677 = vmatprep.mubr.msk.f32.mxu1 %vm1070_vm0, %v9626_v47 }
 0x3f1   : > { %1730 = vmatpush1.bf16.msra.mxu0 %v9211_v56 }
 0x3f4   : > { %1313 = vmatmul.mubr.bf16.gmra.mxu0 %v12408_v52 }
 0x3f5   : > { %1320 = vmatprep.mubr.bf16.mxu0 %v9261_v14 }
 0x3fc   : > { %1321 = vmatmul.mubr.bf16.gmra.mxu0 %v12406_v32 }
 0x3fd   : > { %1328 = vmatprep.mubr.bf16.mxu0 %v9250_v50 }
 0x404   : > { %1329 = vmatmul.mubr.bf16.gmra.mxu0 %v9258_v13 }
 0x405   : > { %1336 = vmatprep.mubr.bf16.mxu0 %v9244_v28 }
 0x40c   : > { %1337 = vmatmul.mubr.bf16.gmra.mxu0 %v9247_v0 }
 0x40d   : > { %1747 = vmatprep.mubr.bf16.mxu0 %v12413_v41 }
 0x492   : > { %v1411_v60 = vpop.f32.mrf.mxu1 }
 0x494   : > { %v9639_v2 = vpop.f32.mrf.mxu0  ;;  %v1413_v48 = vpop.f32.mrf.mxu1 }
 0x496   : > { %v1284_v24 = vpop.f32.mrf.mxu0  ;;  %v1416_v16 = vpop.f32.mrf.mxu1 }
 0x498   : > { %v9641_v57 = vpop.f32.mrf.mxu0  ;;  %v1418_v59 = vpop.f32.mrf.mxu1 }
 0x49a   : > { %v1287_v38 = vpop.f32.mrf.mxu0  ;;  %v1421_v3 = vpop.f32.mrf.mxu1 }
 0x49c   : > { %v9643_v22 = vpop.f32.mrf.mxu0  ;;  %v1423_v61 = vpop.f32.mrf.mxu1 }
 0x49e   : > { %v1292_v36 = vpop.f32.mrf.mxu0  ;;  %v1426_v37 = vpop.f32.mrf.mxu1 }
 0x4a0   : > { %v9645_v10 = vpop.f32.mrf.mxu0  ;;  %v1428_v34 = vpop.f32.mrf.mxu1 }
 0x4a2   : > { %v1295_v42 = vpop.f32.mrf.mxu0  ;;  %v1431_v25 = vpop.f32.mrf.mxu1 }
 0x4a4   : > { %v9647_v46 = vpop.f32.mrf.mxu0  ;;  %v1433_v40 = vpop.f32.mrf.mxu1 }
 0x4a5   : > { %v9669_v40 = vld [vmem:[%s9101_s28 + $0x10] sm:$0xff] }
 0x4a6   : > { %v1300_v53 = vpop.f32.mrf.mxu0  ;;  %v1436_v19 = vpop.f32.mrf.mxu1 }
 0x4a7   : > { %v9681_v53 = vld [vmem:[%s9101_s28 + $0x20] sm:$0xff] }
 0x4a8   : > { %v9649_v4 = vpop.f32.mrf.mxu0  ;;  %v1438_v51 = vpop.f32.mrf.mxu1 }
 0x4a9   : > { %v9686_v51 = vld [vmem:[%s9101_s28 + $0x28] sm:$0xff] }
 0x4aa   : > { %v1303_v35 = vpop.f32.mrf.mxu0  ;;  %v1441_v33 = vpop.f32.mrf.mxu1 }
 0x4ac   : > { %v9651_v44 = vpop.f32.mrf.mxu0  ;;  %v1443_v30 = vpop.f32.mrf.mxu1 }
 0x4ae   : > { %v1308_v55 = vpop.f32.mrf.mxu0  ;;  %v1446_v62 = vpop.f32.mrf.mxu1 }
 0x4af   : > { %7661 = vmatprep.subr.mxu1 %v1446_v62  ;;  %v9698_v55 = vld [vmem:[%s9101_s28 + $0x38] sm:$0xff] }
 0x4b0   : > { %v9653_v49 = vpop.f32.mrf.mxu0  ;;  %v1448_v48 = vpop.f32.mrf.mxu1  ;;  %7662 = vmatpush3.msra.mxu1 %v1446_v62 }
 0x4b1   : > { %7663 = vmatprep.subr.mxu1 %v1441_v33  ;;  %v9705_v48 = vld [vmem:[%s9101_s28 + $0x40] sm:$0xff] }
 0x4b2   : > { %v1311_v24 = vpop.f32.mrf.mxu0  ;;  %7664 = vmatpush3.msra.mxu1 %v1441_v33  ;;  %v9693_v33 = vld [vmem:[%s9101_s28 + $0x30] sm:$0xff] }
 0x4b3   : > { %7665 = vmatprep.subr.mxu1 %v1436_v19 }
 0x4b4   : > { %v9655_v59 = vpop.f32.mrf.mxu0  ;;  %7666 = vmatpush3.msra.mxu1 %v1436_v19 }
 0x4b5   : > { %7667 = vmatprep.subr.mxu1 %v1431_v25 }
 0x4b6   : > { %v1316_v38 = vpop.f32.mrf.mxu0  ;;  %7668 = vmatpush3.msra.mxu1 %v1431_v25  ;;  %v9662_v25 = vld [vmem:[%s9101_s28 + $0x8] sm:$0xff] }
 0x4b7   : > { %7669 = vmatprep.subr.mxu1 %v1426_v37  ;;  %v9710_v38 = vld [vmem:[%s9101_s28 + $0x48] sm:$0xff] }
 0x4b8   : > { %v9657_v61 = vpop.f32.mrf.mxu0  ;;  %7670 = vmatpush3.msra.mxu1 %v1426_v37 }
 0x4b9   : > { %7671 = vmatprep.subr.mxu1 %v1421_v3 }
 0x4ba   : > { %v1319_v36 = vpop.f32.mrf.mxu0  ;;  %7672 = vmatpush3.msra.mxu1 %v1421_v3 }
 0x4bb   : > { %7673 = vmatprep.subr.mxu1 %v1416_v16 }
 0x4bc   : > { %v9659_v34 = vpop.f32.mrf.mxu0  ;;  %7674 = vmatpush3.msra.mxu1 %v1416_v16  ;;  %v9674_v16 = vld [vmem:[%s9101_s28 + $0x18] sm:$0xff] }
 0x4bd   : > { %7675 = vmatprep.subr.mxu1 %v1411_v60 }
 0x4be   : > { %v1324_v42 = vpop.f32.mrf.mxu0  ;;  %7676 = vmatpush3.msra.mxu1 %v1411_v60 }
 0x4bf   : > { %7678 = vmatmul.mubr.msk.f32.vlgmr.msra.gmra.mxu1 %vm1070_vm0, %v9662_v25  ;;  %v9717_v42 = vld [vmem:[%s9101_s28 + $0x50] sm:$0xff] }
 0x4c0   : > { %v9666_v37 = vpop.f32.mrf.mxu0  ;;  %7680 = vmatprep.mubr.msk.f32.mxu1 %vm1070_vm0, %v9669_v40 }
 0x4c2   : > { %v1327_v3 = vpop.f32.mrf.mxu0 }
 0x4c3   : > { %7681 = vmatmul.mubr.msk.f32.gmra.mxu1 %vm1070_vm0, %v9674_v16 }
 0x4c4   : > { %v9678_v60 = vpop.f32.mrf.mxu0  ;;  %7683 = vmatprep.mubr.msk.f32.mxu1 %vm1070_vm0, %v9681_v53 }
 0x4c6   : > { %v1332_v19 = vpop.f32.mrf.mxu0 }
 0x4c7   : > { %7684 = vmatmul.mubr.msk.f32.gmra.mxu1 %vm1070_vm0, %v9686_v51  ;;  %v9722_v19 = vld [vmem:[%s9101_s28 + $0x58] sm:$0xff] }
 0x4c8   : > { %v9690_v35 = vpop.f32.mrf.mxu0  ;;  %7686 = vmatprep.mubr.msk.f32.mxu1 %vm1070_vm0, %v9693_v33 }
 0x4ca   : > { %v1335_v30 = vpop.f32.mrf.mxu0 }
 0x4cb   : > { %7687 = vmatmul.mubr.msk.f32.gmra.mxu1 %vm1070_vm0, %v9698_v55  ;;  %v9727_v30 = vld [vmem:[%s9101_s28 + $0x60] sm:$0xff] }
 0x4cc   : > { %v9702_v62 = vpop.f32.mrf.mxu0  ;;  %7689 = vmatprep.mubr.msk.f32.mxu1 %vm1070_vm0, %v9705_v48 }
 0x4ce   : > { %v1340_v24 = vpop.f32.mrf.mxu0 }
 0x4cf   : > { %7690 = vmatmul.mubr.msk.f32.gmra.mxu1 %vm1070_vm0, %v9710_v38  ;;  %v9732_v24 = vld [vmem:[%s9101_s28 + $0x68] sm:$0xff] }
 0x4d0   : > { %v9714_v36 = vpop.f32.mrf.mxu0  ;;  %7692 = vmatprep.mubr.msk.f32.mxu1 %vm1070_vm0, %v9717_v42 }
 0x4d2   : > { %v1343_v3 = vpop.f32.mrf.mxu0 }
 0x4d3   : > { %7693 = vmatmul.mubr.msk.f32.gmra.mxu1 %vm1070_vm0, %v9722_v19  ;;  %v9742_v3 = vld [vmem:[%s9101_s28 + $0x78] sm:$0xff] }
 0x4d4   : > { %7695 = vmatprep.mubr.msk.f32.mxu1 %vm1070_vm0, %v9727_v30 }
 0x4d7   : > { %7696 = vmatmul.mubr.msk.f32.gmra.mxu1 %vm1070_vm0, %v9732_v24 }
 0x4d8   : > { %7698 = vmatprep.mubr.msk.f32.mxu1 %vm1070_vm0, %v9737_v23 }
 0x4db   : > { %7699 = vmatmul.mubr.msk.f32.gmra.mxu1 %vm1070_vm0, %v9742_v3 }
 0x57f   : > { %v7679_v7 = vpop.f32.mrf.mxu1 }
 0x580   : > { %v1586_v5 = vadd.f32 1e-06, %v7679_v7 }
 0x581   : > { %v1580_v52 = vpop.f32.mrf.mxu1 }
 0x582   : > { %8301 = vrcp.f32 %v1586_v5  ;;  %v1581_v20 = vadd.f32 1e-06, %v1580_v52 }
 0x583   : > { %v7682_v32 = vpop.f32.mrf.mxu1 }
 0x584   : > { %8303 = vrcp.f32 %v1581_v20  ;;  %v1596_v8 = vadd.f32 1e-06, %v7682_v32  ;;  %v1450_v32 = vmul.f32 %v9626_v47, %v9639_v2 }
 0x585   : > { %v1590_v9 = vpop.f32.mrf.mxu1 }
 0x586   : > { %8305 = vrcp.f32 %v1596_v8  ;;  %v1591_v14 = vadd.f32 1e-06, %v1590_v9  ;;  %v1451_v9 = vmul.f32 %v9662_v25, %v9641_v57 }
 0x587   : > { %v7685_v13 = vpop.f32.mrf.mxu1 }
 0x588   : > { %8307 = vrcp.f32 %v1591_v14  ;;  %v1606_v50 = vadd.f32 1e-06, %v7685_v13 }
 0x589   : > { %v1600_v0 = vpop.f32.mrf.mxu1 }
 0x58a   : > { %8309 = vrcp.f32 %v1606_v50  ;;  %v1601_v6 = vadd.f32 1e-06, %v1600_v0 }
 0x58b   : > { %v7688_v56 = vpop.f32.mrf.mxu1 }
 0x58c   : > { %8311 = vrcp.f32 %v1601_v6  ;;  %v1616_v28 = vadd.f32 1e-06, %v7688_v56  ;;  %v1452_v6 = vmul.f32 %v9669_v40, %v9643_v22 }
 0x58d   : > { %v1610_v58 = vpop.f32.mrf.mxu1 }
 0x58e   : > { %8313 = vrcp.f32 %v1616_v28  ;;  %v1611_v7 = vadd.f32 1e-06, %v1610_v58  ;;  %v1453_v58 = vmul.f32 %v9674_v16, %v9645_v10  ;;  %v1454_v10 = vmul.f32 %v9681_v53, %v9647_v46 }
 0x58f   : > { %v8302_v5 = vpop.eup %8301  ;;  %v7691_v52 = vpop.f32.mrf.mxu1  ;;  %v1455_v16 = vmul.f32 %v9686_v51, %v9649_v4  ;;  %v1456_v4 = vmul.f32 %v9693_v33, %v9651_v44  ;;  %v1457_v51 = vmul.f32 %v9698_v55, %v9653_v49  ;;  %v1458_v49 = vmul.f32 %v9705_v48, %v9655_v59 }
 0x590   : > { %8315 = vrcp.f32 %v1611_v7  ;;  %v1626_v14 = vadd.f32 1e-06, %v7691_v52  ;;  %v9750_v50 = vmul.f32 %v8302_v5, %v1451_v9  ;;  %v1459_v33 = vmul.f32 %v9710_v38, %v9657_v61 }
 0x591   : > { %v8304_v13 = vpop.eup %8303  ;;  %v1620_v8 = vpop.f32.mrf.mxu1  ;;  %v1461_v59 = vmul.f32 %v9722_v19, %v9666_v37  ;;  %v1465_v19 = vmul.f32 %v9742_v3, %v9714_v36 }
 0x592   : > { %v9752_v0 = vmul.f32 %v8304_v13, %v1450_v32  ;;  %8317 = vrcp.f32 %v1626_v14  ;;  %v1621_v56 = vadd.f32 1e-06, %v1620_v8 }
 0x593   : > { %v8306_v28 = vpop.eup %8305  ;;  %v7694_v20 = vpop.f32.mrf.mxu1 }
 0x594   : > { %8319 = vrcp.f32 %v1621_v56  ;;  %v1636_v47 = vadd.f32 1e-06, %v7694_v20  ;;  %1788 = vxpose.xlu0.b32.start [1/16] (narrow) %v9752_v0, 64  ;;  %v1691_v2 = vpack.c.bf16 %v9750_v50, %v9752_v0  ;;  %v9761_v7 = vmul.f32 %v8306_v28, %v1453_v58 }
 0x595   : > { %v8308_v57 = vpop.eup %8307  ;;  %v1630_v25 = vpop.f32.mrf.mxu1 }
 0x596   : > { %v9763_v5 = vmul.f32 %v8308_v57, %v1452_v6  ;;  %8321 = vrcp.f32 %v1636_v47  ;;  %v1631_v52 = vadd.f32 1e-06, %v1630_v25  ;;  %1699 = vxpose.xlu1.c.b16.start [1/8] (narrow) %v1691_v2, 64 }
 0x597   : > { %v8310_v22 = vpop.eup %8309  ;;  %v7697_v40 = vpop.f32.mrf.mxu1 }
 0x598   : > { %8323 = vrcp.f32 %v1631_v52  ;;  %v1646_v32 = vadd.f32 1e-06, %v7697_v40  ;;  %1789 = vxpose.xlu0.b32.cont [2/16] (narrow) %v9750_v50, 64  ;;  %v1692_v9 = vpack.c.bf16 %v9761_v7, %v9763_v5  ;;  %v9772_v8 = vmul.f32 %v8310_v22, %v1455_v16 }
 0x599   : > { %v8312_v14 = vpop.eup %8311  ;;  %v1640_v13 = vpop.f32.mrf.mxu1  ;;  %v1460_v16 = vmul.f32 %v9717_v42, %v9659_v34  ;;  %v1463_v34 = vmul.f32 %v9732_v24, %v9690_v35 }
 0x59a   : > { %v9774_v56 = vmul.f32 %v8312_v14, %v1454_v10  ;;  %8325 = vrcp.f32 %v1646_v32  ;;  %v1641_v28 = vadd.f32 1e-06, %v1640_v13  ;;  %1700 = vxpose.xlu1.c.b16.cont [2/8] (narrow) %v1692_v9, 64  ;;  %v1462_v14 = vmul.f32 %v9727_v30, %v9678_v60 }
 0x59b   : > { %v8314_v46 = vpop.eup %8313  ;;  %v7700_v53 = vpop.f32.mrf.mxu1  ;;  %v1464_v60 = vmul.f32 %v9737_v23, %v9702_v62 }
 0x59c   : > { %8327 = vrcp.f32 %v1641_v28  ;;  %v1656_v6 = vadd.f32 1e-06, %v7700_v53  ;;  %1790 = vxpose.xlu0.b32.cont [3/16] (narrow) %v9763_v5, 64  ;;  %v1693_v20 = vpack.c.bf16 %v9772_v8, %v9774_v56  ;;  %v9783_v2 = vmul.f32 %v8314_v46, %v1457_v51 }
 0x59d   : > { %v8316_v58 = vpop.eup %8315  ;;  %v1650_v47 = vpop.f32.mrf.mxu1 }
 0x59e   : > { %v9785_v57 = vmul.f32 %v8316_v58, %v1456_v4  ;;  %8329 = vrcp.f32 %v1656_v6  ;;  %v1651_v25 = vadd.f32 1e-06, %v1650_v47  ;;  %1701 = vxpose.xlu1.c.b16.cont [3/8] (narrow) %v1693_v20, 64 }
 0x59f   : > { %v8318_v44 = vpop.eup %8317 }
 0x5a0   : > { %8331 = vrcp.f32 %v1651_v25  ;;  %1791 = vxpose.xlu0.b32.cont [4/16] (narrow) %v9761_v7, 64  ;;  %v1694_v55 = vpack.c.bf16 %v9783_v2, %v9785_v57  ;;  %v9794_v22 = vmul.f32 %v8318_v44, %v1459_v33  ;;  %v12421_v33 = vmov 0.0  }
 0x5a1   : > { %v8320_v52 = vpop.eup %8319 }
 0x5a2   : > { %12414 = vst [vmem:[#allocation18_spill] sm:$0xff] %v9794_v22  ;;  %v9796_v10 = vmul.f32 %v8320_v52, %v1458_v49  ;;  %1702 = vxpose.xlu1.c.b16.cont [4/8] (narrow) %v1694_v55, 64 }
 0x5a3   : > { %v8322_v40 = vpop.eup %8321 }
 0x5a4   : > { %1792 = vxpose.xlu0.b32.cont [5/16] (narrow) %v9774_v56, 64  ;;  %v1695_v61 = vpack.c.bf16 %v9794_v22, %v9796_v10  ;;  %v9805_v38 = vmul.f32 %v8322_v40, %v1461_v59 }
 0x5a5   : > { %v8324_v48 = vpop.eup %8323 }
 0x5a6   : > { %12415 = vst [vmem:[#allocation17_spill] sm:$0xff] %v9805_v38  ;;  %v9807_v32 = vmul.f32 %v8324_v48, %v1460_v16  ;;  %1703 = vxpose.xlu1.c.b16.cont [5/8] (narrow) %v1695_v61, 64 }
 0x5a7   : > { %v8326_v9 = vpop.eup %8325 }
 0x5a8   : > { %12416 = vst [vmem:[#allocation16_spill] sm:$0xff] %v9807_v32  ;;  %1793 = vxpose.xlu0.b32.cont [6/16] (narrow) %v9772_v8, 64  ;;  %v1696_v37 = vpack.c.bf16 %v9805_v38, %v9807_v32  ;;  %v9818_v13 = vmul.f32 %v8326_v9, %v1463_v34 }
 0x5a9   : > { %v8328_v42 = vpop.eup %8327 }
 0x5aa   : > { %12417 = vst [vmem:[#allocation15_spill] sm:$0xff] %v9818_v13  ;;  %v9820_v28 = vmul.f32 %v8328_v42, %v1462_v14  ;;  %1704 = vxpose.xlu1.c.b16.cont [6/8] (narrow) %v1696_v37, 64  ;;  %v12422_v14 = vld [vmem:[#allocation20_spill] sm:$0xff] }
 0x5ab   : > { %v8330_v46 = vpop.eup %8329 }
 0x5ac   : > { %12418 = vst [vmem:[#allocation14_spill] sm:$0xff] %v9820_v28  ;;  %v9824_v30 = vmul.f32 %v8330_v46, %v1465_v19  ;;  %1794 = vxpose.xlu0.b32.cont [7/16] (narrow) %v9785_v57, 64  ;;  %v1697_v35 = vpack.c.bf16 %v9818_v13, %v9820_v28 }
 0x5ad   : > { %v8332_v24 = vpop.eup %8331 }
 0x5ae   : > { %12419 = vst [vmem:[#allocation13_spill] sm:$0xff] %v9824_v30  ;;  %v9829_v4 = vmul.f32 %v8332_v24, %v1464_v60  ;;  %1705 = vxpose.xlu1.c.b16.cont [7/8] (narrow) %v1697_v35, 64  ;;  %7701 = vmatprep.subr.mxu1 %v9824_v30 }
 0x5af   : > { %7702 = vmatpush3.msra.mxu1 %v9824_v30 }
 0x5b0   : > { %12420 = vst [vmem:[#allocation12_spill] sm:$0xff] %v9829_v4  ;;  %1795 = vxpose.xlu0.b32.cont [8/16] (narrow) %v9783_v2, 64  ;;  %7703 = vmatprep.subr.mxu1 %v9829_v4  ;;  %v1698_v23 = vpack.c.bf16 %v9824_v30, %v9829_v4 }
 0x5b1   : > { %7704 = vmatpush3.msra.mxu1 %v9829_v4 }
 0x5b2   : > { %7705 = vmatprep.subr.mxu1 %v9818_v13  ;;  %1706 = vxpose.xlu1.c.b16.end [8/8] (narrow) %v1698_v23, 64 }
 0x5b3   : > { %7706 = vmatpush3.msra.mxu1 %v9818_v13 }
 0x5b4   : > { %1796 = vxpose.xlu0.b32.cont [9/16] (narrow) %v9796_v10, 64  ;;  %7707 = vmatprep.subr.mxu1 %v9820_v28 }
 0x5b5   : > { %7708 = vmatpush3.msra.mxu1 %v9820_v28 }
 0x5b6   : > { %7709 = vmatprep.subr.mxu1 %v9805_v38 }
 0x5b7   : > { %7710 = vmatpush3.msra.mxu1 %v9805_v38 }
 0x5b8   : > { %1797 = vxpose.xlu0.b32.cont [10/16] (narrow) %v9794_v22, 64  ;;  %7711 = vmatprep.subr.mxu1 %v9807_v32 }
 0x5b9   : > { %7712 = vmatpush3.msra.mxu1 %v9807_v32 }
 0x5ba   : > { %7713 = vmatprep.subr.mxu1 %v9794_v22 }
 0x5bb   : > { %7714 = vmatpush3.msra.mxu1 %v9794_v22 }
 0x5bc   : > { %1798 = vxpose.xlu0.b32.cont [11/16] (narrow) %v9807_v32, 64  ;;  %7715 = vmatprep.subr.mxu1 %v9796_v10 }
 0x5bd   : > { %7716 = vmatpush3.msra.mxu1 %v9796_v10 }
 0x5be   : > { %7717 = vmatprep.subr.mxu1 %v9783_v2 }
 0x5bf   : > { %7718 = vmatpush3.msra.mxu1 %v9783_v2 }
 0x5c0   : > { %1799 = vxpose.xlu0.b32.cont [12/16] (narrow) %v9805_v38, 64  ;;  %7719 = vmatprep.subr.mxu1 %v9785_v57 }
 0x5c1   : > { %7720 = vmatpush3.msra.mxu1 %v9785_v57 }
 0x5c2   : > { %7721 = vmatprep.subr.mxu1 %v9772_v8 }
 0x5c3   : > { %7722 = vmatpush3.msra.mxu1 %v9772_v8 }
 0x5c4   : > { %1800 = vxpose.xlu0.b32.cont [13/16] (narrow) %v9820_v28, 64  ;;  %7723 = vmatprep.subr.mxu1 %v9774_v56 }
 0x5c5   : > { %7724 = vmatpush3.msra.mxu1 %v9774_v56 }
 0x5c6   : > { %7725 = vmatprep.subr.mxu1 %v9761_v7 }
 0x5c7   : > { %7726 = vmatpush3.msra.mxu1 %v9761_v7 }
 0x5c8   : > { %1801 = vxpose.xlu0.b32.cont [14/16] (narrow) %v9818_v13, 64  ;;  %7727 = vmatprep.subr.mxu1 %v9763_v5 }
 0x5c9   : > { %7728 = vmatpush3.msra.mxu1 %v9763_v5 }
 0x5ca   : > { %7729 = vmatprep.subr.mxu1 %v9750_v50 }
 0x5cb   : > { %7730 = vmatpush3.msra.mxu1 %v9750_v50 }
 0x5cc   : > { %1802 = vxpose.xlu0.b32.cont [15/16] (narrow) %v9829_v4, 64  ;;  %7731 = vmatprep.subr.mxu1 %v9752_v0 }
 0x5cd   : > { %7732 = vmatpush3.msra.mxu1 %v9752_v0 }
 0x5ce   : > { %1981 = vmatprep.subr.mxu1 %v9511_v26 }
 0x5d0   : > { %1803 = vxpose.xlu0.b32.end [16/16] (narrow) %v9824_v30, 64 }
 0x5f8   : > { %v1707_v62 = vpop.trf.xlu1 }
 0x5f9   : > { %1748 = vmatmul.mubr.bf16.vlgmr.msra.gmra.mxu0 %v1707_v62 }
 0x5fa   : > { %1757 = vmatprep.mubr.bf16.mxu0 %v12413_v41 }
 0x5fc   : > { %v1708_v36 = vpop.trf.xlu1 }
 0x600   : > { %v1709_v3 = vpop.trf.xlu1 }
 0x601   : > { %1758 = vmatmul.mubr.bf16.gmra.mxu0 %v1708_v36 }
 0x602   : > { %1767 = vmatprep.mubr.bf16.mxu0 %v12413_v41 }
 0x604   : > { %v1710_v53 = vpop.trf.xlu1 }
 0x609   : > { %1768 = vmatmul.mubr.bf16.gmra.mxu0 %v1709_v3 }
 0x60a   : > { %1777 = vmatprep.mubr.bf16.mxu0 %v12413_v41 }
 0x610   : > { %v1804_v51 = vpop.trf.xlu0 }
 0x611   : > { %1778 = vmatmul.mubr.bf16.gmra.mxu0 %v1710_v53  ;;  %7733 = vmatprep.mubr.f32.mxu1 %v1804_v51 }
 0x614   : > { %v1805_v6 = vpop.trf.xlu0 }
 0x615   : > { %7734 = vmatmul.mubr.f32.vlgmr.msra.gmra.mxu1 %v1805_v6 }
 0x616   : > { %1982 = vmatpush1.msra.mxu1 %v9505_v12 }
 0x617   : > { %1983 = vmatprep.subr.mxu1 %v9509_v54 }
 0x618   : > { %1984 = vmatpush1.msra.mxu1 %v9513_v27  ;;  %v1806_v20 = vpop.trf.xlu0 }
 0x619   : > { %1985 = vmatprep.subr.mxu1 %v9507_v17  ;;  %7736 = vmatprep.mubr.f32.mxu1 %v1806_v20 }
 0x61a   : > { %1986 = vmatpush1.msra.mxu1 %v9535_v21 }
 0x61b   : > { %1987 = vmatprep.subr.mxu1 %v9515_v43 }
 0x61c   : > { %1988 = vmatpush1.msra.mxu1 %v9542_v11  ;;  %v1807_v58 = vpop.trf.xlu0 }
 0x61d   : > { %1989 = vmatprep.subr.mxu1 %v9539_v15  ;;  %7737 = vmatmul.mubr.f32.gmra.mxu1 %v1807_v58 }
 0x61e   : > { %1990 = vmatpush1.msra.mxu1 %v9559_v31 }
 0x61f   : > { %1991 = vmatprep.subr.mxu1 %v9544_v45 }
 0x620   : > { %1992 = vmatpush1.msra.mxu1 %v9564_v63  ;;  %v1808_v47 = vpop.trf.xlu0 }
 0x621   : > { %1993 = vmatprep.subr.mxu1 %v9561_v39  ;;  %7739 = vmatprep.mubr.f32.mxu1 %v1808_v47 }
 0x622   : > { %1994 = vmatpush1.msra.mxu1 %v9577_v29 }
 0x623   : > { %1995 = vmatprep.subr.mxu1 %v9490_v1 }
 0x624   : > { %1996 = vmatpush1.msra.mxu1 %v9580_v18  ;;  %v1809_v25 = vpop.trf.xlu0 }
 0x625   : > { %7740 = vmatmul.mubr.f32.gmra.mxu1 %v1809_v25 }
 0x628   : > { %v1810_v44 = vpop.trf.xlu0 }
 0x629   : > { %7742 = vmatprep.mubr.f32.mxu1 %v1810_v44 }
 0x62c   : > { %v1811_v49 = vpop.trf.xlu0 }
 0x62d   : > { %7743 = vmatmul.mubr.f32.gmra.mxu1 %v1811_v49 }
 0x62e   : > { %2029 = vmatprep.mubr.f32.mxu1 %v12421_v33 }
 0x6b9   : > { %v9910_v34 = vpop.f32.mrf.mxu0 }
 0x6bb   : > { %v1751_v37 = vpop.f32.mrf.mxu0 }
 0x6bc   : > { %v1926_v44 = vmul.f32 %v1751_v37, %v9490_v1 }
 0x6bd   : > { %v9912_v42 = vpop.f32.mrf.mxu0 }
 0x6bf   : > { %v9914_v19 = vpop.f32.mrf.mxu0 }
 0x6c1   : > { %v9916_v46 = vpop.f32.mrf.mxu0 }
 0x6c3   : > { %v9920_v35 = vpop.f32.mrf.mxu0 }
 0x6c5   : > { %v9924_v36 = vpop.f32.mrf.mxu0 }
 0x6c7   : > { %v9926_v51 = vpop.f32.mrf.mxu0 }
 0x6c9   : > { %v9928_v58 = vpop.f32.mrf.mxu0 }
 0x6d5   : > { %v7735_v55 = vpop.f32.mrf.mxu1 }
 0x6d7   : > { %v1886_v52 = vpop.f32.mrf.mxu1 }
 0x6d8   : > { %7153 = vmatmul.mubr.msk.f32.vlgmr.msra.gmra.mxu1 %vm1070_vm0, %v1886_v52 }
 0x6d9   : > { %2035 = vmatprep.mubr.f32.mxu1 %v12421_v33 }
 0x6dc   : > { %7154 = vmatmul.mubr.msk.f32.gmra.mxu1 %vm1070_vm0, %v7735_v55  ;;  %v1771_v55 = vpop.f32.mrf.mxu0 }
 0x6dd   : > { %v7738_v40 = vpop.f32.mrf.mxu1  ;;  %2041 = vmatprep.mubr.f32.mxu1 %v12421_v33 }
 0x6df   : > { %v1896_v16 = vpop.f32.mrf.mxu1 }
 0x6e0   : > { %7155 = vmatmul.mubr.msk.f32.gmra.mxu1 %vm1070_vm0, %v1896_v16 }
 0x6e1   : > { %2047 = vmatprep.mubr.f32.mxu1 %v12421_v33 }
 0x6e4   : > { %7156 = vmatmul.mubr.msk.f32.gmra.mxu1 %vm1070_vm0, %v7738_v40 }
 0x6e5   : > { %v7741_v59 = vpop.f32.mrf.mxu1  ;;  %2053 = vmatprep.mubr.f32.mxu1 %v12421_v33 }
 0x6e7   : > { %v1906_v61 = vpop.f32.mrf.mxu1 }
 0x6e8   : > { %7157 = vmatmul.mubr.msk.f32.gmra.mxu1 %vm1070_vm0, %v1906_v61 }
 0x6e9   : > { %2059 = vmatprep.mubr.f32.mxu1 %v12421_v33 }
 0x6ec   : > { %7158 = vmatmul.mubr.msk.f32.gmra.mxu1 %vm1070_vm0, %v7741_v59  ;;  %v9934_v59 = vpop.f32.mrf.mxu0 }
 0x6ed   : > { %v7744_v48 = vpop.f32.mrf.mxu1  ;;  %2065 = vmatprep.mubr.f32.mxu1 %v12421_v33 }
 0x6ef   : > { %v1916_v9 = vpop.f32.mrf.mxu1 }
 0x6f0   : > { %7159 = vmatmul.mubr.msk.f32.gmra.mxu1 %vm1070_vm0, %v1916_v9 }
 0x6f1   : > { %2071 = vmatprep.mubr.f32.mxu1 %v12421_v33 }
 0x6f4   : > { %7160 = vmatmul.mubr.msk.f32.gmra.mxu1 %vm1070_vm0, %v7744_v48 }
 0x6f5   : > { %2150 = vmatprep.mubr.bf16.mxu1 %v12422_v14 }
 0x798   : > { %v9918_v60 = vpop.f32.mrf.mxu1 }
 0x79a   : > { %v2033_v24 = vpop.f32.mrf.mxu1 }
 0x79b   : > { %v2034_v23 = vadd.f32 1e-06, %v2033_v24 }
 0x79c   : > { %v9922_v62 = vpop.f32.mrf.mxu1 }
 0x79d   : > { %8333 = vrcp.f32 %v2034_v23  ;;  %v1775_v23 = vpop.f32.mrf.mxu0 }
 0x79e   : > { %v2039_v3 = vpop.f32.mrf.mxu1 }
 0x79f   : > { %v1779_v13 = vpop.f32.mrf.mxu0 }
 0x7a0   : > { %v2043_v53 = vpop.f32.mrf.mxu1 }
 0x7a1   : > { %v1781_v28 = vpop.f32.mrf.mxu0 }
 0x7a2   : > { %v2045_v6 = vpop.f32.mrf.mxu1 }
 0x7a3   : > { %v1783_v22 = vpop.f32.mrf.mxu0 }
 0x7a4   : > { %v2049_v20 = vpop.f32.mrf.mxu1 }
 0x7a6   : > { %v2051_v47 = vpop.f32.mrf.mxu1 }
 0x7a8   : > { %v2055_v25 = vpop.f32.mrf.mxu1 }
 0x7a9   : > { %v2056_v32 = vadd.f32 1e-06, %v2055_v25 }
 0x7aa   : > { %v8334_v49 = vpop.eup %8333  ;;  %v2057_v52 = vpop.f32.mrf.mxu1 }
 0x7ab   : > { %v9931_v40 = vmul.f32 %v8334_v49, %v1926_v44  ;;  %v2058_v48 = vadd.f32 1e-06, %v2057_v52  ;;  %v2052_v52 = vadd.f32 1e-06, %v2051_v47  ;;  %v1936_v47 = vmul.f32 %v1775_v23, %v9507_v17 }
 0x7ac   : > { %v2061_v16 = vpop.f32.mrf.mxu1  ;;  %v2032_v23 = vadd.f32 1e-06, %v9918_v60 }
 0x7ad   : > { %2279 = vmatprep.mubr.f32.mxu0 %v9931_v40  ;;  %8335 = vrcp.f32 %v2058_v48  ;;  %v2062_v38 = vadd.f32 1e-06, %v2061_v16  ;;  %v1937_v16 = vmul.f32 %v1779_v13, %v9513_v27  ;;  %v2038_v27 = vadd.f32 1e-06, %v9922_v62 }
 0x7ae   : > { %v2063_v61 = vpop.f32.mrf.mxu1 }
 0x7af   : > { %v2064_v24 = vadd.f32 1e-06, %v2063_v61  ;;  %v2046_v61 = vadd.f32 1e-06, %v2045_v6  ;;  %v1938_v6 = vmul.f32 %v1781_v28, %v9509_v54 }
 0x7b0   : > { %v2067_v9 = vpop.f32.mrf.mxu1 }
 0x7b1   : > { %v2068_v4 = vadd.f32 1e-06, %v2067_v9  ;;  %8337 = vrcp.f32 %v2064_v24  ;;  %v1785_v9 = vpop.f32.mrf.mxu0  ;;  %v2050_v24 = vadd.f32 1e-06, %v2049_v20 }
 0x7b2   : > { %v2069_v33 = vpop.f32.mrf.mxu1 }
 0x7b3   : > { %v2070_v30 = vadd.f32 1e-06, %v2069_v33 }
 0x7b4   : > { %v2073_v1 = vpop.f32.mrf.mxu1 }
 0x7b5   : > { %v2074_v37 = vadd.f32 1e-06, %v2073_v1  ;;  %8339 = vrcp.f32 %v2070_v30  ;;  %v2040_v1 = vadd.f32 1e-06, %v2039_v3 }
 0x7b6   : > { %v2075_v44 = vpop.f32.mrf.mxu1 }
 0x7b7   : > { %8341 = vrcp.f32 %v2074_v37  ;;  %v2076_v49 = vadd.f32 1e-06, %v2075_v44  ;;  %v2044_v44 = vadd.f32 1e-06, %v2043_v53 }
 0x7b8   : > { %8343 = vrcp.f32 %v2068_v4  ;;  %v1939_v4 = vmul.f32 %v1783_v22, %v9505_v12 }
 0x7b9   : > { %8345 = vrcp.f32 %v2076_v49 }
 0x7ba   : > { %8347 = vrcp.f32 %v2062_v38  ;;  %v8336_v33 = vpop.eup %8335  ;;  %v1940_v38 = vmul.f32 %v1785_v9, %v9511_v26 }
 0x7bb   : > { %8349 = vrcp.f32 %v2052_v52  ;;  %v1932_v52 = vmul.f32 %v9926_v51, %v9539_v15 }
 0x7bc   : > { %8351 = vrcp.f32 %v2056_v32  ;;  %v1934_v32 = vmul.f32 %v1771_v55, %v9515_v43  ;;  %v1935_v55 = vmul.f32 %v9934_v59, %v9535_v21  ;;  %v1930_v21 = vmul.f32 %v9920_v35, %v9544_v45 }
 0x7bd   : > { %8353 = vrcp.f32 %v2046_v61 }
 0x7be   : > { %v8338_v48 = vpop.eup %8337  ;;  %8355 = vrcp.f32 %v2050_v24  ;;  %v9952_v54 = vmul.f32 %v8336_v33, %v1934_v32  ;;  %v1933_v33 = vmul.f32 %v9928_v58, %v9542_v11  ;;  %v1931_v58 = vmul.f32 %v9924_v36, %v9559_v31  ;;  %v12431_v32 = vld [vmem:[#allocation21_spill] sm:$0xff] }
 0x7bf   : > { %8357 = vrcp.f32 %v2040_v1  ;;  %v9944_v3 = vmul.f32 %v8338_v48, %v1936_v47  ;;  %v1928_v24 = vmul.f32 %v9914_v19, %v9561_v39  ;;  %v1927_v19 = vmul.f32 %v9912_v42, %v9577_v29  ;;  %v12424_v29 = vld [vmem:[#allocation22_spill] sm:$0xff]  ;;  %v12427_v42 = vld [vmem:[#allocation23_spill] sm:$0xff] }
 0x7c0   : > { %8359 = vrcp.f32 %v2044_v44  ;;  %v1925_v36 = vmul.f32 %v9910_v34, %v9580_v18  ;;  %v12425_v18 = vld [vmem:[#allocation19_spill] sm:$0xff]  ;;  %v12426_v34 = vld [vmem:[#allocation34_spill] sm:$0xff] }
 0x7c1   : > { %v2115_v28 = vpack.c.bf16 %v9944_v3, %v9952_v54  ;;  %8361 = vrcp.f32 %v2038_v27  ;;  %v12434_v27 = vld [vmem:[#allocation28_spill] sm:$0xff] }
 0x7c2   : > { %v8340_v30 = vpop.eup %8339  ;;  %8363 = vrcp.f32 %v2032_v23 }
 0x7c3   : > { %v9946_v12 = vmul.f32 %v8340_v30, %v1938_v6  ;;  %v1929_v30 = vmul.f32 %v9916_v46, %v9564_v63  ;;  %v12428_v6 = vld [vmem:[#allocation24_spill] sm:$0xff] }
 0x7c4   : > { %v8342_v37 = vpop.eup %8341 }
 0x7c5   : > { %v8344_v49 = vpop.eup %8343  ;;  %v9942_v20 = vmul.f32 %v8342_v37, %v1939_v4 }
 0x7c6   : > { %v8346_v25 = vpop.eup %8345  ;;  %v9950_v17 = vmul.f32 %v8344_v49, %v1937_v16  ;;  %v12432_v16 = vld [vmem:[#allocation32_spill] sm:$0xff] }
 0x7c7   : > { %v9948_v22 = vmul.f32 %v8346_v25, %v1940_v38  ;;  %v8348_v13 = vpop.eup %8347  ;;  %v12429_v38 = vld [vmem:[#allocation25_spill] sm:$0xff]  ;;  %v12430_v25 = vld [vmem:[#allocation26_spill] sm:$0xff] }
 0x7c8   : > { %v2116_v43 = vpack.c.bf16 %v9942_v20, %v9950_v17  ;;  %v8350_v53 = vpop.eup %8349  ;;  %v9972_v48 = vmul.f32 %v8348_v13, %v1935_v55  ;;  %v12436_v13 = vld [vmem:[#allocation30_spill] sm:$0xff] }
 0x7c9   : > { %2231 = vmatprep.subr.mxu0 %v9948_v22  ;;  %v2117_v26 = vpack.c.bf16 %v9948_v22, %v9946_v12  ;;  %v8352_v62 = vpop.eup %8351  ;;  %v9976_v59 = vmul.f32 %v8350_v53, %v1932_v52  ;;  %v12438_v53 = vld [vmem:[#allocation31_spill] sm:$0xff] }
 0x7ca   : > { %2232 = vmatpush1.xpose.msra.mxu0 %v9942_v20  ;;  %v8354_v61 = vpop.eup %8353  ;;  %v9979_v60 = vmul.f32 %v8352_v62, %v1933_v33 }
 0x7cb   : > { %2126 = vmatprep.subr.bf16.mxu1 %v2117_v26  ;;  %2233 = vmatprep.subr.mxu0 %v9946_v12  ;;  %v9981_v15 = vmul.f32 %v8354_v61, %v1930_v21  ;;  %v8356_v51 = vpop.eup %8355  ;;  %v12433_v26 = vld [vmem:[#allocation27_spill] sm:$0xff] }
 0x7cc   : > { %2127 = vmatpush1.bf16.xpose.msra.mxu1 %v2116_v43  ;;  %v2114_v11 = vpack.c.bf16 %v9972_v48, %v9979_v60  ;;  %v8358_v35 = vpop.eup %8357  ;;  %v9996_v1 = vmul.f32 %v8356_v51, %v1931_v58  ;;  %v12435_v43 = vld [vmem:[#allocation29_spill] sm:$0xff] }
 0x7cd   : > { %2128 = vmatprep.subr.bf16.mxu1 %v2115_v28  ;;  %v2113_v45 = vpack.c.bf16 %v9976_v59, %v9981_v15  ;;  %v8360_v9 = vpop.eup %8359  ;;  %v9998_v37 = vmul.f32 %v8358_v35, %v1928_v24  ;;  %v12437_v28 = vld [vmem:[#allocation33_spill] sm:$0xff] }
 0x7ce   : > { %2234 = vmatpush1.xpose.msra.mxu0 %v9950_v17  ;;  %v10001_v4 = vmul.f32 %v8360_v9, %v1929_v30  ;;  %v8362_v39 = vpop.eup %8361 }
 0x7cf   : > { %2235 = vmatprep.subr.mxu0 %v9944_v3  ;;  %v2111_v63 = vpack.c.bf16 %v9998_v37, %v9931_v40  ;;  %v8364_v46 = vpop.eup %8363  ;;  %v10014_v44 = vmul.f32 %v8362_v39, %v1927_v19 }
 0x7d0   : > { %v2112_v31 = vpack.c.bf16 %v9996_v1, %v10001_v4  ;;  %v10017_v49 = vmul.f32 %v8364_v46, %v1925_v36 }
 0x7d2   : > { %2236 = vmatpush1.xpose.msra.mxu0 %v9972_v48  ;;  %12423 = vst [vmem:[#allocation11_spill] sm:$0xff] %v10017_v49  ;;  %v2110_v47 = vpack.c.bf16 %v10014_v44, %v10017_v49 }
 0x7d3   : > { %2237 = vmatprep.subr.mxu0 %v9952_v54 }
 0x7d4   : > { %2129 = vmatpush1.bf16.xpose.msra.mxu1 %v2114_v11 }
 0x7d5   : > { %2130 = vmatprep.subr.bf16.mxu1 %v2113_v45 }
 0x7d6   : > { %2238 = vmatpush1.xpose.msra.mxu0 %v9979_v60 }
 0x7d7   : > { %2239 = vmatprep.subr.mxu0 %v9976_v59 }
 0x7da   : > { %2240 = vmatpush1.xpose.msra.mxu0 %v9996_v1 }
 0x7db   : > { %2241 = vmatprep.subr.mxu0 %v9981_v15 }
 0x7dc   : > { %2131 = vmatpush1.bf16.xpose.msra.mxu1 %v2112_v31 }
 0x7dd   : > { %2132 = vmatprep.subr.bf16.mxu1 %v2111_v63 }
 0x7de   : > { %2242 = vmatpush1.xpose.msra.mxu0 %v10001_v4 }
 0x7df   : > { %2243 = vmatprep.subr.mxu0 %v9998_v37 }
 0x7e2   : > { %2244 = vmatpush1.xpose.msra.mxu0 %v10014_v44 }
 0x7e3   : > { %2245 = vmatprep.subr.mxu0 %v9931_v40 }
 0x7e4   : > { %2133 = vmatpush1.bf16.xpose.msra.mxu1 %v2110_v47 }
 0x7e5   : > { %2585 = vmatprep.subr.bf16.mxu1 %v12424_v29 }
 0x7e6   : > { %2246 = vmatpush1.xpose.msra.mxu0 %v10017_v49 }
 0x7e9   : > { %2280 = vmatmul.mubr.f32.vlgmr.msra.gmra.mxu0 %v10017_v49 }
 0x7ea   : > { %2284 = vmatprep.mubr.f32.mxu0 %v9998_v37 }
 0x7eb   : > { %2151 = vmatmul.mubr.bf16.vlgmr.msra.gmra.mxu1 %v12425_v18 }
 0x7ec   : > { %2158 = vmatprep.mubr.bf16.mxu1 %v12426_v34  ;;  %2586 = vmatpush1.bf16.msra.mxu1 %v12427_v42 }
 0x7ed   : > { %2285 = vmatmul.mubr.f32.gmra.mxu0 %v10014_v44  ;;  %2587 = vmatprep.subr.bf16.mxu1 %v12428_v6 }
 0x7ee   : > { %2289 = vmatprep.mubr.f32.mxu0 %v9981_v15 }
 0x7f0   : > { %2588 = vmatpush1.bf16.msra.mxu1 %v12429_v38 }
 0x7f1   : > { %2290 = vmatmul.mubr.f32.gmra.mxu0 %v10001_v4  ;;  %2589 = vmatprep.subr.bf16.mxu1 %v12430_v25 }
 0x7f2   : > { %2294 = vmatprep.mubr.f32.mxu0 %v9976_v59 }
 0x7f3   : > { %2159 = vmatmul.mubr.bf16.gmra.mxu1 %v12431_v32 }
 0x7f4   : > { %2166 = vmatprep.mubr.bf16.mxu1 %v12432_v16  ;;  %2590 = vmatpush1.bf16.msra.mxu1 %v12433_v26 }
 0x7f5   : > { %2295 = vmatmul.mubr.f32.gmra.mxu0 %v9996_v1  ;;  %2591 = vmatprep.subr.bf16.mxu1 %v12434_v27 }
 0x7f6   : > { %2299 = vmatprep.mubr.f32.mxu0 %v9952_v54 }
 0x7f8   : > { %2592 = vmatpush1.bf16.msra.mxu1 %v12435_v43 }
 0x7f9   : > { %2300 = vmatmul.mubr.f32.gmra.mxu0 %v9979_v60  ;;  %2593 = vmatprep.subr.bf16.mxu1 %v12436_v13 }
 0x7fa   : > { %2304 = vmatprep.mubr.f32.mxu0 %v9944_v3 }
 0x7fb   : > { %2167 = vmatmul.mubr.bf16.gmra.mxu1 %v12437_v28 }
 0x7fc   : > { %2174 = vmatprep.mubr.bf16.mxu1 %v12436_v13  ;;  %2594 = vmatpush1.bf16.msra.mxu1 %v12438_v53 }
 0x7fd   : > { %2305 = vmatmul.mubr.f32.gmra.mxu0 %v9972_v48  ;;  %2595 = vmatprep.subr.bf16.mxu1 %v12432_v16 }
 0x7fe   : > { %2309 = vmatprep.mubr.f32.mxu0 %v9946_v12 }
 0x800   : > { %2596 = vmatpush1.bf16.msra.mxu1 %v12437_v28 }
 0x801   : > { %2310 = vmatmul.mubr.f32.gmra.mxu0 %v9950_v17  ;;  %2597 = vmatprep.subr.bf16.mxu1 %v12426_v34 }
 0x802   : > { %2314 = vmatprep.mubr.f32.mxu0 %v9948_v22 }
 0x803   : > { %2175 = vmatmul.mubr.bf16.gmra.mxu1 %v12438_v53 }
 0x804   : > { %2182 = vmatprep.mubr.bf16.mxu1 %v12434_v27  ;;  %2598 = vmatpush1.bf16.msra.mxu1 %v12431_v32 }
 0x805   : > { %2315 = vmatmul.mubr.f32.gmra.mxu0 %v9942_v20  ;;  %2599 = vmatprep.subr.bf16.mxu1 %v12422_v14 }
 0x806   : > { %7761 = vmatprep.mubr.msk.f32.mxu0 %vm1070_vm0, %v9752_v0 }
 0x808   : > { %2600 = vmatpush1.bf16.msra.mxu1 %v12425_v18 }
 0x80b   : > { %2183 = vmatmul.mubr.bf16.gmra.mxu1 %v12435_v43 }
 0x80c   : > { %2190 = vmatprep.mubr.bf16.mxu1 %v12430_v25 }
 0x813   : > { %2191 = vmatmul.mubr.bf16.gmra.mxu1 %v12433_v26 }
 0x814   : > { %2198 = vmatprep.mubr.bf16.mxu1 %v12428_v6 }
 0x81b   : > { %2199 = vmatmul.mubr.bf16.gmra.mxu1 %v12429_v38 }
 0x81c   : > { %2206 = vmatprep.mubr.bf16.mxu1 %v12424_v29 }
 0x823   : > { %2207 = vmatmul.mubr.bf16.gmra.mxu1 %v12427_v42 }
 0x824   : > { %2617 = vmatprep.mubr.bf16.mxu1 %v12413_v41 }
 0x8a9   : > { %v2281_v55 = vpop.f32.mrf.mxu0 }
 0x8ab   : > { %v10073_v23 = vpop.f32.mrf.mxu1  ;;  %v2283_v62 = vpop.f32.mrf.mxu0 }
 0x8ad   : > { %v2154_v52 = vpop.f32.mrf.mxu1  ;;  %v2286_v61 = vpop.f32.mrf.mxu0 }
 0x8af   : > { %v10075_v33 = vpop.f32.mrf.mxu1  ;;  %v2288_v21 = vpop.f32.mrf.mxu0 }
 0x8b1   : > { %v2157_v11 = vpop.f32.mrf.mxu1  ;;  %v2291_v51 = vpop.f32.mrf.mxu0 }
 0x8b3   : > { %v10077_v45 = vpop.f32.mrf.mxu1  ;;  %v2293_v35 = vpop.f32.mrf.mxu0 }
 0x8b5   : > { %v2162_v58 = vpop.f32.mrf.mxu1  ;;  %v2296_v9 = vpop.f32.mrf.mxu0 }
 0x8b7   : > { %v10079_v24 = vpop.f32.mrf.mxu1  ;;  %v2298_v30 = vpop.f32.mrf.mxu0 }
 0x8b9   : > { %v2165_v31 = vpop.f32.mrf.mxu1  ;;  %v2301_v39 = vpop.f32.mrf.mxu0 }
 0x8bb   : > { %v10081_v63 = vpop.f32.mrf.mxu1  ;;  %v2303_v19 = vpop.f32.mrf.mxu0 }
 0x8bd   : > { %v2170_v46 = vpop.f32.mrf.mxu1  ;;  %v2306_v36 = vpop.f32.mrf.mxu0 }
 0x8bf   : > { %v10083_v47 = vpop.f32.mrf.mxu1  ;;  %v2308_v62 = vpop.f32.mrf.mxu0 }
 0x8c1   : > { %v2173_v52 = vpop.f32.mrf.mxu1  ;;  %v2311_v21 = vpop.f32.mrf.mxu0 }
 0x8c3   : > { %v10085_v11 = vpop.f32.mrf.mxu1  ;;  %v2313_v35 = vpop.f32.mrf.mxu0 }
 0x8c5   : > { %v2178_v58 = vpop.f32.mrf.mxu1  ;;  %v2316_v53 = vpop.f32.mrf.mxu0 }
 0x8c6   : > { %7745 = vmatprep.subr.mxu0 %v2316_v53 }
 0x8c7   : > { %v10087_v28 = vpop.f32.mrf.mxu1  ;;  %v2318_v30 = vpop.f32.mrf.mxu0  ;;  %7746 = vmatpush3.msra.mxu0 %v2316_v53 }
 0x8c8   : > { %7747 = vmatprep.subr.mxu0 %v2311_v21  ;;  %v12439_v30 = vld [vmem:[#allocation18_spill] sm:$0xff] }
 0x8c9   : > { %v2181_v31 = vpop.f32.mrf.mxu1  ;;  %7748 = vmatpush3.msra.mxu0 %v2311_v21 }
 0x8ca   : > { %7749 = vmatprep.subr.mxu0 %v2306_v36 }
 0x8cb   : > { %v10089_v19 = vpop.f32.mrf.mxu1  ;;  %7750 = vmatpush3.msra.mxu0 %v2306_v36 }
 0x8cc   : > { %7751 = vmatprep.subr.mxu0 %v2301_v39 }
 0x8cd   : > { %v2186_v46 = vpop.f32.mrf.mxu1  ;;  %7752 = vmatpush3.msra.mxu0 %v2301_v39 }
 0x8ce   : > { %7753 = vmatprep.subr.mxu0 %v2296_v9  ;;  %v12440_v46 = vld [vmem:[#allocation16_spill] sm:$0xff] }
 0x8cf   : > { %v10091_v62 = vpop.f32.mrf.mxu1  ;;  %7754 = vmatpush3.msra.mxu0 %v2296_v9 }
 0x8d0   : > { %7755 = vmatprep.subr.mxu0 %v2291_v51 }
 0x8d1   : > { %v2189_v52 = vpop.f32.mrf.mxu1  ;;  %7756 = vmatpush3.msra.mxu0 %v2291_v51 }
 0x8d2   : > { %7757 = vmatprep.subr.mxu0 %v2286_v61 }
 0x8d3   : > { %v10093_v35 = vpop.f32.mrf.mxu1  ;;  %7758 = vmatpush3.msra.mxu0 %v2286_v61 }
 0x8d4   : > { %7759 = vmatprep.subr.mxu0 %v2281_v55 }
 0x8d5   : > { %v2194_v53 = vpop.f32.mrf.mxu1  ;;  %7760 = vmatpush3.msra.mxu0 %v2281_v55 }
 0x8d6   : > { %7762 = vmatmul.mubr.msk.f32.vlgmr.msra.gmra.mxu0 %vm1070_vm0, %v9750_v50  ;;  %v12441_v53 = vld [vmem:[#allocation17_spill] sm:$0xff] }
 0x8d7   : > { %v10097_v36 = vpop.f32.mrf.mxu1  ;;  %7764 = vmatprep.mubr.msk.f32.mxu0 %vm1070_vm0, %v9763_v5 }
 0x8d9   : > { %v2197_v39 = vpop.f32.mrf.mxu1 }
 0x8da   : > { %7765 = vmatmul.mubr.msk.f32.gmra.mxu0 %vm1070_vm0, %v9761_v7  ;;  %v12442_v39 = vld [vmem:[#allocation14_spill] sm:$0xff] }
 0x8db   : > { %v10103_v51 = vpop.f32.mrf.mxu1  ;;  %7767 = vmatprep.mubr.msk.f32.mxu0 %vm1070_vm0, %v9774_v56 }
 0x8dd   : > { %v2202_v61 = vpop.f32.mrf.mxu1 }
 0x8de   : > { %7768 = vmatmul.mubr.msk.f32.gmra.mxu0 %vm1070_vm0, %v9772_v8  ;;  %v12443_v61 = vld [vmem:[#allocation15_spill] sm:$0xff] }
 0x8df   : > { %v10109_v55 = vpop.f32.mrf.mxu1  ;;  %7770 = vmatprep.mubr.msk.f32.mxu0 %vm1070_vm0, %v9785_v57 }
 0x8e1   : > { %v2205_v9 = vpop.f32.mrf.mxu1 }
 0x8e2   : > { %7771 = vmatmul.mubr.msk.f32.gmra.mxu0 %vm1070_vm0, %v9783_v2  ;;  %v12444_v9 = vld [vmem:[#allocation12_spill] sm:$0xff] }
 0x8e3   : > { %v10115_v21 = vpop.f32.mrf.mxu1  ;;  %7773 = vmatprep.mubr.msk.f32.mxu0 %vm1070_vm0, %v9796_v10 }
 0x8e5   : > { %v2210_v58 = vpop.f32.mrf.mxu1 }
 0x8e6   : > { %7774 = vmatmul.mubr.msk.f32.gmra.mxu0 %vm1070_vm0, %v12439_v30  ;;  %v12445_v58 = vld [vmem:[#allocation13_spill] sm:$0xff] }
 0x8e7   : > { %v10121_v31 = vpop.f32.mrf.mxu1  ;;  %7776 = vmatprep.mubr.msk.f32.mxu0 %vm1070_vm0, %v12440_v46 }
 0x8e9   : > { %v2213_v52 = vpop.f32.mrf.mxu1 }
 0x8ea   : > { %7777 = vmatmul.mubr.msk.f32.gmra.mxu0 %vm1070_vm0, %v12441_v53 }
 0x8eb   : > { %7779 = vmatprep.mubr.msk.f32.mxu0 %vm1070_vm0, %v12442_v39 }
 0x8ee   : > { %7780 = vmatmul.mubr.msk.f32.gmra.mxu0 %vm1070_vm0, %v12443_v61 }
 0x8ef   : > { %7782 = vmatprep.mubr.msk.f32.mxu0 %vm1070_vm0, %v12444_v9 }
 0x8f2   : > { %7783 = vmatmul.mubr.msk.f32.gmra.mxu0 %vm1070_vm0, %v12445_v58 }
 0x996   : > { %v7763_v13 = vpop.f32.mrf.mxu0 }
 0x997   : > { %v2456_v43 = vadd.f32 1e-06, %v7763_v13 }
 0x998   : > { %v2450_v27 = vpop.f32.mrf.mxu0 }
 0x999   : > { %8365 = vrcp.f32 %v2456_v43  ;;  %v2451_v52 = vadd.f32 1e-06, %v2450_v27 }
 0x99a   : > { %v7766_v26 = vpop.f32.mrf.mxu0 }
 0x99b   : > { %8367 = vrcp.f32 %v2451_v52  ;;  %v2466_v16 = vadd.f32 1e-06, %v7766_v26  ;;  %v2320_v26 = vmul.f32 %v10073_v23, %v9752_v0  ;;  %v2323_v0 = vmul.f32 %v10079_v24, %v9761_v7 }
 0x99c   : > { %v2460_v32 = vpop.f32.mrf.mxu0  ;;  %v2324_v7 = vmul.f32 %v10081_v63, %v9774_v56  ;;  %v2325_v24 = vmul.f32 %v10083_v47, %v9772_v8  ;;  %v2326_v8 = vmul.f32 %v10085_v11, %v9785_v57  ;;  %v2327_v47 = vmul.f32 %v10087_v28, %v9783_v2 }
 0x99d   : > { %8369 = vrcp.f32 %v2466_v16  ;;  %v2461_v25 = vadd.f32 1e-06, %v2460_v32  ;;  %v2321_v32 = vmul.f32 %v10075_v33, %v9750_v50  ;;  %v2328_v2 = vmul.f32 %v10089_v19, %v9796_v10 }
 0x99e   : > { %v7769_v38 = vpop.f32.mrf.mxu0  ;;  %v2329_v28 = vmul.f32 %v10091_v62, %v12439_v30  ;;  %v2331_v10 = vmul.f32 %v10097_v36, %v12441_v53  ;;  %v2335_v53 = vmul.f32 %v10121_v31, %v12445_v58 }
 0x99f   : > { %8371 = vrcp.f32 %v2461_v25  ;;  %v2476_v6 = vadd.f32 1e-06, %v7769_v38 }
 0x9a0   : > { %v2470_v42 = vpop.f32.mrf.mxu0 }
 0x9a1   : > { %8373 = vrcp.f32 %v2476_v6  ;;  %v2471_v34 = vadd.f32 1e-06, %v2470_v42 }
 0x9a2   : > { %v7772_v18 = vpop.f32.mrf.mxu0 }
 0x9a3   : > { %8375 = vrcp.f32 %v2471_v34  ;;  %v2486_v29 = vadd.f32 1e-06, %v7772_v18 }
 0x9a4   : > { %v2480_v49 = vpop.f32.mrf.mxu0 }
 0x9a5   : > { %8377 = vrcp.f32 %v2486_v29  ;;  %v2481_v13 = vadd.f32 1e-06, %v2480_v49  ;;  %v2322_v49 = vmul.f32 %v10077_v45, %v9763_v5 }
 0x9a6   : > { %v8366_v43 = vpop.eup %8365  ;;  %v7775_v27 = vpop.f32.mrf.mxu0 }
 0x9a7   : > { %8379 = vrcp.f32 %v2481_v13  ;;  %v2496_v25 = vadd.f32 1e-06, %v7775_v27  ;;  %v10139_v6 = vmul.f32 %v8366_v43, %v2321_v32 }
 0x9a8   : > { %v8368_v38 = vpop.eup %8367  ;;  %v2490_v16 = vpop.f32.mrf.mxu0 }
 0x9a9   : > { %v10141_v42 = vmul.f32 %v8368_v38, %v2320_v26  ;;  %8381 = vrcp.f32 %v2496_v25  ;;  %v2491_v18 = vadd.f32 1e-06, %v2490_v16 }
 0x9aa   : > { %v8370_v29 = vpop.eup %8369  ;;  %v7778_v34 = vpop.f32.mrf.mxu0 }
 0x9ab   : > { %8383 = vrcp.f32 %v2491_v18  ;;  %v2506_v50 = vadd.f32 1e-06, %v7778_v34  ;;  %2658 = vxpose.xlu0.b32.start [1/16] (narrow) %v10141_v42, 64  ;;  %v2561_v23 = vpack.c.bf16 %v10139_v6, %v10141_v42  ;;  %v10150_v13 = vmul.f32 %v8370_v29, %v2323_v0 }
 0x9ac   : > { %v8372_v33 = vpop.eup %8371  ;;  %v2500_v52 = vpop.f32.mrf.mxu0 }
 0x9ad   : > { %v10152_v43 = vmul.f32 %v8372_v33, %v2322_v49  ;;  %8385 = vrcp.f32 %v2506_v50  ;;  %v2501_v27 = vadd.f32 1e-06, %v2500_v52  ;;  %2569 = vxpose.xlu1.c.b16.start [1/8] (narrow) %v2561_v23, 64 }
 0x9ae   : > { %v8374_v5 = vpop.eup %8373  ;;  %v7781_v45 = vpop.f32.mrf.mxu0 }
 0x9af   : > { %8387 = vrcp.f32 %v2501_v27  ;;  %v2516_v26 = vadd.f32 1e-06, %v7781_v45  ;;  %2659 = vxpose.xlu0.b32.cont [2/16] (narrow) %v10139_v6, 64  ;;  %v2562_v32 = vpack.c.bf16 %v10150_v13, %v10152_v43  ;;  %v10161_v16 = vmul.f32 %v8374_v5, %v2325_v24 }
 0x9b0   : > { %v8376_v25 = vpop.eup %8375  ;;  %v2510_v38 = vpop.f32.mrf.mxu0  ;;  %v2330_v24 = vmul.f32 %v10093_v35, %v12440_v46  ;;  %v2333_v35 = vmul.f32 %v10109_v55, %v12443_v61 }
 0x9b1   : > { %v10163_v18 = vmul.f32 %v8376_v25, %v2324_v7  ;;  %8389 = vrcp.f32 %v2516_v26  ;;  %v2511_v29 = vadd.f32 1e-06, %v2510_v38  ;;  %2570 = vxpose.xlu1.c.b16.cont [2/8] (narrow) %v2562_v32, 64  ;;  %v2332_v25 = vmul.f32 %v10103_v51, %v12442_v39 }
 0x9b2   : > { %v8378_v56 = vpop.eup %8377  ;;  %v7784_v63 = vpop.f32.mrf.mxu0  ;;  %v2334_v51 = vmul.f32 %v10115_v21, %v12444_v9 }
 0x9b3   : > { %8391 = vrcp.f32 %v2511_v29  ;;  %v2526_v49 = vadd.f32 1e-06, %v7784_v63  ;;  %2660 = vxpose.xlu0.b32.cont [3/16] (narrow) %v10152_v43, 64  ;;  %v2563_v34 = vpack.c.bf16 %v10161_v16, %v10163_v18  ;;  %v10172_v23 = vmul.f32 %v8378_v56, %v2327_v47 }
 0x9b4   : > { %v8380_v0 = vpop.eup %8379  ;;  %v2520_v50 = vpop.f32.mrf.mxu0 }
 0x9b5   : > { %v10174_v33 = vmul.f32 %v8380_v0, %v2326_v8  ;;  %8393 = vrcp.f32 %v2526_v49  ;;  %v2521_v52 = vadd.f32 1e-06, %v2520_v50  ;;  %2571 = vxpose.xlu1.c.b16.cont [3/8] (narrow) %v2563_v34, 64 }
 0x9b6   : > { %v8382_v57 = vpop.eup %8381 }
 0x9b7   : > { %8395 = vrcp.f32 %v2521_v52  ;;  %2661 = vxpose.xlu0.b32.cont [4/16] (narrow) %v10150_v13, 64  ;;  %v2564_v11 = vpack.c.bf16 %v10172_v23, %v10174_v33  ;;  %v10183_v5 = vmul.f32 %v8382_v57, %v2329_v28  ;;  %v12453_v52 = vld [vmem:[#allocation11_spill] sm:$0xff] }
 0x9b8   : > { %v8384_v27 = vpop.eup %8383 }
 0x9b9   : > { %12446 = vst [vmem:[#allocation20_spill] sm:$0xff] %v10183_v5  ;;  %v10185_v7 = vmul.f32 %v8384_v27, %v2328_v2  ;;  %2572 = vxpose.xlu1.c.b16.cont [4/8] (narrow) %v2564_v11, 64  ;;  %v12454_v11 = vmov 0.0  }
 0x9ba   : > { %v8386_v45 = vpop.eup %8385 }
 0x9bb   : > { %2662 = vxpose.xlu0.b32.cont [5/16] (narrow) %v10163_v18, 64  ;;  %v2565_v19 = vpack.c.bf16 %v10183_v5, %v10185_v7  ;;  %v10194_v30 = vmul.f32 %v8386_v45, %v2331_v10 }
 0x9bc   : > { %v8388_v62 = vpop.eup %8387 }
 0x9bd   : > { %12447 = vst [vmem:[#allocation18_spill] sm:$0xff] %v10194_v30  ;;  %v10196_v26 = vmul.f32 %v8388_v62, %v2330_v24  ;;  %2573 = vxpose.xlu1.c.b16.cont [5/8] (narrow) %v2565_v19, 64 }
 0x9be   : > { %v8390_v32 = vpop.eup %8389 }
 0x9bf   : > { %12448 = vst [vmem:[#allocation16_spill] sm:$0xff] %v10196_v26  ;;  %2663 = vxpose.xlu0.b32.cont [6/16] (narrow) %v10161_v16, 64  ;;  %v2566_v36 = vpack.c.bf16 %v10194_v30, %v10196_v26  ;;  %v10207_v38 = vmul.f32 %v8390_v32, %v2333_v35 }
 0x9c0   : > { %v8392_v46 = vpop.eup %8391 }
 0x9c1   : > { %12449 = vst [vmem:[#allocation17_spill] sm:$0xff] %v10207_v38  ;;  %v10209_v29 = vmul.f32 %v8392_v46, %v2332_v25  ;;  %2574 = vxpose.xlu1.c.b16.cont [6/8] (narrow) %v2566_v36, 64 }
 0x9c2   : > { %v8394_v56 = vpop.eup %8393 }
 0x9c3   : > { %12450 = vst [vmem:[#allocation14_spill] sm:$0xff] %v10209_v29  ;;  %v10213_v39 = vmul.f32 %v8394_v56, %v2335_v53  ;;  %2664 = vxpose.xlu0.b32.cont [7/16] (narrow) %v10174_v33, 64  ;;  %v2567_v55 = vpack.c.bf16 %v10207_v38, %v10209_v29 }
 0x9c4   : > { %v8396_v61 = vpop.eup %8395 }
 0x9c5   : > { %12451 = vst [vmem:[#allocation15_spill] sm:$0xff] %v10213_v39  ;;  %v10218_v8 = vmul.f32 %v8396_v61, %v2334_v51  ;;  %2575 = vxpose.xlu1.c.b16.cont [7/8] (narrow) %v2567_v55, 64  ;;  %7785 = vmatprep.subr.mxu0 %v10213_v39 }
 0x9c6   : > { %7786 = vmatpush3.msra.mxu0 %v10213_v39 }
 0x9c7   : > { %12452 = vst [vmem:[#allocation12_spill] sm:$0xff] %v10218_v8  ;;  %2665 = vxpose.xlu0.b32.cont [8/16] (narrow) %v10172_v23, 64  ;;  %7787 = vmatprep.subr.mxu0 %v10218_v8  ;;  %v2568_v21 = vpack.c.bf16 %v10213_v39, %v10218_v8 }
 0x9c8   : > { %7788 = vmatpush3.msra.mxu0 %v10218_v8 }
 0x9c9   : > { %7789 = vmatprep.subr.mxu0 %v10207_v38  ;;  %2576 = vxpose.xlu1.c.b16.end [8/8] (narrow) %v2568_v21, 64 }
 0x9ca   : > { %7790 = vmatpush3.msra.mxu0 %v10207_v38 }
 0x9cb   : > { %2666 = vxpose.xlu0.b32.cont [9/16] (narrow) %v10185_v7, 64  ;;  %7791 = vmatprep.subr.mxu0 %v10209_v29 }
 0x9cc   : > { %7792 = vmatpush3.msra.mxu0 %v10209_v29 }
 0x9cd   : > { %7793 = vmatprep.subr.mxu0 %v10194_v30 }
 0x9ce   : > { %7794 = vmatpush3.msra.mxu0 %v10194_v30 }
 0x9cf   : > { %2667 = vxpose.xlu0.b32.cont [10/16] (narrow) %v10183_v5, 64  ;;  %7795 = vmatprep.subr.mxu0 %v10196_v26 }
 0x9d0   : > { %7796 = vmatpush3.msra.mxu0 %v10196_v26 }
 0x9d1   : > { %7797 = vmatprep.subr.mxu0 %v10183_v5 }
 0x9d2   : > { %7798 = vmatpush3.msra.mxu0 %v10183_v5 }
 0x9d3   : > { %2668 = vxpose.xlu0.b32.cont [11/16] (narrow) %v10196_v26, 64  ;;  %7799 = vmatprep.subr.mxu0 %v10185_v7 }
 0x9d4   : > { %7800 = vmatpush3.msra.mxu0 %v10185_v7 }
 0x9d5   : > { %7801 = vmatprep.subr.mxu0 %v10172_v23 }
 0x9d6   : > { %7802 = vmatpush3.msra.mxu0 %v10172_v23 }
 0x9d7   : > { %2669 = vxpose.xlu0.b32.cont [12/16] (narrow) %v10194_v30, 64  ;;  %7803 = vmatprep.subr.mxu0 %v10174_v33 }
 0x9d8   : > { %7804 = vmatpush3.msra.mxu0 %v10174_v33 }
 0x9d9   : > { %7805 = vmatprep.subr.mxu0 %v10161_v16 }
 0x9da   : > { %7806 = vmatpush3.msra.mxu0 %v10161_v16 }
 0x9db   : > { %2670 = vxpose.xlu0.b32.cont [13/16] (narrow) %v10209_v29, 64  ;;  %7807 = vmatprep.subr.mxu0 %v10163_v18 }
 0x9dc   : > { %7808 = vmatpush3.msra.mxu0 %v10163_v18 }
 0x9dd   : > { %7809 = vmatprep.subr.mxu0 %v10150_v13 }
 0x9de   : > { %7810 = vmatpush3.msra.mxu0 %v10150_v13 }
 0x9df   : > { %2671 = vxpose.xlu0.b32.cont [14/16] (narrow) %v10207_v38, 64  ;;  %7811 = vmatprep.subr.mxu0 %v10152_v43 }
 0x9e0   : > { %7812 = vmatpush3.msra.mxu0 %v10152_v43 }
 0x9e1   : > { %7813 = vmatprep.subr.mxu0 %v10139_v6 }
 0x9e2   : > { %7814 = vmatpush3.msra.mxu0 %v10139_v6 }
 0x9e3   : > { %2672 = vxpose.xlu0.b32.cont [15/16] (narrow) %v10218_v8, 64  ;;  %7815 = vmatprep.subr.mxu0 %v10141_v42 }
 0x9e4   : > { %7816 = vmatpush3.msra.mxu0 %v10141_v42 }
 0x9e5   : > { %2851 = vmatprep.subr.mxu0 %v9948_v22 }
 0x9e7   : > { %2673 = vxpose.xlu0.b32.end [16/16] (narrow) %v10213_v39, 64 }
 0xa0f   : > { %v2577_v31 = vpop.trf.xlu1 }
 0xa10   : > { %2618 = vmatmul.mubr.bf16.vlgmr.msra.gmra.mxu1 %v2577_v31 }
 0xa11   : > { %2627 = vmatprep.mubr.bf16.mxu1 %v12413_v41 }
 0xa13   : > { %v2578_v9 = vpop.trf.xlu1 }
 0xa17   : > { %v2579_v58 = vpop.trf.xlu1 }
 0xa18   : > { %2628 = vmatmul.mubr.bf16.gmra.mxu1 %v2578_v9 }
 0xa19   : > { %2637 = vmatprep.mubr.bf16.mxu1 %v12413_v41 }
 0xa1b   : > { %v2580_v63 = vpop.trf.xlu1 }
 0xa20   : > { %2638 = vmatmul.mubr.bf16.gmra.mxu1 %v2579_v58 }
 0xa21   : > { %2647 = vmatprep.mubr.bf16.mxu1 %v12413_v41 }
 0xa27   : > { %v2674_v47 = vpop.trf.xlu0 }
 0xa28   : > { %2648 = vmatmul.mubr.bf16.gmra.mxu1 %v2580_v63  ;;  %7817 = vmatprep.mubr.f32.mxu0 %v2674_v47 }
 0xa29   : > { %3020 = vmatprep.mubr.bf16.mxu1 %v12422_v14 }
 0xa2b   : > { %v2675_v49 = vpop.trf.xlu0 }
 0xa2c   : > { %7818 = vmatmul.mubr.f32.vlgmr.msra.gmra.mxu0 %v2675_v49 }
 0xa2d   : > { %2852 = vmatpush1.msra.mxu0 %v9942_v20 }
 0xa2e   : > { %2853 = vmatprep.subr.mxu0 %v9946_v12 }
 0xa2f   : > { %2854 = vmatpush1.msra.mxu0 %v9950_v17  ;;  %v2676_v34 = vpop.trf.xlu0 }
 0xa30   : > { %2855 = vmatprep.subr.mxu0 %v9944_v3  ;;  %7820 = vmatprep.mubr.f32.mxu0 %v2676_v34 }
 0xa31   : > { %2856 = vmatpush1.msra.mxu0 %v9972_v48 }
 0xa32   : > { %2857 = vmatprep.subr.mxu0 %v9952_v54 }
 0xa33   : > { %2858 = vmatpush1.msra.mxu0 %v9979_v60  ;;  %v2677_v0 = vpop.trf.xlu0 }
 0xa34   : > { %2859 = vmatprep.subr.mxu0 %v9976_v59  ;;  %7821 = vmatmul.mubr.f32.gmra.mxu0 %v2677_v0 }
 0xa35   : > { %2860 = vmatpush1.msra.mxu0 %v9996_v1 }
 0xa36   : > { %2861 = vmatprep.subr.mxu0 %v9981_v15 }
 0xa37   : > { %2862 = vmatpush1.msra.mxu0 %v10001_v4  ;;  %v2678_v50 = vpop.trf.xlu0 }
 0xa38   : > { %2863 = vmatprep.subr.mxu0 %v9998_v37  ;;  %7823 = vmatprep.mubr.f32.mxu0 %v2678_v50 }
 0xa39   : > { %2864 = vmatpush1.msra.mxu0 %v10014_v44 }
 0xa3a   : > { %2865 = vmatprep.subr.mxu0 %v9931_v40 }
 0xa3b   : > { %2866 = vmatpush1.msra.mxu0 %v12453_v52  ;;  %v2679_v57 = vpop.trf.xlu0 }
 0xa3c   : > { %7824 = vmatmul.mubr.f32.gmra.mxu0 %v2679_v57 }
 0xa3f   : > { %v2680_v2 = vpop.trf.xlu0 }
 0xa40   : > { %7826 = vmatprep.mubr.f32.mxu0 %v2680_v2 }
 0xa43   : > { %v2681_v28 = vpop.trf.xlu0 }
 0xa44   : > { %7827 = vmatmul.mubr.f32.gmra.mxu0 %v2681_v28 }
 0xa45   : > { %2899 = vmatprep.mubr.f32.mxu0 %v12454_v11 }
 0xad0   : > { %v10299_v35 = vpop.f32.mrf.mxu1 }
 0xad2   : > { %v2621_v36 = vpop.f32.mrf.mxu1 }
 0xad3   : > { %v2796_v2 = vmul.f32 %v2621_v36, %v9931_v40 }
 0xad4   : > { %v10301_v46 = vpop.f32.mrf.mxu1 }
 0xad6   : > { %v10303_v53 = vpop.f32.mrf.mxu1 }
 0xad8   : > { %v10305_v56 = vpop.f32.mrf.mxu1 }
 0xada   : > { %v10309_v55 = vpop.f32.mrf.mxu1 }
 0xadc   : > { %v10313_v9 = vpop.f32.mrf.mxu1 }
 0xade   : > { %v10315_v47 = vpop.f32.mrf.mxu1 }
 0xae0   : > { %v10317_v0 = vpop.f32.mrf.mxu1 }
 0xaec   : > { %v7819_v27 = vpop.f32.mrf.mxu0 }
 0xaee   : > { %v2756_v45 = vpop.f32.mrf.mxu0 }
 0xaef   : > { %7177 = vmatmul.mubr.msk.f32.vlgmr.msra.gmra.mxu0 %vm1070_vm0, %v2756_v45 }
 0xaf0   : > { %2905 = vmatprep.mubr.f32.mxu0 %v12454_v11 }
 0xaf3   : > { %7178 = vmatmul.mubr.msk.f32.gmra.mxu0 %vm1070_vm0, %v7819_v27  ;;  %v2641_v27 = vpop.f32.mrf.mxu1 }
 0xaf4   : > { %v7822_v24 = vpop.f32.mrf.mxu0  ;;  %2911 = vmatprep.mubr.f32.mxu0 %v12454_v11 }
 0xaf6   : > { %v2766_v10 = vpop.f32.mrf.mxu0 }
 0xaf7   : > { %7179 = vmatmul.mubr.msk.f32.gmra.mxu0 %vm1070_vm0, %v2766_v10 }
 0xaf8   : > { %2917 = vmatprep.mubr.f32.mxu0 %v12454_v11 }
 0xafb   : > { %7180 = vmatmul.mubr.msk.f32.gmra.mxu0 %vm1070_vm0, %v7822_v24 }
 0xafc   : > { %v7825_v19 = vpop.f32.mrf.mxu0  ;;  %2923 = vmatprep.mubr.f32.mxu0 %v12454_v11 }
 0xafe   : > { %v2776_v62 = vpop.f32.mrf.mxu0 }
 0xaff   : > { %7181 = vmatmul.mubr.msk.f32.gmra.mxu0 %vm1070_vm0, %v2776_v62 }
 0xb00   : > { %2929 = vmatprep.mubr.f32.mxu0 %v12454_v11 }
 0xb03   : > { %7182 = vmatmul.mubr.msk.f32.gmra.mxu0 %vm1070_vm0, %v7825_v19  ;;  %v10323_v19 = vpop.f32.mrf.mxu1 }
 0xb04   : > { %v7828_v32 = vpop.f32.mrf.mxu0  ;;  %2935 = vmatprep.mubr.f32.mxu0 %v12454_v11 }
 0xb06   : > { %v2786_v25 = vpop.f32.mrf.mxu0 }
 0xb07   : > { %7183 = vmatmul.mubr.msk.f32.gmra.mxu0 %vm1070_vm0, %v2786_v25 }
 0xb08   : > { %2941 = vmatprep.mubr.f32.mxu0 %v12454_v11 }
 0xb0b   : > { %7184 = vmatmul.mubr.msk.f32.gmra.mxu0 %vm1070_vm0, %v7828_v32 }
 0xbaf   : > { %v10307_v51 = vpop.f32.mrf.mxu0 }
 0xbb1   : > { %v2903_v61 = vpop.f32.mrf.mxu0 }
 0xbb2   : > { %v2904_v21 = vadd.f32 1e-06, %v2903_v61 }
 0xbb3   : > { %v10311_v31 = vpop.f32.mrf.mxu0 }
 0xbb4   : > { %8397 = vrcp.f32 %v2904_v21  ;;  %v2645_v21 = vpop.f32.mrf.mxu1 }
 0xbb5   : > { %v2909_v58 = vpop.f32.mrf.mxu0 }
 0xbb6   : > { %v2649_v38 = vpop.f32.mrf.mxu1 }
 0xbb7   : > { %v2913_v63 = vpop.f32.mrf.mxu0 }
 0xbb8   : > { %v2651_v29 = vpop.f32.mrf.mxu1 }
 0xbb9   : > { %v2915_v49 = vpop.f32.mrf.mxu0 }
 0xbba   : > { %v2653_v5 = vpop.f32.mrf.mxu1 }
 0xbbb   : > { %v2919_v34 = vpop.f32.mrf.mxu0 }
 0xbbd   : > { %v2921_v50 = vpop.f32.mrf.mxu0 }
 0xbbf   : > { %v2925_v57 = vpop.f32.mrf.mxu0 }
 0xbc0   : > { %v2926_v26 = vadd.f32 1e-06, %v2925_v57 }
 0xbc1   : > { %v8398_v28 = vpop.eup %8397  ;;  %v2927_v45 = vpop.f32.mrf.mxu0 }
 0xbc2   : > { %v10320_v24 = vmul.f32 %v8398_v28, %v2796_v2  ;;  %v2928_v32 = vadd.f32 1e-06, %v2927_v45  ;;  %v2922_v45 = vadd.f32 1e-06, %v2921_v50  ;;  %v2806_v50 = vmul.f32 %v2645_v21, %v9944_v3 }
 0xbc3   : > { %v2931_v10 = vpop.f32.mrf.mxu0  ;;  %v2902_v21 = vadd.f32 1e-06, %v10307_v51 }
 0xbc4   : > { %3149 = vmatprep.mubr.f32.mxu0 %v10320_v24  ;;  %8399 = vrcp.f32 %v2928_v32  ;;  %v2932_v30 = vadd.f32 1e-06, %v2931_v10  ;;  %v2807_v10 = vmul.f32 %v2649_v38, %v9950_v17  ;;  %v2908_v17 = vadd.f32 1e-06, %v10311_v31 }
 0xbc5   : > { %v2933_v62 = vpop.f32.mrf.mxu0 }
 0xbc6   : > { %v2934_v61 = vadd.f32 1e-06, %v2933_v62  ;;  %v2916_v62 = vadd.f32 1e-06, %v2915_v49  ;;  %v2808_v49 = vmul.f32 %v2651_v29, %v9946_v12 }
 0xbc7   : > { %v2937_v25 = vpop.f32.mrf.mxu0 }
 0xbc8   : > { %v2938_v8 = vadd.f32 1e-06, %v2937_v25  ;;  %8401 = vrcp.f32 %v2934_v61  ;;  %v2655_v25 = vpop.f32.mrf.mxu1  ;;  %v2920_v61 = vadd.f32 1e-06, %v2919_v34 }
 0xbc9   : > { %v2939_v11 = vpop.f32.mrf.mxu0 }
 0xbca   : > { %v2940_v39 = vadd.f32 1e-06, %v2939_v11 }
 0xbcb   : > { %v2943_v40 = vpop.f32.mrf.mxu0 }
 0xbcc   : > { %v2944_v36 = vadd.f32 1e-06, %v2943_v40  ;;  %8403 = vrcp.f32 %v2940_v39  ;;  %v2910_v40 = vadd.f32 1e-06, %v2909_v58 }
 0xbcd   : > { %v2945_v2 = vpop.f32.mrf.mxu0 }
 0xbce   : > { %8405 = vrcp.f32 %v2944_v36  ;;  %v2946_v28 = vadd.f32 1e-06, %v2945_v2  ;;  %v2914_v2 = vadd.f32 1e-06, %v2913_v63 }
 0xbcf   : > { %8407 = vrcp.f32 %v2938_v8  ;;  %v2809_v8 = vmul.f32 %v2653_v5, %v9942_v20 }
 0xbd0   : > { %8409 = vrcp.f32 %v2946_v28 }
 0xbd1   : > { %8411 = vrcp.f32 %v2932_v30  ;;  %v8400_v11 = vpop.eup %8399  ;;  %v2810_v30 = vmul.f32 %v2655_v25, %v9948_v22 }
 0xbd2   : > { %8413 = vrcp.f32 %v2922_v45  ;;  %v2802_v45 = vmul.f32 %v10315_v47, %v9976_v59 }
 0xbd3   : > { %8415 = vrcp.f32 %v2926_v26  ;;  %v2804_v26 = vmul.f32 %v2641_v27, %v9952_v54  ;;  %v2805_v27 = vmul.f32 %v10323_v19, %v9972_v48  ;;  %v2800_v48 = vmul.f32 %v10309_v55, %v9981_v15 }
 0xbd4   : > { %8417 = vrcp.f32 %v2916_v62 }
 0xbd5   : > { %v8402_v32 = vpop.eup %8401  ;;  %8419 = vrcp.f32 %v2920_v61  ;;  %v10341_v12 = vmul.f32 %v8400_v11, %v2804_v26  ;;  %v2803_v11 = vmul.f32 %v10317_v0, %v9979_v60  ;;  %v2801_v0 = vmul.f32 %v10313_v9, %v9996_v1  ;;  %v12463_v26 = vld [vmem:[#allocation21_spill] sm:$0xff] }
 0xbd6   : > { %8421 = vrcp.f32 %v2910_v40  ;;  %v10333_v58 = vmul.f32 %v8402_v32, %v2806_v50  ;;  %v2798_v61 = vmul.f32 %v10303_v53, %v9998_v37  ;;  %v2797_v53 = vmul.f32 %v10301_v46, %v10014_v44  ;;  %v12456_v44 = vld [vmem:[#allocation22_spill] sm:$0xff]  ;;  %v12459_v46 = vld [vmem:[#allocation23_spill] sm:$0xff] }
 0xbd7   : > { %8423 = vrcp.f32 %v2914_v2  ;;  %v2795_v9 = vmul.f32 %v10299_v35, %v12453_v52  ;;  %v12457_v52 = vld [vmem:[#allocation19_spill] sm:$0xff]  ;;  %v12458_v35 = vld [vmem:[#allocation34_spill] sm:$0xff] }
 0xbd8   : > { %v2985_v29 = vpack.c.bf16 %v10333_v58, %v10341_v12  ;;  %8425 = vrcp.f32 %v2908_v17  ;;  %v12466_v17 = vld [vmem:[#allocation28_spill] sm:$0xff] }
 0xbd9   : > { %v8404_v39 = vpop.eup %8403  ;;  %8427 = vrcp.f32 %v2902_v21 }
 0xbda   : > { %v10335_v20 = vmul.f32 %v8404_v39, %v2808_v49  ;;  %v2799_v39 = vmul.f32 %v10305_v56, %v10001_v4  ;;  %v12460_v49 = vld [vmem:[#allocation24_spill] sm:$0xff] }
 0xbdb   : > { %v8406_v36 = vpop.eup %8405 }
 0xbdc   : > { %v8408_v28 = vpop.eup %8407  ;;  %v10331_v34 = vmul.f32 %v8406_v36, %v2809_v8 }
 0xbdd   : > { %v8410_v57 = vpop.eup %8409  ;;  %v10339_v3 = vmul.f32 %v8408_v28, %v2807_v10  ;;  %v12464_v10 = vld [vmem:[#allocation32_spill] sm:$0xff] }
 0xbde   : > { %v10337_v5 = vmul.f32 %v8410_v57, %v2810_v30  ;;  %v8412_v38 = vpop.eup %8411  ;;  %v12461_v30 = vld [vmem:[#allocation25_spill] sm:$0xff]  ;;  %v12462_v57 = vld [vmem:[#allocation26_spill] sm:$0xff] }
 0xbdf   : > { %v2986_v54 = vpack.c.bf16 %v10331_v34, %v10339_v3  ;;  %v8414_v63 = vpop.eup %8413  ;;  %v10361_v32 = vmul.f32 %v8412_v38, %v2805_v27  ;;  %v12468_v38 = vld [vmem:[#allocation30_spill] sm:$0xff] }
 0xbe0   : > { %12455 = vst [vmem:[#allocation13_spill] sm:$0xff] %v10337_v5  ;;  %3101 = vmatprep.subr.mxu0 %v10337_v5  ;;  %v2987_v22 = vpack.c.bf16 %v10337_v5, %v10335_v20  ;;  %v8416_v31 = vpop.eup %8415  ;;  %v10365_v19 = vmul.f32 %v8414_v63, %v2802_v45  ;;  %v12470_v63 = vld [vmem:[#allocation31_spill] sm:$0xff] }
 0xbe1   : > { %3102 = vmatpush1.xpose.msra.mxu0 %v10331_v34  ;;  %v8418_v62 = vpop.eup %8417  ;;  %v10368_v51 = vmul.f32 %v8416_v31, %v2803_v11 }
 0xbe2   : > { %2996 = vmatprep.subr.bf16.mxu1 %v2987_v22  ;;  %3103 = vmatprep.subr.mxu0 %v10335_v20  ;;  %v10370_v59 = vmul.f32 %v8418_v62, %v2800_v48  ;;  %v8420_v47 = vpop.eup %8419  ;;  %v12465_v22 = vld [vmem:[#allocation27_spill] sm:$0xff] }
 0xbe3   : > { %2997 = vmatpush1.bf16.xpose.msra.mxu1 %v2986_v54  ;;  %v2984_v60 = vpack.c.bf16 %v10361_v32, %v10368_v51  ;;  %v8422_v55 = vpop.eup %8421  ;;  %v10385_v40 = vmul.f32 %v8420_v47, %v2801_v0  ;;  %v12467_v54 = vld [vmem:[#allocation29_spill] sm:$0xff] }
 0xbe4   : > { %2998 = vmatprep.subr.bf16.mxu1 %v2985_v29  ;;  %v2983_v15 = vpack.c.bf16 %v10365_v19, %v10370_v59  ;;  %v8424_v25 = vpop.eup %8423  ;;  %v10387_v36 = vmul.f32 %v8422_v55, %v2798_v61  ;;  %v12469_v29 = vld [vmem:[#allocation33_spill] sm:$0xff] }
 0xbe5   : > { %3104 = vmatpush1.xpose.msra.mxu0 %v10339_v3  ;;  %v10390_v8 = vmul.f32 %v8424_v25, %v2799_v39  ;;  %v8426_v37 = vpop.eup %8425 }
 0xbe6   : > { %3105 = vmatprep.subr.mxu0 %v10333_v58  ;;  %v2981_v4 = vpack.c.bf16 %v10387_v36, %v10320_v24  ;;  %v8428_v56 = vpop.eup %8427  ;;  %v10403_v2 = vmul.f32 %v8426_v37, %v2797_v53 }
 0xbe7   : > { %v2982_v1 = vpack.c.bf16 %v10385_v40, %v10390_v8  ;;  %v10406_v28 = vmul.f32 %v8428_v56, %v2795_v9 }
 0xbe9   : > { %3106 = vmatpush1.xpose.msra.mxu0 %v10361_v32  ;;  %v2980_v50 = vpack.c.bf16 %v10403_v2, %v10406_v28 }
 0xbea   : > { %3107 = vmatprep.subr.mxu0 %v10341_v12 }
 0xbeb   : > { %2999 = vmatpush1.bf16.xpose.msra.mxu1 %v2984_v60 }
 0xbec   : > { %3000 = vmatprep.subr.bf16.mxu1 %v2983_v15 }
 0xbed   : > { %3108 = vmatpush1.xpose.msra.mxu0 %v10368_v51 }
 0xbee   : > { %3109 = vmatprep.subr.mxu0 %v10365_v19 }
 0xbf1   : > { %3110 = vmatpush1.xpose.msra.mxu0 %v10385_v40 }
 0xbf2   : > { %3111 = vmatprep.subr.mxu0 %v10370_v59 }
 0xbf3   : > { %3001 = vmatpush1.bf16.xpose.msra.mxu1 %v2982_v1 }
 0xbf4   : > { %3002 = vmatprep.subr.bf16.mxu1 %v2981_v4 }
 0xbf5   : > { %3112 = vmatpush1.xpose.msra.mxu0 %v10390_v8 }
 0xbf6   : > { %3113 = vmatprep.subr.mxu0 %v10387_v36 }
 0xbf9   : > { %3114 = vmatpush1.xpose.msra.mxu0 %v10403_v2 }
 0xbfa   : > { %3115 = vmatprep.subr.mxu0 %v10320_v24 }
 0xbfb   : > { %3003 = vmatpush1.bf16.xpose.msra.mxu1 %v2980_v50 }
 0xbfc   : > { %3455 = vmatprep.subr.bf16.mxu1 %v12456_v44 }
 0xbfd   : > { %3116 = vmatpush1.xpose.msra.mxu0 %v10406_v28 }
 0xc00   : > { %3150 = vmatmul.mubr.f32.vlgmr.msra.gmra.mxu0 %v10406_v28 }
 0xc01   : > { %3154 = vmatprep.mubr.f32.mxu0 %v10387_v36 }
 0xc02   : > { %3021 = vmatmul.mubr.bf16.vlgmr.msra.gmra.mxu1 %v12457_v52 }
 0xc03   : > { %3028 = vmatprep.mubr.bf16.mxu1 %v12458_v35  ;;  %3456 = vmatpush1.bf16.msra.mxu1 %v12459_v46 }
 0xc04   : > { %3155 = vmatmul.mubr.f32.gmra.mxu0 %v10403_v2  ;;  %3457 = vmatprep.subr.bf16.mxu1 %v12460_v49 }
 0xc05   : > { %3159 = vmatprep.mubr.f32.mxu0 %v10370_v59 }
 0xc07   : > { %3458 = vmatpush1.bf16.msra.mxu1 %v12461_v30 }
 0xc08   : > { %3160 = vmatmul.mubr.f32.gmra.mxu0 %v10390_v8  ;;  %3459 = vmatprep.subr.bf16.mxu1 %v12462_v57 }
 0xc09   : > { %3164 = vmatprep.mubr.f32.mxu0 %v10365_v19 }
 0xc0a   : > { %3029 = vmatmul.mubr.bf16.gmra.mxu1 %v12463_v26 }
 0xc0b   : > { %3036 = vmatprep.mubr.bf16.mxu1 %v12464_v10  ;;  %3460 = vmatpush1.bf16.msra.mxu1 %v12465_v22 }
 0xc0c   : > { %3165 = vmatmul.mubr.f32.gmra.mxu0 %v10385_v40  ;;  %3461 = vmatprep.subr.bf16.mxu1 %v12466_v17 }
 0xc0d   : > { %3169 = vmatprep.mubr.f32.mxu0 %v10341_v12 }
 0xc0f   : > { %3462 = vmatpush1.bf16.msra.mxu1 %v12467_v54 }
 0xc10   : > { %3170 = vmatmul.mubr.f32.gmra.mxu0 %v10368_v51  ;;  %3463 = vmatprep.subr.bf16.mxu1 %v12468_v38 }
 0xc11   : > { %3174 = vmatprep.mubr.f32.mxu0 %v10333_v58 }
 0xc12   : > { %3037 = vmatmul.mubr.bf16.gmra.mxu1 %v12469_v29 }
 0xc13   : > { %3044 = vmatprep.mubr.bf16.mxu1 %v12468_v38  ;;  %3464 = vmatpush1.bf16.msra.mxu1 %v12470_v63 }
 0xc14   : > { %3175 = vmatmul.mubr.f32.gmra.mxu0 %v10361_v32  ;;  %3465 = vmatprep.subr.bf16.mxu1 %v12464_v10 }
 0xc15   : > { %3179 = vmatprep.mubr.f32.mxu0 %v10335_v20 }
 0xc17   : > { %3466 = vmatpush1.bf16.msra.mxu1 %v12469_v29 }
 0xc18   : > { %3180 = vmatmul.mubr.f32.gmra.mxu0 %v10339_v3  ;;  %3467 = vmatprep.subr.bf16.mxu1 %v12458_v35 }
 0xc19   : > { %3184 = vmatprep.mubr.f32.mxu0 %v10337_v5 }
 0xc1a   : > { %3045 = vmatmul.mubr.bf16.gmra.mxu1 %v12470_v63 }
 0xc1b   : > { %3052 = vmatprep.mubr.bf16.mxu1 %v12466_v17  ;;  %3468 = vmatpush1.bf16.msra.mxu1 %v12463_v26 }
 0xc1c   : > { %3185 = vmatmul.mubr.f32.gmra.mxu0 %v10331_v34  ;;  %3469 = vmatprep.subr.bf16.mxu1 %v12422_v14 }
 0xc1d   : > { %7845 = vmatprep.mubr.msk.f32.mxu0 %vm1070_vm0, %v10141_v42 }
 0xc1f   : > { %3470 = vmatpush1.bf16.msra.mxu1 %v12457_v52 }
 0xc20   : > { %3721 = vmatprep.subr.mxu1 %v10337_v5 }
 0xc22   : > { %3053 = vmatmul.mubr.bf16.gmra.mxu1 %v12467_v54 }
 0xc23   : > { %3060 = vmatprep.mubr.bf16.mxu1 %v12462_v57 }
 0xc2a   : > { %3061 = vmatmul.mubr.bf16.gmra.mxu1 %v12465_v22 }
 0xc2b   : > { %3068 = vmatprep.mubr.bf16.mxu1 %v12460_v49 }
 0xc32   : > { %3069 = vmatmul.mubr.bf16.gmra.mxu1 %v12461_v30 }
 0xc33   : > { %3076 = vmatprep.mubr.bf16.mxu1 %v12456_v44 }
 0xc3a   : > { %3077 = vmatmul.mubr.bf16.gmra.mxu1 %v12459_v46 }
 0xc3b   : > { %3487 = vmatprep.mubr.bf16.mxu1 %v12413_v41 }
 0xcc0   : > { %v3151_v27 = vpop.f32.mrf.mxu0 }
 0xcc2   : > { %v10463_v21 = vpop.f32.mrf.mxu1  ;;  %v3153_v31 = vpop.f32.mrf.mxu0 }
 0xcc4   : > { %v3024_v45 = vpop.f32.mrf.mxu1  ;;  %v3156_v62 = vpop.f32.mrf.mxu0 }
 0xcc6   : > { %v10465_v11 = vpop.f32.mrf.mxu1  ;;  %v3158_v48 = vpop.f32.mrf.mxu0 }
 0xcc8   : > { %v3027_v60 = vpop.f32.mrf.mxu1  ;;  %v3161_v47 = vpop.f32.mrf.mxu0 }
 0xcca   : > { %v10467_v15 = vpop.f32.mrf.mxu1  ;;  %v3163_v55 = vpop.f32.mrf.mxu0 }
 0xccc   : > { %v3032_v0 = vpop.f32.mrf.mxu1  ;;  %v3166_v25 = vpop.f32.mrf.mxu0 }
 0xcce   : > { %v10469_v61 = vpop.f32.mrf.mxu1  ;;  %v3168_v39 = vpop.f32.mrf.mxu0 }
 0xcd0   : > { %v3035_v1 = vpop.f32.mrf.mxu1  ;;  %v3171_v37 = vpop.f32.mrf.mxu0 }
 0xcd2   : > { %v10471_v4 = vpop.f32.mrf.mxu1  ;;  %v3173_v53 = vpop.f32.mrf.mxu0 }
 0xcd4   : > { %v3040_v56 = vpop.f32.mrf.mxu1  ;;  %v3176_v9 = vpop.f32.mrf.mxu0 }
 0xcd6   : > { %v10473_v50 = vpop.f32.mrf.mxu1  ;;  %v3178_v31 = vpop.f32.mrf.mxu0 }
 0xcd8   : > { %v3043_v45 = vpop.f32.mrf.mxu1  ;;  %v3181_v48 = vpop.f32.mrf.mxu0 }
 0xcda   : > { %v10475_v60 = vpop.f32.mrf.mxu1  ;;  %v3183_v55 = vpop.f32.mrf.mxu0 }
 0xcdc   : > { %v3048_v0 = vpop.f32.mrf.mxu1  ;;  %v3186_v63 = vpop.f32.mrf.mxu0 }
 0xcdd   : > { %7829 = vmatprep.subr.mxu0 %v3186_v63 }
 0xcde   : > { %v10477_v29 = vpop.f32.mrf.mxu1  ;;  %v3188_v39 = vpop.f32.mrf.mxu0  ;;  %7830 = vmatpush3.msra.mxu0 %v3186_v63 }
 0xcdf   : > { %7831 = vmatprep.subr.mxu0 %v3181_v48  ;;  %v12471_v39 = vld [vmem:[#allocation20_spill] sm:$0xff] }
 0xce0   : > { %v3051_v1 = vpop.f32.mrf.mxu1  ;;  %7832 = vmatpush3.msra.mxu0 %v3181_v48 }
 0xce1   : > { %7833 = vmatprep.subr.mxu0 %v3176_v9 }
 0xce2   : > { %v10479_v53 = vpop.f32.mrf.mxu1  ;;  %7834 = vmatpush3.msra.mxu0 %v3176_v9 }
 0xce3   : > { %7835 = vmatprep.subr.mxu0 %v3171_v37 }
 0xce4   : > { %v3056_v56 = vpop.f32.mrf.mxu1  ;;  %7836 = vmatpush3.msra.mxu0 %v3171_v37 }
 0xce5   : > { %7837 = vmatprep.subr.mxu0 %v3166_v25  ;;  %v12472_v56 = vld [vmem:[#allocation16_spill] sm:$0xff] }
 0xce6   : > { %v10481_v31 = vpop.f32.mrf.mxu1  ;;  %7838 = vmatpush3.msra.mxu0 %v3166_v25 }
 0xce7   : > { %7839 = vmatprep.subr.mxu0 %v3161_v47 }
 0xce8   : > { %v3059_v45 = vpop.f32.mrf.mxu1  ;;  %7840 = vmatpush3.msra.mxu0 %v3161_v47 }
 0xce9   : > { %7841 = vmatprep.subr.mxu0 %v3156_v62 }
 0xcea   : > { %v10483_v55 = vpop.f32.mrf.mxu1  ;;  %7842 = vmatpush3.msra.mxu0 %v3156_v62 }
 0xceb   : > { %7843 = vmatprep.subr.mxu0 %v3151_v27 }
 0xcec   : > { %v3064_v63 = vpop.f32.mrf.mxu1  ;;  %7844 = vmatpush3.msra.mxu0 %v3151_v27 }
 0xced   : > { %7846 = vmatmul.mubr.msk.f32.vlgmr.msra.gmra.mxu0 %vm1070_vm0, %v10139_v6  ;;  %v12473_v63 = vld [vmem:[#allocation18_spill] sm:$0xff] }
 0xcee   : > { %v10487_v9 = vpop.f32.mrf.mxu1  ;;  %7848 = vmatprep.mubr.msk.f32.mxu0 %vm1070_vm0, %v10152_v43 }
 0xcf0   : > { %v3067_v37 = vpop.f32.mrf.mxu1 }
 0xcf1   : > { %7849 = vmatmul.mubr.msk.f32.gmra.mxu0 %vm1070_vm0, %v10150_v13  ;;  %v12474_v37 = vld [vmem:[#allocation14_spill] sm:$0xff] }
 0xcf2   : > { %v10493_v47 = vpop.f32.mrf.mxu1  ;;  %7851 = vmatprep.mubr.msk.f32.mxu0 %vm1070_vm0, %v10163_v18 }
 0xcf4   : > { %v3072_v62 = vpop.f32.mrf.mxu1 }
 0xcf5   : > { %7852 = vmatmul.mubr.msk.f32.gmra.mxu0 %vm1070_vm0, %v10161_v16  ;;  %v12475_v62 = vld [vmem:[#allocation17_spill] sm:$0xff] }
 0xcf6   : > { %v10499_v27 = vpop.f32.mrf.mxu1  ;;  %7854 = vmatprep.mubr.msk.f32.mxu0 %vm1070_vm0, %v10174_v33 }
 0xcf8   : > { %v3075_v25 = vpop.f32.mrf.mxu1 }
 0xcf9   : > { %7855 = vmatmul.mubr.msk.f32.gmra.mxu0 %vm1070_vm0, %v10172_v23  ;;  %v12476_v25 = vld [vmem:[#allocation12_spill] sm:$0xff] }
 0xcfa   : > { %v10505_v48 = vpop.f32.mrf.mxu1  ;;  %7857 = vmatprep.mubr.msk.f32.mxu0 %vm1070_vm0, %v10185_v7 }
 0xcfc   : > { %v3080_v0 = vpop.f32.mrf.mxu1 }
 0xcfd   : > { %7858 = vmatmul.mubr.msk.f32.gmra.mxu0 %vm1070_vm0, %v12471_v39  ;;  %v12477_v0 = vld [vmem:[#allocation15_spill] sm:$0xff] }
 0xcfe   : > { %v10511_v1 = vpop.f32.mrf.mxu1  ;;  %7860 = vmatprep.mubr.msk.f32.mxu0 %vm1070_vm0, %v12472_v56 }
 0xd00   : > { %v3083_v45 = vpop.f32.mrf.mxu1 }
 0xd01   : > { %7861 = vmatmul.mubr.msk.f32.gmra.mxu0 %vm1070_vm0, %v12473_v63 }
 0xd02   : > { %7863 = vmatprep.mubr.msk.f32.mxu0 %vm1070_vm0, %v12474_v37 }
 0xd05   : > { %7864 = vmatmul.mubr.msk.f32.gmra.mxu0 %vm1070_vm0, %v12475_v62 }
 0xd06   : > { %7866 = vmatprep.mubr.msk.f32.mxu0 %vm1070_vm0, %v12476_v25 }
 0xd09   : > { %7867 = vmatmul.mubr.msk.f32.gmra.mxu0 %vm1070_vm0, %v12477_v0 }
 0xdad   : > { %v7847_v38 = vpop.f32.mrf.mxu0 }
 0xdae   : > { %v3326_v54 = vadd.f32 1e-06, %v7847_v38 }
 0xdaf   : > { %v3320_v17 = vpop.f32.mrf.mxu0 }
 0xdb0   : > { %8429 = vrcp.f32 %v3326_v54  ;;  %v3321_v45 = vadd.f32 1e-06, %v3320_v17 }
 0xdb1   : > { %v7850_v22 = vpop.f32.mrf.mxu0 }
 0xdb2   : > { %8431 = vrcp.f32 %v3321_v45  ;;  %v3336_v10 = vadd.f32 1e-06, %v7850_v22  ;;  %v3190_v22 = vmul.f32 %v10463_v21, %v10141_v42  ;;  %v3193_v42 = vmul.f32 %v10469_v61, %v10150_v13 }
 0xdb3   : > { %v3330_v26 = vpop.f32.mrf.mxu0  ;;  %v3194_v13 = vmul.f32 %v10471_v4, %v10163_v18  ;;  %v3195_v61 = vmul.f32 %v10473_v50, %v10161_v16  ;;  %v3196_v16 = vmul.f32 %v10475_v60, %v10174_v33  ;;  %v3197_v50 = vmul.f32 %v10477_v29, %v10172_v23 }
 0xdb4   : > { %8433 = vrcp.f32 %v3336_v10  ;;  %v3331_v57 = vadd.f32 1e-06, %v3330_v26  ;;  %v3191_v26 = vmul.f32 %v10465_v11, %v10139_v6  ;;  %v3198_v23 = vmul.f32 %v10479_v53, %v10185_v7 }
 0xdb5   : > { %v7853_v30 = vpop.f32.mrf.mxu0  ;;  %v3199_v29 = vmul.f32 %v10481_v31, %v12471_v39  ;;  %v3201_v7 = vmul.f32 %v10487_v9, %v12473_v63  ;;  %v3205_v63 = vmul.f32 %v10511_v1, %v12477_v0 }
 0xdb6   : > { %8435 = vrcp.f32 %v3331_v57  ;;  %v3346_v49 = vadd.f32 1e-06, %v7853_v30 }
 0xdb7   : > { %v3340_v46 = vpop.f32.mrf.mxu0 }
 0xdb8   : > { %8437 = vrcp.f32 %v3346_v49  ;;  %v3341_v35 = vadd.f32 1e-06, %v3340_v46 }
 0xdb9   : > { %v7856_v52 = vpop.f32.mrf.mxu0 }
 0xdba   : > { %8439 = vrcp.f32 %v3341_v35  ;;  %v3356_v44 = vadd.f32 1e-06, %v7856_v52 }
 0xdbb   : > { %v3350_v5 = vpop.f32.mrf.mxu0 }
 0xdbc   : > { %8441 = vrcp.f32 %v3356_v44  ;;  %v3351_v38 = vadd.f32 1e-06, %v3350_v5  ;;  %v3192_v5 = vmul.f32 %v10467_v15, %v10152_v43 }
 0xdbd   : > { %v8430_v54 = vpop.eup %8429  ;;  %v7859_v17 = vpop.f32.mrf.mxu0 }
 0xdbe   : > { %8443 = vrcp.f32 %v3351_v38  ;;  %v3366_v57 = vadd.f32 1e-06, %v7859_v17  ;;  %v10529_v49 = vmul.f32 %v8430_v54, %v3191_v26 }
 0xdbf   : > { %v8432_v30 = vpop.eup %8431  ;;  %v3360_v10 = vpop.f32.mrf.mxu0 }
 0xdc0   : > { %v10531_v46 = vmul.f32 %v8432_v30, %v3190_v22  ;;  %8445 = vrcp.f32 %v3366_v57  ;;  %v3361_v52 = vadd.f32 1e-06, %v3360_v10 }
 0xdc1   : > { %v8434_v44 = vpop.eup %8433  ;;  %v7862_v35 = vpop.f32.mrf.mxu0 }
 0xdc2   : > { %8447 = vrcp.f32 %v3361_v52  ;;  %v3376_v6 = vadd.f32 1e-06, %v7862_v35  ;;  %3528 = vxpose.xlu0.b32.start [1/16] (narrow) %v10531_v46, 64  ;;  %v3431_v21 = vpack.c.bf16 %v10529_v49, %v10531_v46  ;;  %v10540_v38 = vmul.f32 %v8434_v44, %v3193_v42 }
 0xdc3   : > { %v8436_v11 = vpop.eup %8435  ;;  %v3370_v45 = vpop.f32.mrf.mxu0 }
 0xdc4   : > { %v10542_v54 = vmul.f32 %v8436_v11, %v3192_v5  ;;  %8449 = vrcp.f32 %v3376_v6  ;;  %v3371_v17 = vadd.f32 1e-06, %v3370_v45  ;;  %3439 = vxpose.xlu1.c.b16.start [1/8] (narrow) %v3431_v21, 64 }
 0xdc5   : > { %v8438_v43 = vpop.eup %8437  ;;  %v7865_v15 = vpop.f32.mrf.mxu0 }
 0xdc6   : > { %8451 = vrcp.f32 %v3371_v17  ;;  %v3386_v22 = vadd.f32 1e-06, %v7865_v15  ;;  %3529 = vxpose.xlu0.b32.cont [2/16] (narrow) %v10529_v49, 64  ;;  %v3432_v26 = vpack.c.bf16 %v10540_v38, %v10542_v54  ;;  %v10551_v10 = vmul.f32 %v8438_v43, %v3195_v61 }
 0xdc7   : > { %v8440_v57 = vpop.eup %8439  ;;  %v3380_v30 = vpop.f32.mrf.mxu0  ;;  %v3200_v61 = vmul.f32 %v10483_v55, %v12472_v56  ;;  %v3203_v55 = vmul.f32 %v10499_v27, %v12475_v62 }
 0xdc8   : > { %v10553_v52 = vmul.f32 %v8440_v57, %v3194_v13  ;;  %8453 = vrcp.f32 %v3386_v22  ;;  %v3381_v44 = vadd.f32 1e-06, %v3380_v30  ;;  %3440 = vxpose.xlu1.c.b16.cont [2/8] (narrow) %v3432_v26, 64  ;;  %v3202_v57 = vmul.f32 %v10493_v47, %v12474_v37 }
 0xdc9   : > { %v8442_v18 = vpop.eup %8441  ;;  %v7868_v4 = vpop.f32.mrf.mxu0  ;;  %v3204_v47 = vmul.f32 %v10505_v48, %v12476_v25 }
 0xdca   : > { %8455 = vrcp.f32 %v3381_v44  ;;  %v3396_v5 = vadd.f32 1e-06, %v7868_v4  ;;  %3530 = vxpose.xlu0.b32.cont [3/16] (narrow) %v10542_v54, 64  ;;  %v3433_v35 = vpack.c.bf16 %v10551_v10, %v10553_v52  ;;  %v10562_v21 = vmul.f32 %v8442_v18, %v3197_v50 }
 0xdcb   : > { %v8444_v42 = vpop.eup %8443  ;;  %v3390_v6 = vpop.f32.mrf.mxu0 }
 0xdcc   : > { %12478 = vst [vmem:[#allocation11_spill] sm:$0xff] %v10562_v21  ;;  %v10564_v11 = vmul.f32 %v8444_v42, %v3196_v16  ;;  %8457 = vrcp.f32 %v3396_v5  ;;  %v3391_v45 = vadd.f32 1e-06, %v3390_v6  ;;  %3441 = vxpose.xlu1.c.b16.cont [3/8] (narrow) %v3433_v35, 64  ;;  %v12487_v5 = vmov 0.0  }
 0xdcd   : > { %v8446_v33 = vpop.eup %8445 }
 0xdce   : > { %8459 = vrcp.f32 %v3391_v45  ;;  %3531 = vxpose.xlu0.b32.cont [4/16] (narrow) %v10540_v38, 64  ;;  %v3434_v60 = vpack.c.bf16 %v10562_v21, %v10564_v11  ;;  %v10573_v43 = vmul.f32 %v8446_v33, %v3199_v29 }
 0xdcf   : > { %v8448_v17 = vpop.eup %8447 }
 0xdd0   : > { %12479 = vst [vmem:[#allocation20_spill] sm:$0xff] %v10573_v43  ;;  %v10575_v13 = vmul.f32 %v8448_v17, %v3198_v23  ;;  %3442 = vxpose.xlu1.c.b16.cont [4/8] (narrow) %v3434_v60, 64 }
 0xdd1   : > { %v8450_v15 = vpop.eup %8449 }
 0xdd2   : > { %12480 = vst [vmem:[#allocation16_spill] sm:$0xff] %v10575_v13  ;;  %3532 = vxpose.xlu0.b32.cont [5/16] (narrow) %v10553_v52, 64  ;;  %v3435_v53 = vpack.c.bf16 %v10573_v43, %v10575_v13  ;;  %v10584_v39 = vmul.f32 %v8450_v15, %v3201_v7 }
 0xdd3   : > { %v8452_v31 = vpop.eup %8451 }
 0xdd4   : > { %12481 = vst [vmem:[#allocation18_spill] sm:$0xff] %v10584_v39  ;;  %v10586_v22 = vmul.f32 %v8452_v31, %v3200_v61  ;;  %3443 = vxpose.xlu1.c.b16.cont [5/8] (narrow) %v3435_v53, 64 }
 0xdd5   : > { %v8454_v26 = vpop.eup %8453 }
 0xdd6   : > { %12482 = vst [vmem:[#allocation14_spill] sm:$0xff] %v10586_v22  ;;  %3533 = vxpose.xlu0.b32.cont [6/16] (narrow) %v10551_v10, 64  ;;  %v3436_v9 = vpack.c.bf16 %v10584_v39, %v10586_v22  ;;  %v10597_v30 = vmul.f32 %v8454_v26, %v3203_v55 }
 0xdd7   : > { %v8456_v56 = vpop.eup %8455 }
 0xdd8   : > { %12483 = vst [vmem:[#allocation17_spill] sm:$0xff] %v10597_v30  ;;  %v10599_v44 = vmul.f32 %v8456_v56, %v3202_v57  ;;  %3444 = vxpose.xlu1.c.b16.cont [6/8] (narrow) %v3436_v9, 64 }
 0xdd9   : > { %v8458_v18 = vpop.eup %8457 }
 0xdda   : > { %12484 = vst [vmem:[#allocation12_spill] sm:$0xff] %v10599_v44  ;;  %v10603_v37 = vmul.f32 %v8458_v18, %v3205_v63  ;;  %3534 = vxpose.xlu0.b32.cont [7/16] (narrow) %v10564_v11, 64  ;;  %v3437_v27 = vpack.c.bf16 %v10597_v30, %v10599_v44 }
 0xddb   : > { %v8460_v62 = vpop.eup %8459 }
 0xddc   : > { %12485 = vst [vmem:[#allocation15_spill] sm:$0xff] %v10603_v37  ;;  %v10608_v16 = vmul.f32 %v8460_v62, %v3204_v47  ;;  %3445 = vxpose.xlu1.c.b16.cont [7/8] (narrow) %v3437_v27, 64  ;;  %7869 = vmatprep.subr.mxu0 %v10603_v37 }
 0xddd   : > { %7870 = vmatpush3.msra.mxu0 %v10603_v37 }
 0xdde   : > { %12486 = vst [vmem:[#allocation35_spill] sm:$0xff] %v10608_v16  ;;  %3535 = vxpose.xlu0.b32.cont [8/16] (narrow) %v10562_v21, 64  ;;  %7871 = vmatprep.subr.mxu0 %v10608_v16  ;;  %v3438_v48 = vpack.c.bf16 %v10603_v37, %v10608_v16 }
 0xddf   : > { %7872 = vmatpush3.msra.mxu0 %v10608_v16 }
 0xde0   : > { %7873 = vmatprep.subr.mxu0 %v10597_v30  ;;  %3446 = vxpose.xlu1.c.b16.end [8/8] (narrow) %v3438_v48, 64 }
 0xde1   : > { %7874 = vmatpush3.msra.mxu0 %v10597_v30 }
 0xde2   : > { %3536 = vxpose.xlu0.b32.cont [9/16] (narrow) %v10575_v13, 64  ;;  %7875 = vmatprep.subr.mxu0 %v10599_v44 }
 0xde3   : > { %7876 = vmatpush3.msra.mxu0 %v10599_v44 }
 0xde4   : > { %7877 = vmatprep.subr.mxu0 %v10584_v39 }
 0xde5   : > { %7878 = vmatpush3.msra.mxu0 %v10584_v39 }
 0xde6   : > { %3537 = vxpose.xlu0.b32.cont [10/16] (narrow) %v10573_v43, 64  ;;  %7879 = vmatprep.subr.mxu0 %v10586_v22 }
 0xde7   : > { %7880 = vmatpush3.msra.mxu0 %v10586_v22 }
 0xde8   : > { %7881 = vmatprep.subr.mxu0 %v10573_v43 }
 0xde9   : > { %7882 = vmatpush3.msra.mxu0 %v10573_v43 }
 0xdea   : > { %3538 = vxpose.xlu0.b32.cont [11/16] (narrow) %v10586_v22, 64  ;;  %7883 = vmatprep.subr.mxu0 %v10575_v13 }
 0xdeb   : > { %7884 = vmatpush3.msra.mxu0 %v10575_v13 }
 0xdec   : > { %7885 = vmatprep.subr.mxu0 %v10562_v21 }
 0xded   : > { %7886 = vmatpush3.msra.mxu0 %v10562_v21 }
 0xdee   : > { %3539 = vxpose.xlu0.b32.cont [12/16] (narrow) %v10584_v39, 64  ;;  %7887 = vmatprep.subr.mxu0 %v10564_v11 }
 0xdef   : > { %7888 = vmatpush3.msra.mxu0 %v10564_v11 }
 0xdf0   : > { %7889 = vmatprep.subr.mxu0 %v10551_v10 }
 0xdf1   : > { %7890 = vmatpush3.msra.mxu0 %v10551_v10 }
 0xdf2   : > { %3540 = vxpose.xlu0.b32.cont [13/16] (narrow) %v10599_v44, 64  ;;  %7891 = vmatprep.subr.mxu0 %v10553_v52 }
 0xdf3   : > { %7892 = vmatpush3.msra.mxu0 %v10553_v52 }
 0xdf4   : > { %7893 = vmatprep.subr.mxu0 %v10540_v38 }
 0xdf5   : > { %7894 = vmatpush3.msra.mxu0 %v10540_v38 }
 0xdf6   : > { %3541 = vxpose.xlu0.b32.cont [14/16] (narrow) %v10597_v30, 64  ;;  %7895 = vmatprep.subr.mxu0 %v10542_v54 }
 0xdf7   : > { %7896 = vmatpush3.msra.mxu0 %v10542_v54 }
 0xdf8   : > { %7897 = vmatprep.subr.mxu0 %v10529_v49 }
 0xdf9   : > { %7898 = vmatpush3.msra.mxu0 %v10529_v49 }
 0xdfa   : > { %3542 = vxpose.xlu0.b32.cont [15/16] (narrow) %v10608_v16, 64  ;;  %7899 = vmatprep.subr.mxu0 %v10531_v46 }
 0xdfb   : > { %7900 = vmatpush3.msra.mxu0 %v10531_v46 }
 0xdfe   : > { %3543 = vxpose.xlu0.b32.end [16/16] (narrow) %v10603_v37, 64 }
 0xe26   : > { %v3447_v1 = vpop.trf.xlu1 }
 0xe27   : > { %3488 = vmatmul.mubr.bf16.vlgmr.msra.gmra.mxu1 %v3447_v1 }
 0xe28   : > { %3722 = vmatpush1.msra.mxu1 %v10331_v34  ;;  %3497 = vmatprep.mubr.bf16.mxu1 %v12413_v41 }
 0xe29   : > { %3723 = vmatprep.subr.mxu1 %v10335_v20 }
 0xe2a   : > { %3724 = vmatpush1.msra.mxu1 %v10339_v3  ;;  %v3448_v25 = vpop.trf.xlu1 }
 0xe2b   : > { %3725 = vmatprep.subr.mxu1 %v10333_v58 }
 0xe2c   : > { %3726 = vmatpush1.msra.mxu1 %v10361_v32 }
 0xe2d   : > { %3727 = vmatprep.subr.mxu1 %v10341_v12 }
 0xe2e   : > { %3728 = vmatpush1.msra.mxu1 %v10368_v51  ;;  %v3449_v0 = vpop.trf.xlu1 }
 0xe2f   : > { %3729 = vmatprep.subr.mxu1 %v10365_v19  ;;  %3498 = vmatmul.mubr.bf16.gmra.mxu1 %v3448_v25 }
 0xe30   : > { %3730 = vmatpush1.msra.mxu1 %v10385_v40  ;;  %3507 = vmatprep.mubr.bf16.mxu1 %v12413_v41 }
 0xe31   : > { %3731 = vmatprep.subr.mxu1 %v10370_v59 }
 0xe32   : > { %3732 = vmatpush1.msra.mxu1 %v10390_v8  ;;  %v3450_v4 = vpop.trf.xlu1 }
 0xe33   : > { %3733 = vmatprep.subr.mxu1 %v10387_v36 }
 0xe34   : > { %3734 = vmatpush1.msra.mxu1 %v10403_v2 }
 0xe35   : > { %3735 = vmatprep.subr.mxu1 %v10320_v24 }
 0xe36   : > { %3736 = vmatpush1.msra.mxu1 %v10406_v28 }
 0xe37   : > { %3508 = vmatmul.mubr.bf16.gmra.mxu1 %v3449_v0 }
 0xe38   : > { %3517 = vmatprep.mubr.bf16.mxu1 %v12413_v41 }
 0xe3e   : > { %v3544_v50 = vpop.trf.xlu0 }
 0xe3f   : > { %3518 = vmatmul.mubr.bf16.gmra.mxu1 %v3450_v4  ;;  %7901 = vmatprep.mubr.f32.mxu0 %v3544_v50 }
 0xe40   : > { %3769 = vmatprep.mubr.f32.mxu1 %v12487_v5 }
 0xe42   : > { %v3545_v35 = vpop.trf.xlu0 }
 0xe43   : > { %7902 = vmatmul.mubr.f32.vlgmr.msra.gmra.mxu0 %v3545_v35 }
 0xe46   : > { %v3546_v42 = vpop.trf.xlu0 }
 0xe47   : > { %7904 = vmatprep.mubr.f32.mxu0 %v3546_v42 }
 0xe4a   : > { %v3547_v6 = vpop.trf.xlu0 }
 0xe4b   : > { %7905 = vmatmul.mubr.f32.gmra.mxu0 %v3547_v6 }
 0xe4e   : > { %v3548_v45 = vpop.trf.xlu0 }
 0xe4f   : > { %7907 = vmatprep.mubr.f32.mxu0 %v3548_v45 }
 0xe52   : > { %v3549_v33 = vpop.trf.xlu0 }
 0xe53   : > { %7908 = vmatmul.mubr.f32.gmra.mxu0 %v3549_v33 }
 0xe56   : > { %v3550_v23 = vpop.trf.xlu0 }
 0xe57   : > { %7910 = vmatprep.mubr.f32.mxu0 %v3550_v23 }
 0xe5a   : > { %v3551_v29 = vpop.trf.xlu0 }
 0xe5b   : > { %7911 = vmatmul.mubr.f32.gmra.mxu0 %v3551_v29 }
 0xe5c   : > { %3890 = vmatprep.mubr.bf16.mxu0 %v12422_v14 }
 0xee7   : > { %v10688_v57 = vpop.f32.mrf.mxu1 }
 0xee9   : > { %v3491_v55 = vpop.f32.mrf.mxu1 }
 0xeeb   : > { %v10690_v9 = vpop.f32.mrf.mxu1 }
 0xeed   : > { %v10692_v56 = vpop.f32.mrf.mxu1 }
 0xeef   : > { %v10694_v63 = vpop.f32.mrf.mxu1 }
 0xef1   : > { %v10696_v18 = vpop.f32.mrf.mxu1 }
 0xef3   : > { %v10698_v47 = vpop.f32.mrf.mxu1 }
 0xef5   : > { %v10700_v27 = vpop.f32.mrf.mxu1 }
 0xef7   : > { %v10702_v62 = vpop.f32.mrf.mxu1 }
 0xef9   : > { %v3511_v48 = vpop.f32.mrf.mxu1 }
 0xefb   : > { %v10704_v1 = vpop.f32.mrf.mxu1 }
 0xefd   : > { %v3515_v25 = vpop.f32.mrf.mxu1 }
 0xeff   : > { %v3519_v0 = vpop.f32.mrf.mxu1 }
 0xf01   : > { %v3521_v4 = vpop.f32.mrf.mxu1 }
 0xf03   : > { %v7903_v60 = vpop.f32.mrf.mxu0  ;;  %v3523_v50 = vpop.f32.mrf.mxu1 }
 0xf05   : > { %v3626_v17 = vpop.f32.mrf.mxu0  ;;  %v3525_v35 = vpop.f32.mrf.mxu1 }
 0xf06   : > { %7201 = vmatmul.mubr.msk.f32.vlgmr.msra.gmra.mxu1 %vm1070_vm0, %v3626_v17 }
 0xf07   : > { %3775 = vmatprep.mubr.f32.mxu1 %v12487_v5 }
 0xf0a   : > { %7202 = vmatmul.mubr.msk.f32.gmra.mxu1 %vm1070_vm0, %v7903_v60 }
 0xf0b   : > { %v7906_v15 = vpop.f32.mrf.mxu0  ;;  %3781 = vmatprep.mubr.f32.mxu1 %v12487_v5 }
 0xf0d   : > { %v3636_v61 = vpop.f32.mrf.mxu0 }
 0xf0e   : > { %7203 = vmatmul.mubr.msk.f32.gmra.mxu1 %vm1070_vm0, %v3636_v61 }
 0xf0f   : > { %3787 = vmatprep.mubr.f32.mxu1 %v12487_v5 }
 0xf12   : > { %7204 = vmatmul.mubr.msk.f32.gmra.mxu1 %vm1070_vm0, %v7906_v15 }
 0xf13   : > { %v7909_v7 = vpop.f32.mrf.mxu0  ;;  %3793 = vmatprep.mubr.f32.mxu1 %v12487_v5 }
 0xf15   : > { %v3646_v53 = vpop.f32.mrf.mxu0 }
 0xf16   : > { %7205 = vmatmul.mubr.msk.f32.gmra.mxu1 %vm1070_vm0, %v3646_v53 }
 0xf17   : > { %3799 = vmatprep.mubr.f32.mxu1 %v12487_v5 }
 0xf1a   : > { %7206 = vmatmul.mubr.msk.f32.gmra.mxu1 %vm1070_vm0, %v7909_v7  ;;  %v3666_v7 = vmul.f32 %v3491_v55, %v10320_v24 }
 0xf1b   : > { %v7912_v31 = vpop.f32.mrf.mxu0  ;;  %3805 = vmatprep.mubr.f32.mxu1 %v12487_v5 }
 0xf1d   : > { %v3656_v26 = vpop.f32.mrf.mxu0 }
 0xf1e   : > { %7207 = vmatmul.mubr.msk.f32.gmra.mxu1 %vm1070_vm0, %v3656_v26 }
 0xf1f   : > { %3811 = vmatprep.mubr.f32.mxu1 %v12487_v5 }
 0xf22   : > { %7208 = vmatmul.mubr.msk.f32.gmra.mxu1 %vm1070_vm0, %v7912_v31 }
 0xfc6   : > { %v10706_v42 = vpop.f32.mrf.mxu1 }
 0xfc8   : > { %v3773_v6 = vpop.f32.mrf.mxu1 }
 0xfc9   : > { %v3774_v45 = vadd.f32 1e-06, %v3773_v6 }
 0xfca   : > { %v10708_v33 = vpop.f32.mrf.mxu1 }
 0xfcb   : > { %8461 = vrcp.f32 %v3774_v45 }
 0xfcc   : > { %v3779_v23 = vpop.f32.mrf.mxu1 }
 0xfce   : > { %v3783_v29 = vpop.f32.mrf.mxu1 }
 0xfd0   : > { %v3785_v60 = vpop.f32.mrf.mxu1 }
 0xfd1   : > { %v3786_v21 = vadd.f32 1e-06, %v3785_v60 }
 0xfd2   : > { %v3789_v17 = vpop.f32.mrf.mxu1 }
 0xfd4   : > { %v3791_v15 = vpop.f32.mrf.mxu1 }
 0xfd6   : > { %v3795_v61 = vpop.f32.mrf.mxu1 }
 0xfd7   : > { %v3796_v13 = vadd.f32 1e-06, %v3795_v61 }
 0xfd8   : > { %v8462_v53 = vpop.eup %8461  ;;  %v3797_v31 = vpop.f32.mrf.mxu1 }
 0xfd9   : > { %v10711_v26 = vmul.f32 %v8462_v53, %v3666_v7  ;;  %v3798_v6 = vadd.f32 1e-06, %v3797_v31  ;;  %v3792_v53 = vadd.f32 1e-06, %v3791_v15  ;;  %v12488_v15 = vld [vmem:[#allocation13_spill] sm:$0xff] }
 0xfda   : > { %v3801_v5 = vpop.f32.mrf.mxu1  ;;  %v3680_v60 = vmul.f32 %v3525_v35, %v12488_v15  ;;  %v3675_v35 = vmul.f32 %v10704_v1, %v10361_v32  ;;  %v3670_v32 = vmul.f32 %v10696_v18, %v10370_v59  ;;  %v12496_v15 = vld [vmem:[#allocation26_spill] sm:$0xff] }
 0xfdb   : > { %4019 = vmatprep.mubr.f32.mxu1 %v10711_v26  ;;  %8463 = vrcp.f32 %v3798_v6  ;;  %v3802_v7 = vadd.f32 1e-06, %v3801_v5  ;;  %v3678_v5 = vmul.f32 %v3521_v4, %v10335_v20 }
 0xfdc   : > { %v3803_v37 = vpop.f32.mrf.mxu1 }
 0xfdd   : > { %v3804_v30 = vadd.f32 1e-06, %v3803_v37 }
 0xfde   : > { %v3807_v16 = vpop.f32.mrf.mxu1 }
 0xfdf   : > { %v3808_v39 = vadd.f32 1e-06, %v3807_v16  ;;  %8465 = vrcp.f32 %v3804_v30  ;;  %v3790_v16 = vadd.f32 1e-06, %v3789_v17  ;;  %v3780_v30 = vadd.f32 1e-06, %v3779_v23 }
 0xfe0   : > { %v3809_v45 = vpop.f32.mrf.mxu1 }
 0xfe1   : > { %v3810_v44 = vadd.f32 1e-06, %v3809_v45 }
 0xfe2   : > { %v3813_v22 = vpop.f32.mrf.mxu1 }
 0xfe3   : > { %v3814_v43 = vadd.f32 1e-06, %v3813_v22  ;;  %8467 = vrcp.f32 %v3810_v44  ;;  %v3679_v44 = vmul.f32 %v3523_v50, %v10331_v34 }
 0xfe4   : > { %v3815_v24 = vpop.f32.mrf.mxu1 }
 0xfe5   : > { %8469 = vrcp.f32 %v3814_v43  ;;  %v3816_v55 = vadd.f32 1e-06, %v3815_v24  ;;  %v3784_v43 = vadd.f32 1e-06, %v3783_v29  ;;  %v3772_v29 = vadd.f32 1e-06, %v10706_v42 }
 0xfe6   : > { %8471 = vrcp.f32 %v3808_v39  ;;  %v3676_v39 = vmul.f32 %v3515_v25, %v10333_v58  ;;  %v3672_v24 = vmul.f32 %v10700_v27, %v10365_v19 }
 0xfe7   : > { %8473 = vrcp.f32 %v3816_v55 }
 0xfe8   : > { %8475 = vrcp.f32 %v3802_v7  ;;  %v8464_v37 = vpop.eup %8463  ;;  %v3673_v7 = vmul.f32 %v10702_v62, %v10368_v51  ;;  %v3671_v62 = vmul.f32 %v10698_v47, %v10385_v40  ;;  %v3665_v47 = vmul.f32 %v10688_v57, %v10406_v28  ;;  %v12491_v28 = vld [vmem:[#allocation19_spill] sm:$0xff]  ;;  %v12492_v57 = vld [vmem:[#allocation34_spill] sm:$0xff] }
 0xfe9   : > { %8477 = vrcp.f32 %v3792_v53 }
 0xfea   : > { %8479 = vrcp.f32 %v3796_v13  ;;  %v3674_v13 = vmul.f32 %v3511_v48, %v10341_v12  ;;  %v3778_v12 = vadd.f32 1e-06, %v10708_v33 }
 0xfeb   : > { %8481 = vrcp.f32 %v3786_v21  ;;  %v3677_v21 = vmul.f32 %v3519_v0, %v10339_v3 }
 0xfec   : > { %v8466_v31 = vpop.eup %8465  ;;  %8483 = vrcp.f32 %v3790_v16  ;;  %v10730_v20 = vmul.f32 %v8464_v37, %v3674_v13  ;;  %v3669_v16 = vmul.f32 %v10694_v63, %v10390_v8  ;;  %v12499_v13 = vld [vmem:[#allocation27_spill] sm:$0xff] }
 0xfed   : > { %8485 = vrcp.f32 %v3780_v30  ;;  %v10722_v23 = vmul.f32 %v8466_v31, %v3676_v39  ;;  %v3668_v31 = vmul.f32 %v10692_v56, %v10387_v36  ;;  %v3667_v56 = vmul.f32 %v10690_v9, %v10403_v2  ;;  %v12490_v2 = vld [vmem:[#allocation22_spill] sm:$0xff]  ;;  %v12493_v9 = vld [vmem:[#allocation23_spill] sm:$0xff]  ;;  %v12494_v39 = vld [vmem:[#allocation24_spill] sm:$0xff] }
 0xfee   : > { %8487 = vrcp.f32 %v3784_v43 }
 0xfef   : > { %v3855_v0 = vpack.c.bf16 %v10722_v23, %v10730_v20  ;;  %8489 = vrcp.f32 %v3778_v12  ;;  %v12502_v12 = vld [vmem:[#allocation30_spill] sm:$0xff] }
 0xff0   : > { %v8468_v6 = vpop.eup %8467  ;;  %8491 = vrcp.f32 %v3772_v29 }
 0xff1   : > { %v10724_v34 = vmul.f32 %v8468_v6, %v3678_v5  ;;  %v12495_v5 = vld [vmem:[#allocation25_spill] sm:$0xff] }
 0xff2   : > { %v8470_v22 = vpop.eup %8469 }
 0xff3   : > { %v8472_v45 = vpop.eup %8471  ;;  %v10720_v17 = vmul.f32 %v8470_v22, %v3679_v44 }
 0xff4   : > { %v8474_v61 = vpop.eup %8473  ;;  %v10728_v58 = vmul.f32 %v8472_v45, %v3677_v21  ;;  %v12500_v21 = vld [vmem:[#allocation28_spill] sm:$0xff] }
 0xff5   : > { %v10726_v50 = vmul.f32 %v8474_v61, %v3680_v60  ;;  %v8476_v25 = vpop.eup %8475  ;;  %v12497_v60 = vld [vmem:[#allocation21_spill] sm:$0xff]  ;;  %v12498_v61 = vld [vmem:[#allocation32_spill] sm:$0xff] }
 0xff6   : > { %v3856_v48 = vpack.c.bf16 %v10720_v17, %v10728_v58  ;;  %v8478_v4 = vpop.eup %8477  ;;  %v10750_v53 = vmul.f32 %v8476_v25, %v3675_v35  ;;  %v12504_v25 = vld [vmem:[#allocation31_spill] sm:$0xff] }
 0xff7   : > { %3971 = vmatprep.subr.mxu1 %v10726_v50  ;;  %v3857_v3 = vpack.c.bf16 %v10726_v50, %v10724_v34  ;;  %v8480_v33 = vpop.eup %8479  ;;  %v10754_v1 = vmul.f32 %v8478_v4, %v3672_v24 }
 0xff8   : > { %3972 = vmatpush1.xpose.msra.mxu1 %v10720_v17  ;;  %v8482_v55 = vpop.eup %8481  ;;  %v10757_v42 = vmul.f32 %v8480_v33, %v3673_v7 }
 0xff9   : > { %3866 = vmatprep.subr.bf16.mxu0 %v3857_v3  ;;  %3973 = vmatprep.subr.mxu1 %v10724_v34  ;;  %v10759_v19 = vmul.f32 %v8482_v55, %v3670_v32  ;;  %v8484_v27 = vpop.eup %8483  ;;  %v12501_v3 = vld [vmem:[#allocation29_spill] sm:$0xff] }
 0xffa   : > { %3867 = vmatpush1.bf16.xpose.msra.mxu0 %v3856_v48  ;;  %v3854_v51 = vpack.c.bf16 %v10750_v53, %v10757_v42  ;;  %v8486_v18 = vpop.eup %8485  ;;  %v10774_v6 = vmul.f32 %v8484_v27, %v3671_v62  ;;  %v12503_v48 = vld [vmem:[#allocation33_spill] sm:$0xff] }
 0xffb   : > { %3868 = vmatprep.subr.bf16.mxu0 %v3855_v0  ;;  %v3853_v59 = vpack.c.bf16 %v10754_v1, %v10759_v19  ;;  %v8488_v37 = vpop.eup %8487  ;;  %v10776_v30 = vmul.f32 %v8486_v18, %v3668_v31 }
 0xffc   : > { %3974 = vmatpush1.xpose.msra.mxu1 %v10728_v58  ;;  %v10779_v22 = vmul.f32 %v8488_v37, %v3669_v16  ;;  %v8490_v36 = vpop.eup %8489 }
 0xffd   : > { %3975 = vmatprep.subr.mxu1 %v10722_v23  ;;  %v3851_v8 = vpack.c.bf16 %v10776_v30, %v10711_v26  ;;  %v8492_v63 = vpop.eup %8491  ;;  %v10792_v44 = vmul.f32 %v8490_v36, %v3667_v56 }
 0xffe   : > { %v3852_v40 = vpack.c.bf16 %v10774_v6, %v10779_v22  ;;  %v10795_v43 = vmul.f32 %v8492_v63, %v3665_v47 }
0x1000   : > { %3976 = vmatpush1.xpose.msra.mxu1 %v10750_v53  ;;  %12489 = vst [vmem:[#allocation13_spill] sm:$0xff] %v10795_v43  ;;  %v3850_v45 = vpack.c.bf16 %v10792_v44, %v10795_v43 }
0x1001   : > { %3977 = vmatprep.subr.mxu1 %v10730_v20 }
0x1002   : > { %3869 = vmatpush1.bf16.xpose.msra.mxu0 %v3854_v51 }
0x1003   : > { %3870 = vmatprep.subr.bf16.mxu0 %v3853_v59 }
0x1004   : > { %3978 = vmatpush1.xpose.msra.mxu1 %v10757_v42 }
0x1005   : > { %3979 = vmatprep.subr.mxu1 %v10754_v1 }
0x1008   : > { %3980 = vmatpush1.xpose.msra.mxu1 %v10774_v6 }
0x1009   : > { %3981 = vmatprep.subr.mxu1 %v10759_v19 }
0x100a   : > { %3871 = vmatpush1.bf16.xpose.msra.mxu0 %v3852_v40 }
0x100b   : > { %3872 = vmatprep.subr.bf16.mxu0 %v3851_v8 }
0x100c   : > { %3982 = vmatpush1.xpose.msra.mxu1 %v10779_v22 }
0x100d   : > { %3983 = vmatprep.subr.mxu1 %v10776_v30 }
0x1010   : > { %3984 = vmatpush1.xpose.msra.mxu1 %v10792_v44 }
0x1011   : > { %3985 = vmatprep.subr.mxu1 %v10711_v26 }
0x1012   : > { %3873 = vmatpush1.bf16.xpose.msra.mxu0 %v3850_v45 }
0x1013   : > { %4325 = vmatprep.subr.bf16.mxu0 %v12490_v2 }
0x1014   : > { %3986 = vmatpush1.xpose.msra.mxu1 %v10795_v43 }
0x1017   : > { %4020 = vmatmul.mubr.f32.vlgmr.msra.gmra.mxu1 %v10795_v43 }
0x1018   : > { %4024 = vmatprep.mubr.f32.mxu1 %v10776_v30 }
0x1019   : > { %3891 = vmatmul.mubr.bf16.vlgmr.msra.gmra.mxu0 %v12491_v28 }
0x101a   : > { %3898 = vmatprep.mubr.bf16.mxu0 %v12492_v57  ;;  %4326 = vmatpush1.bf16.msra.mxu0 %v12493_v9 }
0x101b   : > { %4025 = vmatmul.mubr.f32.gmra.mxu1 %v10792_v44  ;;  %4327 = vmatprep.subr.bf16.mxu0 %v12494_v39 }
0x101c   : > { %4029 = vmatprep.mubr.f32.mxu1 %v10759_v19 }
0x101e   : > { %4328 = vmatpush1.bf16.msra.mxu0 %v12495_v5 }
0x101f   : > { %4030 = vmatmul.mubr.f32.gmra.mxu1 %v10779_v22  ;;  %4329 = vmatprep.subr.bf16.mxu0 %v12496_v15 }
0x1020   : > { %4034 = vmatprep.mubr.f32.mxu1 %v10754_v1 }
0x1021   : > { %3899 = vmatmul.mubr.bf16.gmra.mxu0 %v12497_v60 }
0x1022   : > { %3906 = vmatprep.mubr.bf16.mxu0 %v12498_v61  ;;  %4330 = vmatpush1.bf16.msra.mxu0 %v12499_v13 }
0x1023   : > { %4035 = vmatmul.mubr.f32.gmra.mxu1 %v10774_v6  ;;  %4331 = vmatprep.subr.bf16.mxu0 %v12500_v21 }
0x1024   : > { %4039 = vmatprep.mubr.f32.mxu1 %v10730_v20 }
0x1026   : > { %4332 = vmatpush1.bf16.msra.mxu0 %v12501_v3 }
0x1027   : > { %4040 = vmatmul.mubr.f32.gmra.mxu1 %v10757_v42  ;;  %4333 = vmatprep.subr.bf16.mxu0 %v12502_v12 }
0x1028   : > { %4044 = vmatprep.mubr.f32.mxu1 %v10722_v23 }
0x1029   : > { %3907 = vmatmul.mubr.bf16.gmra.mxu0 %v12503_v48 }
0x102a   : > { %3914 = vmatprep.mubr.bf16.mxu0 %v12502_v12  ;;  %4334 = vmatpush1.bf16.msra.mxu0 %v12504_v25 }
0x102b   : > { %4045 = vmatmul.mubr.f32.gmra.mxu1 %v10750_v53  ;;  %4335 = vmatprep.subr.bf16.mxu0 %v12498_v61 }
0x102c   : > { %4049 = vmatprep.mubr.f32.mxu1 %v10724_v34 }
0x102e   : > { %4336 = vmatpush1.bf16.msra.mxu0 %v12503_v48  ;;  %v12512_v48 = vld [vmem:[#allocation35_spill] sm:$0xff] }
0x102f   : > { %4050 = vmatmul.mubr.f32.gmra.mxu1 %v10728_v58  ;;  %4337 = vmatprep.subr.bf16.mxu0 %v12492_v57 }
0x1030   : > { %4054 = vmatprep.mubr.f32.mxu1 %v10726_v50 }
0x1031   : > { %3915 = vmatmul.mubr.bf16.gmra.mxu0 %v12504_v25  ;;  %v12511_v25 = vld [vmem:[#allocation17_spill] sm:$0xff] }
0x1032   : > { %3922 = vmatprep.mubr.bf16.mxu0 %v12500_v21  ;;  %4338 = vmatpush1.bf16.msra.mxu0 %v12497_v60 }
0x1033   : > { %4055 = vmatmul.mubr.f32.gmra.mxu1 %v10720_v17  ;;  %4339 = vmatprep.subr.bf16.mxu0 %v12422_v14 }
0x1034   : > { %7929 = vmatprep.mubr.msk.f32.mxu1 %vm1070_vm0, %v10531_v46 }
0x1036   : > { %4340 = vmatpush1.bf16.msra.mxu0 %v12491_v28 }
0x1039   : > { %3923 = vmatmul.mubr.bf16.gmra.mxu0 %v12501_v3 }
0x103a   : > { %3930 = vmatprep.mubr.bf16.mxu0 %v12496_v15 }
0x1041   : > { %3931 = vmatmul.mubr.bf16.gmra.mxu0 %v12499_v13 }
0x1042   : > { %3938 = vmatprep.mubr.bf16.mxu0 %v12494_v39 }
0x1049   : > { %3939 = vmatmul.mubr.bf16.gmra.mxu0 %v12495_v5 }
0x104a   : > { %3946 = vmatprep.mubr.bf16.mxu0 %v12490_v2 }
0x1051   : > { %3947 = vmatmul.mubr.bf16.gmra.mxu0 %v12493_v9 }
0x1052   : > { %4357 = vmatprep.mubr.bf16.mxu0 %v12413_v41 }
0x10d7   : > { %v4021_v0 = vpop.f32.mrf.mxu1 }
0x10d9   : > { %v10851_v4 = vpop.f32.mrf.mxu0  ;;  %v4023_v35 = vpop.f32.mrf.mxu1 }
0x10db   : > { %v3894_v29 = vpop.f32.mrf.mxu0  ;;  %v4026_v33 = vpop.f32.mrf.mxu1 }
0x10dd   : > { %v10853_v24 = vpop.f32.mrf.mxu0  ;;  %v4028_v55 = vpop.f32.mrf.mxu1 }
0x10df   : > { %v3897_v7 = vpop.f32.mrf.mxu0  ;;  %v4031_v32 = vpop.f32.mrf.mxu1 }
0x10e1   : > { %v10855_v51 = vpop.f32.mrf.mxu0  ;;  %v4033_v27 = vpop.f32.mrf.mxu1 }
0x10e3   : > { %v3902_v59 = vpop.f32.mrf.mxu0  ;;  %v4036_v18 = vpop.f32.mrf.mxu1 }
0x10e5   : > { %v10857_v62 = vpop.f32.mrf.mxu0  ;;  %v4038_v37 = vpop.f32.mrf.mxu1 }
0x10e7   : > { %v3905_v31 = vpop.f32.mrf.mxu0  ;;  %v4041_v16 = vpop.f32.mrf.mxu1 }
0x10e9   : > { %v10859_v40 = vpop.f32.mrf.mxu0  ;;  %v4043_v36 = vpop.f32.mrf.mxu1 }
0x10eb   : > { %v3910_v8 = vpop.f32.mrf.mxu0  ;;  %v4046_v56 = vpop.f32.mrf.mxu1 }
0x10ed   : > { %v10861_v63 = vpop.f32.mrf.mxu0  ;;  %v4048_v47 = vpop.f32.mrf.mxu1 }
0x10ef   : > { %v3913_v45 = vpop.f32.mrf.mxu0  ;;  %v4051_v35 = vpop.f32.mrf.mxu1 }
0x10f1   : > { %v10863_v29 = vpop.f32.mrf.mxu0  ;;  %v4053_v55 = vpop.f32.mrf.mxu1 }
0x10f3   : > { %v3918_v7 = vpop.f32.mrf.mxu0  ;;  %v4056_v27 = vpop.f32.mrf.mxu1 }
0x10f4   : > { %7913 = vmatprep.subr.mxu1 %v4056_v27  ;;  %v12505_v7 = vld [vmem:[#allocation11_spill] sm:$0xff] }
0x10f5   : > { %v10865_v59 = vpop.f32.mrf.mxu0  ;;  %v4058_v37 = vpop.f32.mrf.mxu1  ;;  %7914 = vmatpush3.msra.mxu1 %v4056_v27 }
0x10f6   : > { %7915 = vmatprep.subr.mxu1 %v4051_v35  ;;  %v12506_v37 = vld [vmem:[#allocation16_spill] sm:$0xff] }
0x10f7   : > { %v3921_v31 = vpop.f32.mrf.mxu0  ;;  %7916 = vmatpush3.msra.mxu1 %v4051_v35 }
0x10f8   : > { %7917 = vmatprep.subr.mxu1 %v4046_v56 }
0x10f9   : > { %v10867_v36 = vpop.f32.mrf.mxu0  ;;  %7918 = vmatpush3.msra.mxu1 %v4046_v56 }
0x10fa   : > { %7919 = vmatprep.subr.mxu1 %v4041_v16 }
0x10fb   : > { %v3926_v8 = vpop.f32.mrf.mxu0  ;;  %7920 = vmatpush3.msra.mxu1 %v4041_v16 }
0x10fc   : > { %7921 = vmatprep.subr.mxu1 %v4036_v18  ;;  %v12507_v8 = vld [vmem:[#allocation20_spill] sm:$0xff] }
0x10fd   : > { %v10869_v47 = vpop.f32.mrf.mxu0  ;;  %7922 = vmatpush3.msra.mxu1 %v4036_v18 }
0x10fe   : > { %7923 = vmatprep.subr.mxu1 %v4031_v32 }
0x10ff   : > { %v3929_v45 = vpop.f32.mrf.mxu0  ;;  %7924 = vmatpush3.msra.mxu1 %v4031_v32 }
0x1100   : > { %7925 = vmatprep.subr.mxu1 %v4026_v33 }
0x1101   : > { %v10871_v55 = vpop.f32.mrf.mxu0  ;;  %7926 = vmatpush3.msra.mxu1 %v4026_v33 }
0x1102   : > { %7927 = vmatprep.subr.mxu1 %v4021_v0 }
0x1103   : > { %v3934_v35 = vpop.f32.mrf.mxu0  ;;  %7928 = vmatpush3.msra.mxu1 %v4021_v0 }
0x1104   : > { %7930 = vmatmul.mubr.msk.f32.vlgmr.msra.gmra.mxu1 %vm1070_vm0, %v10529_v49  ;;  %v12508_v35 = vld [vmem:[#allocation14_spill] sm:$0xff] }
0x1105   : > { %v10875_v56 = vpop.f32.mrf.mxu0  ;;  %7932 = vmatprep.mubr.msk.f32.mxu1 %vm1070_vm0, %v10542_v54 }
0x1107   : > { %v3937_v16 = vpop.f32.mrf.mxu0 }
0x1108   : > { %7933 = vmatmul.mubr.msk.f32.gmra.mxu1 %vm1070_vm0, %v10540_v38 }
0x1109   : > { %v10881_v32 = vpop.f32.mrf.mxu0  ;;  %7935 = vmatprep.mubr.msk.f32.mxu1 %vm1070_vm0, %v10553_v52 }
0x110b   : > { %v3942_v33 = vpop.f32.mrf.mxu0 }
0x110c   : > { %7936 = vmatmul.mubr.msk.f32.gmra.mxu1 %vm1070_vm0, %v10551_v10  ;;  %v12509_v33 = vld [vmem:[#allocation18_spill] sm:$0xff] }
0x110d   : > { %v10887_v0 = vpop.f32.mrf.mxu0  ;;  %7938 = vmatprep.mubr.msk.f32.mxu1 %vm1070_vm0, %v10564_v11 }
0x110f   : > { %v3945_v18 = vpop.f32.mrf.mxu0 }
0x1110   : > { %7939 = vmatmul.mubr.msk.f32.gmra.mxu1 %vm1070_vm0, %v12505_v7  ;;  %v12510_v18 = vld [vmem:[#allocation12_spill] sm:$0xff] }
0x1111   : > { %v10893_v27 = vpop.f32.mrf.mxu0  ;;  %7941 = vmatprep.mubr.msk.f32.mxu1 %vm1070_vm0, %v12506_v37 }
0x1113   : > { %v3950_v31 = vpop.f32.mrf.mxu0 }
0x1114   : > { %7942 = vmatmul.mubr.msk.f32.gmra.mxu1 %vm1070_vm0, %v12507_v8  ;;  %v12513_v31 = vld [vmem:[#allocation15_spill] sm:$0xff] }
0x1115   : > { %v10899_v45 = vpop.f32.mrf.mxu0  ;;  %7944 = vmatprep.mubr.msk.f32.mxu1 %vm1070_vm0, %v12508_v35 }
0x1117   : > { %v3953_v16 = vpop.f32.mrf.mxu0 }
0x1118   : > { %7945 = vmatmul.mubr.msk.f32.gmra.mxu1 %vm1070_vm0, %v12509_v33 }
0x1119   : > { %7947 = vmatprep.mubr.msk.f32.mxu1 %vm1070_vm0, %v12510_v18 }
0x111c   : > { %7948 = vmatmul.mubr.msk.f32.gmra.mxu1 %vm1070_vm0, %v12511_v25 }
0x111d   : > { %7950 = vmatprep.mubr.msk.f32.mxu1 %vm1070_vm0, %v12512_v48 }
0x1120   : > { %7951 = vmatmul.mubr.msk.f32.gmra.mxu1 %vm1070_vm0, %v12513_v31 }
0x11c4   : > { %v7931_v12 = vpop.f32.mrf.mxu1 }
0x11c5   : > { %v4196_v3 = vadd.f32 1e-06, %v7931_v12 }
0x11c6   : > { %v4190_v21 = vpop.f32.mrf.mxu1 }
0x11c7   : > { %8493 = vrcp.f32 %v4196_v3  ;;  %v4191_v16 = vadd.f32 1e-06, %v4190_v21 }
0x11c8   : > { %v7934_v13 = vpop.f32.mrf.mxu1 }
0x11c9   : > { %8495 = vrcp.f32 %v4191_v16  ;;  %v4206_v61 = vadd.f32 1e-06, %v7934_v13  ;;  %v4060_v13 = vmul.f32 %v10851_v4, %v10531_v46  ;;  %v4063_v46 = vmul.f32 %v10857_v62, %v10540_v38 }
0x11ca   : > { %v4200_v60 = vpop.f32.mrf.mxu1  ;;  %v4064_v38 = vmul.f32 %v10859_v40, %v10553_v52  ;;  %v4065_v62 = vmul.f32 %v10861_v63, %v10551_v10  ;;  %v4066_v10 = vmul.f32 %v10863_v29, %v10564_v11  ;;  %v4067_v63 = vmul.f32 %v10865_v59, %v12505_v7 }
0x11cb   : > { %8497 = vrcp.f32 %v4206_v61  ;;  %v4201_v15 = vadd.f32 1e-06, %v4200_v60  ;;  %v4061_v60 = vmul.f32 %v10853_v24, %v10529_v49  ;;  %v4068_v29 = vmul.f32 %v10867_v36, %v12506_v37 }
0x11cc   : > { %v7937_v5 = vpop.f32.mrf.mxu1  ;;  %v4069_v59 = vmul.f32 %v10869_v47, %v12507_v8  ;;  %v4071_v36 = vmul.f32 %v10875_v56, %v12509_v33  ;;  %v4075_v33 = vmul.f32 %v10899_v45, %v12513_v31 }
0x11cd   : > { %8499 = vrcp.f32 %v4201_v15  ;;  %v4216_v39 = vadd.f32 1e-06, %v7937_v5 }
0x11ce   : > { %v4210_v9 = vpop.f32.mrf.mxu1 }
0x11cf   : > { %8501 = vrcp.f32 %v4216_v39  ;;  %v4211_v57 = vadd.f32 1e-06, %v4210_v9 }
0x11d0   : > { %v7940_v28 = vpop.f32.mrf.mxu1 }
0x11d1   : > { %8503 = vrcp.f32 %v4211_v57  ;;  %v4226_v2 = vadd.f32 1e-06, %v7940_v28 }
0x11d2   : > { %v4220_v43 = vpop.f32.mrf.mxu1 }
0x11d3   : > { %8505 = vrcp.f32 %v4226_v2  ;;  %v4221_v12 = vadd.f32 1e-06, %v4220_v43  ;;  %v4062_v43 = vmul.f32 %v10855_v51, %v10542_v54 }
0x11d4   : > { %v8494_v3 = vpop.eup %8493  ;;  %v7943_v21 = vpop.f32.mrf.mxu1 }
0x11d5   : > { %8507 = vrcp.f32 %v4221_v12  ;;  %v4236_v15 = vadd.f32 1e-06, %v7943_v21  ;;  %v10917_v39 = vmul.f32 %v8494_v3, %v4061_v60 }
0x11d6   : > { %v8496_v5 = vpop.eup %8495  ;;  %v4230_v61 = vpop.f32.mrf.mxu1 }
0x11d7   : > { %v10919_v9 = vmul.f32 %v8496_v5, %v4060_v13  ;;  %8509 = vrcp.f32 %v4236_v15  ;;  %v4231_v28 = vadd.f32 1e-06, %v4230_v61 }
0x11d8   : > { %v8498_v2 = vpop.eup %8497  ;;  %v7946_v57 = vpop.f32.mrf.mxu1 }
0x11d9   : > { %8511 = vrcp.f32 %v4231_v28  ;;  %v4246_v49 = vadd.f32 1e-06, %v7946_v57  ;;  %4398 = vxpose.xlu1.b32.start [1/16] (narrow) %v10919_v9, 64  ;;  %v4301_v4 = vpack.c.bf16 %v10917_v39, %v10919_v9  ;;  %v10928_v12 = vmul.f32 %v8498_v2, %v4063_v46 }
0x11da   : > { %v8500_v24 = vpop.eup %8499  ;;  %v4240_v16 = vpop.f32.mrf.mxu1 }
0x11db   : > { %v10930_v3 = vmul.f32 %v8500_v24, %v4062_v43  ;;  %8513 = vrcp.f32 %v4246_v49  ;;  %v4241_v21 = vadd.f32 1e-06, %v4240_v16  ;;  %4309 = vxpose.xlu0.c.b16.start [1/8] (narrow) %v4301_v4, 64 }
0x11dc   : > { %v8502_v54 = vpop.eup %8501  ;;  %v7949_v51 = vpop.f32.mrf.mxu1 }
0x11dd   : > { %8515 = vrcp.f32 %v4241_v21  ;;  %v4256_v13 = vadd.f32 1e-06, %v7949_v51  ;;  %4399 = vxpose.xlu1.b32.cont [2/16] (narrow) %v10917_v39, 64  ;;  %v4302_v60 = vpack.c.bf16 %v10928_v12, %v10930_v3  ;;  %v10939_v61 = vmul.f32 %v8502_v54, %v4065_v62 }
0x11de   : > { %v8504_v15 = vpop.eup %8503  ;;  %v4250_v5 = vpop.f32.mrf.mxu1  ;;  %v4070_v62 = vmul.f32 %v10871_v55, %v12508_v35  ;;  %v4073_v55 = vmul.f32 %v10887_v0, %v12511_v25 }
0x11df   : > { %v10941_v28 = vmul.f32 %v8504_v15, %v4064_v38  ;;  %8517 = vrcp.f32 %v4256_v13  ;;  %v4251_v2 = vadd.f32 1e-06, %v4250_v5  ;;  %4310 = vxpose.xlu0.c.b16.cont [2/8] (narrow) %v4302_v60, 64  ;;  %v4072_v15 = vmul.f32 %v10881_v32, %v12510_v18 }
0x11e0   : > { %v8506_v52 = vpop.eup %8505  ;;  %v7952_v40 = vpop.f32.mrf.mxu1  ;;  %v4074_v32 = vmul.f32 %v10893_v27, %v12512_v48 }
0x11e1   : > { %8519 = vrcp.f32 %v4251_v2  ;;  %v4266_v43 = vadd.f32 1e-06, %v7952_v40  ;;  %4400 = vxpose.xlu1.b32.cont [3/16] (narrow) %v10930_v3, 64  ;;  %v4303_v57 = vpack.c.bf16 %v10939_v61, %v10941_v28  ;;  %v10950_v4 = vmul.f32 %v8506_v52, %v4067_v63 }
0x11e2   : > { %v8508_v46 = vpop.eup %8507  ;;  %v4260_v49 = vpop.f32.mrf.mxu1 }
0x11e3   : > { %v10952_v24 = vmul.f32 %v8508_v46, %v4066_v10  ;;  %8521 = vrcp.f32 %v4266_v43  ;;  %v4261_v16 = vadd.f32 1e-06, %v4260_v49  ;;  %4311 = vxpose.xlu0.c.b16.cont [3/8] (narrow) %v4303_v57, 64 }
0x11e4   : > { %v8510_v11 = vpop.eup %8509 }
0x11e5   : > { %8523 = vrcp.f32 %v4261_v16  ;;  %4401 = vxpose.xlu1.b32.cont [4/16] (narrow) %v10928_v12, 64  ;;  %v4304_v7 = vpack.c.bf16 %v10950_v4, %v10952_v24  ;;  %v10961_v54 = vmul.f32 %v8510_v11, %v4069_v59  ;;  %v12521_v16 = vld [vmem:[#allocation13_spill] sm:$0xff] }
0x11e6   : > { %v8512_v21 = vpop.eup %8511 }
0x11e7   : > { %12514 = vst [vmem:[#allocation11_spill] sm:$0xff] %v10961_v54  ;;  %v10963_v38 = vmul.f32 %v8512_v21, %v4068_v29  ;;  %4312 = vxpose.xlu0.c.b16.cont [4/8] (narrow) %v4304_v7, 64  ;;  %v12522_v7 = vmov 0.0  }
0x11e8   : > { %v8514_v51 = vpop.eup %8513 }
0x11e9   : > { %4402 = vxpose.xlu1.b32.cont [5/16] (narrow) %v10941_v28, 64  ;;  %v4305_v47 = vpack.c.bf16 %v10961_v54, %v10963_v38  ;;  %v10972_v8 = vmul.f32 %v8514_v51, %v4071_v36 }
0x11ea   : > { %v8516_v37 = vpop.eup %8515 }
0x11eb   : > { %12515 = vst [vmem:[#allocation16_spill] sm:$0xff] %v10972_v8  ;;  %v10974_v13 = vmul.f32 %v8516_v37, %v4070_v62  ;;  %4313 = vxpose.xlu0.c.b16.cont [5/8] (narrow) %v4305_v47, 64 }
0x11ec   : > { %v8518_v60 = vpop.eup %8517 }
0x11ed   : > { %12516 = vst [vmem:[#allocation20_spill] sm:$0xff] %v10974_v13  ;;  %4403 = vxpose.xlu1.b32.cont [6/16] (narrow) %v10939_v61, 64  ;;  %v4306_v56 = vpack.c.bf16 %v10972_v8, %v10974_v13  ;;  %v10985_v5 = vmul.f32 %v8518_v60, %v4073_v55 }
0x11ee   : > { %v8520_v35 = vpop.eup %8519 }
0x11ef   : > { %12517 = vst [vmem:[#allocation14_spill] sm:$0xff] %v10985_v5  ;;  %v10987_v2 = vmul.f32 %v8520_v35, %v4072_v15  ;;  %4314 = vxpose.xlu0.c.b16.cont [6/8] (narrow) %v4306_v56, 64 }
0x11f0   : > { %v8522_v52 = vpop.eup %8521 }
0x11f1   : > { %12518 = vst [vmem:[#allocation18_spill] sm:$0xff] %v10987_v2  ;;  %v10991_v18 = vmul.f32 %v8522_v52, %v4075_v33  ;;  %4404 = vxpose.xlu1.b32.cont [7/16] (narrow) %v10952_v24, 64  ;;  %v4307_v25 = vpack.c.bf16 %v10985_v5, %v10987_v2 }
0x11f2   : > { %v8524_v0 = vpop.eup %8523 }
0x11f3   : > { %12519 = vst [vmem:[#allocation12_spill] sm:$0xff] %v10991_v18  ;;  %v10996_v10 = vmul.f32 %v8524_v0, %v4074_v32  ;;  %4315 = vxpose.xlu0.c.b16.cont [7/8] (narrow) %v4307_v25, 64  ;;  %7953 = vmatprep.subr.mxu1 %v10991_v18 }
0x11f4   : > { %7954 = vmatpush3.msra.mxu1 %v10991_v18 }
0x11f5   : > { %12520 = vst [vmem:[#allocation17_spill] sm:$0xff] %v10996_v10  ;;  %4405 = vxpose.xlu1.b32.cont [8/16] (narrow) %v10950_v4, 64  ;;  %7955 = vmatprep.subr.mxu1 %v10996_v10  ;;  %v4308_v48 = vpack.c.bf16 %v10991_v18, %v10996_v10 }
0x11f6   : > { %7956 = vmatpush3.msra.mxu1 %v10996_v10 }
0x11f7   : > { %7957 = vmatprep.subr.mxu1 %v10985_v5  ;;  %4316 = vxpose.xlu0.c.b16.end [8/8] (narrow) %v4308_v48, 64 }
0x11f8   : > { %7958 = vmatpush3.msra.mxu1 %v10985_v5 }
0x11f9   : > { %4406 = vxpose.xlu1.b32.cont [9/16] (narrow) %v10963_v38, 64  ;;  %7959 = vmatprep.subr.mxu1 %v10987_v2 }
0x11fa   : > { %7960 = vmatpush3.msra.mxu1 %v10987_v2 }
0x11fb   : > { %7961 = vmatprep.subr.mxu1 %v10972_v8 }
0x11fc   : > { %7962 = vmatpush3.msra.mxu1 %v10972_v8 }
0x11fd   : > { %4407 = vxpose.xlu1.b32.cont [10/16] (narrow) %v10961_v54, 64  ;;  %7963 = vmatprep.subr.mxu1 %v10974_v13 }
0x11fe   : > { %7964 = vmatpush3.msra.mxu1 %v10974_v13 }
0x11ff   : > { %7965 = vmatprep.subr.mxu1 %v10961_v54 }
0x1200   : > { %7966 = vmatpush3.msra.mxu1 %v10961_v54 }
0x1201   : > { %4408 = vxpose.xlu1.b32.cont [11/16] (narrow) %v10974_v13, 64  ;;  %7967 = vmatprep.subr.mxu1 %v10963_v38 }
0x1202   : > { %7968 = vmatpush3.msra.mxu1 %v10963_v38 }
0x1203   : > { %7969 = vmatprep.subr.mxu1 %v10950_v4 }
0x1204   : > { %7970 = vmatpush3.msra.mxu1 %v10950_v4 }
0x1205   : > { %4409 = vxpose.xlu1.b32.cont [12/16] (narrow) %v10972_v8, 64  ;;  %7971 = vmatprep.subr.mxu1 %v10952_v24 }
0x1206   : > { %7972 = vmatpush3.msra.mxu1 %v10952_v24 }
0x1207   : > { %7973 = vmatprep.subr.mxu1 %v10939_v61 }
0x1208   : > { %7974 = vmatpush3.msra.mxu1 %v10939_v61 }
0x1209   : > { %4410 = vxpose.xlu1.b32.cont [13/16] (narrow) %v10987_v2, 64  ;;  %7975 = vmatprep.subr.mxu1 %v10941_v28 }
0x120a   : > { %7976 = vmatpush3.msra.mxu1 %v10941_v28 }
0x120b   : > { %7977 = vmatprep.subr.mxu1 %v10928_v12 }
0x120c   : > { %7978 = vmatpush3.msra.mxu1 %v10928_v12 }
0x120d   : > { %4411 = vxpose.xlu1.b32.cont [14/16] (narrow) %v10985_v5, 64  ;;  %7979 = vmatprep.subr.mxu1 %v10930_v3 }
0x120e   : > { %7980 = vmatpush3.msra.mxu1 %v10930_v3 }
0x120f   : > { %7981 = vmatprep.subr.mxu1 %v10917_v39 }
0x1210   : > { %7982 = vmatpush3.msra.mxu1 %v10917_v39 }
0x1211   : > { %4412 = vxpose.xlu1.b32.cont [15/16] (narrow) %v10996_v10, 64  ;;  %7983 = vmatprep.subr.mxu1 %v10919_v9 }
0x1212   : > { %7984 = vmatpush3.msra.mxu1 %v10919_v9 }
0x1213   : > { %4591 = vmatprep.subr.mxu1 %v10726_v50 }
0x1215   : > { %4413 = vxpose.xlu1.b32.end [16/16] (narrow) %v10991_v18, 64 }
0x123d   : > { %v4317_v27 = vpop.trf.xlu0 }
0x123e   : > { %4358 = vmatmul.mubr.bf16.vlgmr.msra.gmra.mxu0 %v4317_v27 }
0x123f   : > { %4367 = vmatprep.mubr.bf16.mxu0 %v12413_v41 }
0x1241   : > { %v4318_v45 = vpop.trf.xlu0 }
0x1245   : > { %v4319_v31 = vpop.trf.xlu0 }
0x1246   : > { %4368 = vmatmul.mubr.bf16.gmra.mxu0 %v4318_v45 }
0x1247   : > { %4377 = vmatprep.mubr.bf16.mxu0 %v12413_v41 }
0x1249   : > { %v4320_v40 = vpop.trf.xlu0 }
0x124e   : > { %4378 = vmatmul.mubr.bf16.gmra.mxu0 %v4319_v31 }
0x124f   : > { %4387 = vmatprep.mubr.bf16.mxu0 %v12413_v41 }
0x1255   : > { %v4414_v63 = vpop.trf.xlu1 }
0x1256   : > { %4388 = vmatmul.mubr.bf16.gmra.mxu0 %v4320_v40  ;;  %7985 = vmatprep.mubr.f32.mxu1 %v4414_v63 }
0x1257   : > { %4760 = vmatprep.mubr.bf16.mxu0 %v12422_v14 }
0x1259   : > { %v4415_v43 = vpop.trf.xlu1 }
0x125a   : > { %7986 = vmatmul.mubr.f32.vlgmr.msra.gmra.mxu1 %v4415_v43 }
0x125b   : > { %4592 = vmatpush1.msra.mxu1 %v10720_v17 }
0x125c   : > { %4593 = vmatprep.subr.mxu1 %v10724_v34 }
0x125d   : > { %4594 = vmatpush1.msra.mxu1 %v10728_v58  ;;  %v4416_v57 = vpop.trf.xlu1 }
0x125e   : > { %4595 = vmatprep.subr.mxu1 %v10722_v23  ;;  %7988 = vmatprep.mubr.f32.mxu1 %v4416_v57 }
0x125f   : > { %4596 = vmatpush1.msra.mxu1 %v10750_v53 }
0x1260   : > { %4597 = vmatprep.subr.mxu1 %v10730_v20 }
0x1261   : > { %4598 = vmatpush1.msra.mxu1 %v10757_v42  ;;  %v4417_v46 = vpop.trf.xlu1 }
0x1262   : > { %4599 = vmatprep.subr.mxu1 %v10754_v1  ;;  %7989 = vmatmul.mubr.f32.gmra.mxu1 %v4417_v46 }
0x1263   : > { %4600 = vmatpush1.msra.mxu1 %v10774_v6 }
0x1264   : > { %4601 = vmatprep.subr.mxu1 %v10759_v19 }
0x1265   : > { %4602 = vmatpush1.msra.mxu1 %v10779_v22  ;;  %v4418_v49 = vpop.trf.xlu1 }
0x1266   : > { %4603 = vmatprep.subr.mxu1 %v10776_v30  ;;  %7991 = vmatprep.mubr.f32.mxu1 %v4418_v49 }
0x1267   : > { %4604 = vmatpush1.msra.mxu1 %v10792_v44 }
0x1268   : > { %4605 = vmatprep.subr.mxu1 %v10711_v26 }
0x1269   : > { %4606 = vmatpush1.msra.mxu1 %v12521_v16  ;;  %v4419_v11 = vpop.trf.xlu1 }
0x126a   : > { %7992 = vmatmul.mubr.f32.gmra.mxu1 %v4419_v11 }
0x126d   : > { %v4420_v29 = vpop.trf.xlu1 }
0x126e   : > { %7994 = vmatprep.mubr.f32.mxu1 %v4420_v29 }
0x1271   : > { %v4421_v59 = vpop.trf.xlu1 }
0x1272   : > { %7995 = vmatmul.mubr.f32.gmra.mxu1 %v4421_v59 }
0x1273   : > { %4639 = vmatprep.mubr.f32.mxu1 %v12522_v7 }
0x12fe   : > { %v11077_v55 = vpop.f32.mrf.mxu0 }
0x1300   : > { %v4361_v56 = vpop.f32.mrf.mxu0 }
0x1301   : > { %v4536_v29 = vmul.f32 %v4361_v56, %v10711_v26 }
0x1302   : > { %v11079_v35 = vpop.f32.mrf.mxu0 }
0x1304   : > { %v11081_v33 = vpop.f32.mrf.mxu0 }
0x1306   : > { %v11083_v52 = vpop.f32.mrf.mxu0 }
0x1308   : > { %v11087_v25 = vpop.f32.mrf.mxu0 }
0x130a   : > { %v11091_v45 = vpop.f32.mrf.mxu0 }
0x130c   : > { %v11093_v63 = vpop.f32.mrf.mxu0 }
0x130e   : > { %v11095_v46 = vpop.f32.mrf.mxu0 }
0x131a   : > { %v7987_v21 = vpop.f32.mrf.mxu1 }
0x131c   : > { %v4496_v51 = vpop.f32.mrf.mxu1 }
0x131d   : > { %7225 = vmatmul.mubr.msk.f32.vlgmr.msra.gmra.mxu1 %vm1070_vm0, %v4496_v51 }
0x131e   : > { %4645 = vmatprep.mubr.f32.mxu1 %v12522_v7 }
0x1321   : > { %7226 = vmatmul.mubr.msk.f32.gmra.mxu1 %vm1070_vm0, %v7987_v21  ;;  %v4381_v21 = vpop.f32.mrf.mxu0 }
0x1322   : > { %v7990_v62 = vpop.f32.mrf.mxu1  ;;  %4651 = vmatprep.mubr.f32.mxu1 %v12522_v7 }
0x1324   : > { %v4506_v36 = vpop.f32.mrf.mxu1 }
0x1325   : > { %7227 = vmatmul.mubr.msk.f32.gmra.mxu1 %vm1070_vm0, %v4506_v36 }
0x1326   : > { %4657 = vmatprep.mubr.f32.mxu1 %v12522_v7 }
0x1329   : > { %7228 = vmatmul.mubr.msk.f32.gmra.mxu1 %vm1070_vm0, %v7990_v62 }
0x132a   : > { %v7993_v47 = vpop.f32.mrf.mxu1  ;;  %4663 = vmatprep.mubr.f32.mxu1 %v12522_v7 }
0x132c   : > { %v4516_v37 = vpop.f32.mrf.mxu1 }
0x132d   : > { %7229 = vmatmul.mubr.msk.f32.gmra.mxu1 %vm1070_vm0, %v4516_v37 }
0x132e   : > { %4669 = vmatprep.mubr.f32.mxu1 %v12522_v7 }
0x1331   : > { %7230 = vmatmul.mubr.msk.f32.gmra.mxu1 %vm1070_vm0, %v7993_v47  ;;  %v11101_v47 = vpop.f32.mrf.mxu0 }
0x1332   : > { %v7996_v60 = vpop.f32.mrf.mxu1  ;;  %4675 = vmatprep.mubr.f32.mxu1 %v12522_v7 }
0x1334   : > { %v4526_v15 = vpop.f32.mrf.mxu1 }
0x1335   : > { %7231 = vmatmul.mubr.msk.f32.gmra.mxu1 %vm1070_vm0, %v4526_v15 }
0x1336   : > { %4681 = vmatprep.mubr.f32.mxu1 %v12522_v7 }
0x1339   : > { %7232 = vmatmul.mubr.msk.f32.gmra.mxu1 %vm1070_vm0, %v7996_v60 }
0x13dd   : > { %v11085_v32 = vpop.f32.mrf.mxu1 }
0x13df   : > { %v4643_v0 = vpop.f32.mrf.mxu1 }
0x13e0   : > { %v4644_v48 = vadd.f32 1e-06, %v4643_v0 }
0x13e1   : > { %v11089_v27 = vpop.f32.mrf.mxu1 }
0x13e2   : > { %8525 = vrcp.f32 %v4644_v48  ;;  %v4385_v48 = vpop.f32.mrf.mxu0 }
0x13e3   : > { %v4649_v31 = vpop.f32.mrf.mxu1 }
0x13e4   : > { %v4389_v5 = vpop.f32.mrf.mxu0 }
0x13e5   : > { %v4653_v40 = vpop.f32.mrf.mxu1 }
0x13e6   : > { %v4391_v2 = vpop.f32.mrf.mxu0 }
0x13e7   : > { %v4655_v43 = vpop.f32.mrf.mxu1 }
0x13e8   : > { %v4393_v54 = vpop.f32.mrf.mxu0 }
0x13e9   : > { %v4659_v57 = vpop.f32.mrf.mxu1 }
0x13eb   : > { %v4661_v49 = vpop.f32.mrf.mxu1 }
0x13ed   : > { %v4665_v11 = vpop.f32.mrf.mxu1 }
0x13ee   : > { %v4666_v13 = vadd.f32 1e-06, %v4665_v11 }
0x13ef   : > { %v8526_v59 = vpop.eup %8525  ;;  %v4667_v51 = vpop.f32.mrf.mxu1 }
0x13f0   : > { %v11098_v62 = vmul.f32 %v8526_v59, %v4536_v29  ;;  %v4668_v60 = vadd.f32 1e-06, %v4667_v51  ;;  %v4662_v51 = vadd.f32 1e-06, %v4661_v49  ;;  %v4546_v49 = vmul.f32 %v4385_v48, %v10722_v23 }
0x13f1   : > { %v4671_v36 = vpop.f32.mrf.mxu1  ;;  %v4642_v48 = vadd.f32 1e-06, %v11085_v32 }
0x13f2   : > { %4889 = vmatprep.mubr.f32.mxu1 %v11098_v62  ;;  %8527 = vrcp.f32 %v4668_v60  ;;  %v4672_v8 = vadd.f32 1e-06, %v4671_v36  ;;  %v4547_v36 = vmul.f32 %v4389_v5, %v10728_v58  ;;  %v4648_v58 = vadd.f32 1e-06, %v11089_v27 }
0x13f3   : > { %v4673_v37 = vpop.f32.mrf.mxu1 }
0x13f4   : > { %v4674_v0 = vadd.f32 1e-06, %v4673_v37  ;;  %v4656_v37 = vadd.f32 1e-06, %v4655_v43  ;;  %v4548_v43 = vmul.f32 %v4391_v2, %v10724_v34 }
0x13f5   : > { %v4677_v15 = vpop.f32.mrf.mxu1 }
0x13f6   : > { %v4678_v10 = vadd.f32 1e-06, %v4677_v15  ;;  %8529 = vrcp.f32 %v4674_v0  ;;  %v4395_v15 = vpop.f32.mrf.mxu0  ;;  %v4660_v0 = vadd.f32 1e-06, %v4659_v57 }
0x13f7   : > { %v4679_v7 = vpop.f32.mrf.mxu1 }
0x13f8   : > { %v4680_v18 = vadd.f32 1e-06, %v4679_v7 }
0x13f9   : > { %v4683_v26 = vpop.f32.mrf.mxu1 }
0x13fa   : > { %v4684_v56 = vadd.f32 1e-06, %v4683_v26  ;;  %8531 = vrcp.f32 %v4680_v18  ;;  %v4650_v26 = vadd.f32 1e-06, %v4649_v31 }
0x13fb   : > { %v4685_v29 = vpop.f32.mrf.mxu1 }
0x13fc   : > { %8533 = vrcp.f32 %v4684_v56  ;;  %v4686_v59 = vadd.f32 1e-06, %v4685_v29  ;;  %v4654_v29 = vadd.f32 1e-06, %v4653_v40 }
0x13fd   : > { %8535 = vrcp.f32 %v4678_v10  ;;  %v4549_v10 = vmul.f32 %v4393_v54, %v10720_v17 }
0x13fe   : > { %8537 = vrcp.f32 %v4686_v59 }
0x13ff   : > { %8539 = vrcp.f32 %v4672_v8  ;;  %v8528_v7 = vpop.eup %8527  ;;  %v4550_v8 = vmul.f32 %v4395_v15, %v10726_v50 }
0x1400   : > { %8541 = vrcp.f32 %v4662_v51  ;;  %v4542_v51 = vmul.f32 %v11093_v63, %v10754_v1 }
0x1401   : > { %8543 = vrcp.f32 %v4666_v13  ;;  %v4544_v13 = vmul.f32 %v4381_v21, %v10730_v20  ;;  %v4545_v21 = vmul.f32 %v11101_v47, %v10750_v53  ;;  %v4540_v53 = vmul.f32 %v11087_v25, %v10759_v19 }
0x1402   : > { %8545 = vrcp.f32 %v4656_v37 }
0x1403   : > { %v8530_v60 = vpop.eup %8529  ;;  %8547 = vrcp.f32 %v4660_v0  ;;  %v11119_v34 = vmul.f32 %v8528_v7, %v4544_v13  ;;  %v4543_v7 = vmul.f32 %v11095_v46, %v10757_v42  ;;  %v4541_v46 = vmul.f32 %v11091_v45, %v10774_v6  ;;  %v12531_v13 = vld [vmem:[#allocation21_spill] sm:$0xff] }
0x1404   : > { %8549 = vrcp.f32 %v4650_v26  ;;  %v11111_v31 = vmul.f32 %v8530_v60, %v4546_v49  ;;  %v4538_v0 = vmul.f32 %v11081_v33, %v10776_v30  ;;  %v4537_v33 = vmul.f32 %v11079_v35, %v10792_v44  ;;  %v12524_v44 = vld [vmem:[#allocation22_spill] sm:$0xff]  ;;  %v12527_v35 = vld [vmem:[#allocation23_spill] sm:$0xff] }
0x1405   : > { %8551 = vrcp.f32 %v4654_v29  ;;  %v4535_v45 = vmul.f32 %v11077_v55, %v12521_v16  ;;  %v12525_v16 = vld [vmem:[#allocation19_spill] sm:$0xff]  ;;  %v12526_v55 = vld [vmem:[#allocation34_spill] sm:$0xff] }
0x1406   : > { %v4725_v2 = vpack.c.bf16 %v11111_v31, %v11119_v34  ;;  %8553 = vrcp.f32 %v4648_v58  ;;  %v12534_v58 = vld [vmem:[#allocation28_spill] sm:$0xff] }
0x1407   : > { %v8532_v18 = vpop.eup %8531  ;;  %8555 = vrcp.f32 %v4642_v48 }
0x1408   : > { %v11113_v17 = vmul.f32 %v8532_v18, %v4548_v43  ;;  %v4539_v18 = vmul.f32 %v11083_v52, %v10779_v22  ;;  %v12528_v43 = vld [vmem:[#allocation24_spill] sm:$0xff] }
0x1409   : > { %v8534_v56 = vpop.eup %8533 }
0x140a   : > { %v8536_v59 = vpop.eup %8535  ;;  %v11109_v57 = vmul.f32 %v8534_v56, %v4549_v10 }
0x140b   : > { %v8538_v11 = vpop.eup %8537  ;;  %v11117_v23 = vmul.f32 %v8536_v59, %v4547_v36  ;;  %v12532_v36 = vld [vmem:[#allocation32_spill] sm:$0xff] }
0x140c   : > { %v11115_v54 = vmul.f32 %v8538_v11, %v4550_v8  ;;  %v8540_v5 = vpop.eup %8539  ;;  %v12529_v8 = vld [vmem:[#allocation25_spill] sm:$0xff]  ;;  %v12530_v11 = vld [vmem:[#allocation26_spill] sm:$0xff] }
0x140d   : > { %v4726_v20 = vpack.c.bf16 %v11109_v57, %v11117_v23  ;;  %v8542_v40 = vpop.eup %8541  ;;  %v11139_v60 = vmul.f32 %v8540_v5, %v4545_v21  ;;  %v12536_v5 = vld [vmem:[#allocation30_spill] sm:$0xff] }
0x140e   : > { %12523 = vst [vmem:[#allocation35_spill] sm:$0xff] %v11115_v54  ;;  %4841 = vmatprep.subr.mxu1 %v11115_v54  ;;  %v4727_v50 = vpack.c.bf16 %v11115_v54, %v11113_v17  ;;  %v8544_v27 = vpop.eup %8543  ;;  %v11143_v47 = vmul.f32 %v8542_v40, %v4542_v51  ;;  %v12538_v40 = vld [vmem:[#allocation31_spill] sm:$0xff] }
0x140f   : > { %4842 = vmatpush1.xpose.msra.mxu1 %v11109_v57  ;;  %v8546_v37 = vpop.eup %8545  ;;  %v11146_v32 = vmul.f32 %v8544_v27, %v4543_v7 }
0x1410   : > { %4736 = vmatprep.subr.bf16.mxu0 %v4727_v50  ;;  %4843 = vmatprep.subr.mxu1 %v11113_v17  ;;  %v11148_v1 = vmul.f32 %v8546_v37, %v4540_v53  ;;  %v8548_v63 = vpop.eup %8547  ;;  %v12533_v50 = vld [vmem:[#allocation27_spill] sm:$0xff] }
0x1411   : > { %4737 = vmatpush1.bf16.xpose.msra.mxu0 %v4726_v20  ;;  %v4724_v42 = vpack.c.bf16 %v11139_v60, %v11146_v32  ;;  %v8550_v25 = vpop.eup %8549  ;;  %v11163_v26 = vmul.f32 %v8548_v63, %v4541_v46  ;;  %v12535_v20 = vld [vmem:[#allocation29_spill] sm:$0xff] }
0x1412   : > { %4738 = vmatprep.subr.bf16.mxu0 %v4725_v2  ;;  %v4723_v19 = vpack.c.bf16 %v11143_v47, %v11148_v1  ;;  %v8552_v15 = vpop.eup %8551  ;;  %v11165_v56 = vmul.f32 %v8550_v25, %v4538_v0  ;;  %v12537_v2 = vld [vmem:[#allocation33_spill] sm:$0xff] }
0x1413   : > { %4844 = vmatpush1.xpose.msra.mxu1 %v11117_v23  ;;  %v11168_v10 = vmul.f32 %v8552_v15, %v4539_v18  ;;  %v8554_v30 = vpop.eup %8553 }
0x1414   : > { %4845 = vmatprep.subr.mxu1 %v11111_v31  ;;  %v4721_v22 = vpack.c.bf16 %v11165_v56, %v11098_v62  ;;  %v8556_v52 = vpop.eup %8555  ;;  %v11181_v29 = vmul.f32 %v8554_v30, %v4537_v33 }
0x1415   : > { %v4722_v6 = vpack.c.bf16 %v11163_v26, %v11168_v10  ;;  %v11184_v59 = vmul.f32 %v8556_v52, %v4535_v45 }
0x1417   : > { %4846 = vmatpush1.xpose.msra.mxu1 %v11139_v60  ;;  %v4720_v49 = vpack.c.bf16 %v11181_v29, %v11184_v59 }
0x1418   : > { %4847 = vmatprep.subr.mxu1 %v11119_v34 }
0x1419   : > { %4739 = vmatpush1.bf16.xpose.msra.mxu0 %v4724_v42 }
0x141a   : > { %4740 = vmatprep.subr.bf16.mxu0 %v4723_v19 }
0x141b   : > { %4848 = vmatpush1.xpose.msra.mxu1 %v11146_v32 }
0x141c   : > { %4849 = vmatprep.subr.mxu1 %v11143_v47 }
0x141f   : > { %4850 = vmatpush1.xpose.msra.mxu1 %v11163_v26 }
0x1420   : > { %4851 = vmatprep.subr.mxu1 %v11148_v1 }
0x1421   : > { %4741 = vmatpush1.bf16.xpose.msra.mxu0 %v4722_v6 }
0x1422   : > { %4742 = vmatprep.subr.bf16.mxu0 %v4721_v22 }
0x1423   : > { %4852 = vmatpush1.xpose.msra.mxu1 %v11168_v10 }
0x1424   : > { %4853 = vmatprep.subr.mxu1 %v11165_v56 }
0x1427   : > { %4854 = vmatpush1.xpose.msra.mxu1 %v11181_v29 }
0x1428   : > { %4855 = vmatprep.subr.mxu1 %v11098_v62 }
0x1429   : > { %4743 = vmatpush1.bf16.xpose.msra.mxu0 %v4720_v49 }
0x142a   : > { %5195 = vmatprep.subr.bf16.mxu0 %v12524_v44 }
0x142b   : > { %4856 = vmatpush1.xpose.msra.mxu1 %v11184_v59 }
0x142e   : > { %4890 = vmatmul.mubr.f32.vlgmr.msra.gmra.mxu1 %v11184_v59 }
0x142f   : > { %4894 = vmatprep.mubr.f32.mxu1 %v11165_v56 }
0x1430   : > { %4761 = vmatmul.mubr.bf16.vlgmr.msra.gmra.mxu0 %v12525_v16 }
0x1431   : > { %4768 = vmatprep.mubr.bf16.mxu0 %v12526_v55  ;;  %5196 = vmatpush1.bf16.msra.mxu0 %v12527_v35 }
0x1432   : > { %4895 = vmatmul.mubr.f32.gmra.mxu1 %v11181_v29  ;;  %5197 = vmatprep.subr.bf16.mxu0 %v12528_v43 }
0x1433   : > { %4899 = vmatprep.mubr.f32.mxu1 %v11148_v1 }
0x1435   : > { %5198 = vmatpush1.bf16.msra.mxu0 %v12529_v8 }
0x1436   : > { %4900 = vmatmul.mubr.f32.gmra.mxu1 %v11168_v10  ;;  %5199 = vmatprep.subr.bf16.mxu0 %v12530_v11 }
0x1437   : > { %4904 = vmatprep.mubr.f32.mxu1 %v11143_v47 }
0x1438   : > { %4769 = vmatmul.mubr.bf16.gmra.mxu0 %v12531_v13 }
0x1439   : > { %4776 = vmatprep.mubr.bf16.mxu0 %v12532_v36  ;;  %5200 = vmatpush1.bf16.msra.mxu0 %v12533_v50 }
0x143a   : > { %4905 = vmatmul.mubr.f32.gmra.mxu1 %v11163_v26  ;;  %5201 = vmatprep.subr.bf16.mxu0 %v12534_v58 }
0x143b   : > { %4909 = vmatprep.mubr.f32.mxu1 %v11119_v34 }
0x143d   : > { %5202 = vmatpush1.bf16.msra.mxu0 %v12535_v20 }
0x143e   : > { %4910 = vmatmul.mubr.f32.gmra.mxu1 %v11146_v32  ;;  %5203 = vmatprep.subr.bf16.mxu0 %v12536_v5 }
0x143f   : > { %4914 = vmatprep.mubr.f32.mxu1 %v11111_v31 }
0x1440   : > { %4777 = vmatmul.mubr.bf16.gmra.mxu0 %v12537_v2 }
0x1441   : > { %4784 = vmatprep.mubr.bf16.mxu0 %v12536_v5  ;;  %5204 = vmatpush1.bf16.msra.mxu0 %v12538_v40 }
0x1442   : > { %4915 = vmatmul.mubr.f32.gmra.mxu1 %v11139_v60  ;;  %5205 = vmatprep.subr.bf16.mxu0 %v12532_v36 }
0x1443   : > { %4919 = vmatprep.mubr.f32.mxu1 %v11113_v17 }
0x1445   : > { %5206 = vmatpush1.bf16.msra.mxu0 %v12537_v2 }
0x1446   : > { %4920 = vmatmul.mubr.f32.gmra.mxu1 %v11117_v23  ;;  %5207 = vmatprep.subr.bf16.mxu0 %v12526_v55 }
0x1447   : > { %4924 = vmatprep.mubr.f32.mxu1 %v11115_v54 }
0x1448   : > { %4785 = vmatmul.mubr.bf16.gmra.mxu0 %v12538_v40 }
0x1449   : > { %4792 = vmatprep.mubr.bf16.mxu0 %v12534_v58  ;;  %5208 = vmatpush1.bf16.msra.mxu0 %v12531_v13 }
0x144a   : > { %4925 = vmatmul.mubr.f32.gmra.mxu1 %v11109_v57  ;;  %5209 = vmatprep.subr.bf16.mxu0 %v12422_v14 }
0x144b   : > { %8013 = vmatprep.mubr.msk.f32.mxu1 %vm1070_vm0, %v10919_v9 }
0x144d   : > { %5210 = vmatpush1.bf16.msra.mxu0 %v12525_v16 }
0x144e   : > { %5461 = vmatprep.subr.mxu0 %v11115_v54 }
0x1450   : > { %4793 = vmatmul.mubr.bf16.gmra.mxu0 %v12535_v20 }
0x1451   : > { %4800 = vmatprep.mubr.bf16.mxu0 %v12530_v11 }
0x1458   : > { %4801 = vmatmul.mubr.bf16.gmra.mxu0 %v12533_v50 }
0x1459   : > { %4808 = vmatprep.mubr.bf16.mxu0 %v12528_v43 }
0x1460   : > { %4809 = vmatmul.mubr.bf16.gmra.mxu0 %v12529_v8 }
0x1461   : > { %4816 = vmatprep.mubr.bf16.mxu0 %v12524_v44 }
0x1468   : > { %4817 = vmatmul.mubr.bf16.gmra.mxu0 %v12527_v35 }
0x1469   : > { %5227 = vmatprep.mubr.bf16.mxu0 %v12413_v41 }
0x14ee   : > { %v4891_v21 = vpop.f32.mrf.mxu1 }
0x14f0   : > { %v11241_v48 = vpop.f32.mrf.mxu0  ;;  %v4893_v27 = vpop.f32.mrf.mxu1 }
0x14f2   : > { %v4764_v51 = vpop.f32.mrf.mxu0  ;;  %v4896_v37 = vpop.f32.mrf.mxu1 }
0x14f4   : > { %v11243_v7 = vpop.f32.mrf.mxu0  ;;  %v4898_v53 = vpop.f32.mrf.mxu1 }
0x14f6   : > { %v4767_v42 = vpop.f32.mrf.mxu0  ;;  %v4901_v63 = vpop.f32.mrf.mxu1 }
0x14f8   : > { %v11245_v19 = vpop.f32.mrf.mxu0  ;;  %v4903_v25 = vpop.f32.mrf.mxu1 }
0x14fa   : > { %v4772_v46 = vpop.f32.mrf.mxu0  ;;  %v4906_v15 = vpop.f32.mrf.mxu1 }
0x14fc   : > { %v11247_v0 = vpop.f32.mrf.mxu0  ;;  %v4908_v18 = vpop.f32.mrf.mxu1 }
0x14fe   : > { %v4775_v6 = vpop.f32.mrf.mxu0  ;;  %v4911_v30 = vpop.f32.mrf.mxu1 }
0x1500   : > { %v11249_v22 = vpop.f32.mrf.mxu0  ;;  %v4913_v33 = vpop.f32.mrf.mxu1 }
0x1502   : > { %v4780_v52 = vpop.f32.mrf.mxu0  ;;  %v4916_v45 = vpop.f32.mrf.mxu1 }
0x1504   : > { %v11251_v49 = vpop.f32.mrf.mxu0  ;;  %v4918_v27 = vpop.f32.mrf.mxu1 }
0x1506   : > { %v4783_v51 = vpop.f32.mrf.mxu0  ;;  %v4921_v53 = vpop.f32.mrf.mxu1 }
0x1508   : > { %v11253_v42 = vpop.f32.mrf.mxu0  ;;  %v4923_v25 = vpop.f32.mrf.mxu1 }
0x150a   : > { %v4788_v46 = vpop.f32.mrf.mxu0  ;;  %v4926_v40 = vpop.f32.mrf.mxu1 }
0x150b   : > { %7997 = vmatprep.subr.mxu1 %v4926_v40 }
0x150c   : > { %v11255_v2 = vpop.f32.mrf.mxu0  ;;  %v4928_v18 = vpop.f32.mrf.mxu1  ;;  %7998 = vmatpush3.msra.mxu1 %v4926_v40 }
0x150d   : > { %7999 = vmatprep.subr.mxu1 %v4921_v53  ;;  %v12539_v18 = vld [vmem:[#allocation11_spill] sm:$0xff] }
0x150e   : > { %v4791_v6 = vpop.f32.mrf.mxu0  ;;  %8000 = vmatpush3.msra.mxu1 %v4921_v53 }
0x150f   : > { %8001 = vmatprep.subr.mxu1 %v4916_v45 }
0x1510   : > { %v11257_v33 = vpop.f32.mrf.mxu0  ;;  %8002 = vmatpush3.msra.mxu1 %v4916_v45 }
0x1511   : > { %8003 = vmatprep.subr.mxu1 %v4911_v30 }
0x1512   : > { %v4796_v52 = vpop.f32.mrf.mxu0  ;;  %8004 = vmatpush3.msra.mxu1 %v4911_v30 }
0x1513   : > { %8005 = vmatprep.subr.mxu1 %v4906_v15  ;;  %v12540_v52 = vld [vmem:[#allocation20_spill] sm:$0xff] }
0x1514   : > { %v11259_v27 = vpop.f32.mrf.mxu0  ;;  %8006 = vmatpush3.msra.mxu1 %v4906_v15 }
0x1515   : > { %8007 = vmatprep.subr.mxu1 %v4901_v63 }
0x1516   : > { %v4799_v51 = vpop.f32.mrf.mxu0  ;;  %8008 = vmatpush3.msra.mxu1 %v4901_v63 }
0x1517   : > { %8009 = vmatprep.subr.mxu1 %v4896_v37 }
0x1518   : > { %v11261_v25 = vpop.f32.mrf.mxu0  ;;  %8010 = vmatpush3.msra.mxu1 %v4896_v37 }
0x1519   : > { %8011 = vmatprep.subr.mxu1 %v4891_v21 }
0x151a   : > { %v4804_v40 = vpop.f32.mrf.mxu0  ;;  %8012 = vmatpush3.msra.mxu1 %v4891_v21 }
0x151b   : > { %8014 = vmatmul.mubr.msk.f32.vlgmr.msra.gmra.mxu1 %vm1070_vm0, %v10917_v39  ;;  %v12541_v40 = vld [vmem:[#allocation16_spill] sm:$0xff] }
0x151c   : > { %v11265_v45 = vpop.f32.mrf.mxu0  ;;  %8016 = vmatprep.mubr.msk.f32.mxu1 %vm1070_vm0, %v10930_v3 }
0x151e   : > { %v4807_v30 = vpop.f32.mrf.mxu0 }
0x151f   : > { %8017 = vmatmul.mubr.msk.f32.gmra.mxu1 %vm1070_vm0, %v10928_v12  ;;  %v12542_v30 = vld [vmem:[#allocation18_spill] sm:$0xff] }
0x1520   : > { %v11271_v63 = vpop.f32.mrf.mxu0  ;;  %8019 = vmatprep.mubr.msk.f32.mxu1 %vm1070_vm0, %v10941_v28 }
0x1522   : > { %v4812_v37 = vpop.f32.mrf.mxu0 }
0x1523   : > { %8020 = vmatmul.mubr.msk.f32.gmra.mxu1 %vm1070_vm0, %v10939_v61  ;;  %v12543_v37 = vld [vmem:[#allocation14_spill] sm:$0xff] }
0x1524   : > { %v11277_v21 = vpop.f32.mrf.mxu0  ;;  %8022 = vmatprep.mubr.msk.f32.mxu1 %vm1070_vm0, %v10952_v24 }
0x1526   : > { %v4815_v15 = vpop.f32.mrf.mxu0 }
0x1527   : > { %8023 = vmatmul.mubr.msk.f32.gmra.mxu1 %vm1070_vm0, %v10950_v4  ;;  %v12544_v15 = vld [vmem:[#allocation17_spill] sm:$0xff] }
0x1528   : > { %v11283_v53 = vpop.f32.mrf.mxu0  ;;  %8025 = vmatprep.mubr.msk.f32.mxu1 %vm1070_vm0, %v10963_v38 }
0x152a   : > { %v4820_v46 = vpop.f32.mrf.mxu0 }
0x152b   : > { %8026 = vmatmul.mubr.msk.f32.gmra.mxu1 %vm1070_vm0, %v12539_v18  ;;  %v12545_v46 = vld [vmem:[#allocation12_spill] sm:$0xff] }
0x152c   : > { %v11289_v6 = vpop.f32.mrf.mxu0  ;;  %8028 = vmatprep.mubr.msk.f32.mxu1 %vm1070_vm0, %v12540_v52 }
0x152e   : > { %v4823_v51 = vpop.f32.mrf.mxu0 }
0x152f   : > { %8029 = vmatmul.mubr.msk.f32.gmra.mxu1 %vm1070_vm0, %v12541_v40 }
0x1530   : > { %8031 = vmatprep.mubr.msk.f32.mxu1 %vm1070_vm0, %v12542_v30 }
0x1533   : > { %8032 = vmatmul.mubr.msk.f32.gmra.mxu1 %vm1070_vm0, %v12543_v37 }
0x1534   : > { %8034 = vmatprep.mubr.msk.f32.mxu1 %vm1070_vm0, %v12544_v15 }
0x1537   : > { %8035 = vmatmul.mubr.msk.f32.gmra.mxu1 %vm1070_vm0, %v12545_v46 }
0x15db   : > { %v8015_v5 = vpop.f32.mrf.mxu1 }
0x15dc   : > { %v5066_v20 = vadd.f32 1e-06, %v8015_v5 }
0x15dd   : > { %v5060_v58 = vpop.f32.mrf.mxu1 }
0x15de   : > { %8557 = vrcp.f32 %v5066_v20  ;;  %v5061_v51 = vadd.f32 1e-06, %v5060_v58 }
0x15df   : > { %v8018_v50 = vpop.f32.mrf.mxu1 }
0x15e0   : > { %8559 = vrcp.f32 %v5061_v51  ;;  %v5076_v36 = vadd.f32 1e-06, %v8018_v50  ;;  %v4930_v50 = vmul.f32 %v11241_v48, %v10919_v9  ;;  %v4933_v9 = vmul.f32 %v11247_v0, %v10928_v12 }
0x15e1   : > { %v5070_v13 = vpop.f32.mrf.mxu1  ;;  %v4934_v12 = vmul.f32 %v11249_v22, %v10941_v28  ;;  %v4935_v0 = vmul.f32 %v11251_v49, %v10939_v61  ;;  %v4936_v61 = vmul.f32 %v11253_v42, %v10952_v24  ;;  %v4937_v49 = vmul.f32 %v11255_v2, %v10950_v4 }
0x15e2   : > { %8561 = vrcp.f32 %v5076_v36  ;;  %v5071_v11 = vadd.f32 1e-06, %v5070_v13  ;;  %v4931_v13 = vmul.f32 %v11243_v7, %v10917_v39  ;;  %v4938_v4 = vmul.f32 %v11257_v33, %v10963_v38 }
0x15e3   : > { %v8021_v8 = vpop.f32.mrf.mxu1  ;;  %v4939_v2 = vmul.f32 %v11259_v27, %v12539_v18  ;;  %v4941_v38 = vmul.f32 %v11265_v45, %v12541_v40  ;;  %v4945_v40 = vmul.f32 %v11289_v6, %v12545_v46 }
0x15e4   : > { %8563 = vrcp.f32 %v5071_v11  ;;  %v5086_v43 = vadd.f32 1e-06, %v8021_v8 }
0x15e5   : > { %v5080_v35 = vpop.f32.mrf.mxu1 }
0x15e6   : > { %8565 = vrcp.f32 %v5086_v43  ;;  %v5081_v55 = vadd.f32 1e-06, %v5080_v35 }
0x15e7   : > { %v8024_v16 = vpop.f32.mrf.mxu1 }
0x15e8   : > { %8567 = vrcp.f32 %v5081_v55  ;;  %v5096_v44 = vadd.f32 1e-06, %v8024_v16 }
0x15e9   : > { %v5090_v54 = vpop.f32.mrf.mxu1 }
0x15ea   : > { %8569 = vrcp.f32 %v5096_v44  ;;  %v5091_v5 = vadd.f32 1e-06, %v5090_v54  ;;  %v4932_v54 = vmul.f32 %v11245_v19, %v10930_v3 }
0x15eb   : > { %v8558_v20 = vpop.eup %8557  ;;  %v8027_v58 = vpop.f32.mrf.mxu1 }
0x15ec   : > { %8571 = vrcp.f32 %v5091_v5  ;;  %v5106_v11 = vadd.f32 1e-06, %v8027_v58  ;;  %v11307_v43 = vmul.f32 %v8558_v20, %v4931_v13 }
0x15ed   : > { %v8560_v8 = vpop.eup %8559  ;;  %v5100_v36 = vpop.f32.mrf.mxu1 }
0x15ee   : > { %v11309_v35 = vmul.f32 %v8560_v8, %v4930_v50  ;;  %8573 = vrcp.f32 %v5106_v11  ;;  %v5101_v16 = vadd.f32 1e-06, %v5100_v36 }
0x15ef   : > { %v8562_v44 = vpop.eup %8561  ;;  %v8030_v55 = vpop.f32.mrf.mxu1 }
0x15f0   : > { %8575 = vrcp.f32 %v5101_v16  ;;  %v5116_v39 = vadd.f32 1e-06, %v8030_v55  ;;  %5268 = vxpose.xlu1.b32.start [1/16] (narrow) %v11309_v35, 64  ;;  %v5171_v48 = vpack.c.bf16 %v11307_v43, %v11309_v35  ;;  %v11318_v5 = vmul.f32 %v8562_v44, %v4933_v9 }
0x15f1   : > { %v8564_v7 = vpop.eup %8563  ;;  %v5110_v51 = vpop.f32.mrf.mxu1 }
0x15f2   : > { %v11320_v20 = vmul.f32 %v8564_v7, %v4932_v54  ;;  %8577 = vrcp.f32 %v5116_v39  ;;  %v5111_v58 = vadd.f32 1e-06, %v5110_v51  ;;  %5179 = vxpose.xlu0.c.b16.start [1/8] (narrow) %v5171_v48, 64 }
0x15f3   : > { %v8566_v3 = vpop.eup %8565  ;;  %v8033_v19 = vpop.f32.mrf.mxu1 }
0x15f4   : > { %8579 = vrcp.f32 %v5111_v58  ;;  %v5126_v50 = vadd.f32 1e-06, %v8033_v19  ;;  %5269 = vxpose.xlu1.b32.cont [2/16] (narrow) %v11307_v43, 64  ;;  %v5172_v13 = vpack.c.bf16 %v11318_v5, %v11320_v20  ;;  %v11329_v36 = vmul.f32 %v8566_v3, %v4935_v0 }
0x15f5   : > { %v8568_v11 = vpop.eup %8567  ;;  %v5120_v8 = vpop.f32.mrf.mxu1  ;;  %v4940_v0 = vmul.f32 %v11261_v25, %v12540_v52  ;;  %v4943_v25 = vmul.f32 %v11277_v21, %v12543_v37 }
0x15f6   : > { %v11331_v16 = vmul.f32 %v8568_v11, %v4934_v12  ;;  %8581 = vrcp.f32 %v5126_v50  ;;  %v5121_v44 = vadd.f32 1e-06, %v5120_v8  ;;  %5180 = vxpose.xlu0.c.b16.cont [2/8] (narrow) %v5172_v13, 64  ;;  %v4942_v11 = vmul.f32 %v11271_v63, %v12542_v30 }
0x15f7   : > { %v8570_v28 = vpop.eup %8569  ;;  %v8036_v22 = vpop.f32.mrf.mxu1  ;;  %v4944_v63 = vmul.f32 %v11283_v53, %v12544_v15 }
0x15f8   : > { %8583 = vrcp.f32 %v5121_v44  ;;  %v5136_v54 = vadd.f32 1e-06, %v8036_v22  ;;  %5270 = vxpose.xlu1.b32.cont [3/16] (narrow) %v11320_v20, 64  ;;  %v5173_v55 = vpack.c.bf16 %v11329_v36, %v11331_v16  ;;  %v11340_v48 = vmul.f32 %v8570_v28, %v4937_v49 }
0x15f9   : > { %v8572_v9 = vpop.eup %8571  ;;  %v5130_v39 = vpop.f32.mrf.mxu1 }
0x15fa   : > { %12546 = vst [vmem:[#allocation15_spill] sm:$0xff] %v11340_v48  ;;  %v11342_v7 = vmul.f32 %v8572_v9, %v4936_v61  ;;  %8585 = vrcp.f32 %v5136_v54  ;;  %v5131_v51 = vadd.f32 1e-06, %v5130_v39  ;;  %5181 = vxpose.xlu0.c.b16.cont [3/8] (narrow) %v5173_v55, 64  ;;  %v12555_v54 = vmov 0.0  }
0x15fb   : > { %v8574_v24 = vpop.eup %8573 }
0x15fc   : > { %8587 = vrcp.f32 %v5131_v51  ;;  %5271 = vxpose.xlu1.b32.cont [4/16] (narrow) %v11318_v5, 64  ;;  %v5174_v42 = vpack.c.bf16 %v11340_v48, %v11342_v7  ;;  %v11351_v3 = vmul.f32 %v8574_v24, %v4939_v2 }
0x15fd   : > { %v8576_v58 = vpop.eup %8575 }
0x15fe   : > { %12547 = vst [vmem:[#allocation13_spill] sm:$0xff] %v11351_v3  ;;  %v11353_v12 = vmul.f32 %v8576_v58, %v4938_v4  ;;  %5182 = vxpose.xlu0.c.b16.cont [4/8] (narrow) %v5174_v42, 64 }
0x15ff   : > { %v8578_v19 = vpop.eup %8577 }
0x1600   : > { %12548 = vst [vmem:[#allocation11_spill] sm:$0xff] %v11353_v12  ;;  %5272 = vxpose.xlu1.b32.cont [5/16] (narrow) %v11331_v16, 64  ;;  %v5175_v33 = vpack.c.bf16 %v11351_v3, %v11353_v12  ;;  %v11362_v18 = vmul.f32 %v8578_v19, %v4941_v38 }
0x1601   : > { %v8580_v27 = vpop.eup %8579 }
0x1602   : > { %12549 = vst [vmem:[#allocation20_spill] sm:$0xff] %v11362_v18  ;;  %v11364_v50 = vmul.f32 %v8580_v27, %v4940_v0  ;;  %5183 = vxpose.xlu0.c.b16.cont [5/8] (narrow) %v5175_v33, 64 }
0x1603   : > { %v8582_v13 = vpop.eup %8581 }
0x1604   : > { %12550 = vst [vmem:[#allocation16_spill] sm:$0xff] %v11364_v50  ;;  %5273 = vxpose.xlu1.b32.cont [6/16] (narrow) %v11329_v36, 64  ;;  %v5176_v45 = vpack.c.bf16 %v11362_v18, %v11364_v50  ;;  %v11375_v8 = vmul.f32 %v8582_v13, %v4943_v25 }
0x1605   : > { %v8584_v52 = vpop.eup %8583 }
0x1606   : > { %12551 = vst [vmem:[#allocation18_spill] sm:$0xff] %v11375_v8  ;;  %v11377_v44 = vmul.f32 %v8584_v52, %v4942_v11  ;;  %5184 = vxpose.xlu0.c.b16.cont [6/8] (narrow) %v5176_v45, 64 }
0x1607   : > { %v8586_v28 = vpop.eup %8585 }
0x1608   : > { %12552 = vst [vmem:[#allocation14_spill] sm:$0xff] %v11377_v44  ;;  %v11381_v30 = vmul.f32 %v8586_v28, %v4945_v40  ;;  %5274 = vxpose.xlu1.b32.cont [7/16] (narrow) %v11342_v7, 64  ;;  %v5177_v21 = vpack.c.bf16 %v11375_v8, %v11377_v44 }
0x1609   : > { %v8588_v37 = vpop.eup %8587 }
0x160a   : > { %12553 = vst [vmem:[#allocation17_spill] sm:$0xff] %v11381_v30  ;;  %v11386_v61 = vmul.f32 %v8588_v37, %v4944_v63  ;;  %5185 = vxpose.xlu0.c.b16.cont [7/8] (narrow) %v5177_v21, 64  ;;  %8037 = vmatprep.subr.mxu1 %v11381_v30 }
0x160b   : > { %8038 = vmatpush3.msra.mxu1 %v11381_v30 }
0x160c   : > { %12554 = vst [vmem:[#allocation12_spill] sm:$0xff] %v11386_v61  ;;  %5275 = vxpose.xlu1.b32.cont [8/16] (narrow) %v11340_v48, 64  ;;  %8039 = vmatprep.subr.mxu1 %v11386_v61  ;;  %v5178_v53 = vpack.c.bf16 %v11381_v30, %v11386_v61 }
0x160d   : > { %8040 = vmatpush3.msra.mxu1 %v11386_v61 }
0x160e   : > { %8041 = vmatprep.subr.mxu1 %v11375_v8  ;;  %5186 = vxpose.xlu0.c.b16.end [8/8] (narrow) %v5178_v53, 64 }
0x160f   : > { %8042 = vmatpush3.msra.mxu1 %v11375_v8 }
0x1610   : > { %5276 = vxpose.xlu1.b32.cont [9/16] (narrow) %v11353_v12, 64  ;;  %8043 = vmatprep.subr.mxu1 %v11377_v44 }
0x1611   : > { %8044 = vmatpush3.msra.mxu1 %v11377_v44 }
0x1612   : > { %8045 = vmatprep.subr.mxu1 %v11362_v18 }
0x1613   : > { %8046 = vmatpush3.msra.mxu1 %v11362_v18 }
0x1614   : > { %5277 = vxpose.xlu1.b32.cont [10/16] (narrow) %v11351_v3, 64  ;;  %8047 = vmatprep.subr.mxu1 %v11364_v50 }
0x1615   : > { %8048 = vmatpush3.msra.mxu1 %v11364_v50 }
0x1616   : > { %8049 = vmatprep.subr.mxu1 %v11351_v3 }
0x1617   : > { %8050 = vmatpush3.msra.mxu1 %v11351_v3 }
0x1618   : > { %5278 = vxpose.xlu1.b32.cont [11/16] (narrow) %v11364_v50, 64  ;;  %8051 = vmatprep.subr.mxu1 %v11353_v12 }
0x1619   : > { %8052 = vmatpush3.msra.mxu1 %v11353_v12 }
0x161a   : > { %8053 = vmatprep.subr.mxu1 %v11340_v48 }
0x161b   : > { %8054 = vmatpush3.msra.mxu1 %v11340_v48 }
0x161c   : > { %5279 = vxpose.xlu1.b32.cont [12/16] (narrow) %v11362_v18, 64  ;;  %8055 = vmatprep.subr.mxu1 %v11342_v7 }
0x161d   : > { %8056 = vmatpush3.msra.mxu1 %v11342_v7 }
0x161e   : > { %8057 = vmatprep.subr.mxu1 %v11329_v36 }
0x161f   : > { %8058 = vmatpush3.msra.mxu1 %v11329_v36 }
0x1620   : > { %5280 = vxpose.xlu1.b32.cont [13/16] (narrow) %v11377_v44, 64  ;;  %8059 = vmatprep.subr.mxu1 %v11331_v16 }
0x1621   : > { %8060 = vmatpush3.msra.mxu1 %v11331_v16 }
0x1622   : > { %8061 = vmatprep.subr.mxu1 %v11318_v5 }
0x1623   : > { %8062 = vmatpush3.msra.mxu1 %v11318_v5 }
0x1624   : > { %5281 = vxpose.xlu1.b32.cont [14/16] (narrow) %v11375_v8, 64  ;;  %8063 = vmatprep.subr.mxu1 %v11320_v20 }
0x1625   : > { %8064 = vmatpush3.msra.mxu1 %v11320_v20 }
0x1626   : > { %8065 = vmatprep.subr.mxu1 %v11307_v43 }
0x1627   : > { %8066 = vmatpush3.msra.mxu1 %v11307_v43 }
0x1628   : > { %5282 = vxpose.xlu1.b32.cont [15/16] (narrow) %v11386_v61, 64  ;;  %8067 = vmatprep.subr.mxu1 %v11309_v35 }
0x1629   : > { %8068 = vmatpush3.msra.mxu1 %v11309_v35 }
0x162c   : > { %5283 = vxpose.xlu1.b32.end [16/16] (narrow) %v11381_v30, 64 }
0x1654   : > { %v5187_v6 = vpop.trf.xlu0 }
0x1655   : > { %5228 = vmatmul.mubr.bf16.vlgmr.msra.gmra.mxu0 %v5187_v6 }
0x1656   : > { %5462 = vmatpush1.msra.mxu0 %v11109_v57  ;;  %5237 = vmatprep.mubr.bf16.mxu0 %v12413_v41 }
0x1657   : > { %5463 = vmatprep.subr.mxu0 %v11113_v17 }
0x1658   : > { %5464 = vmatpush1.msra.mxu0 %v11117_v23  ;;  %v5188_v15 = vpop.trf.xlu0 }
0x1659   : > { %5465 = vmatprep.subr.mxu0 %v11111_v31 }
0x165a   : > { %5466 = vmatpush1.msra.mxu0 %v11139_v60 }
0x165b   : > { %5467 = vmatprep.subr.mxu0 %v11119_v34 }
0x165c   : > { %5468 = vmatpush1.msra.mxu0 %v11146_v32  ;;  %v5189_v46 = vpop.trf.xlu0 }
0x165d   : > { %5469 = vmatprep.subr.mxu0 %v11143_v47  ;;  %5238 = vmatmul.mubr.bf16.gmra.mxu0 %v5188_v15 }
0x165e   : > { %5470 = vmatpush1.msra.mxu0 %v11163_v26  ;;  %5247 = vmatprep.mubr.bf16.mxu0 %v12413_v41 }
0x165f   : > { %5471 = vmatprep.subr.mxu0 %v11148_v1 }
0x1660   : > { %5472 = vmatpush1.msra.mxu0 %v11168_v10  ;;  %v5190_v22 = vpop.trf.xlu0 }
0x1661   : > { %5473 = vmatprep.subr.mxu0 %v11165_v56 }
0x1662   : > { %5474 = vmatpush1.msra.mxu0 %v11181_v29 }
0x1663   : > { %5475 = vmatprep.subr.mxu0 %v11098_v62 }
0x1664   : > { %5476 = vmatpush1.msra.mxu0 %v11184_v59 }
0x1665   : > { %5248 = vmatmul.mubr.bf16.gmra.mxu0 %v5189_v46 }
0x1666   : > { %5257 = vmatprep.mubr.bf16.mxu0 %v12413_v41 }
0x166c   : > { %v5284_v49 = vpop.trf.xlu1 }
0x166d   : > { %5258 = vmatmul.mubr.bf16.gmra.mxu0 %v5190_v22  ;;  %8069 = vmatprep.mubr.f32.mxu1 %v5284_v49 }
0x166e   : > { %5509 = vmatprep.mubr.f32.mxu0 %v12555_v54 }
0x1670   : > { %v5285_v55 = vpop.trf.xlu1 }
0x1671   : > { %8070 = vmatmul.mubr.f32.vlgmr.msra.gmra.mxu1 %v5285_v55 }
0x1674   : > { %v5286_v9 = vpop.trf.xlu1 }
0x1675   : > { %8072 = vmatprep.mubr.f32.mxu1 %v5286_v9 }
0x1678   : > { %v5287_v39 = vpop.trf.xlu1 }
0x1679   : > { %8073 = vmatmul.mubr.f32.gmra.mxu1 %v5287_v39 }
0x167c   : > { %v5288_v51 = vpop.trf.xlu1 }
0x167d   : > { %8075 = vmatprep.mubr.f32.mxu1 %v5288_v51 }
0x1680   : > { %v5289_v24 = vpop.trf.xlu1 }
0x1681   : > { %8076 = vmatmul.mubr.f32.gmra.mxu1 %v5289_v24 }
0x1684   : > { %v5290_v4 = vpop.trf.xlu1 }
0x1685   : > { %8078 = vmatprep.mubr.f32.mxu1 %v5290_v4 }
0x1688   : > { %v5291_v2 = vpop.trf.xlu1 }
0x1689   : > { %8079 = vmatmul.mubr.f32.gmra.mxu1 %v5291_v2 }
0x168a   : > { %5630 = vmatprep.mubr.bf16.mxu1 %v12422_v14 }
0x1715   : > { %v11466_v11 = vpop.f32.mrf.mxu0 }
0x1717   : > { %v5231_v25 = vpop.f32.mrf.mxu0 }
0x1719   : > { %v11468_v45 = vpop.f32.mrf.mxu0 }
0x171b   : > { %v11470_v52 = vpop.f32.mrf.mxu0 }
0x171d   : > { %v11472_v40 = vpop.f32.mrf.mxu0 }
0x171f   : > { %v11474_v28 = vpop.f32.mrf.mxu0 }
0x1721   : > { %v11476_v63 = vpop.f32.mrf.mxu0 }
0x1723   : > { %v11478_v21 = vpop.f32.mrf.mxu0 }
0x1725   : > { %v11480_v37 = vpop.f32.mrf.mxu0 }
0x1727   : > { %v5251_v53 = vpop.f32.mrf.mxu0 }
0x1729   : > { %v11482_v6 = vpop.f32.mrf.mxu0 }
0x172b   : > { %v5255_v15 = vpop.f32.mrf.mxu0 }
0x172d   : > { %v5259_v46 = vpop.f32.mrf.mxu0 }
0x172f   : > { %v5261_v22 = vpop.f32.mrf.mxu0 }
0x1731   : > { %v8071_v42 = vpop.f32.mrf.mxu1  ;;  %v5263_v49 = vpop.f32.mrf.mxu0 }
0x1733   : > { %v5366_v58 = vpop.f32.mrf.mxu1  ;;  %v5265_v55 = vpop.f32.mrf.mxu0 }
0x1734   : > { %7249 = vmatmul.mubr.msk.f32.vlgmr.msra.gmra.mxu0 %vm1070_vm0, %v5366_v58 }
0x1735   : > { %5515 = vmatprep.mubr.f32.mxu0 %v12555_v54 }
0x1738   : > { %7250 = vmatmul.mubr.msk.f32.gmra.mxu0 %vm1070_vm0, %v8071_v42 }
0x1739   : > { %v8074_v19 = vpop.f32.mrf.mxu1  ;;  %5521 = vmatprep.mubr.f32.mxu0 %v12555_v54 }
0x173b   : > { %v5376_v0 = vpop.f32.mrf.mxu1 }
0x173c   : > { %7251 = vmatmul.mubr.msk.f32.gmra.mxu0 %vm1070_vm0, %v5376_v0 }
0x173d   : > { %5527 = vmatprep.mubr.f32.mxu0 %v12555_v54 }
0x1740   : > { %7252 = vmatmul.mubr.msk.f32.gmra.mxu0 %vm1070_vm0, %v8074_v19 }
0x1741   : > { %v8077_v38 = vpop.f32.mrf.mxu1  ;;  %5533 = vmatprep.mubr.f32.mxu0 %v12555_v54 }
0x1743   : > { %v5386_v33 = vpop.f32.mrf.mxu1 }
0x1744   : > { %7253 = vmatmul.mubr.msk.f32.gmra.mxu0 %vm1070_vm0, %v5386_v33 }
0x1745   : > { %5539 = vmatprep.mubr.f32.mxu0 %v12555_v54 }
0x1748   : > { %7254 = vmatmul.mubr.msk.f32.gmra.mxu0 %vm1070_vm0, %v8077_v38  ;;  %v5406_v38 = vmul.f32 %v5231_v25, %v11098_v62 }
0x1749   : > { %v8080_v27 = vpop.f32.mrf.mxu1  ;;  %5545 = vmatprep.mubr.f32.mxu0 %v12555_v54 }
0x174b   : > { %v5396_v13 = vpop.f32.mrf.mxu1 }
0x174c   : > { %7255 = vmatmul.mubr.msk.f32.gmra.mxu0 %vm1070_vm0, %v5396_v13 }
0x174d   : > { %5551 = vmatprep.mubr.f32.mxu0 %v12555_v54 }
0x1750   : > { %7256 = vmatmul.mubr.msk.f32.gmra.mxu0 %vm1070_vm0, %v8080_v27 }
0x17f4   : > { %v11484_v9 = vpop.f32.mrf.mxu0 }
0x17f6   : > { %v5513_v39 = vpop.f32.mrf.mxu0 }
0x17f7   : > { %v5514_v51 = vadd.f32 1e-06, %v5513_v39 }
0x17f8   : > { %v11486_v24 = vpop.f32.mrf.mxu0 }
0x17f9   : > { %8589 = vrcp.f32 %v5514_v51 }
0x17fa   : > { %v5519_v4 = vpop.f32.mrf.mxu0 }
0x17fc   : > { %v5523_v2 = vpop.f32.mrf.mxu0 }
0x17fe   : > { %v5525_v42 = vpop.f32.mrf.mxu0 }
0x17ff   : > { %v5526_v48 = vadd.f32 1e-06, %v5525_v42 }
0x1800   : > { %v5529_v58 = vpop.f32.mrf.mxu0 }
0x1802   : > { %v5531_v19 = vpop.f32.mrf.mxu0 }
0x1804   : > { %v5535_v0 = vpop.f32.mrf.mxu0 }
0x1805   : > { %v5536_v12 = vadd.f32 1e-06, %v5535_v0 }
0x1806   : > { %v8590_v33 = vpop.eup %8589  ;;  %v5537_v27 = vpop.f32.mrf.mxu0 }
0x1807   : > { %v11489_v13 = vmul.f32 %v8590_v33, %v5406_v38  ;;  %v5538_v39 = vadd.f32 1e-06, %v5537_v27  ;;  %v5532_v33 = vadd.f32 1e-06, %v5531_v19  ;;  %v12556_v19 = vld [vmem:[#allocation35_spill] sm:$0xff] }
0x1808   : > { %v5541_v54 = vpop.f32.mrf.mxu0  ;;  %v5420_v42 = vmul.f32 %v5265_v55, %v12556_v19  ;;  %v5415_v55 = vmul.f32 %v11482_v6, %v11139_v60  ;;  %v5410_v60 = vmul.f32 %v11474_v28, %v11148_v1  ;;  %v12563_v19 = vld [vmem:[#allocation26_spill] sm:$0xff] }
0x1809   : > { %5759 = vmatprep.mubr.f32.mxu0 %v11489_v13  ;;  %8591 = vrcp.f32 %v5538_v39  ;;  %v5542_v38 = vadd.f32 1e-06, %v5541_v54  ;;  %v5418_v54 = vmul.f32 %v5261_v22, %v11113_v17 }
0x180a   : > { %v5543_v30 = vpop.f32.mrf.mxu0 }
0x180b   : > { %v5544_v8 = vadd.f32 1e-06, %v5543_v30 }
0x180c   : > { %v5547_v61 = vpop.f32.mrf.mxu0 }
0x180d   : > { %v5548_v18 = vadd.f32 1e-06, %v5547_v61  ;;  %8593 = vrcp.f32 %v5544_v8  ;;  %v5530_v61 = vadd.f32 1e-06, %v5529_v58  ;;  %v5520_v8 = vadd.f32 1e-06, %v5519_v4 }
0x180e   : > { %v5549_v51 = vpop.f32.mrf.mxu0 }
0x180f   : > { %v5550_v44 = vadd.f32 1e-06, %v5549_v51 }
0x1810   : > { %v5553_v50 = vpop.f32.mrf.mxu0 }
0x1811   : > { %v5554_v3 = vadd.f32 1e-06, %v5553_v50  ;;  %8595 = vrcp.f32 %v5550_v44  ;;  %v5419_v44 = vmul.f32 %v5263_v49, %v11109_v57 }
0x1812   : > { %v5555_v62 = vpop.f32.mrf.mxu0 }
0x1813   : > { %8597 = vrcp.f32 %v5554_v3  ;;  %v5556_v25 = vadd.f32 1e-06, %v5555_v62  ;;  %v5524_v3 = vadd.f32 1e-06, %v5523_v2  ;;  %v5512_v2 = vadd.f32 1e-06, %v11484_v9 }
0x1814   : > { %8599 = vrcp.f32 %v5548_v18  ;;  %v5416_v18 = vmul.f32 %v5255_v15, %v11111_v31  ;;  %v5412_v62 = vmul.f32 %v11478_v21, %v11143_v47 }
0x1815   : > { %8601 = vrcp.f32 %v5556_v25 }
0x1816   : > { %8603 = vrcp.f32 %v5542_v38  ;;  %v8592_v30 = vpop.eup %8591  ;;  %v5413_v38 = vmul.f32 %v11480_v37, %v11146_v32  ;;  %v5411_v37 = vmul.f32 %v11476_v63, %v11163_v26  ;;  %v5405_v63 = vmul.f32 %v11466_v11, %v11184_v59  ;;  %v12558_v59 = vld [vmem:[#allocation19_spill] sm:$0xff]  ;;  %v12559_v11 = vld [vmem:[#allocation34_spill] sm:$0xff] }
0x1817   : > { %8605 = vrcp.f32 %v5532_v33 }
0x1818   : > { %8607 = vrcp.f32 %v5536_v12  ;;  %v5414_v12 = vmul.f32 %v5251_v53, %v11119_v34  ;;  %v5518_v34 = vadd.f32 1e-06, %v11486_v24 }
0x1819   : > { %8609 = vrcp.f32 %v5526_v48  ;;  %v5417_v48 = vmul.f32 %v5259_v46, %v11117_v23 }
0x181a   : > { %v8594_v27 = vpop.eup %8593  ;;  %8611 = vrcp.f32 %v5530_v61  ;;  %v11508_v17 = vmul.f32 %v8592_v30, %v5414_v12  ;;  %v5409_v61 = vmul.f32 %v11472_v40, %v11168_v10  ;;  %v12566_v12 = vld [vmem:[#allocation27_spill] sm:$0xff] }
0x181b   : > { %8613 = vrcp.f32 %v5520_v8  ;;  %v11500_v4 = vmul.f32 %v8594_v27, %v5416_v18  ;;  %v5408_v27 = vmul.f32 %v11470_v52, %v11165_v56  ;;  %v5407_v52 = vmul.f32 %v11468_v45, %v11181_v29  ;;  %v12557_v29 = vld [vmem:[#allocation22_spill] sm:$0xff]  ;;  %v12560_v45 = vld [vmem:[#allocation23_spill] sm:$0xff]  ;;  %v12561_v18 = vld [vmem:[#allocation24_spill] sm:$0xff] }
0x181c   : > { %8615 = vrcp.f32 %v5524_v3 }
0x181d   : > { %v5595_v46 = vpack.c.bf16 %v11500_v4, %v11508_v17  ;;  %8617 = vrcp.f32 %v5518_v34  ;;  %v12569_v34 = vld [vmem:[#allocation30_spill] sm:$0xff] }
0x181e   : > { %v8596_v39 = vpop.eup %8595  ;;  %8619 = vrcp.f32 %v5512_v2 }
0x181f   : > { %v11502_v57 = vmul.f32 %v8596_v39, %v5418_v54  ;;  %v12562_v54 = vld [vmem:[#allocation25_spill] sm:$0xff] }
0x1820   : > { %v8598_v50 = vpop.eup %8597 }
0x1821   : > { %v8600_v51 = vpop.eup %8599  ;;  %v11498_v58 = vmul.f32 %v8598_v50, %v5419_v44 }
0x1822   : > { %v8602_v0 = vpop.eup %8601  ;;  %v11506_v31 = vmul.f32 %v8600_v51, %v5417_v48  ;;  %v12567_v48 = vld [vmem:[#allocation28_spill] sm:$0xff] }
0x1823   : > { %v11504_v49 = vmul.f32 %v8602_v0, %v5420_v42  ;;  %v8604_v15 = vpop.eup %8603  ;;  %v12564_v42 = vld [vmem:[#allocation21_spill] sm:$0xff]  ;;  %v12565_v0 = vld [vmem:[#allocation32_spill] sm:$0xff] }
0x1824   : > { %v5596_v53 = vpack.c.bf16 %v11498_v58, %v11506_v31  ;;  %v8606_v22 = vpop.eup %8605  ;;  %v11528_v33 = vmul.f32 %v8604_v15, %v5415_v55  ;;  %v12571_v15 = vld [vmem:[#allocation31_spill] sm:$0xff] }
0x1825   : > { %5711 = vmatprep.subr.mxu0 %v11504_v49  ;;  %v5597_v23 = vpack.c.bf16 %v11504_v49, %v11502_v57  ;;  %v8608_v24 = vpop.eup %8607  ;;  %v11532_v6 = vmul.f32 %v8606_v22, %v5412_v62 }
0x1826   : > { %5712 = vmatpush1.xpose.msra.mxu0 %v11498_v58  ;;  %v8610_v25 = vpop.eup %8609  ;;  %v11535_v9 = vmul.f32 %v8608_v24, %v5413_v38 }
0x1827   : > { %5606 = vmatprep.subr.bf16.mxu1 %v5597_v23  ;;  %5713 = vmatprep.subr.mxu0 %v11502_v57  ;;  %v11537_v47 = vmul.f32 %v8610_v25, %v5410_v60  ;;  %v8612_v21 = vpop.eup %8611  ;;  %v12568_v23 = vld [vmem:[#allocation29_spill] sm:$0xff] }
0x1828   : > { %5607 = vmatpush1.bf16.xpose.msra.mxu1 %v5596_v53  ;;  %v5594_v32 = vpack.c.bf16 %v11528_v33, %v11535_v9  ;;  %v8614_v28 = vpop.eup %8613  ;;  %v11552_v39 = vmul.f32 %v8612_v21, %v5411_v37  ;;  %v12570_v53 = vld [vmem:[#allocation33_spill] sm:$0xff] }
0x1829   : > { %5608 = vmatprep.subr.bf16.mxu1 %v5595_v46  ;;  %v5593_v1 = vpack.c.bf16 %v11532_v6, %v11537_v47  ;;  %v8616_v30 = vpop.eup %8615  ;;  %v11554_v8 = vmul.f32 %v8614_v28, %v5408_v27 }
0x182a   : > { %5714 = vmatpush1.xpose.msra.mxu0 %v11506_v31  ;;  %v11557_v50 = vmul.f32 %v8616_v30, %v5409_v61  ;;  %v8618_v56 = vpop.eup %8617 }
0x182b   : > { %5715 = vmatprep.subr.mxu0 %v11500_v4  ;;  %v5591_v10 = vpack.c.bf16 %v11554_v8, %v11489_v13  ;;  %v8620_v40 = vpop.eup %8619  ;;  %v11570_v44 = vmul.f32 %v8618_v56, %v5407_v52 }
0x182c   : > { %v5592_v26 = vpack.c.bf16 %v11552_v39, %v11557_v50  ;;  %v11573_v3 = vmul.f32 %v8620_v40, %v5405_v63 }
0x182e   : > { %5716 = vmatpush1.xpose.msra.mxu0 %v11528_v33  ;;  %v5590_v51 = vpack.c.bf16 %v11570_v44, %v11573_v3 }
0x182f   : > { %5717 = vmatprep.subr.mxu0 %v11508_v17 }
0x1830   : > { %5609 = vmatpush1.bf16.xpose.msra.mxu1 %v5594_v32 }
0x1831   : > { %5610 = vmatprep.subr.bf16.mxu1 %v5593_v1 }
0x1832   : > { %5718 = vmatpush1.xpose.msra.mxu0 %v11535_v9 }
0x1833   : > { %5719 = vmatprep.subr.mxu0 %v11532_v6 }
0x1836   : > { %5720 = vmatpush1.xpose.msra.mxu0 %v11552_v39 }
0x1837   : > { %5721 = vmatprep.subr.mxu0 %v11537_v47 }
0x1838   : > { %5611 = vmatpush1.bf16.xpose.msra.mxu1 %v5592_v26 }
0x1839   : > { %5612 = vmatprep.subr.bf16.mxu1 %v5591_v10 }
0x183a   : > { %5722 = vmatpush1.xpose.msra.mxu0 %v11557_v50 }
0x183b   : > { %5723 = vmatprep.subr.mxu0 %v11554_v8 }
0x183e   : > { %5724 = vmatpush1.xpose.msra.mxu0 %v11570_v44 }
0x183f   : > { %5725 = vmatprep.subr.mxu0 %v11489_v13 }
0x1840   : > { %5613 = vmatpush1.bf16.xpose.msra.mxu1 %v5590_v51 }
0x1841   : > { %6065 = vmatprep.subr.bf16.mxu1 %v12557_v29 }
0x1842   : > { %5726 = vmatpush1.xpose.msra.mxu0 %v11573_v3 }
0x1845   : > { %5760 = vmatmul.mubr.f32.vlgmr.msra.gmra.mxu0 %v11573_v3 }
0x1846   : > { %5764 = vmatprep.mubr.f32.mxu0 %v11554_v8 }
0x1847   : > { %5631 = vmatmul.mubr.bf16.vlgmr.msra.gmra.mxu1 %v12558_v59 }
0x1848   : > { %5638 = vmatprep.mubr.bf16.mxu1 %v12559_v11  ;;  %6066 = vmatpush1.bf16.msra.mxu1 %v12560_v45 }
0x1849   : > { %5765 = vmatmul.mubr.f32.gmra.mxu0 %v11570_v44  ;;  %6067 = vmatprep.subr.bf16.mxu1 %v12561_v18 }
0x184a   : > { %5769 = vmatprep.mubr.f32.mxu0 %v11537_v47 }
0x184c   : > { %6068 = vmatpush1.bf16.msra.mxu1 %v12562_v54 }
0x184d   : > { %5770 = vmatmul.mubr.f32.gmra.mxu0 %v11557_v50  ;;  %6069 = vmatprep.subr.bf16.mxu1 %v12563_v19 }
0x184e   : > { %5774 = vmatprep.mubr.f32.mxu0 %v11532_v6 }
0x184f   : > { %5639 = vmatmul.mubr.bf16.gmra.mxu1 %v12564_v42 }
0x1850   : > { %5646 = vmatprep.mubr.bf16.mxu1 %v12565_v0  ;;  %6070 = vmatpush1.bf16.msra.mxu1 %v12566_v12 }
0x1851   : > { %5775 = vmatmul.mubr.f32.gmra.mxu0 %v11552_v39  ;;  %6071 = vmatprep.subr.bf16.mxu1 %v12567_v48 }
0x1852   : > { %5779 = vmatprep.mubr.f32.mxu0 %v11508_v17 }
0x1854   : > { %6072 = vmatpush1.bf16.msra.mxu1 %v12568_v23 }
0x1855   : > { %5780 = vmatmul.mubr.f32.gmra.mxu0 %v11535_v9  ;;  %6073 = vmatprep.subr.bf16.mxu1 %v12569_v34 }
0x1856   : > { %5784 = vmatprep.mubr.f32.mxu0 %v11500_v4 }
0x1857   : > { %5647 = vmatmul.mubr.bf16.gmra.mxu1 %v12570_v53 }
0x1858   : > { %5654 = vmatprep.mubr.bf16.mxu1 %v12569_v34  ;;  %6074 = vmatpush1.bf16.msra.mxu1 %v12571_v15 }
0x1859   : > { %5785 = vmatmul.mubr.f32.gmra.mxu0 %v11528_v33  ;;  %6075 = vmatprep.subr.bf16.mxu1 %v12565_v0 }
0x185a   : > { %5789 = vmatprep.mubr.f32.mxu0 %v11502_v57 }
0x185c   : > { %6076 = vmatpush1.bf16.msra.mxu1 %v12570_v53 }
0x185d   : > { %5790 = vmatmul.mubr.f32.gmra.mxu0 %v11506_v31  ;;  %6077 = vmatprep.subr.bf16.mxu1 %v12559_v11 }
0x185e   : > { %5794 = vmatprep.mubr.f32.mxu0 %v11504_v49 }
0x185f   : > { %5655 = vmatmul.mubr.bf16.gmra.mxu1 %v12571_v15 }
0x1860   : > { %5662 = vmatprep.mubr.bf16.mxu1 %v12567_v48  ;;  %6078 = vmatpush1.bf16.msra.mxu1 %v12564_v42 }
0x1861   : > { %5795 = vmatmul.mubr.f32.gmra.mxu0 %v11498_v58  ;;  %6079 = vmatprep.subr.bf16.mxu1 %v12422_v14 }
0x1862   : > { %8097 = vmatprep.mubr.msk.f32.mxu0 %vm1070_vm0, %v11309_v35 }
0x1864   : > { %6080 = vmatpush1.bf16.msra.mxu1 %v12558_v59 }
0x1867   : > { %5663 = vmatmul.mubr.bf16.gmra.mxu1 %v12568_v23 }
0x1868   : > { %5670 = vmatprep.mubr.bf16.mxu1 %v12563_v19 }
0x186f   : > { %5671 = vmatmul.mubr.bf16.gmra.mxu1 %v12566_v12 }
0x1870   : > { %5678 = vmatprep.mubr.bf16.mxu1 %v12561_v18 }
0x1877   : > { %5679 = vmatmul.mubr.bf16.gmra.mxu1 %v12562_v54 }
0x1878   : > { %5686 = vmatprep.mubr.bf16.mxu1 %v12557_v29 }
0x187f   : > { %5687 = vmatmul.mubr.bf16.gmra.mxu1 %v12560_v45 }
0x1880   : > { %6097 = vmatprep.mubr.bf16.mxu1 %v12413_v41 }
0x1905   : > { %v5761_v14 = vpop.f32.mrf.mxu0 }
0x1907   : > { %v11629_v46 = vpop.f32.mrf.mxu1  ;;  %v5763_v22 = vpop.f32.mrf.mxu0 }
0x1909   : > { %v5634_v55 = vpop.f32.mrf.mxu1  ;;  %v5766_v2 = vpop.f32.mrf.mxu0 }
0x190b   : > { %v11631_v24 = vpop.f32.mrf.mxu1  ;;  %v5768_v62 = vpop.f32.mrf.mxu0 }
0x190c   : > { %v12572_v62 = vld [vmem:[#allocation15_spill] sm:$0xff] }
0x190d   : > { %v5637_v25 = vpop.f32.mrf.mxu1  ;;  %v5771_v38 = vpop.f32.mrf.mxu0 }
0x190f   : > { %v11633_v60 = vpop.f32.mrf.mxu1  ;;  %v5773_v32 = vpop.f32.mrf.mxu0 }
0x1911   : > { %v5642_v21 = vpop.f32.mrf.mxu1  ;;  %v5776_v1 = vpop.f32.mrf.mxu0 }
0x1912   : > { %v12574_v21 = vld [vmem:[#allocation13_spill] sm:$0xff] }
0x1913   : > { %v11635_v28 = vpop.f32.mrf.mxu1  ;;  %v5778_v37 = vpop.f32.mrf.mxu0 }
0x1914   : > { %v12575_v37 = vld [vmem:[#allocation16_spill] sm:$0xff] }
0x1915   : > { %v5645_v30 = vpop.f32.mrf.mxu1  ;;  %v5781_v27 = vpop.f32.mrf.mxu0 }
0x1917   : > { %v11637_v61 = vpop.f32.mrf.mxu1  ;;  %v5783_v26 = vpop.f32.mrf.mxu0 }
0x1918   : > { %v12577_v26 = vld [vmem:[#allocation14_spill] sm:$0xff] }
0x1919   : > { %v5650_v56 = vpop.f32.mrf.mxu1  ;;  %v5786_v10 = vpop.f32.mrf.mxu0 }
0x191a   : > { %v12578_v56 = vld [vmem:[#allocation18_spill] sm:$0xff] }
0x191b   : > { %v11639_v52 = vpop.f32.mrf.mxu1  ;;  %v5788_v40 = vpop.f32.mrf.mxu0 }
0x191c   : > { %v12580_v40 = vld [vmem:[#allocation17_spill] sm:$0xff] }
0x191d   : > { %v5653_v63 = vpop.f32.mrf.mxu1  ;;  %v5791_v51 = vpop.f32.mrf.mxu0 }
0x191f   : > { %v11641_v29 = vpop.f32.mrf.mxu1  ;;  %v5793_v59 = vpop.f32.mrf.mxu0 }
0x1921   : > { %v5658_v11 = vpop.f32.mrf.mxu1  ;;  %v5796_v45 = vpop.f32.mrf.mxu0 }
0x1922   : > { %8081 = vmatprep.subr.mxu0 %v5796_v45 }
0x1923   : > { %v11643_v18 = vpop.f32.mrf.mxu1  ;;  %v5798_v54 = vpop.f32.mrf.mxu0  ;;  %8082 = vmatpush3.msra.mxu0 %v5796_v45 }
0x1924   : > { %8083 = vmatprep.subr.mxu0 %v5791_v51 }
0x1925   : > { %v5661_v19 = vpop.f32.mrf.mxu1  ;;  %8084 = vmatpush3.msra.mxu0 %v5791_v51 }
0x1926   : > { %8085 = vmatprep.subr.mxu0 %v5786_v10 }
0x1927   : > { %v11645_v42 = vpop.f32.mrf.mxu1  ;;  %8086 = vmatpush3.msra.mxu0 %v5786_v10  ;;  %v12579_v10 = vld [vmem:[#allocation12_spill] sm:$0xff] }
0x1928   : > { %8087 = vmatprep.subr.mxu0 %v5781_v27 }
0x1929   : > { %v5666_v0 = vpop.f32.mrf.mxu1  ;;  %8088 = vmatpush3.msra.mxu0 %v5781_v27  ;;  %v12576_v27 = vld [vmem:[#allocation20_spill] sm:$0xff] }
0x192a   : > { %8089 = vmatprep.subr.mxu0 %v5776_v1 }
0x192b   : > { %v11647_v12 = vpop.f32.mrf.mxu1  ;;  %8090 = vmatpush3.msra.mxu0 %v5776_v1 }
0x192c   : > { %8091 = vmatprep.subr.mxu0 %v5771_v38 }
0x192d   : > { %v5669_v48 = vpop.f32.mrf.mxu1  ;;  %8092 = vmatpush3.msra.mxu0 %v5771_v38  ;;  %v12573_v38 = vld [vmem:[#allocation11_spill] sm:$0xff] }
0x192e   : > { %8093 = vmatprep.subr.mxu0 %v5766_v2 }
0x192f   : > { %v11649_v23 = vpop.f32.mrf.mxu1  ;;  %8094 = vmatpush3.msra.mxu0 %v5766_v2 }
0x1930   : > { %8095 = vmatprep.subr.mxu0 %v5761_v14 }
0x1931   : > { %v5674_v34 = vpop.f32.mrf.mxu1  ;;  %8096 = vmatpush3.msra.mxu0 %v5761_v14 }
0x1932   : > { %8098 = vmatmul.mubr.msk.f32.vlgmr.msra.gmra.mxu0 %vm1070_vm0, %v11307_v43 }
0x1933   : > { %v11653_v53 = vpop.f32.mrf.mxu1  ;;  %8100 = vmatprep.mubr.msk.f32.mxu0 %vm1070_vm0, %v11320_v20 }
0x1935   : > { %v5677_v15 = vpop.f32.mrf.mxu1 }
0x1936   : > { %8101 = vmatmul.mubr.msk.f32.gmra.mxu0 %vm1070_vm0, %v11318_v5 }
0x1937   : > { %v11659_v22 = vpop.f32.mrf.mxu1  ;;  %8103 = vmatprep.mubr.msk.f32.mxu0 %vm1070_vm0, %v11331_v16 }
0x1939   : > { %v5682_v55 = vpop.f32.mrf.mxu1 }
0x193a   : > { %8104 = vmatmul.mubr.msk.f32.gmra.mxu0 %vm1070_vm0, %v11329_v36 }
0x193b   : > { %v11665_v14 = vpop.f32.mrf.mxu1  ;;  %8106 = vmatprep.mubr.msk.f32.mxu0 %vm1070_vm0, %v11342_v7 }
0x193d   : > { %v5685_v2 = vpop.f32.mrf.mxu1 }
0x193e   : > { %8107 = vmatmul.mubr.msk.f32.gmra.mxu0 %vm1070_vm0, %v12572_v62 }
0x193f   : > { %v11671_v25 = vpop.f32.mrf.mxu1  ;;  %8109 = vmatprep.mubr.msk.f32.mxu0 %vm1070_vm0, %v12573_v38 }
0x1941   : > { %v5690_v32 = vpop.f32.mrf.mxu1 }
0x1942   : > { %8110 = vmatmul.mubr.msk.f32.gmra.mxu0 %vm1070_vm0, %v12574_v21 }
0x1943   : > { %v11677_v1 = vpop.f32.mrf.mxu1  ;;  %8112 = vmatprep.mubr.msk.f32.mxu0 %vm1070_vm0, %v12575_v37 }
0x1945   : > { %v5693_v30 = vpop.f32.mrf.mxu1 }
0x1946   : > { %8113 = vmatmul.mubr.msk.f32.gmra.mxu0 %vm1070_vm0, %v12576_v27 }
0x1947   : > { %8115 = vmatprep.mubr.msk.f32.mxu0 %vm1070_vm0, %v12577_v26 }
0x194a   : > { %8116 = vmatmul.mubr.msk.f32.gmra.mxu0 %vm1070_vm0, %v12578_v56 }
0x194b   : > { %8118 = vmatprep.mubr.msk.f32.mxu0 %vm1070_vm0, %v12579_v10 }
0x194e   : > { %8119 = vmatmul.mubr.msk.f32.gmra.mxu0 %vm1070_vm0, %v12580_v40 }
0x19f2   : > { %v8099_v63 = vpop.f32.mrf.mxu0 }
0x19f3   : > { %v5936_v51 = vadd.f32 1e-06, %v8099_v63 }
0x19f4   : > { %v5930_v59 = vpop.f32.mrf.mxu0 }
0x19f5   : > { %8621 = vrcp.f32 %v5936_v51  ;;  %v5931_v11 = vadd.f32 1e-06, %v5930_v59 }
0x19f6   : > { %v8102_v45 = vpop.f32.mrf.mxu0 }
0x19f7   : > { %8623 = vrcp.f32 %v5931_v11  ;;  %v5946_v54 = vadd.f32 1e-06, %v8102_v45  ;;  %v5800_v11 = vmul.f32 %v11629_v46, %v11309_v35  ;;  %v5801_v45 = vmul.f32 %v11631_v24, %v11307_v43 }
0x19f8   : > { %v5940_v19 = vpop.f32.mrf.mxu0  ;;  %v5803_v35 = vmul.f32 %v11635_v28, %v11318_v5  ;;  %v5804_v5 = vmul.f32 %v11637_v61, %v11331_v16  ;;  %v5805_v28 = vmul.f32 %v11639_v52, %v11329_v36  ;;  %v5806_v36 = vmul.f32 %v11641_v29, %v11342_v7 }
0x19f9   : > { %8625 = vrcp.f32 %v5946_v54  ;;  %v5941_v0 = vadd.f32 1e-06, %v5940_v19  ;;  %v5807_v52 = vmul.f32 %v11643_v18, %v12572_v62  ;;  %v5808_v29 = vmul.f32 %v11645_v42, %v12573_v38 }
0x19fa   : > { %v8105_v48 = vpop.f32.mrf.mxu0  ;;  %v5809_v18 = vmul.f32 %v11647_v12, %v12574_v21  ;;  %v5811_v42 = vmul.f32 %v11653_v53, %v12576_v27  ;;  %v5815_v27 = vmul.f32 %v11677_v1, %v12580_v40  ;;  %v383_v40 = vld [vmem:[%s12139_s4 + $0x10] sm:$0xff] }
0x19fb   : > { %8627 = vrcp.f32 %v5941_v0  ;;  %v5956_v34 = vadd.f32 1e-06, %v8105_v48 }
0x19fc   : > { %v5950_v15 = vpop.f32.mrf.mxu0 }
0x19fd   : > { %8629 = vrcp.f32 %v5956_v34  ;;  %v5951_v55 = vadd.f32 1e-06, %v5950_v15 }
0x19fe   : > { %v8108_v2 = vpop.f32.mrf.mxu0 }
0x19ff   : > { %8631 = vrcp.f32 %v5951_v55  ;;  %v5966_v32 = vadd.f32 1e-06, %v8108_v2  ;;  %v5802_v2 = vmul.f32 %v11633_v60, %v11320_v20 }
0x1a00   : > { %v5960_v30 = vpop.f32.mrf.mxu0 }
0x1a01   : > { %8633 = vrcp.f32 %v5966_v32  ;;  %v5961_v63 = vadd.f32 1e-06, %v5960_v30 }
0x1a02   : > { %v8622_v51 = vpop.eup %8621  ;;  %v8111_v59 = vpop.f32.mrf.mxu0 }
0x1a03   : > { %8635 = vrcp.f32 %v5961_v63  ;;  %v5976_v54 = vadd.f32 1e-06, %v8111_v59  ;;  %v11695_v48 = vmul.f32 %v8622_v51, %v5801_v45 }
0x1a04   : > { %v8624_v19 = vpop.eup %8623  ;;  %v5970_v0 = vpop.f32.mrf.mxu0 }
0x1a05   : > { %8637 = vrcp.f32 %v5976_v54  ;;  %v5971_v34 = vadd.f32 1e-06, %v5970_v0  ;;  %v11697_v15 = vmul.f32 %v8624_v19, %v5800_v11 }
0x1a06   : > { %v8626_v55 = vpop.eup %8625  ;;  %v8114_v32 = vpop.f32.mrf.mxu0 }
0x1a07   : > { %8639 = vrcp.f32 %v5971_v34  ;;  %v5986_v43 = vadd.f32 1e-06, %v8114_v32  ;;  %6138 = vxpose.xlu0.b32.start [1/16] (narrow) %v11697_v15, 64  ;;  %v6041_v46 = vpack.c.bf16 %v11695_v48, %v11697_v15  ;;  %v11706_v63 = vmul.f32 %v8626_v55, %v5803_v35 }
0x1a08   : > { %v8628_v24 = vpop.eup %8627  ;;  %v5980_v30 = vpop.f32.mrf.mxu0 }
0x1a09   : > { %v11708_v51 = vmul.f32 %v8628_v24, %v5802_v2  ;;  %8641 = vrcp.f32 %v5986_v43  ;;  %v5981_v59 = vadd.f32 1e-06, %v5980_v30  ;;  %6049 = vxpose.xlu1.c.b16.start [1/8] (narrow) %v6041_v46, 64 }
0x1a0a   : > { %v8630_v20 = vpop.eup %8629  ;;  %v8117_v60 = vpop.f32.mrf.mxu0 }
0x1a0b   : > { %8643 = vrcp.f32 %v5981_v59  ;;  %v5996_v11 = vadd.f32 1e-06, %v8117_v60  ;;  %6139 = vxpose.xlu0.b32.cont [2/16] (narrow) %v11695_v48, 64  ;;  %v6042_v45 = vpack.c.bf16 %v11706_v63, %v11708_v51  ;;  %v11717_v0 = vmul.f32 %v8630_v20, %v5805_v28 }
0x1a0c   : > { %v8632_v54 = vpop.eup %8631  ;;  %v5990_v19 = vpop.f32.mrf.mxu0  ;;  %v5810_v28 = vmul.f32 %v11649_v23, %v12575_v37  ;;  %v5813_v23 = vmul.f32 %v11665_v14, %v12578_v56 }
0x1a0d   : > { %v11719_v34 = vmul.f32 %v8632_v54, %v5804_v5  ;;  %8645 = vrcp.f32 %v5996_v11  ;;  %v5991_v55 = vadd.f32 1e-06, %v5990_v19  ;;  %6050 = vxpose.xlu1.c.b16.cont [2/8] (narrow) %v6042_v45, 64  ;;  %v5812_v54 = vmul.f32 %v11659_v22, %v12577_v26 }
0x1a0e   : > { %v8634_v16 = vpop.eup %8633  ;;  %v8120_v61 = vpop.f32.mrf.mxu0  ;;  %v5814_v22 = vmul.f32 %v11671_v25, %v12579_v10  ;;  %v382_v10 = vld [vmem:[%s12139_s4 + $0x8] sm:$0xff] }
0x1a0f   : > { %8647 = vrcp.f32 %v5991_v55  ;;  %v6006_v2 = vadd.f32 1e-06, %v8120_v61  ;;  %6140 = vxpose.xlu0.b32.cont [3/16] (narrow) %v11708_v51, 64  ;;  %v6043_v32 = vpack.c.bf16 %v11717_v0, %v11719_v34  ;;  %v11728_v46 = vmul.f32 %v8634_v16, %v5807_v52  ;;  %v385_v61 = vld [vmem:[%s12139_s4 + $0x20] sm:$0xff]  ;;  %v386_v52 = vld [vmem:[%s12139_s4 + $0x28] sm:$0xff] }
0x1a10   : > { %v8636_v35 = vpop.eup %8635  ;;  %v6000_v43 = vpop.f32.mrf.mxu0 }
0x1a11   : > { %12581 = vst [vmem:[#allocation35_spill] sm:$0xff] %v11728_v46  ;;  %v11730_v24 = vmul.f32 %v8636_v35, %v5806_v36  ;;  %8649 = vrcp.f32 %v6006_v2  ;;  %v6001_v30 = vadd.f32 1e-06, %v6000_v43  ;;  %6051 = vxpose.xlu1.c.b16.cont [3/8] (narrow) %v6043_v32, 64  ;;  %v384_v36 = vld [vmem:[%s12139_s4 + $0x18] sm:$0xff]  ;;  %v387_v2 = vld [vmem:[%s12139_s4 + $0x30] sm:$0xff] }
0x1a12   : > { %v8638_v7 = vpop.eup %8637  ;;  %v388_v32 = vld [vmem:[%s12139_s4 + $0x38] sm:$0xff]  ;;  %v389_v35 = vld [vmem:[%s12139_s4 + $0x40] sm:$0xff]  ;;  %v390_v43 = vld [vmem:[%s12139_s4 + $0x48] sm:$0xff] }
0x1a13   : > { %12582 = vst [vmem:[#allocation22_spill] sm:$0xff] %v11730_v24  ;;  %8651 = vrcp.f32 %v6001_v30  ;;  %6141 = vxpose.xlu0.b32.cont [4/16] (narrow) %v11706_v63, 64  ;;  %v6044_v62 = vpack.c.bf16 %v11728_v46, %v11730_v24  ;;  %v11739_v20 = vmul.f32 %v8638_v7, %v5809_v18  ;;  %v392_v30 = vld [vmem:[%s12139_s4 + $0x58] sm:$0xff]  ;;  %v394_v7 = vld [vmem:[%s12139_s4 + $0x68] sm:$0xff]  ;;  %v381_v18 = vld [vmem:[%s12139_s4] sm:$0xff] }
0x1a14   : > { %v8640_v59 = vpop.eup %8639 }
0x1a15   : > { %12583 = vst [vmem:[#allocation19_spill] sm:$0xff] %v11739_v20  ;;  %v11741_v5 = vmul.f32 %v8640_v59, %v5808_v29  ;;  %6052 = vxpose.xlu1.c.b16.cont [4/8] (narrow) %v6044_v62, 64  ;;  %v396_v29 = vld [vmem:[%s12139_s4 + $0x78] sm:$0xff]  ;;  %v391_v59 = vld [vmem:[%s12139_s4 + $0x50] sm:$0xff] }
0x1a16   : > { %v8642_v60 = vpop.eup %8641 }
0x1a17   : > { %12584 = vst [vmem:[#allocation34_spill] sm:$0xff] %v11741_v5  ;;  %6142 = vxpose.xlu0.b32.cont [5/16] (narrow) %v11719_v34, 64  ;;  %v6045_v12 = vpack.c.bf16 %v11739_v20, %v11741_v5  ;;  %v11750_v21 = vmul.f32 %v8642_v60, %v5811_v42  ;;  %v395_v42 = vld [vmem:[%s12139_s4 + $0x70] sm:$0xff] }
0x1a18   : > { %v8644_v38 = vpop.eup %8643 }
0x1a19   : > { %12585 = vst [vmem:[#allocation23_spill] sm:$0xff] %v11750_v21  ;;  %v11752_v11 = vmul.f32 %v8644_v38, %v5810_v28  ;;  %6053 = vxpose.xlu1.c.b16.cont [5/8] (narrow) %v6045_v12, 64  ;;  %v393_v28 = vld [vmem:[%s12139_s4 + $0x60] sm:$0xff] }
0x1a1a   : > { %v8646_v45 = vpop.eup %8645 }
0x1a1b   : > { %12586 = vst [vmem:[#allocation24_spill] sm:$0xff] %v11752_v11  ;;  %6143 = vxpose.xlu0.b32.cont [6/16] (narrow) %v11717_v0, 64  ;;  %v6046_v53 = vpack.c.bf16 %v11750_v21, %v11752_v11  ;;  %v11763_v19 = vmul.f32 %v8646_v45, %v5813_v23 }
0x1a1c   : > { %v8648_v37 = vpop.eup %8647 }
0x1a1d   : > { %12587 = vst [vmem:[#allocation25_spill] sm:$0xff] %v11763_v19  ;;  %v11765_v55 = vmul.f32 %v8648_v37, %v5812_v54  ;;  %6054 = vxpose.xlu1.c.b16.cont [6/8] (narrow) %v6046_v53, 64  ;;  %v12591_v54 = vmov 0.0  }
0x1a1e   : > { %v8650_v16 = vpop.eup %8649 }
0x1a1f   : > { %12588 = vst [vmem:[#allocation26_spill] sm:$0xff] %v11765_v55  ;;  %6144 = vxpose.xlu0.b32.cont [7/16] (narrow) %v11730_v24, 64  ;;  %v6047_v14 = vpack.c.bf16 %v11763_v19, %v11765_v55  ;;  %v11772_v26 = vmul.f32 %v8650_v16, %v5815_v27 }
0x1a20   : > { %v8652_v56 = vpop.eup %8651 }
0x1a21   : > { %12589 = vst [vmem:[#allocation21_spill] sm:$0xff] %v11772_v26  ;;  %6055 = vxpose.xlu1.c.b16.cont [7/8] (narrow) %v6047_v14, 64  ;;  %8121 = vmatprep.subr.mxu0 %v11772_v26  ;;  %v11775_v1 = vmul.f32 %v8652_v56, %v5814_v22 }
0x1a22   : > { %8122 = vmatpush3.msra.mxu0 %v11772_v26 }
0x1a23   : > { %12590 = vst [vmem:[#allocation32_spill] sm:$0xff] %v11775_v1  ;;  %6145 = vxpose.xlu0.b32.cont [8/16] (narrow) %v11728_v46, 64  ;;  %8123 = vmatprep.subr.mxu0 %v11775_v1  ;;  %v6048_v25 = vpack.c.bf16 %v11772_v26, %v11775_v1 }
0x1a24   : > { %8124 = vmatpush3.msra.mxu0 %v11775_v1 }
0x1a25   : > { %8125 = vmatprep.subr.mxu0 %v11763_v19  ;;  %6056 = vxpose.xlu1.c.b16.end [8/8] (narrow) %v6048_v25, 64 }
0x1a26   : > { %8126 = vmatpush3.msra.mxu0 %v11763_v19 }
0x1a27   : > { %6146 = vxpose.xlu0.b32.cont [9/16] (narrow) %v11741_v5, 64  ;;  %8127 = vmatprep.subr.mxu0 %v11765_v55 }
0x1a28   : > { %8128 = vmatpush3.msra.mxu0 %v11765_v55 }
0x1a29   : > { %8129 = vmatprep.subr.mxu0 %v11750_v21  ;;  %6676 = vperm.xlu1 %8232, %v382_v10  }
0x1a2a   : > { %8130 = vmatpush3.msra.mxu0 %v11750_v21 }
0x1a2b   : > { %6147 = vxpose.xlu0.b32.cont [10/16] (narrow) %v11739_v20, 64  ;;  %8131 = vmatprep.subr.mxu0 %v11752_v11 }
0x1a2c   : > { %8132 = vmatpush3.msra.mxu0 %v11752_v11 }
0x1a2d   : > { %8133 = vmatprep.subr.mxu0 %v11739_v20  ;;  %6681 = vperm.xlu1 %8232, %v383_v40  }
0x1a2e   : > { %8134 = vmatpush3.msra.mxu0 %v11739_v20 }
0x1a2f   : > { %6148 = vxpose.xlu0.b32.cont [11/16] (narrow) %v11752_v11, 64  ;;  %8135 = vmatprep.subr.mxu0 %v11741_v5 }
0x1a30   : > { %8136 = vmatpush3.msra.mxu0 %v11741_v5 }
0x1a31   : > { %8137 = vmatprep.subr.mxu0 %v11728_v46  ;;  %6686 = vperm.xlu1 %8232, %v384_v36  }
0x1a32   : > { %8138 = vmatpush3.msra.mxu0 %v11728_v46 }
0x1a33   : > { %6149 = vxpose.xlu0.b32.cont [12/16] (narrow) %v11750_v21, 64  ;;  %8139 = vmatprep.subr.mxu0 %v11730_v24 }
0x1a34   : > { %8140 = vmatpush3.msra.mxu0 %v11730_v24 }
0x1a35   : > { %8141 = vmatprep.subr.mxu0 %v11717_v0  ;;  %6691 = vperm.xlu1 %8232, %v385_v61  }
0x1a36   : > { %8142 = vmatpush3.msra.mxu0 %v11717_v0 }
0x1a37   : > { %6150 = vxpose.xlu0.b32.cont [13/16] (narrow) %v11765_v55, 64  ;;  %8143 = vmatprep.subr.mxu0 %v11719_v34 }
0x1a38   : > { %8144 = vmatpush3.msra.mxu0 %v11719_v34 }
0x1a39   : > { %8145 = vmatprep.subr.mxu0 %v11706_v63  ;;  %6696 = vperm.xlu1 %8232, %v386_v52  }
0x1a3a   : > { %8146 = vmatpush3.msra.mxu0 %v11706_v63 }
0x1a3b   : > { %6151 = vxpose.xlu0.b32.cont [14/16] (narrow) %v11763_v19, 64  ;;  %8147 = vmatprep.subr.mxu0 %v11708_v51 }
0x1a3c   : > { %8148 = vmatpush3.msra.mxu0 %v11708_v51 }
0x1a3d   : > { %8149 = vmatprep.subr.mxu0 %v11695_v48  ;;  %6701 = vperm.xlu1 %8232, %v387_v2  }
0x1a3e   : > { %8150 = vmatpush3.msra.mxu0 %v11695_v48 }
0x1a3f   : > { %6152 = vxpose.xlu0.b32.cont [15/16] (narrow) %v11775_v1, 64  ;;  %8151 = vmatprep.subr.mxu0 %v11697_v15 }
0x1a40   : > { %8152 = vmatpush3.msra.mxu0 %v11697_v15 }
0x1a41   : > { %6331 = vmatprep.subr.mxu0 %v11504_v49  ;;  %6706 = vperm.xlu1 %8232, %v388_v32  }
0x1a43   : > { %6153 = vxpose.xlu0.b32.end [16/16] (narrow) %v11772_v26, 64 }
0x1a45   : > { %6711 = vperm.xlu1 %8232, %v389_v35  }
0x1a49   : > { %6716 = vperm.xlu1 %8232, %v390_v43  }
0x1a4d   : > { %6726 = vperm.xlu1 %8232, %v392_v30  }
0x1a51   : > { %6736 = vperm.xlu1 %8232, %v394_v7  }
0x1a55   : > { %6746 = vperm.xlu1 %8232, %v396_v29  }
0x1a6b   : > { %v6057_v62 = vpop.trf.xlu1 }
0x1a6c   : > { %6671 = vperm.xlu0 %8231, %v381_v18   ;;  %6098 = vmatmul.mubr.bf16.vlgmr.msra.gmra.mxu1 %v6057_v62 }
0x1a6d   : > { %6107 = vmatprep.mubr.bf16.mxu1 %v12413_v41 }
0x1a6f   : > { %v6058_v60 = vpop.trf.xlu1 }
0x1a70   : > { %6721 = vperm.xlu0 %8231, %v391_v59  }
0x1a73   : > { %v6059_v12 = vpop.trf.xlu1 }
0x1a74   : > { %6731 = vperm.xlu0 %8231, %v393_v28   ;;  %6108 = vmatmul.mubr.bf16.gmra.mxu1 %v6058_v60 }
0x1a75   : > { %6117 = vmatprep.mubr.bf16.mxu1 %v12413_v41 }
0x1a77   : > { %v6060_v38 = vpop.trf.xlu1 }
0x1a78   : > { %6741 = vperm.xlu0 %8231, %v395_v42  }
0x1a7c   : > { %6118 = vmatmul.mubr.bf16.gmra.mxu1 %v6059_v12 }
0x1a7d   : > { %6127 = vmatprep.mubr.bf16.mxu1 %v12413_v41 }
0x1a83   : > { %v6154_v45 = vpop.trf.xlu0 }
0x1a84   : > { %6128 = vmatmul.mubr.bf16.gmra.mxu1 %v6060_v38  ;;  %8153 = vmatprep.mubr.f32.mxu0 %v6154_v45 }
0x1a85   : > { %6572 = vmatprep.mubr.f32.mxu1 %v12591_v54 }
0x1a87   : > { %v6155_v23 = vpop.trf.xlu0 }
0x1a88   : > { %8154 = vmatmul.mubr.f32.vlgmr.msra.gmra.mxu0 %v6155_v23 }
0x1a89   : > { %6332 = vmatpush1.msra.mxu0 %v11498_v58 }
0x1a8a   : > { %6333 = vmatprep.subr.mxu0 %v11502_v57 }
0x1a8b   : > { %6334 = vmatpush1.msra.mxu0 %v11506_v31  ;;  %v6156_v53 = vpop.trf.xlu0 }
0x1a8c   : > { %6335 = vmatprep.subr.mxu0 %v11500_v4  ;;  %8156 = vmatprep.mubr.f32.mxu0 %v6156_v53 }
0x1a8d   : > { %6336 = vmatpush1.msra.mxu0 %v11528_v33 }
0x1a8e   : > { %6337 = vmatprep.subr.mxu0 %v11508_v17 }
0x1a8f   : > { %6338 = vmatpush1.msra.mxu0 %v11535_v9  ;;  %v6157_v41 = vpop.trf.xlu0 }
0x1a90   : > { %6339 = vmatprep.subr.mxu0 %v11532_v6  ;;  %8157 = vmatmul.mubr.f32.gmra.mxu0 %v6157_v41 }
0x1a91   : > { %6340 = vmatpush1.msra.mxu0 %v11552_v39 }
0x1a92   : > { %6341 = vmatprep.subr.mxu0 %v11537_v47 }
0x1a93   : > { %6342 = vmatpush1.msra.mxu0 %v11557_v50  ;;  %v6158_v37 = vpop.trf.xlu0 }
0x1a94   : > { %6343 = vmatprep.subr.mxu0 %v11554_v8  ;;  %8159 = vmatprep.mubr.f32.mxu0 %v6158_v37 }
0x1a95   : > { %6344 = vmatpush1.msra.mxu0 %v11570_v44 }
0x1a96   : > { %6345 = vmatprep.subr.mxu0 %v11489_v13 }
0x1a97   : > { %6346 = vmatpush1.msra.mxu0 %v11573_v3  ;;  %v6159_v27 = vpop.trf.xlu0 }
0x1a98   : > { %8160 = vmatmul.mubr.f32.gmra.mxu0 %v6159_v27 }
0x1a9b   : > { %v6160_v16 = vpop.trf.xlu0 }
0x1a9c   : > { %8162 = vmatprep.mubr.f32.mxu0 %v6160_v16 }
0x1a9f   : > { %v6161_v22 = vpop.trf.xlu0 }
0x1aa0   : > { %8163 = vmatmul.mubr.f32.gmra.mxu0 %v6161_v22 }
0x1aa1   : > { %6379 = vmatprep.mubr.f32.mxu0 %v12591_v54 }
0x1b2c   : > { %v11904_v2 = vpop.f32.mrf.mxu1 }
0x1b2e   : > { %v11906_v32 = vpop.f32.mrf.mxu1 }
0x1b30   : > { %v11908_v35 = vpop.f32.mrf.mxu1 }
0x1b32   : > { %v11910_v43 = vpop.f32.mrf.mxu1 }
0x1b34   : > { %v11912_v30 = vpop.f32.mrf.mxu1 }
0x1b36   : > { %v11914_v29 = vpop.f32.mrf.mxu1 }
0x1b38   : > { %v11916_v59 = vpop.f32.mrf.mxu1 }
0x1b3a   : > { %v11918_v42 = vpop.f32.mrf.mxu1 }
0x1b3c   : > { %v11920_v45 = vpop.f32.mrf.mxu1 }
0x1b3e   : > { %v11922_v41 = vpop.f32.mrf.mxu1 }
0x1b40   : > { %v6123_v16 = vpop.f32.mrf.mxu1 }
0x1b48   : > { %v8155_v14 = vpop.f32.mrf.mxu0 }
0x1b4a   : > { %v6236_v56 = vpop.f32.mrf.mxu0 }
0x1b4b   : > { %7273 = vmatmul.mubr.msk.f32.vlgmr.msra.gmra.mxu0 %vm1070_vm0, %v6236_v56  ;;  %v6125_v56 = vpop.f32.mrf.mxu1 }
0x1b4c   : > { %6385 = vmatprep.mubr.f32.mxu0 %v12591_v54 }
0x1b4f   : > { %7274 = vmatmul.mubr.msk.f32.gmra.mxu0 %vm1070_vm0, %v8155_v14 }
0x1b50   : > { %v8158_v25 = vpop.f32.mrf.mxu0  ;;  %6391 = vmatprep.mubr.f32.mxu0 %v12591_v54 }
0x1b52   : > { %v6246_v10 = vpop.f32.mrf.mxu0 }
0x1b53   : > { %7275 = vmatmul.mubr.msk.f32.gmra.mxu0 %vm1070_vm0, %v6246_v10 }
0x1b54   : > { %6397 = vmatprep.mubr.f32.mxu0 %v12591_v54 }
0x1b57   : > { %7276 = vmatmul.mubr.msk.f32.gmra.mxu0 %vm1070_vm0, %v8158_v25 }
0x1b58   : > { %v8161_v40 = vpop.f32.mrf.mxu0  ;;  %6403 = vmatprep.mubr.f32.mxu0 %v12591_v54 }
0x1b5a   : > { %v6256_v36 = vpop.f32.mrf.mxu0 }
0x1b5b   : > { %7277 = vmatmul.mubr.msk.f32.gmra.mxu0 %vm1070_vm0, %v6256_v36 }
0x1b5c   : > { %6409 = vmatprep.mubr.f32.mxu0 %v12591_v54 }
0x1b5f   : > { %7278 = vmatmul.mubr.msk.f32.gmra.mxu0 %vm1070_vm0, %v8161_v40 }
0x1b60   : > { %v8164_v61 = vpop.f32.mrf.mxu0  ;;  %6415 = vmatprep.mubr.f32.mxu0 %v12591_v54 }
0x1b62   : > { %v6266_v52 = vpop.f32.mrf.mxu0 }
0x1b63   : > { %7279 = vmatmul.mubr.msk.f32.gmra.mxu0 %vm1070_vm0, %v6266_v52 }
0x1b64   : > { %6421 = vmatprep.mubr.f32.mxu0 %v12591_v54 }
0x1b67   : > { %7280 = vmatmul.mubr.msk.f32.gmra.mxu0 %vm1070_vm0, %v8164_v61  ;;  %v6129_v61 = vpop.f32.mrf.mxu1 }
0x1b68   : > { %6813 = vmatprep.mubr.f32.mxu0 %v12591_v54 }
0x1b69   : > { %v6131_v11 = vpop.f32.mrf.mxu1 }
0x1c0b   : > { %v6381_v7 = vpop.f32.mrf.mxu0 }
0x1c0d   : > { %v6383_v18 = vpop.f32.mrf.mxu0 }
0x1c0f   : > { %v6387_v62 = vpop.f32.mrf.mxu0 }
0x1c11   : > { %v6389_v60 = vpop.f32.mrf.mxu0 }
0x1c13   : > { %v6393_v28 = vpop.f32.mrf.mxu0 }
0x1c14   : > { %v6394_v24 = vadd.f32 1e-06, %v6393_v28 }
0x1c15   : > { %v6395_v12 = vpop.f32.mrf.mxu0 }
0x1c17   : > { %v6399_v38 = vpop.f32.mrf.mxu0 }
0x1c18   : > { %v6400_v46 = vadd.f32 1e-06, %v6399_v38 }
0x1c19   : > { %v6401_v23 = vpop.f32.mrf.mxu0 }
0x1c1a   : > { %v6402_v5 = vadd.f32 1e-06, %v6401_v23 }
0x1c1b   : > { %v6405_v53 = vpop.f32.mrf.mxu0 }
0x1c1c   : > { %v6406_v20 = vadd.f32 1e-06, %v6405_v53 }
0x1c1d   : > { %v6407_v37 = vpop.f32.mrf.mxu0 }
0x1c1e   : > { %v6408_v21 = vadd.f32 1e-06, %v6407_v37 }
0x1c1f   : > { %v6411_v27 = vpop.f32.mrf.mxu0 }
0x1c20   : > { %v6412_v55 = vadd.f32 1e-06, %v6411_v27  ;;  %v6284_v27 = vmul.f32 %v11922_v41, %v11508_v17 }
0x1c21   : > { %v6413_v22 = vpop.f32.mrf.mxu0 }
0x1c22   : > { %v6414_v1 = vadd.f32 1e-06, %v6413_v22  ;;  %v6388_v22 = vadd.f32 1e-06, %v6387_v62  ;;  %v6287_v62 = vmul.f32 %v6129_v61, %v11506_v31  ;;  %v6283_v31 = vmul.f32 %v11920_v45, %v11535_v9 }
0x1c23   : > { %v6417_v14 = vpop.f32.mrf.mxu0  ;;  %v6280_v61 = vmul.f32 %v11914_v29, %v11537_v47 }
0x1c24   : > { %v6418_v52 = vadd.f32 1e-06, %v6417_v14  ;;  %v6390_v14 = vadd.f32 1e-06, %v6389_v60  ;;  %v6286_v60 = vmul.f32 %v6125_v56, %v11500_v4  ;;  %v6282_v56 = vmul.f32 %v11918_v42, %v11532_v6 }
0x1c25   : > { %v6419_v25 = vpop.f32.mrf.mxu0 }
0x1c26   : > { %v6420_v10 = vadd.f32 1e-06, %v6419_v25  ;;  %v6396_v25 = vadd.f32 1e-06, %v6395_v12 }
0x1c27   : > { %v6423_v40 = vpop.f32.mrf.mxu0 }
0x1c28   : > { %v6424_v36 = vadd.f32 1e-06, %v6423_v40  ;;  %8653 = vrcp.f32 %v6420_v10  ;;  %v6133_v40 = vpop.f32.mrf.mxu1 }
0x1c29   : > { %v6425_v26 = vpop.f32.mrf.mxu0  ;;  %v6289_v28 = vmul.f32 %v6133_v40, %v11498_v58  ;;  %v6277_v40 = vmul.f32 %v11908_v35, %v11570_v44  ;;  %v12593_v44 = vld [vmem:[#allocation35_spill] sm:$0xff] }
0x1c2a   : > { %v6426_v19 = vadd.f32 1e-06, %v6425_v26  ;;  %8655 = vrcp.f32 %v6424_v36  ;;  %v6384_v26 = vadd.f32 1e-06, %v6383_v18  ;;  %v6135_v37 = vpop.f32.mrf.mxu1  ;;  %v6281_v36 = vmul.f32 %v11916_v59, %v11552_v39 }
0x1c2c   : > { %8657 = vrcp.f32 %v6426_v19  ;;  %v6382_v19 = vadd.f32 1e-06, %v6381_v7 }
0x1c2d   : > { %8659 = vrcp.f32 %v6418_v52  ;;  %v6279_v52 = vmul.f32 %v11912_v30, %v11557_v50  ;;  %v6275_v30 = vmul.f32 %v11904_v2, %v11573_v3  ;;  %v12594_v3 = vld [vmem:[#allocation34_spill] sm:$0xff]  ;;  %v12601_v2 = vld [vmem:[#allocation21_spill] sm:$0xff] }
0x1c2e   : > { %8661 = vrcp.f32 %v6414_v1 }
0x1c2f   : > { %8663 = vrcp.f32 %v6412_v55  ;;  %v6290_v55 = vmul.f32 %v6135_v37, %v11504_v49  ;;  %v6285_v49 = vmul.f32 %v6123_v16, %v11528_v33 }
0x1c30   : > { %8665 = vrcp.f32 %v6408_v21 }
0x1c31   : > { %8667 = vrcp.f32 %v6406_v20 }
0x1c32   : > { %8669 = vrcp.f32 %v6402_v5  ;;  %v6288_v5 = vmul.f32 %v6131_v11, %v11502_v57 }
0x1c33   : > { %8671 = vrcp.f32 %v6400_v46 }
0x1c34   : > { %8673 = vrcp.f32 %v6396_v25  ;;  %v6278_v25 = vmul.f32 %v11910_v43, %v11554_v8 }
0x1c35   : > { %8675 = vrcp.f32 %v6394_v24  ;;  %v8654_v53 = vpop.eup %8653 }
0x1c36   : > { %8677 = vrcp.f32 %v6390_v14  ;;  %v6455_v12 = vmul.f32 %v8654_v53, %v6288_v5  ;;  %v6276_v14 = vmul.f32 %v11906_v32, %v11489_v13  ;;  %v12592_v13 = vld [vmem:[#allocation22_spill] sm:$0xff] }
0x1c37   : > { %8679 = vrcp.f32 %v6388_v22  ;;  %v8656_v1 = vpop.eup %8655 }
0x1c38   : > { %8681 = vrcp.f32 %v6384_v26  ;;  %v6457_v7 = vmul.f32 %v8656_v1, %v6289_v28 }
0x1c39   : > { %v8658_v21 = vpop.eup %8657  ;;  %8683 = vrcp.f32 %v6382_v19 }
0x1c3a   : > { %v8660_v20 = vpop.eup %8659  ;;  %v6459_v46 = vmul.f32 %v8658_v21, %v6290_v55 }
0x1c3b   : > { %v8662_v18 = vpop.eup %8661  ;;  %v6453_v23 = vmul.f32 %v8660_v20, %v6287_v62 }
0x1c3c   : > { %v8664_v24 = vpop.eup %8663  ;;  %6524 = vmatprep.subr.mxu1 %v6459_v46  ;;  %v6451_v57 = vmul.f32 %v8662_v18, %v6286_v60 }
0x1c3d   : > { %v8666_v38 = vpop.eup %8665  ;;  %6525 = vmatpush1.msra.mxu1 %v6457_v7  ;;  %v6449_v10 = vmul.f32 %v8664_v24, %v6285_v49 }
0x1c3e   : > { %v8668_v58 = vpop.eup %8667  ;;  %6526 = vmatprep.subr.mxu1 %v6455_v12  ;;  %v6447_v33 = vmul.f32 %v8666_v38, %v6284_v27 }
0x1c3f   : > { %v8670_v11 = vpop.eup %8669  ;;  %6527 = vmatpush1.msra.mxu1 %v6453_v23  ;;  %v6445_v17 = vmul.f32 %v8668_v58, %v6283_v31 }
0x1c40   : > { %v8672_v4 = vpop.eup %8671  ;;  %6528 = vmatprep.subr.mxu1 %v6451_v57  ;;  %v6443_v9 = vmul.f32 %v8670_v11, %v6282_v56 }
0x1c41   : > { %v8674_v16 = vpop.eup %8673  ;;  %6529 = vmatpush1.msra.mxu1 %v6449_v10  ;;  %v6441_v6 = vmul.f32 %v8672_v4, %v6281_v36  ;;  %v349_v36 = vld [vmem:[#allocation5] sm:$0xff] }
0x1c42   : > { %v8676_v41 = vpop.eup %8675  ;;  %6530 = vmatprep.subr.mxu1 %v6447_v33  ;;  %v6439_v39 = vmul.f32 %v8674_v16, %v6280_v61  ;;  %v352_v61 = vld [vmem:[#allocation5 + $0x18] sm:$0xff] }
0x1c43   : > { %v8678_v45 = vpop.eup %8677  ;;  %6531 = vmatpush1.msra.mxu1 %v6445_v17  ;;  %v6437_v47 = vmul.f32 %v8676_v41, %v6279_v52  ;;  %v350_v17 = vld [vmem:[#allocation5 + $0x8] sm:$0xff]  ;;  %v351_v41 = vld [vmem:[#allocation5 + $0x10] sm:$0xff] }
0x1c44   : > { %v8680_v42 = vpop.eup %8679  ;;  %6532 = vmatprep.subr.mxu1 %v6443_v9  ;;  %v6435_v50 = vmul.f32 %v8678_v45, %v6278_v25  ;;  %v353_v9 = vld [vmem:[#allocation5 + $0x20] sm:$0xff]  ;;  %v354_v45 = vld [vmem:[#allocation5 + $0x28] sm:$0xff]  ;;  %v355_v52 = vld [vmem:[#allocation5 + $0x30] sm:$0xff] }
0x1c45   : > { %v8682_v59 = vpop.eup %8681  ;;  %6533 = vmatpush1.msra.mxu1 %v6441_v6  ;;  %v6433_v22 = vmul.f32 %v8680_v42, %v6277_v40  ;;  %v356_v6 = vld [vmem:[#allocation5 + $0x38] sm:$0xff]  ;;  %v357_v42 = vld [vmem:[#allocation5 + $0x40] sm:$0xff]  ;;  %v358_v25 = vld [vmem:[#allocation5 + $0x48] sm:$0xff] }
0x1c46   : > { %v8684_v29 = vpop.eup %8683  ;;  %6534 = vmatprep.subr.mxu1 %v6439_v39  ;;  %v6431_v8 = vmul.f32 %v8682_v59, %v6276_v14  ;;  %v359_v39 = vld [vmem:[#allocation5 + $0x50] sm:$0xff]  ;;  %v360_v59 = vld [vmem:[#allocation5 + $0x58] sm:$0xff]  ;;  %v361_v40 = vld [vmem:[#allocation5 + $0x60] sm:$0xff] }
0x1c47   : > { %6535 = vmatpush1.msra.mxu1 %v6437_v47  ;;  %v6429_v43 = vmul.f32 %v8684_v29, %v6275_v30  ;;  %v362_v47 = vld [vmem:[#allocation5 + $0x68] sm:$0xff]  ;;  %v363_v29 = vld [vmem:[#allocation5 + $0x70] sm:$0xff]  ;;  %v364_v14 = vld [vmem:[#allocation5 + $0x78] sm:$0xff] }
0x1c48   : > { %6536 = vmatprep.subr.mxu1 %v6435_v50  ;;  %v6677_v50 = vpop.permute.xlu1 %6676 }
0x1c49   : > { %6537 = vmatpush1.msra.mxu1 %v6433_v22 }
0x1c4a   : > { %6538 = vmatprep.subr.mxu1 %v6431_v8  ;;  %v6672_v8 = vpop.permute.xlu0 %6671 }
0x1c4b   : > { %6539 = vmatpush1.msra.mxu1 %v6429_v43 }
0x1c4c   : > { %7281 = vmatmul.mubr.msk.f32.vlgmr.msra.gmra.mxu1 %vm1070_vm0, %v11697_v15  ;;  %v12596_v15 = vld [vmem:[#allocation24_spill] sm:$0xff]  ;;  %v6682_v30 = vpop.permute.xlu1 %6681 }
0x1c4d   : > { %6578 = vmatprep.mubr.f32.mxu1 %v12591_v54 }
0x1c50   : > { %7282 = vmatmul.mubr.msk.f32.gmra.mxu1 %vm1070_vm0, %v11695_v48  ;;  %v12595_v48 = vld [vmem:[#allocation19_spill] sm:$0xff]  ;;  %v6687_v22 = vpop.permute.xlu1 %6686 }
0x1c51   : > { %6584 = vmatprep.mubr.f32.mxu1 %v12591_v54 }
0x1c54   : > { %7283 = vmatmul.mubr.msk.f32.gmra.mxu1 %vm1070_vm0, %v11708_v51  ;;  %v12598_v51 = vld [vmem:[#allocation26_spill] sm:$0xff] }
0x1c55   : > { %6590 = vmatprep.mubr.f32.mxu1 %v12591_v54 }
0x1c58   : > { %7284 = vmatmul.mubr.msk.f32.gmra.mxu1 %vm1070_vm0, %v11706_v63  ;;  %v12597_v63 = vld [vmem:[#allocation23_spill] sm:$0xff] }
0x1c59   : > { %6596 = vmatprep.mubr.f32.mxu1 %v12591_v54 }
0x1c5c   : > { %7285 = vmatmul.mubr.msk.f32.gmra.mxu1 %vm1070_vm0, %v11719_v34  ;;  %v12600_v34 = vld [vmem:[#allocation32_spill] sm:$0xff] }
0x1c5d   : > { %6602 = vmatprep.mubr.f32.mxu1 %v12591_v54 }
0x1c60   : > { %7286 = vmatmul.mubr.msk.f32.gmra.mxu1 %vm1070_vm0, %v11717_v0  ;;  %v12599_v0 = vld [vmem:[#allocation25_spill] sm:$0xff] }
0x1c61   : > { %6608 = vmatprep.mubr.f32.mxu1 %v12591_v54 }
0x1c64   : > { %7287 = vmatmul.mubr.msk.f32.gmra.mxu1 %vm1070_vm0, %v12592_v13 }
0x1c65   : > { %6614 = vmatprep.mubr.f32.mxu1 %v12591_v54 }
0x1c68   : > { %7288 = vmatmul.mubr.msk.f32.gmra.mxu1 %vm1070_vm0, %v12593_v44 }
0x1c69   : > { %6620 = vmatprep.mubr.f32.mxu1 %v12591_v54 }
0x1c6c   : > { %7289 = vmatmul.mubr.msk.f32.gmra.mxu1 %vm1070_vm0, %v12594_v3  ;;  %v8701_v3 = vld [vmem:[%s9000_s12] sm:$0xff] }
0x1c6d   : > { %6626 = vmatprep.mubr.f32.mxu1 %v12591_v54 }
0x1c70   : > { %7290 = vmatmul.mubr.msk.f32.gmra.mxu1 %vm1070_vm0, %v12595_v48 }
0x1c71   : > { %6632 = vmatprep.mubr.f32.mxu1 %v12591_v54 }
0x1c74   : > { %7291 = vmatmul.mubr.msk.f32.gmra.mxu1 %vm1070_vm0, %v12596_v15 }
0x1c75   : > { %6638 = vmatprep.mubr.f32.mxu1 %v12591_v54 }
0x1c78   : > { %7292 = vmatmul.mubr.msk.f32.gmra.mxu1 %vm1070_vm0, %v12597_v63 }
0x1c79   : > { %6644 = vmatprep.mubr.f32.mxu1 %v12591_v54 }
0x1c7c   : > { %7293 = vmatmul.mubr.msk.f32.gmra.mxu1 %vm1070_vm0, %v12598_v51  ;;  %v8702_v51 = vld [vmem:[%s9000_s12 + $0x8] sm:$0xff] }
0x1c7d   : > { %6650 = vmatprep.mubr.f32.mxu1 %v12591_v54 }
0x1c80   : > { %7294 = vmatmul.mubr.msk.f32.gmra.mxu1 %vm1070_vm0, %v12599_v0 }
0x1c81   : > { %6656 = vmatprep.mubr.f32.mxu1 %v12591_v54 }
0x1c84   : > { %7295 = vmatmul.mubr.msk.f32.gmra.mxu1 %vm1070_vm0, %v12600_v34 }
0x1c85   : > { %6662 = vmatprep.mubr.f32.mxu1 %v12591_v54 }
0x1c88   : > { %7296 = vmatmul.mubr.msk.f32.gmra.mxu1 %vm1070_vm0, %v12601_v2  ;;  %v6692_v2 = vpop.permute.xlu1 %6691 }
0x1d0c   : > { %v11997_v32 = vpop.f32.mrf.mxu1 }
0x1d0e   : > { %v6576_v35 = vpop.f32.mrf.mxu1 }
0x1d10   : > { %v6580_v26 = vpop.f32.mrf.mxu1 }
0x1d12   : > { %v6582_v37 = vpop.f32.mrf.mxu1 }
0x1d14   : > { %v6586_v19 = vpop.f32.mrf.mxu1 }
0x1d16   : > { %v6588_v53 = vpop.f32.mrf.mxu1 }
0x1d18   : > { %v6592_v1 = vpop.f32.mrf.mxu1 }
0x1d1a   : > { %v6594_v55 = vpop.f32.mrf.mxu1 }
0x1d1c   : > { %v6598_v21 = vpop.f32.mrf.mxu1 }
0x1d1e   : > { %v6600_v28 = vpop.f32.mrf.mxu1 }
0x1d20   : > { %v6604_v20 = vpop.f32.mrf.mxu1 }
0x1d22   : > { %v6606_v5 = vpop.f32.mrf.mxu1 }
0x1d24   : > { %v6610_v46 = vpop.f32.mrf.mxu1 }
0x1d26   : > { %v6612_v18 = vpop.f32.mrf.mxu1 }
0x1d28   : > { %v6616_v62 = vpop.f32.mrf.mxu1 }
0x1d2a   : > { %v6618_v7 = vpop.f32.mrf.mxu1 }
0x1d2c   : > { %v6622_v24 = vpop.f32.mrf.mxu1 }
0x1d2e   : > { %v6624_v60 = vpop.f32.mrf.mxu1 }
0x1d30   : > { %v6628_v12 = vpop.f32.mrf.mxu1 }
0x1d32   : > { %v6630_v38 = vpop.f32.mrf.mxu1 }
0x1d34   : > { %v6634_v49 = vpop.f32.mrf.mxu1 }
0x1d36   : > { %v6636_v23 = vpop.f32.mrf.mxu1 }
0x1d38   : > { %v6640_v58 = vpop.f32.mrf.mxu1 }
0x1d3a   : > { %v6642_v27 = vpop.f32.mrf.mxu1 }
0x1d3c   : > { %v6646_v57 = vpop.f32.mrf.mxu1 }
0x1d3e   : > { %v6648_v11 = vpop.f32.mrf.mxu1 }
0x1d40   : > { %v6652_v31 = vpop.f32.mrf.mxu1 }
0x1d42   : > { %v6654_v10 = vpop.f32.mrf.mxu1 }
0x1d44   : > { %v6658_v4 = vpop.f32.mrf.mxu1 }
0x1d46   : > { %v6660_v56 = vpop.f32.mrf.mxu1 }
0x1d48   : > { %v6664_v33 = vpop.f32.mrf.mxu1 }
0x1d4a   : > { %v6666_v16 = vpop.f32.mrf.mxu1 }
0x1d4b   : > { %6749 = vmatprep.subr.mxu0 %v6666_v16 }
0x1d4c   : > { %6750 = vmatpush1.msra.mxu0 %v6664_v33 }
0x1d4d   : > { %6751 = vmatprep.subr.mxu0 %v6660_v56 }
0x1d4e   : > { %6752 = vmatpush1.msra.mxu0 %v6658_v4  ;;  %v8708_v4 = vld [vmem:[%s9000_s12 + $0x38] sm:$0xff] }
0x1d4f   : > { %6753 = vmatprep.subr.mxu0 %v6654_v10 }
0x1d50   : > { %6754 = vmatpush1.msra.mxu0 %v6652_v31 }
0x1d51   : > { %6755 = vmatprep.subr.mxu0 %v6648_v11 }
0x1d52   : > { %6756 = vmatpush1.msra.mxu0 %v6646_v57 }
0x1d53   : > { %6757 = vmatprep.subr.mxu0 %v6642_v27  ;;  %v8707_v27 = vld [vmem:[%s9000_s12 + $0x30] sm:$0xff] }
0x1d54   : > { %6758 = vmatpush1.msra.mxu0 %v6640_v58 }
0x1d55   : > { %6759 = vmatprep.subr.mxu0 %v6636_v23 }
0x1d56   : > { %6760 = vmatpush1.msra.mxu0 %v6634_v49 }
0x1d57   : > { %6761 = vmatprep.subr.mxu0 %v6630_v38 }
0x1d58   : > { %6762 = vmatpush1.msra.mxu0 %v6628_v12  ;;  %v8706_v12 = vld [vmem:[%s9000_s12 + $0x28] sm:$0xff] }
0x1d59   : > { %6763 = vmatprep.subr.mxu0 %v6624_v60 }
0x1d5a   : > { %6764 = vmatpush1.msra.mxu0 %v6622_v24 }
0x1d5b   : > { %6765 = vmatprep.subr.mxu0 %v6618_v7  ;;  %v6697_v7 = vpop.permute.xlu1 %6696 }
0x1d5c   : > { %6766 = vmatpush1.msra.mxu0 %v6616_v62 }
0x1d5d   : > { %6767 = vmatprep.subr.mxu0 %v6612_v18 }
0x1d5e   : > { %6768 = vmatpush1.msra.mxu0 %v6610_v46  ;;  %v8705_v46 = vld [vmem:[%s9000_s12 + $0x20] sm:$0xff] }
0x1d5f   : > { %6769 = vmatprep.subr.mxu0 %v6606_v5  ;;  %v6702_v16 = vpop.permute.xlu1 %6701 }
0x1d60   : > { %6770 = vmatpush1.msra.mxu0 %v6604_v20 }
0x1d61   : > { %6771 = vmatprep.subr.mxu0 %v6600_v28 }
0x1d62   : > { %6772 = vmatpush1.msra.mxu0 %v6598_v21 }
0x1d63   : > { %6773 = vmatprep.subr.mxu0 %v6594_v55  ;;  %v8704_v55 = vld [vmem:[%s9000_s12 + $0x18] sm:$0xff] }
0x1d64   : > { %6774 = vmatpush1.msra.mxu0 %v6592_v1 }
0x1d65   : > { %6775 = vmatprep.subr.mxu0 %v6588_v53 }
0x1d66   : > { %6776 = vmatpush1.msra.mxu0 %v6586_v19 }
0x1d67   : > { %6777 = vmatprep.subr.mxu0 %v6582_v37 }
0x1d68   : > { %6778 = vmatpush1.msra.mxu0 %v6580_v26  ;;  %v8703_v26 = vld [vmem:[%s9000_s12 + $0x10] sm:$0xff] }
0x1d69   : > { %6779 = vmatprep.subr.mxu0 %v6576_v35 }
0x1d6a   : > { %6780 = vmatpush1.msra.mxu0 %v11997_v32 }
0x1d6b   : > { %6814 = vmatmul.mubr.f32.vlgmr.msra.gmra.mxu0 %v349_v36 }
0x1d6c   : > { %6819 = vmatprep.mubr.f32.mxu0 %v12591_v54 }
0x1d6f   : > { %6820 = vmatmul.mubr.f32.gmra.mxu0 %v350_v17 }
0x1d70   : > { %6825 = vmatprep.mubr.f32.mxu0 %v12591_v54 }
0x1d73   : > { %6826 = vmatmul.mubr.f32.gmra.mxu0 %v351_v41  ;;  %v8709_v41 = vld [vmem:[%s9000_s12 + $0x40] sm:$0xff] }
0x1d74   : > { %6831 = vmatprep.mubr.f32.mxu0 %v12591_v54 }
0x1d77   : > { %6832 = vmatmul.mubr.f32.gmra.mxu0 %v352_v61 }
0x1d78   : > { %6837 = vmatprep.mubr.f32.mxu0 %v12591_v54 }
0x1d7b   : > { %6838 = vmatmul.mubr.f32.gmra.mxu0 %v353_v9 }
0x1d7c   : > { %6843 = vmatprep.mubr.f32.mxu0 %v12591_v54 }
0x1d7f   : > { %6844 = vmatmul.mubr.f32.gmra.mxu0 %v354_v45 }
0x1d80   : > { %6849 = vmatprep.mubr.f32.mxu0 %v12591_v54 }
0x1d83   : > { %6850 = vmatmul.mubr.f32.gmra.mxu0 %v355_v52 }
0x1d84   : > { %6855 = vmatprep.mubr.f32.mxu0 %v12591_v54 }
0x1d87   : > { %6856 = vmatmul.mubr.f32.gmra.mxu0 %v356_v6  ;;  %v8710_v6 = vld [vmem:[%s9000_s12 + $0x48] sm:$0xff] }
0x1d88   : > { %6861 = vmatprep.mubr.f32.mxu0 %v12591_v54 }
0x1d8b   : > { %6862 = vmatmul.mubr.f32.gmra.mxu0 %v357_v42 }
0x1d8c   : > { %6867 = vmatprep.mubr.f32.mxu0 %v12591_v54 }
0x1d8f   : > { %6868 = vmatmul.mubr.f32.gmra.mxu0 %v358_v25 }
0x1d90   : > { %6873 = vmatprep.mubr.f32.mxu0 %v12591_v54 }
0x1d93   : > { %6874 = vmatmul.mubr.f32.gmra.mxu0 %v359_v39 }
0x1d94   : > { %6879 = vmatprep.mubr.f32.mxu0 %v12591_v54 }
0x1d97   : > { %6880 = vmatmul.mubr.f32.gmra.mxu0 %v360_v59 }
0x1d98   : > { %6885 = vmatprep.mubr.f32.mxu0 %v12591_v54 }
0x1d9b   : > { %6886 = vmatmul.mubr.f32.gmra.mxu0 %v361_v40  ;;  %v8711_v40 = vld [vmem:[%s9000_s12 + $0x50] sm:$0xff] }
0x1d9c   : > { %6891 = vmatprep.mubr.f32.mxu0 %v12591_v54 }
0x1d9f   : > { %6892 = vmatmul.mubr.f32.gmra.mxu0 %v362_v47 }
0x1da0   : > { %6897 = vmatprep.mubr.f32.mxu0 %v12591_v54 }
0x1da3   : > { %6898 = vmatmul.mubr.f32.gmra.mxu0 %v363_v29 }
0x1da4   : > { %6903 = vmatprep.mubr.f32.mxu0 %v12591_v54 }
0x1da7   : > { %6904 = vmatmul.mubr.f32.gmra.mxu0 %v364_v14  ;;  %v6707_v14 = vpop.permute.xlu1 %6706 }
0x1e2b   : > { %v6815_v43 = vpop.f32.mrf.mxu0 }
0x1e2c   : > { %v6816_v13 = vadd.f32 %v6815_v43, %v6672_v8 }
0x1e2d   : > { %v6817_v44 = vpop.f32.mrf.mxu0 }
0x1e2e   : > { %v6910_v48 = vadd.f32 %v8701_v3, %v6816_v13  ;;  %v6818_v15 = vadd.f32 %v6817_v44, %v6672_v8  ;;  %v8713_v3 = vld [vmem:[%s9000_s12 + $0x60] sm:$0xff] }
0x1e2f   : > { %v6821_v63 = vpop.f32.mrf.mxu0 }
0x1e30   : > { %v6942_v54 = vmax.f32 %v6910_v48, 0.0  ;;  %v6911_v0 = vadd.f32 %v8702_v51, %v6818_v15  ;;  %v6822_v34 = vadd.f32 %v6821_v63, %v6677_v50  ;;  %v8714_v51 = vld [vmem:[%s9000_s12 + $0x68] sm:$0xff] }
0x1e31   : > { %v6823_v32 = vpop.f32.mrf.mxu0 }
0x1e32   : > { %6974 = vst [vmem:[%s12020_s15] sm:$0xff] %v6942_v54  ;;  %v6943_v35 = vmax.f32 %v6911_v0, 0.0  ;;  %v6912_v37 = vadd.f32 %v8703_v26, %v6822_v34  ;;  %v6824_v19 = vadd.f32 %v6823_v32, %v6677_v50  ;;  %v8715_v26 = vld [vmem:[%s9000_s12 + $0x70] sm:$0xff] }
0x1e33   : > { %v6827_v53 = vpop.f32.mrf.mxu0 }
0x1e34   : > { %6975 = vst [vmem:[%s12020_s15 + $0x8] sm:$0xff] %v6943_v35  ;;  %v6944_v1 = vmax.f32 %v6912_v37, 0.0  ;;  %v6913_v21 = vadd.f32 %v8704_v55, %v6824_v19  ;;  %v6828_v28 = vadd.f32 %v6827_v53, %v6682_v30  ;;  %v8716_v55 = vld [vmem:[%s9000_s12 + $0x78] sm:$0xff] }
0x1e35   : > { %v6829_v20 = vpop.f32.mrf.mxu0 }
0x1e36   : > { %6976 = vst [vmem:[%s12020_s15 + $0x10] sm:$0xff] %v6944_v1  ;;  %v6945_v5 = vmax.f32 %v6913_v21, 0.0  ;;  %v6914_v18 = vadd.f32 %v8705_v46, %v6828_v28  ;;  %v6830_v62 = vadd.f32 %v6829_v20, %v6682_v30  ;;  %v8717_v46 = vld [vmem:[%s9000_s12 + $0x80] sm:$0xff] }
0x1e37   : > { %v6833_v24 = vpop.f32.mrf.mxu0 }
0x1e38   : > { %6977 = vst [vmem:[%s12020_s15 + $0x18] sm:$0xff] %v6945_v5  ;;  %v6946_v60 = vmax.f32 %v6914_v18, 0.0  ;;  %v6915_v38 = vadd.f32 %v8706_v12, %v6830_v62  ;;  %v6834_v49 = vadd.f32 %v6833_v24, %v6687_v22  ;;  %v8718_v12 = vld [vmem:[%s9000_s12 + $0x88] sm:$0xff] }
0x1e39   : > { %v6835_v23 = vpop.f32.mrf.mxu0 }
0x1e3a   : > { %6978 = vst [vmem:[%s12020_s15 + $0x20] sm:$0xff] %v6946_v60  ;;  %v6947_v58 = vmax.f32 %v6915_v38, 0.0  ;;  %v6916_v57 = vadd.f32 %v8707_v27, %v6834_v49  ;;  %v6836_v11 = vadd.f32 %v6835_v23, %v6687_v22  ;;  %v8712_v22 = vld [vmem:[%s9000_s12 + $0x58] sm:$0xff]  ;;  %v8719_v27 = vld [vmem:[%s9000_s12 + $0x90] sm:$0xff] }
0x1e3b   : > { %v6839_v31 = vpop.f32.mrf.mxu0 }
0x1e3c   : > { %6979 = vst [vmem:[%s12020_s15 + $0x28] sm:$0xff] %v6947_v58  ;;  %v6948_v10 = vmax.f32 %v6916_v57, 0.0  ;;  %v6917_v56 = vadd.f32 %v8708_v4, %v6836_v11  ;;  %v6840_v33 = vadd.f32 %v6839_v31, %v6692_v2  ;;  %v6722_v31 = vpop.permute.xlu0 %6721 }
0x1e3d   : > { %v6841_v36 = vpop.f32.mrf.mxu0 }
0x1e3e   : > { %6980 = vst [vmem:[%s12020_s15 + $0x30] sm:$0xff] %v6948_v10  ;;  %v6949_v17 = vmax.f32 %v6917_v56, 0.0  ;;  %v6918_v61 = vadd.f32 %v8709_v41, %v6840_v33  ;;  %v6842_v9 = vadd.f32 %v6841_v36, %v6692_v2  ;;  %v6712_v2 = vpop.permute.xlu1 %6711  ;;  %v8720_v56 = vld [vmem:[%s9000_s12 + $0x98] sm:$0xff]  ;;  %v8721_v41 = vld [vmem:[%s9000_s12 + $0xa0] sm:$0xff] }
0x1e3f   : > { %v6845_v45 = vpop.f32.mrf.mxu0 }
0x1e40   : > { %6981 = vst [vmem:[%s12020_s15 + $0x38] sm:$0xff] %v6949_v17  ;;  %v6950_v52 = vmax.f32 %v6918_v61, 0.0  ;;  %v6919_v42 = vadd.f32 %v8710_v6, %v6842_v9  ;;  %v6846_v25 = vadd.f32 %v6845_v45, %v6697_v7 }
0x1e41   : > { %v6847_v39 = vpop.f32.mrf.mxu0 }
0x1e42   : > { %6982 = vst [vmem:[%s12020_s15 + $0x40] sm:$0xff] %v6950_v52  ;;  %v6951_v59 = vmax.f32 %v6919_v42, 0.0  ;;  %v6920_v47 = vadd.f32 %v8711_v40, %v6846_v25  ;;  %v6848_v29 = vadd.f32 %v6847_v39, %v6697_v7  ;;  %v6717_v7 = vpop.permute.xlu1 %6716  ;;  %v8722_v42 = vld [vmem:[%s9000_s12 + $0xa8] sm:$0xff] }
0x1e43   : > { %v6851_v50 = vpop.f32.mrf.mxu0 }
0x1e44   : > { %6983 = vst [vmem:[%s12020_s15 + $0x48] sm:$0xff] %v6951_v59  ;;  %v6952_v30 = vmax.f32 %v6920_v47, 0.0  ;;  %v6921_v8 = vadd.f32 %v8712_v22, %v6848_v29  ;;  %v6852_v43 = vadd.f32 %v6851_v50, %v6702_v16  ;;  %v8723_v47 = vld [vmem:[%s9000_s12 + $0xb0] sm:$0xff]  ;;  %v6732_v50 = vpop.permute.xlu0 %6731 }
0x1e45   : > { %v6853_v13 = vpop.f32.mrf.mxu0 }
0x1e46   : > { %6984 = vst [vmem:[%s12020_s15 + $0x50] sm:$0xff] %v6952_v30  ;;  %v6953_v44 = vmax.f32 %v6921_v8, 0.0  ;;  %v6922_v48 = vadd.f32 %v8713_v3, %v6852_v43  ;;  %v6854_v15 = vadd.f32 %v6853_v13, %v6702_v16  ;;  %v6727_v45 = vpop.permute.xlu1 %6726  ;;  %v8724_v8 = vld [vmem:[%s9000_s12 + $0xb8] sm:$0xff] }
0x1e47   : > { %v6857_v63 = vpop.f32.mrf.mxu0 }
0x1e48   : > { %6985 = vst [vmem:[%s12020_s15 + $0x58] sm:$0xff] %v6953_v44  ;;  %v6954_v54 = vmax.f32 %v6922_v48, 0.0  ;;  %v6923_v0 = vadd.f32 %v8714_v51, %v6854_v15  ;;  %v6858_v34 = vadd.f32 %v6857_v63, %v6707_v14  ;;  %v8725_v48 = vld [vmem:[%s9000_s12 + $0xc0] sm:$0xff] }
0x1e49   : > { %v6859_v32 = vpop.f32.mrf.mxu0 }
0x1e4a   : > { %6986 = vst [vmem:[%s12020_s15 + $0x60] sm:$0xff] %v6954_v54  ;;  %v6955_v35 = vmax.f32 %v6923_v0, 0.0  ;;  %v6924_v37 = vadd.f32 %v8715_v26, %v6858_v34  ;;  %v6860_v19 = vadd.f32 %v6859_v32, %v6707_v14  ;;  %v6737_v54 = vpop.permute.xlu1 %6736  ;;  %v8726_v34 = vld [vmem:[%s9000_s12 + $0xc8] sm:$0xff] }
0x1e4b   : > { %v6863_v53 = vpop.f32.mrf.mxu0 }
0x1e4c   : > { %6987 = vst [vmem:[%s12020_s15 + $0x68] sm:$0xff] %v6955_v35  ;;  %v6956_v1 = vmax.f32 %v6924_v37, 0.0  ;;  %v6925_v21 = vadd.f32 %v8716_v55, %v6860_v19  ;;  %v6864_v28 = vadd.f32 %v6863_v53, %v6712_v2  ;;  %v8727_v37 = vld [vmem:[%s9000_s12 + $0xd0] sm:$0xff] }
0x1e4d   : > { %v6865_v20 = vpop.f32.mrf.mxu0 }
0x1e4e   : > { %6988 = vst [vmem:[%s12020_s15 + $0x70] sm:$0xff] %v6956_v1  ;;  %v6957_v5 = vmax.f32 %v6925_v21, 0.0  ;;  %v6926_v18 = vadd.f32 %v8717_v46, %v6864_v28  ;;  %v6866_v62 = vadd.f32 %v6865_v20, %v6712_v2  ;;  %v6742_v1 = vpop.permute.xlu0 %6741  ;;  %v8728_v28 = vld [vmem:[%s9000_s12 + $0xd8] sm:$0xff] }
0x1e4f   : > { %v6869_v24 = vpop.f32.mrf.mxu0 }
0x1e50   : > { %6989 = vst [vmem:[%s12020_s15 + $0x78] sm:$0xff] %v6957_v5  ;;  %v6958_v60 = vmax.f32 %v6926_v18, 0.0  ;;  %v6927_v38 = vadd.f32 %v8718_v12, %v6866_v62  ;;  %v6870_v49 = vadd.f32 %v6869_v24, %v6717_v7  ;;  %v8729_v62 = vld [vmem:[%s9000_s12 + $0xe0] sm:$0xff] }
0x1e51   : > { %v6871_v23 = vpop.f32.mrf.mxu0 }
0x1e52   : > { %6990 = vst [vmem:[%s12020_s15 + $0x80] sm:$0xff] %v6958_v60  ;;  %v6959_v58 = vmax.f32 %v6927_v38, 0.0  ;;  %v6928_v57 = vadd.f32 %v8719_v27, %v6870_v49  ;;  %v6872_v11 = vadd.f32 %v6871_v23, %v6717_v7  ;;  %v6747_v60 = vpop.permute.xlu1 %6746  ;;  %v8730_v49 = vld [vmem:[%s9000_s12 + $0xe8] sm:$0xff] }
0x1e53   : > { %v6875_v10 = vpop.f32.mrf.mxu0 }
0x1e54   : > { %6991 = vst [vmem:[%s12020_s15 + $0x88] sm:$0xff] %v6959_v58  ;;  %v6960_v4 = vmax.f32 %v6928_v57, 0.0  ;;  %v6929_v33 = vadd.f32 %v8720_v56, %v6872_v11  ;;  %v6876_v16 = vadd.f32 %v6875_v10, %v6722_v31  ;;  %v8731_v11 = vld [vmem:[%s9000_s12 + $0xf0] sm:$0xff]  ;;  %v8732_v56 = vld [vmem:[%s9000_s12 + $0xf8] sm:$0xff]  ;;  %s8861_s12 = smov [#allocation7]  }
0x1e55   : > { %v6877_v36 = vpop.f32.mrf.mxu0  ;;  %s8789_s28 = sshll.u32 %s8861_s12, 4  ;;  %s8790_s28 = int_to_ptr.vmem [resolvable:$false] %s8789_s28 }
0x1e56   : > { %6992 = vst [vmem:[%s12020_s15 + $0x90] sm:$0xff] %v6960_v4  ;;  %v6961_v17 = vmax.f32 %v6929_v33, 0.0  ;;  %v6930_v61 = vadd.f32 %v8721_v41, %v6876_v16  ;;  %v6878_v9 = vadd.f32 %v6877_v36, %v6722_v31  ;;  %s8791_s29 = scalar_lea.vmem %s8790_s28, 8192  ;;  %p8792_p11 = scmp.lt.s32.totalorder %s12089_s17, %s8790_s28 }
0x1e57   : > { %v6881_v52 = vpop.f32.mrf.mxu0  ;;  %p8793_p0 = scmp.lt.s32.totalorder %s8791_s29, %s8785_s26 }
0x1e58   : > { %6993 = vst [vmem:[%s12020_s15 + $0x98] sm:$0xff] %v6961_v17  ;;  %v6962_v6 = vmax.f32 %v6930_v61, 0.0  ;;  %v6931_v25 = vadd.f32 %v8722_v42, %v6878_v9  ;;  %v6882_v39 = vadd.f32 %v6881_v52, %v6727_v45 }
0x1e59   : > { %v6883_v59 = vpop.f32.mrf.mxu0  ;;  %p8794_p1 = por %p8793_p0, %p8792_p11 }
0x1e5a   : > { %6994 = vst [vmem:[%s12020_s15 + $0xa0] sm:$0xff] %v6962_v6  ;;  %v6963_v40 = vmax.f32 %v6931_v25, 0.0  ;;  %v6932_v29 = vadd.f32 %v8723_v47, %v6882_v39  ;;  %v6884_v14 = vadd.f32 %v6883_v59, %v6727_v45 }
0x1e5b   : > { %v6887_v30 = vpop.f32.mrf.mxu0  ;;  %p8795_p3 = pnand %p8794_p1, %p8788_p8 }
0x1e5c   : > { %6995 = vst [vmem:[%s12020_s15 + $0xa8] sm:$0xff] %v6963_v40  ;;  %v6964_v22 = vmax.f32 %v6932_v29, 0.0  ;;  %v6933_v43 = vadd.f32 %v8724_v8, %v6884_v14  ;;  %v6888_v13 = vadd.f32 %v6887_v30, %v6732_v50 }
0x1e5d   : > { %v6889_v44 = vpop.f32.mrf.mxu0 }
0x1e5e   : > { %6996 = vst [vmem:[%s12020_s15 + $0xb0] sm:$0xff] %v6964_v22  ;;  %v6965_v3 = vmax.f32 %v6933_v43, 0.0  ;;  %v6934_v15 = vadd.f32 %v8725_v48, %v6888_v13  ;;  %v6890_v63 = vadd.f32 %v6889_v44, %v6732_v50 }
0x1e5f   : > { %v6893_v51 = vpop.f32.mrf.mxu0 }
0x1e60   : > { %6997 = vst [vmem:[%s12020_s15 + $0xb8] sm:$0xff] %v6965_v3  ;;  %v6966_v0 = vmax.f32 %v6934_v15, 0.0  ;;  %v6935_v2 = vadd.f32 %v8726_v34, %v6890_v63  ;;  %v6894_v32 = vadd.f32 %v6893_v51, %v6737_v54 }
0x1e61   : > { %v6895_v35 = vpop.f32.mrf.mxu0 }
0x1e62   : > { %6998 = vst [vmem:[%s12020_s15 + $0xc0] sm:$0xff] %v6966_v0  ;;  %v6967_v26 = vmax.f32 %v6935_v2, 0.0  ;;  %v6936_v19 = vadd.f32 %v8727_v37, %v6894_v32  ;;  %v6896_v53 = vadd.f32 %v6895_v35, %v6737_v54 }
0x1e63   : > { %v6899_v55 = vpop.f32.mrf.mxu0 }
0x1e64   : > { %6999 = vst [vmem:[%s12020_s15 + $0xc8] sm:$0xff] %v6967_v26  ;;  %v6968_v21 = vmax.f32 %v6936_v19, 0.0  ;;  %v6937_v20 = vadd.f32 %v8728_v28, %v6896_v53  ;;  %v6900_v5 = vadd.f32 %v6899_v55, %v6742_v1 }
0x1e65   : > { %v6901_v46 = vpop.f32.mrf.mxu0 }
0x1e66   : > { %7000 = vst [vmem:[%s12020_s15 + $0xd0] sm:$0xff] %v6968_v21  ;;  %v6969_v18 = vmax.f32 %v6937_v20, 0.0  ;;  %v6938_v7 = vadd.f32 %v8729_v62, %v6900_v5  ;;  %v6902_v24 = vadd.f32 %v6901_v46, %v6742_v1 }
0x1e67   : > { %v6905_v12 = vpop.f32.mrf.mxu0 }
0x1e68   : > { %7001 = vst [vmem:[%s12020_s15 + $0xd8] sm:$0xff] %v6969_v18  ;;  %v6970_v38 = vmax.f32 %v6938_v7, 0.0  ;;  %v6939_v23 = vadd.f32 %v8730_v49, %v6902_v24  ;;  %v6906_v58 = vadd.f32 %v6905_v12, %v6747_v60 }
0x1e69   : > { %v6907_v27 = vpop.f32.mrf.mxu0 }
0x1e6a   : > { %7002 = vst [vmem:[%s12020_s15 + $0xe0] sm:$0xff] %v6970_v38  ;;  %v6971_v57 = vmax.f32 %v6939_v23, 0.0  ;;  %v6940_v31 = vadd.f32 %v8731_v11, %v6906_v58  ;;  %v6908_v10 = vadd.f32 %v6907_v27, %v6747_v60 }
0x1e6c   : > { %7003 = vst [vmem:[%s12020_s15 + $0xe8] sm:$0xff] %v6971_v57  ;;  %v6972_v4 = vmax.f32 %v6940_v31, 0.0  ;;  %v6941_v33 = vadd.f32 %v8732_v56, %v6908_v10 }
0x1e6e   : > { %7004 = vst [vmem:[%s12020_s15 + $0xf0] sm:$0xff] %v6972_v4  ;;  %v6973_v16 = vmax.f32 %v6941_v33, 0.0 }
0x1e70   : > { %7005 = vst [vmem:[%s12020_s15 + $0xf8] sm:$0xff] %v6973_v16 }
0x1e71   : > { %8798 = shalt.err (!%p8795_p3)
}
0x1e72   : > { %s8799_s9 = scalar_lea.hbm %s12087_s20, 4096  ;;  %s8803_s13 = scalar_lea.hbm %s12141_s6, 8192 }
0x1e73   : > { %p8800_p2 = scmp.ne.s32.totalorder %s12087_s20, %s8799_s9  ;;  %p8804_p7 = scmp.lt.s32.totalorder %s12087_s20, %s12141_s6 }
0x1e74   : > { %p8805_p6 = scmp.lt.s32.totalorder %s8803_s13, %s8799_s9 }
0x1e75   : > { %p8801_p4 = pnand %p8800_p2, %p8937_p5 }
0x1e76   : > { %p8806_p9 = por %p8805_p6, %p8804_p7 }
0x1e77   : > { %p8802_p13 = pneg %p8801_p4 }
0x1e79   : > { %p8807_p10 = pnand %p8806_p9, %p8802_p13 }
0x1e7b   : > { %8810 = shalt.err (!%p8807_p10)
}
0x1e7c   : > { %s8862_s16 = smov 256   ;;  %s8863_s18 = smov 16  }
0x1e7d   : > { %8173 = dma.vmem_to_hbm [thread:$0]  (%p8937_p5), %s12089_s17, 4096, %s12087_s20, %s12095_s25, %s8862_s16, %s8862_s16, %s8863_s18  }
0x1e7e PF: > { %p8190_p12 = scmp.ge.s32.totalorder %s8853_s24, 2  ;;  %s7035_s19 = sand.u32 1, %s8841_s21  }
0x1e7f   : > { %p12602_p8 = scmp.ne.s32.totalorder %s12364_s8, 0  ;;  %s7036_s26 = scalar_lea.sflag [#allocation4], %s7035_s19 }
0x1e81   : > { %p8183_p11 = pnand %p8190_p12, %p12602_p8 }
0x1e83   : > { %p8184_p0 = pneg %p8183_p11 }
0x1e85   : > { %8836 = dma.done.wait (%p8184_p0), %s7036_s26, 4096  }
0x1e86   : > { %8838 = vsyncadd (%p8184_p0), %s7036_s26, 4294963200  ;;  %p18_p1 = scmp.ge.s32.totalorder %s8924_s27, 4   ;;  %s12603_s21 = smov %s8845_s22 }
0x1e87   : > { %s12604_s22 = smov %s8849_s23  ;;  %s12605_s23 = smov %s8935_s30 }
0x1e88   : > { %s12606_s24 = smov %s8924_s27  ;;  %20 = sbr.rel (!%p18_p1) target bundleno = 5 (0x5), region = 91 }
0x1e8d   :  { %7041 = vsyncpa [#allocation3], 1 }
0x1e8e   :  { %7043 = vsyncpa [#allocation3 + $0x1], 1 }
0x1e8f   :  { %7044 = vsyncpa [#allocation6], 1 }
0x1e90   :  { %7045 = vsyncpa [#allocation4], 1 }
0x1e91   :  { %7047 = vsyncpa [#allocation4 + $0x1], 1 }

</bundles_post_ra>
